<compile_context>
chip_gen: v5e
topology: v5e:2x2
jax: 0.10.0
libtpu: 0.0.40
codegen_flags: <defaults>
</compile_context>

<pallas_src>
import jax
import jax.numpy as jnp
from jax import lax
from jax.experimental import pallas as pl
from jax.experimental.pallas import tpu as pltpu


def rnn_attn_kernel(x_ref,        # (T*B, F)    bf16, time-major rows (t*B + b)
                    wih_ref,      # (F, 6H)     bf16  [f_r f_z f_n b_r b_z b_n]
                    gib_ref,      # (1, 6H)     f32   pre-folded gi biases
                    whh_ref,      # (6, H, H)   bf16  per-gate hidden weights
                    bhn_ref,      # (2, 1, H)   f32   b_hn (fwd, bwd)
                    attn_ref,     # (2, 1, H)   f32   attention weight halves
                    fcw_ref,      # (2, H, O)   bf16  fc weight halves
                    fcb_ref,      # (1, O)      f32
                    out_ref,      # (B, O)      f32
                    gi_scr,       # (6, T*B, H) f32   hoisted gate inputs
                    h_scr,        # (2, T, B, H) f32  hidden history (fwd, bwd)
                    sc_scr):      # (2, T, B, 1) f32  attention scores (fwd, bwd)
    H = whh_ref.shape[1]
    T = h_scr.shape[1]
    B = h_scr.shape[2]

    # ---- hoisted input projection: one MXU op for all timesteps / both dirs ----
    gi_all = (jnp.dot(x_ref[...], wih_ref[...],
                      preferred_element_type=jnp.float32)
              + gib_ref[...])                          # (T*B, 6H) f32
    for k in range(6):                                 # one-time lane split, off the chain
        gi_scr[k] = gi_all[:, k * H:(k + 1) * H]

    # per-gate hidden weights (bf16) and leftover f32 vectors
    wf = (whh_ref[0], whh_ref[1], whh_ref[2])          # fwd: r, z, n
    wb = (whh_ref[3], whh_ref[4], whh_ref[5])          # bwd: r, z, n
    bn_f, bn_b = bhn_ref[0], bhn_ref[1]                # (1, H)
    wa_f, wa_b = attn_ref[0], attn_ref[1]              # (1, H)

    def gru_cell(h, gi_r, gi_z, gi_n, w, b_n):
        # PyTorch GRU cell, gate order [r, z, n]; r/z biases are pre-folded into gi.
        hb = h.astype(jnp.bfloat16)
        gh_r = jnp.dot(hb, w[0], preferred_element_type=jnp.float32)
        gh_z = jnp.dot(hb, w[1], preferred_element_type=jnp.float32)
        gh_n = jnp.dot(hb, w[2], preferred_element_type=jnp.float32)
        r = jax.nn.sigmoid(gi_r + gh_r)
        z = jax.nn.sigmoid(gi_z + gh_z)
        n = jnp.tanh(gi_n + r * (gh_n + b_n))
        return (1.0 - z) * n + z * h

    h_f = jnp.zeros((B, H), jnp.float32)
    h_b = jnp.zeros((B, H), jnp.float32)

    # ---- fused fwd/bwd recurrence, fully unrolled (static indices everywhere) ----
    for i in range(T):
        tb = T - 1 - i
        lo_f, lo_b = i * B, tb * B
        h_f = gru_cell(h_f,
                       gi_scr[0, lo_f:lo_f + B, :],
                       gi_scr[1, lo_f:lo_f + B, :],
                       gi_scr[2, lo_f:lo_f + B, :],
                       wf, bn_f)
        h_b = gru_cell(h_b,
                       gi_scr[3, lo_b:lo_b + B, :],
                       gi_scr[4, lo_b:lo_b + B, :],
                       gi_scr[5, lo_b:lo_b + B, :],
                       wb, bn_b)
        h_scr[0, i] = h_f
        h_scr[1, tb] = h_b
        # attention scores accumulated in-loop (hidden under the matmul chain)
        sc_scr[0, i] = jnp.sum(h_f * wa_f, axis=-1, keepdims=True)
        sc_scr[1, tb] = jnp.sum(h_b * wa_b, axis=-1, keepdims=True)

    # ---- epilogue: softmax over seq, weighted sum, FC ----
    scores = sc_scr[0] + sc_scr[1]                     # (T, B, 1)
    m = jnp.max(scores, axis=0, keepdims=True)
    e = jnp.exp(scores - m)
    w_attn = e * pl.reciprocal(jnp.sum(e, axis=0, keepdims=True), approx=True)

    ctx_f = jnp.sum(w_attn * h_scr[0], axis=0)         # (B, H)
    ctx_b = jnp.sum(w_attn * h_scr[1], axis=0)         # (B, H)

    out = (jnp.dot(ctx_f.astype(jnp.bfloat16), fcw_ref[0],
                   preferred_element_type=jnp.float32)
           + jnp.dot(ctx_b.astype(jnp.bfloat16), fcw_ref[1],
                     preferred_element_type=jnp.float32)
           + fcb_ref[...])
    out_ref[...] = out


def init_params(key, input_size, hidden_size, output_size):
    F, H, O = input_size, hidden_size, output_size
    k = 1.0 / jnp.sqrt(jnp.float32(H))
    ks = jax.random.split(key, 12)
    u = lambda kk, shape, s: jax.random.uniform(kk, shape, jnp.float32, -s, s)
    return dict(
        input_size=F, hidden_size=H, output_size=O,
        # GRU weights stored pre-transposed: (in, 3H) / (H, 3H); biases as (1, 3H)
        wih_f=u(ks[0], (F, 3 * H), k), whh_f=u(ks[1], (H, 3 * H), k),
        bih_f=u(ks[2], (1, 3 * H), k), bhh_f=u(ks[3], (1, 3 * H), k),
        wih_b=u(ks[4], (F, 3 * H), k), whh_b=u(ks[5], (H, 3 * H), k),
        bih_b=u(ks[6], (1, 3 * H), k), bhh_b=u(ks[7], (1, 3 * H), k),
        attn_w=u(ks[8], (1, 2 * H), 1.0 / jnp.sqrt(jnp.float32(2 * H))),
        fc_w=u(ks[9], (2 * H, O), 1.0 / jnp.sqrt(jnp.float32(2 * H))),
        fc_b=u(ks[10], (1, O), 1.0 / jnp.sqrt(jnp.float32(2 * H))),
    )


def pack_params(p):
    """Repack natural (PyTorch-like) params into the kernel's layout."""
    H, O = p["hidden_size"], p["output_size"]

    def split3(w):  # (X, 3H) -> r, z, n, each (X, H)
        return w[:, :H], w[:, H:2 * H], w[:, 2 * H:]

    ir_f, iz_f, in_f = split3(p["wih_f"])
    ir_b, iz_b, in_b = split3(p["wih_b"])
    hr_f, hz_f, hn_f = split3(p["whh_f"])
    hr_b, hz_b, hn_b = split3(p["whh_b"])
    bir_f, biz_f, bin_f = split3(p["bih_f"])
    bir_b, biz_b, bin_b = split3(p["bih_b"])
    bhr_f, bhz_f, bhn_f = split3(p["bhh_f"])
    bhr_b, bhz_b, bhn_b = split3(p["bhh_b"])

    wih_all = jnp.concatenate([ir_f, iz_f, in_f, ir_b, iz_b, in_b],
                              axis=1).astype(jnp.bfloat16)            # (F, 6H)
    gi_bias = jnp.concatenate([bir_f + bhr_f, biz_f + bhz_f, bin_f,
                               bir_b + bhr_b, biz_b + bhz_b, bin_b],
                              axis=1)                                  # (1, 6H) f32
    whh_stack = jnp.stack([hr_f, hz_f, hn_f, hr_b, hz_b, hn_b],
                          axis=0).astype(jnp.bfloat16)                 # (6, H, H)
    bhn = jnp.stack([bhn_f, bhn_b], axis=0)                            # (2, 1, H) f32
    attn = p["attn_w"].reshape(2, 1, H)                                # (2, 1, H) f32
    fcw = p["fc_w"].reshape(2, H, O).astype(jnp.bfloat16)              # (2, H, O)
    return dict(wih_all=wih_all, gi_bias=gi_bias, whh_stack=whh_stack,
                bhn=bhn, attn=attn, fcw=fcw, fcb=p["fc_b"])


def rnn_attn_forward(X, p):
    B = X.shape[0]
    F, H, O = p["input_size"], p["hidden_size"], p["output_size"]
    # X.permute(0,2,3,1).reshape(B, input_size, -1)  (requires C*H*W == input_size**2)
    Xp = jnp.transpose(X, (0, 2, 3, 1)).reshape(B, F, -1)
    assert Xp.shape[-1] == F, "C*H*W must equal input_size**2 (as in the torch module)"
    T = F
    # time-major rows (t, b); permute + reshape + transpose + cast fuse into one XLA copy
    x2d = jnp.transpose(Xp, (1, 0, 2)).reshape(T * B, F).astype(jnp.bfloat16)

    kp = pack_params(p)
    vmem = pl.BlockSpec(memory_space=pltpu.MemorySpace.VMEM)
    return pl.pallas_call(
        rnn_attn_kernel,
        out_shape=jax.ShapeDtypeStruct((B, O), jnp.float32),
        in_specs=[vmem] * 8,
        out_specs=vmem,
        scratch_shapes=[pltpu.VMEM((6, T * B, H), jnp.float32),
                        pltpu.VMEM((2, T, B, H), jnp.float32),
                        pltpu.VMEM((2, T, B, 1), jnp.float32)],
    )(x2d, kp["wih_all"], kp["gi_bias"], kp["whh_stack"],
      kp["bhn"], kp["attn"], kp["fcw"], kp["fcb"])


# ---- pure-JAX f32 reference (mirrors the PyTorch module) ----
def _ref_gru_dir(x_tbf, wih, whh, bih, bhh):
    H = whh.shape[0]

    def step(h, x_t):
        gi = x_t @ wih + bih
        gh = h @ whh + bhh
        r = jax.nn.sigmoid(gi[:, :H] + gh[:, :H])
        z = jax.nn.sigmoid(gi[:, H:2 * H] + gh[:, H:2 * H])
        n = jnp.tanh(gi[:, 2 * H:] + r * gh[:, 2 * H:])
        h_new = (1.0 - z) * n + z * h
        return h_new, h_new

    _, hs = lax.scan(step, jnp.zeros((x_tbf.shape[1], H), jnp.float32), x_tbf)
    return hs  # (T, B, H)


def rnn_attn_reference(X, p):
    B = X.shape[0]
    F, H = p["input_size"], p["hidden_size"]
    Xp = jnp.transpose(X, (0, 2, 3, 1)).reshape(B, F, -1).astype(jnp.float32)
    x_tbf = jnp.transpose(Xp, (1, 0, 2))
    hf = _ref_gru_dir(x_tbf, p["wih_f"], p["whh_f"], p["bih_f"], p["bhh_f"])
    hb = _ref_gru_dir(x_tbf[::-1], p["wih_b"], p["whh_b"], p["bih_b"], p["bhh_b"])[::-1]
    out = jnp.concatenate([hf, hb], axis=-1)            # (T, B, 2H)
    scores = jnp.einsum("tbh,h->tb", out, p["attn_w"][0])
    w = jax.nn.softmax(scores, axis=0)
    ctx = jnp.sum(w[:, :, None] * out, axis=0)          # (B, 2H)
    return ctx @ p["fc_w"] + p["fc_b"][0]


if __name__ == "__main__":
    # small, consistent shapes: C*H*W == input_size**2  (4*8*8 = 256 = 16**2)
    B, C, Hs, Ws = 2, 4, 8, 8
    input_size, hidden_size, output_size = 16, 32, 8

    key = jax.random.PRNGKey(0)
    kx, kparam = jax.random.split(key)
    X = jax.random.normal(kx, (B, C, Hs, Ws), jnp.float32)
    params = init_params(kparam, input_size, hidden_size, output_size)

    y = jax.block_until_ready(rnn_attn_forward(X, params))
    y_ref = jax.block_until_ready(rnn_attn_reference(X, params))

    assert y.shape == (B, output_size)
    max_diff = float(jnp.max(jnp.abs(y - y_ref)))
    # kernel uses bf16 matmul inputs (f32 accumulate/carry) vs. the f32 reference,
    # so allow a loose-but-structural tolerance.
    assert max_diff < 5e-2, f"max abs diff {max_diff}"

    # TODO(synk): the torch module's debug `print(weight.shape)` calls are intentionally omitted.
    print("KERNEL_OK")
</pallas_src>

<mosaic_0001>
module attributes {stable_mosaic.version = 11 : i64} {
  func.func @rnn_attn_kernel(%arg0: memref<32x16xbf16, #tpu.memory_space<vmem>>, %arg1: memref<16x192xbf16, #tpu.memory_space<vmem>>, %arg2: memref<1x192xf32, #tpu.memory_space<vmem>>, %arg3: memref<6x32x32xbf16, #tpu.memory_space<vmem>>, %arg4: memref<2x1x32xf32, #tpu.memory_space<vmem>>, %arg5: memref<2x1x32xf32, #tpu.memory_space<vmem>>, %arg6: memref<2x32x8xbf16, #tpu.memory_space<vmem>>, %arg7: memref<1x8xf32, #tpu.memory_space<vmem>>, %arg8: memref<2x8xf32, #tpu.memory_space<vmem>>, %arg9: memref<6x32x32xf32, #tpu.memory_space<vmem>>, %arg10: memref<2x16x2x32xf32, #tpu.memory_space<vmem>>, %arg11: memref<2x16x2x1xf32, #tpu.memory_space<vmem>>) attributes {dimension_semantics = [], scalar_prefetch = 0 : i64, scratch_operands = 3 : i64, tpu.core_type = #tpu.core_type<tc>} {
    %c0 = arith.constant 0 : index
    %c0_0 = arith.constant 0 : index
    %0 = vector.load %arg0[%c0, %c0_0] : memref<32x16xbf16, #tpu.memory_space<vmem>>, vector<32x16xbf16>
    %c0_1 = arith.constant 0 : index
    %c0_2 = arith.constant 0 : index
    %1 = vector.load %arg1[%c0_1, %c0_2] : memref<16x192xbf16, #tpu.memory_space<vmem>>, vector<16x192xbf16>
    %cst = arith.constant dense<0.000000e+00> : vector<32x192xf32>
    %2 = tpu.matmul %0, %1, %cst {dimension_numbers = #tpu.dot_dimension_numbers<[1], [0], [0], [1], [0, 0, 1, 1], [], []>} : vector<32x16xbf16>, vector<16x192xbf16>, vector<32x192xf32> -> vector<32x192xf32>
    %c0_3 = arith.constant 0 : index
    %c0_4 = arith.constant 0 : index
    %3 = vector.load %arg2[%c0_3, %c0_4] : memref<1x192xf32, #tpu.memory_space<vmem>>, vector<1x192xf32>
    %4 = vector.broadcast %3 : vector<1x192xf32> to vector<32x192xf32>
    %5 = arith.addf %2, %4 : vector<32x192xf32>
    %6 = vector.extract_strided_slice %5 {offsets = [0, 0], sizes = [32, 32], strides = [1, 1]} : vector<32x192xf32> to vector<32x32xf32>
    %c0_5 = arith.constant 0 : index
    %c0_6 = arith.constant 0 : index
    %c0_7 = arith.constant 0 : index
    %7 = vector.load %arg9[%c0_5, %c0_6, %c0_7] : memref<6x32x32xf32, #tpu.memory_space<vmem>>, vector<1x32x32xf32>
    %8 = vector.shape_cast %7 : vector<1x32x32xf32> to vector<32x32xf32>
    %9 = vector.shape_cast %6 : vector<32x32xf32> to vector<1x32x32xf32>
    tpu.vector_store %arg9[%c0_5, %c0_6, %c0_7], %9 {strides = array<i32>} : memref<6x32x32xf32, #tpu.memory_space<vmem>>, vector<1x32x32xf32>,
    %10 = vector.extract_strided_slice %5 {offsets = [0, 32], sizes = [32, 32], strides = [1, 1]} : vector<32x192xf32> to vector<32x32xf32>
    %c1 = arith.constant 1 : index
    %c0_8 = arith.constant 0 : index
    %c0_9 = arith.constant 0 : index
    %11 = vector.load %arg9[%c1, %c0_8, %c0_9] : memref<6x32x32xf32, #tpu.memory_space<vmem>>, vector<1x32x32xf32>
    %12 = vector.shape_cast %11 : vector<1x32x32xf32> to vector<32x32xf32>
    %13 = vector.shape_cast %10 : vector<32x32xf32> to vector<1x32x32xf32>
    tpu.vector_store %arg9[%c1, %c0_8, %c0_9], %13 {strides = array<i32>} : memref<6x32x32xf32, #tpu.memory_space<vmem>>, vector<1x32x32xf32>,
    %14 = vector.extract_strided_slice %5 {offsets = [0, 64], sizes = [32, 32], strides = [1, 1]} : vector<32x192xf32> to vector<32x32xf32>
    %c2 = arith.constant 2 : index
    %c0_10 = arith.constant 0 : index
    %c0_11 = arith.constant 0 : index
    %15 = vector.load %arg9[%c2, %c0_10, %c0_11] : memref<6x32x32xf32, #tpu.memory_space<vmem>>, vector<1x32x32xf32>
    %16 = vector.shape_cast %15 : vector<1x32x32xf32> to vector<32x32xf32>
    %17 = vector.shape_cast %14 : vector<32x32xf32> to vector<1x32x32xf32>
    tpu.vector_store %arg9[%c2, %c0_10, %c0_11], %17 {strides = array<i32>} : memref<6x32x32xf32, #tpu.memory_space<vmem>>, vector<1x32x32xf32>,
    %18 = vector.extract_strided_slice %5 {offsets = [0, 96], sizes = [32, 32], strides = [1, 1]} : vector<32x192xf32> to vector<32x32xf32>
    %c3 = arith.constant 3 : index
    %c0_12 = arith.constant 0 : index
    %c0_13 = arith.constant 0 : index
    %19 = vector.load %arg9[%c3, %c0_12, %c0_13] : memref<6x32x32xf32, #tpu.memory_space<vmem>>, vector<1x32x32xf32>
    %20 = vector.shape_cast %19 : vector<1x32x32xf32> to vector<32x32xf32>
    %21 = vector.shape_cast %18 : vector<32x32xf32> to vector<1x32x32xf32>
    tpu.vector_store %arg9[%c3, %c0_12, %c0_13], %21 {strides = array<i32>} : memref<6x32x32xf32, #tpu.memory_space<vmem>>, vector<1x32x32xf32>,
    %22 = vector.extract_strided_slice %5 {offsets = [0, 128], sizes = [32, 32], strides = [1, 1]} : vector<32x192xf32> to vector<32x32xf32>
    %c4 = arith.constant 4 : index
    %c0_14 = arith.constant 0 : index
    %c0_15 = arith.constant 0 : index
    %23 = vector.load %arg9[%c4, %c0_14, %c0_15] : memref<6x32x32xf32, #tpu.memory_space<vmem>>, vector<1x32x32xf32>
    %24 = vector.shape_cast %23 : vector<1x32x32xf32> to vector<32x32xf32>
    %25 = vector.shape_cast %22 : vector<32x32xf32> to vector<1x32x32xf32>
    tpu.vector_store %arg9[%c4, %c0_14, %c0_15], %25 {strides = array<i32>} : memref<6x32x32xf32, #tpu.memory_space<vmem>>, vector<1x32x32xf32>,
    %26 = vector.extract_strided_slice %5 {offsets = [0, 160], sizes = [32, 32], strides = [1, 1]} : vector<32x192xf32> to vector<32x32xf32>
    %c5 = arith.constant 5 : index
    %c0_16 = arith.constant 0 : index
    %c0_17 = arith.constant 0 : index
    %27 = vector.load %arg9[%c5, %c0_16, %c0_17] : memref<6x32x32xf32, #tpu.memory_space<vmem>>, vector<1x32x32xf32>
    %28 = vector.shape_cast %27 : vector<1x32x32xf32> to vector<32x32xf32>
    %29 = vector.shape_cast %26 : vector<32x32xf32> to vector<1x32x32xf32>
    tpu.vector_store %arg9[%c5, %c0_16, %c0_17], %29 {strides = array<i32>} : memref<6x32x32xf32, #tpu.memory_space<vmem>>, vector<1x32x32xf32>,
    %c0_18 = arith.constant 0 : index
    %c0_19 = arith.constant 0 : index
    %c0_20 = arith.constant 0 : index
    %30 = vector.load %arg3[%c0_18, %c0_19, %c0_20] : memref<6x32x32xbf16, #tpu.memory_space<vmem>>, vector<1x32x32xbf16>
    %31 = vector.shape_cast %30 : vector<1x32x32xbf16> to vector<32x32xbf16>
    %c1_21 = arith.constant 1 : index
    %c0_22 = arith.constant 0 : index
    %c0_23 = arith.constant 0 : index
    %32 = vector.load %arg3[%c1_21, %c0_22, %c0_23] : memref<6x32x32xbf16, #tpu.memory_space<vmem>>, vector<1x32x32xbf16>
    %33 = vector.shape_cast %32 : vector<1x32x32xbf16> to vector<32x32xbf16>
    %c2_24 = arith.constant 2 : index
    %c0_25 = arith.constant 0 : index
    %c0_26 = arith.constant 0 : index
    %34 = vector.load %arg3[%c2_24, %c0_25, %c0_26] : memref<6x32x32xbf16, #tpu.memory_space<vmem>>, vector<1x32x32xbf16>
    %35 = vector.shape_cast %34 : vector<1x32x32xbf16> to vector<32x32xbf16>
    %c3_27 = arith.constant 3 : index
    %c0_28 = arith.constant 0 : index
    %c0_29 = arith.constant 0 : index
    %36 = vector.load %arg3[%c3_27, %c0_28, %c0_29] : memref<6x32x32xbf16, #tpu.memory_space<vmem>>, vector<1x32x32xbf16>
    %37 = vector.shape_cast %36 : vector<1x32x32xbf16> to vector<32x32xbf16>
    %c4_30 = arith.constant 4 : index
    %c0_31 = arith.constant 0 : index
    %c0_32 = arith.constant 0 : index
    %38 = vector.load %arg3[%c4_30, %c0_31, %c0_32] : memref<6x32x32xbf16, #tpu.memory_space<vmem>>, vector<1x32x32xbf16>
    %39 = vector.shape_cast %38 : vector<1x32x32xbf16> to vector<32x32xbf16>
    %c5_33 = arith.constant 5 : index
    %c0_34 = arith.constant 0 : index
    %c0_35 = arith.constant 0 : index
    %40 = vector.load %arg3[%c5_33, %c0_34, %c0_35] : memref<6x32x32xbf16, #tpu.memory_space<vmem>>, vector<1x32x32xbf16>
    %41 = vector.shape_cast %40 : vector<1x32x32xbf16> to vector<32x32xbf16>
    %c0_36 = arith.constant 0 : index
    %c0_37 = arith.constant 0 : index
    %c0_38 = arith.constant 0 : index
    %42 = vector.load %arg4[%c0_36, %c0_37, %c0_38] : memref<2x1x32xf32, #tpu.memory_space<vmem>>, vector<1x1x32xf32>
    %43 = vector.shape_cast %42 : vector<1x1x32xf32> to vector<1x32xf32>
    %c1_39 = arith.constant 1 : index
    %c0_40 = arith.constant 0 : index
    %c0_41 = arith.constant 0 : index
    %44 = vector.load %arg4[%c1_39, %c0_40, %c0_41] : memref<2x1x32xf32, #tpu.memory_space<vmem>>, vector<1x1x32xf32>
    %45 = vector.shape_cast %44 : vector<1x1x32xf32> to vector<1x32xf32>
    %c0_42 = arith.constant 0 : index
    %c0_43 = arith.constant 0 : index
    %c0_44 = arith.constant 0 : index
    %46 = vector.load %arg5[%c0_42, %c0_43, %c0_44] : memref<2x1x32xf32, #tpu.memory_space<vmem>>, vector<1x1x32xf32>
    %47 = vector.shape_cast %46 : vector<1x1x32xf32> to vector<1x32xf32>
    %c1_45 = arith.constant 1 : index
    %c0_46 = arith.constant 0 : index
    %c0_47 = arith.constant 0 : index
    %48 = vector.load %arg5[%c1_45, %c0_46, %c0_47] : memref<2x1x32xf32, #tpu.memory_space<vmem>>, vector<1x1x32xf32>
    %49 = vector.shape_cast %48 : vector<1x1x32xf32> to vector<1x32xf32>
    %cst_48 = arith.constant 0.000000e+00 : f32
    %50 = vector.broadcast %cst_48 : f32 to vector<2x32xf32>
    %cst_49 = arith.constant 0.000000e+00 : f32
    %51 = vector.broadcast %cst_49 : f32 to vector<2x32xf32>
    %c0_50 = arith.constant 0 : index
    %c0_51 = arith.constant 0 : index
    %c0_52 = arith.constant 0 : index
    %52 = vector.load %arg9[%c0_50, %c0_51, %c0_52] : memref<6x32x32xf32, #tpu.memory_space<vmem>>, vector<1x2x32xf32>
    %53 = vector.shape_cast %52 : vector<1x2x32xf32> to vector<2x32xf32>
    %c1_53 = arith.constant 1 : index
    %c0_54 = arith.constant 0 : index
    %c0_55 = arith.constant 0 : index
    %54 = vector.load %arg9[%c1_53, %c0_54, %c0_55] : memref<6x32x32xf32, #tpu.memory_space<vmem>>, vector<1x2x32xf32>
    %55 = vector.shape_cast %54 : vector<1x2x32xf32> to vector<2x32xf32>
    %c2_56 = arith.constant 2 : index
    %c0_57 = arith.constant 0 : index
    %c0_58 = arith.constant 0 : index
    %56 = vector.load %arg9[%c2_56, %c0_57, %c0_58] : memref<6x32x32xf32, #tpu.memory_space<vmem>>, vector<1x2x32xf32>
    %57 = vector.shape_cast %56 : vector<1x2x32xf32> to vector<2x32xf32>
    %58 = arith.truncf %50 : vector<2x32xf32> to vector<2x32xbf16>
    %cst_59 = arith.constant dense<0.000000e+00> : vector<2x32xf32>
    %59 = tpu.matmul %58, %31, %cst_59 {dimension_numbers = #tpu.dot_dimension_numbers<[1], [0], [0], [1], [0, 0, 1, 1], [], []>} : vector<2x32xbf16>, vector<32x32xbf16>, vector<2x32xf32> -> vector<2x32xf32>
    %cst_60 = arith.constant dense<0.000000e+00> : vector<2x32xf32>
    %60 = tpu.matmul %58, %33, %cst_60 {dimension_numbers = #tpu.dot_dimension_numbers<[1], [0], [0], [1], [0, 0, 1, 1], [], []>} : vector<2x32xbf16>, vector<32x32xbf16>, vector<2x32xf32> -> vector<2x32xf32>
    %cst_61 = arith.constant dense<0.000000e+00> : vector<2x32xf32>
    %61 = tpu.matmul %58, %35, %cst_61 {dimension_numbers = #tpu.dot_dimension_numbers<[1], [0], [0], [1], [0, 0, 1, 1], [], []>} : vector<2x32xbf16>, vector<32x32xbf16>, vector<2x32xf32> -> vector<2x32xf32>
    %62 = arith.addf %53, %59 : vector<2x32xf32>
    %63 = arith.negf %62 : vector<2x32xf32>
    %64 = math.exp %63 : vector<2x32xf32>
    %cst_62 = arith.constant 1.000000e+00 : f32
    %65 = vector.broadcast %cst_62 : f32 to vector<2x32xf32>
    %66 = arith.addf %65, %64 : vector<2x32xf32>
    %67 = arith.divf %65, %66 : vector<2x32xf32>
    %68 = arith.addf %55, %60 : vector<2x32xf32>
    %69 = arith.negf %68 : vector<2x32xf32>
    %70 = math.exp %69 : vector<2x32xf32>
    %cst_63 = arith.constant 1.000000e+00 : f32
    %71 = vector.broadcast %cst_63 : f32 to vector<2x32xf32>
    %72 = arith.addf %71, %70 : vector<2x32xf32>
    %73 = arith.divf %71, %72 : vector<2x32xf32>
    %74 = vector.broadcast %43 : vector<1x32xf32> to vector<2x32xf32>
    %75 = arith.addf %61, %74 : vector<2x32xf32>
    %76 = arith.mulf %67, %75 : vector<2x32xf32>
    %77 = arith.addf %57, %76 : vector<2x32xf32>
    %78 = math.tanh %77 : vector<2x32xf32>
    %cst_64 = arith.constant 1.000000e+00 : f32
    %79 = vector.broadcast %cst_64 : f32 to vector<2x32xf32>
    %80 = arith.subf %79, %73 : vector<2x32xf32>
    %81 = arith.mulf %80, %78 : vector<2x32xf32>
    %82 = arith.mulf %73, %50 : vector<2x32xf32>
    %83 = arith.addf %81, %82 : vector<2x32xf32>
    %c3_65 = arith.constant 3 : index
    %c30 = arith.constant 30 : index
    %c0_66 = arith.constant 0 : index
    %84 = vector.load %arg9[%c3_65, %c30, %c0_66] : memref<6x32x32xf32, #tpu.memory_space<vmem>>, vector<1x2x32xf32>
    %85 = vector.shape_cast %84 : vector<1x2x32xf32> to vector<2x32xf32>
    %c4_67 = arith.constant 4 : index
    %c30_68 = arith.constant 30 : index
    %c0_69 = arith.constant 0 : index
    %86 = vector.load %arg9[%c4_67, %c30_68, %c0_69] : memref<6x32x32xf32, #tpu.memory_space<vmem>>, vector<1x2x32xf32>
    %87 = vector.shape_cast %86 : vector<1x2x32xf32> to vector<2x32xf32>
    %c5_70 = arith.constant 5 : index
    %c30_71 = arith.constant 30 : index
    %c0_72 = arith.constant 0 : index
    %88 = vector.load %arg9[%c5_70, %c30_71, %c0_72] : memref<6x32x32xf32, #tpu.memory_space<vmem>>, vector<1x2x32xf32>
    %89 = vector.shape_cast %88 : vector<1x2x32xf32> to vector<2x32xf32>
    %90 = arith.truncf %51 : vector<2x32xf32> to vector<2x32xbf16>
    %cst_73 = arith.constant dense<0.000000e+00> : vector<2x32xf32>
    %91 = tpu.matmul %90, %37, %cst_73 {dimension_numbers = #tpu.dot_dimension_numbers<[1], [0], [0], [1], [0, 0, 1, 1], [], []>} : vector<2x32xbf16>, vector<32x32xbf16>, vector<2x32xf32> -> vector<2x32xf32>
    %cst_74 = arith.constant dense<0.000000e+00> : vector<2x32xf32>
    %92 = tpu.matmul %90, %39, %cst_74 {dimension_numbers = #tpu.dot_dimension_numbers<[1], [0], [0], [1], [0, 0, 1, 1], [], []>} : vector<2x32xbf16>, vector<32x32xbf16>, vector<2x32xf32> -> vector<2x32xf32>
    %cst_75 = arith.constant dense<0.000000e+00> : vector<2x32xf32>
    %93 = tpu.matmul %90, %41, %cst_75 {dimension_numbers = #tpu.dot_dimension_numbers<[1], [0], [0], [1], [0, 0, 1, 1], [], []>} : vector<2x32xbf16>, vector<32x32xbf16>, vector<2x32xf32> -> vector<2x32xf32>
    %94 = arith.addf %85, %91 : vector<2x32xf32>
    %95 = arith.negf %94 : vector<2x32xf32>
    %96 = math.exp %95 : vector<2x32xf32>
    %cst_76 = arith.constant 1.000000e+00 : f32
    %97 = vector.broadcast %cst_76 : f32 to vector<2x32xf32>
    %98 = arith.addf %97, %96 : vector<2x32xf32>
    %99 = arith.divf %97, %98 : vector<2x32xf32>
    %100 = arith.addf %87, %92 : vector<2x32xf32>
    %101 = arith.negf %100 : vector<2x32xf32>
    %102 = math.exp %101 : vector<2x32xf32>
    %cst_77 = arith.constant 1.000000e+00 : f32
    %103 = vector.broadcast %cst_77 : f32 to vector<2x32xf32>
    %104 = arith.addf %103, %102 : vector<2x32xf32>
    %105 = arith.divf %103, %104 : vector<2x32xf32>
    %106 = vector.broadcast %45 : vector<1x32xf32> to vector<2x32xf32>
    %107 = arith.addf %93, %106 : vector<2x32xf32>
    %108 = arith.mulf %99, %107 : vector<2x32xf32>
    %109 = arith.addf %89, %108 : vector<2x32xf32>
    %110 = math.tanh %109 : vector<2x32xf32>
    %cst_78 = arith.constant 1.000000e+00 : f32
    %111 = vector.broadcast %cst_78 : f32 to vector<2x32xf32>
    %112 = arith.subf %111, %105 : vector<2x32xf32>
    %113 = arith.mulf %112, %110 : vector<2x32xf32>
    %114 = arith.mulf %105, %51 : vector<2x32xf32>
    %115 = arith.addf %113, %114 : vector<2x32xf32>
    %c0_79 = arith.constant 0 : index
    %c0_80 = arith.constant 0 : index
    %c0_81 = arith.constant 0 : index
    %c0_82 = arith.constant 0 : index
    %116 = vector.load %arg10[%c0_79, %c0_80, %c0_81, %c0_82] : memref<2x16x2x32xf32, #tpu.memory_space<vmem>>, vector<1x1x2x32xf32>
    %117 = vector.shape_cast %116 : vector<1x1x2x32xf32> to vector<2x32xf32>
    %118 = vector.shape_cast %83 : vector<2x32xf32> to vector<1x1x2x32xf32>
    tpu.vector_store %arg10[%c0_79, %c0_80, %c0_81, %c0_82], %118 {strides = array<i32>} : memref<2x16x2x32xf32, #tpu.memory_space<vmem>>, vector<1x1x2x32xf32>,
    %c1_83 = arith.constant 1 : index
    %c15 = arith.constant 15 : index
    %c0_84 = arith.constant 0 : index
    %c0_85 = arith.constant 0 : index
    %119 = vector.load %arg10[%c1_83, %c15, %c0_84, %c0_85] : memref<2x16x2x32xf32, #tpu.memory_space<vmem>>, vector<1x1x2x32xf32>
    %120 = vector.shape_cast %119 : vector<1x1x2x32xf32> to vector<2x32xf32>
    %121 = vector.shape_cast %115 : vector<2x32xf32> to vector<1x1x2x32xf32>
    tpu.vector_store %arg10[%c1_83, %c15, %c0_84, %c0_85], %121 {strides = array<i32>} : memref<2x16x2x32xf32, #tpu.memory_space<vmem>>, vector<1x1x2x32xf32>,
    %122 = vector.broadcast %47 : vector<1x32xf32> to vector<2x32xf32>
    %123 = arith.mulf %83, %122 : vector<2x32xf32>
    %cst_86 = arith.constant dense<0.000000e+00> : vector<2xf32>
    %124 = vector.multi_reduction <add>, %123, %cst_86 [1] : vector<2x32xf32> to vector<2xf32>
    %125 = vector.shape_cast %124 : vector<2xf32> to vector<2x1xf32>
    %c0_87 = arith.constant 0 : index
    %c0_88 = arith.constant 0 : index
    %c0_89 = arith.constant 0 : index
    %c0_90 = arith.constant 0 : index
    %126 = vector.load %arg11[%c0_87, %c0_88, %c0_89, %c0_90] : memref<2x16x2x1xf32, #tpu.memory_space<vmem>>, vector<1x1x2x1xf32>
    %127 = vector.shape_cast %126 : vector<1x1x2x1xf32> to vector<2x1xf32>
    %128 = vector.shape_cast %125 : vector<2x1xf32> to vector<1x1x2x1xf32>
    tpu.vector_store %arg11[%c0_87, %c0_88, %c0_89, %c0_90], %128 {strides = array<i32>} : memref<2x16x2x1xf32, #tpu.memory_space<vmem>>, vector<1x1x2x1xf32>,
    %129 = vector.broadcast %49 : vector<1x32xf32> to vector<2x32xf32>
    %130 = arith.mulf %115, %129 : vector<2x32xf32>
    %cst_91 = arith.constant dense<0.000000e+00> : vector<2xf32>
    %131 = vector.multi_reduction <add>, %130, %cst_91 [1] : vector<2x32xf32> to vector<2xf32>
    %132 = vector.shape_cast %131 : vector<2xf32> to vector<2x1xf32>
    %c1_92 = arith.constant 1 : index
    %c15_93 = arith.constant 15 : index
    %c0_94 = arith.constant 0 : index
    %c0_95 = arith.constant 0 : index
    %133 = vector.load %arg11[%c1_92, %c15_93, %c0_94, %c0_95] : memref<2x16x2x1xf32, #tpu.memory_space<vmem>>, vector<1x1x2x1xf32>
    %134 = vector.shape_cast %133 : vector<1x1x2x1xf32> to vector<2x1xf32>
    %135 = vector.shape_cast %132 : vector<2x1xf32> to vector<1x1x2x1xf32>
    tpu.vector_store %arg11[%c1_92, %c15_93, %c0_94, %c0_95], %135 {strides = array<i32>} : memref<2x16x2x1xf32, #tpu.memory_space<vmem>>, vector<1x1x2x1xf32>,
    %c0_96 = arith.constant 0 : index
    %c2_97 = arith.constant 2 : index
    %c0_98 = arith.constant 0 : index
    %136 = vector.load %arg9[%c0_96, %c2_97, %c0_98] : memref<6x32x32xf32, #tpu.memory_space<vmem>>, vector<1x2x32xf32>
    %137 = vector.shape_cast %136 : vector<1x2x32xf32> to vector<2x32xf32>
    %c1_99 = arith.constant 1 : index
    %c2_100 = arith.constant 2 : index
    %c0_101 = arith.constant 0 : index
    %138 = vector.load %arg9[%c1_99, %c2_100, %c0_101] : memref<6x32x32xf32, #tpu.memory_space<vmem>>, vector<1x2x32xf32>
    %139 = vector.shape_cast %138 : vector<1x2x32xf32> to vector<2x32xf32>
    %c2_102 = arith.constant 2 : index
    %c2_103 = arith.constant 2 : index
    %c0_104 = arith.constant 0 : index
    %140 = vector.load %arg9[%c2_102, %c2_103, %c0_104] : memref<6x32x32xf32, #tpu.memory_space<vmem>>, vector<1x2x32xf32>
    %141 = vector.shape_cast %140 : vector<1x2x32xf32> to vector<2x32xf32>
    %142 = arith.truncf %83 : vector<2x32xf32> to vector<2x32xbf16>
    %cst_105 = arith.constant dense<0.000000e+00> : vector<2x32xf32>
    %143 = tpu.matmul %142, %31, %cst_105 {dimension_numbers = #tpu.dot_dimension_numbers<[1], [0], [0], [1], [0, 0, 1, 1], [], []>} : vector<2x32xbf16>, vector<32x32xbf16>, vector<2x32xf32> -> vector<2x32xf32>
    %cst_106 = arith.constant dense<0.000000e+00> : vector<2x32xf32>
    %144 = tpu.matmul %142, %33, %cst_106 {dimension_numbers = #tpu.dot_dimension_numbers<[1], [0], [0], [1], [0, 0, 1, 1], [], []>} : vector<2x32xbf16>, vector<32x32xbf16>, vector<2x32xf32> -> vector<2x32xf32>
    %cst_107 = arith.constant dense<0.000000e+00> : vector<2x32xf32>
    %145 = tpu.matmul %142, %35, %cst_107 {dimension_numbers = #tpu.dot_dimension_numbers<[1], [0], [0], [1], [0, 0, 1, 1], [], []>} : vector<2x32xbf16>, vector<32x32xbf16>, vector<2x32xf32> -> vector<2x32xf32>
    %146 = arith.addf %137, %143 : vector<2x32xf32>
    %147 = arith.negf %146 : vector<2x32xf32>
    %148 = math.exp %147 : vector<2x32xf32>
    %cst_108 = arith.constant 1.000000e+00 : f32
    %149 = vector.broadcast %cst_108 : f32 to vector<2x32xf32>
    %150 = arith.addf %149, %148 : vector<2x32xf32>
    %151 = arith.divf %149, %150 : vector<2x32xf32>
    %152 = arith.addf %139, %144 : vector<2x32xf32>
    %153 = arith.negf %152 : vector<2x32xf32>
    %154 = math.exp %153 : vector<2x32xf32>
    %cst_109 = arith.constant 1.000000e+00 : f32
    %155 = vector.broadcast %cst_109 : f32 to vector<2x32xf32>
    %156 = arith.addf %155, %154 : vector<2x32xf32>
    %157 = arith.divf %155, %156 : vector<2x32xf32>
    %158 = vector.broadcast %43 : vector<1x32xf32> to vector<2x32xf32>
    %159 = arith.addf %145, %158 : vector<2x32xf32>
    %160 = arith.mulf %151, %159 : vector<2x32xf32>
    %161 = arith.addf %141, %160 : vector<2x32xf32>
    %162 = math.tanh %161 : vector<2x32xf32>
    %cst_110 = arith.constant 1.000000e+00 : f32
    %163 = vector.broadcast %cst_110 : f32 to vector<2x32xf32>
    %164 = arith.subf %163, %157 : vector<2x32xf32>
    %165 = arith.mulf %164, %162 : vector<2x32xf32>
    %166 = arith.mulf %157, %83 : vector<2x32xf32>
    %167 = arith.addf %165, %166 : vector<2x32xf32>
    %c3_111 = arith.constant 3 : index
    %c28 = arith.constant 28 : index
    %c0_112 = arith.constant 0 : index
    %168 = vector.load %arg9[%c3_111, %c28, %c0_112] : memref<6x32x32xf32, #tpu.memory_space<vmem>>, vector<1x2x32xf32>
    %169 = vector.shape_cast %168 : vector<1x2x32xf32> to vector<2x32xf32>
    %c4_113 = arith.constant 4 : index
    %c28_114 = arith.constant 28 : index
    %c0_115 = arith.constant 0 : index
    %170 = vector.load %arg9[%c4_113, %c28_114, %c0_115] : memref<6x32x32xf32, #tpu.memory_space<vmem>>, vector<1x2x32xf32>
    %171 = vector.shape_cast %170 : vector<1x2x32xf32> to vector<2x32xf32>
    %c5_116 = arith.constant 5 : index
    %c28_117 = arith.constant 28 : index
    %c0_118 = arith.constant 0 : index
    %172 = vector.load %arg9[%c5_116, %c28_117, %c0_118] : memref<6x32x32xf32, #tpu.memory_space<vmem>>, vector<1x2x32xf32>
    %173 = vector.shape_cast %172 : vector<1x2x32xf32> to vector<2x32xf32>
    %174 = arith.truncf %115 : vector<2x32xf32> to vector<2x32xbf16>
    %cst_119 = arith.constant dense<0.000000e+00> : vector<2x32xf32>
    %175 = tpu.matmul %174, %37, %cst_119 {dimension_numbers = #tpu.dot_dimension_numbers<[1], [0], [0], [1], [0, 0, 1, 1], [], []>} : vector<2x32xbf16>, vector<32x32xbf16>, vector<2x32xf32> -> vector<2x32xf32>
    %cst_120 = arith.constant dense<0.000000e+00> : vector<2x32xf32>
    %176 = tpu.matmul %174, %39, %cst_120 {dimension_numbers = #tpu.dot_dimension_numbers<[1], [0], [0], [1], [0, 0, 1, 1], [], []>} : vector<2x32xbf16>, vector<32x32xbf16>, vector<2x32xf32> -> vector<2x32xf32>
    %cst_121 = arith.constant dense<0.000000e+00> : vector<2x32xf32>
    %177 = tpu.matmul %174, %41, %cst_121 {dimension_numbers = #tpu.dot_dimension_numbers<[1], [0], [0], [1], [0, 0, 1, 1], [], []>} : vector<2x32xbf16>, vector<32x32xbf16>, vector<2x32xf32> -> vector<2x32xf32>
    %178 = arith.addf %169, %175 : vector<2x32xf32>
    %179 = arith.negf %178 : vector<2x32xf32>
    %180 = math.exp %179 : vector<2x32xf32>
    %cst_122 = arith.constant 1.000000e+00 : f32
    %181 = vector.broadcast %cst_122 : f32 to vector<2x32xf32>
    %182 = arith.addf %181, %180 : vector<2x32xf32>
    %183 = arith.divf %181, %182 : vector<2x32xf32>
    %184 = arith.addf %171, %176 : vector<2x32xf32>
    %185 = arith.negf %184 : vector<2x32xf32>
    %186 = math.exp %185 : vector<2x32xf32>
    %cst_123 = arith.constant 1.000000e+00 : f32
    %187 = vector.broadcast %cst_123 : f32 to vector<2x32xf32>
    %188 = arith.addf %187, %186 : vector<2x32xf32>
    %189 = arith.divf %187, %188 : vector<2x32xf32>
    %190 = vector.broadcast %45 : vector<1x32xf32> to vector<2x32xf32>
    %191 = arith.addf %177, %190 : vector<2x32xf32>
    %192 = arith.mulf %183, %191 : vector<2x32xf32>
    %193 = arith.addf %173, %192 : vector<2x32xf32>
    %194 = math.tanh %193 : vector<2x32xf32>
    %cst_124 = arith.constant 1.000000e+00 : f32
    %195 = vector.broadcast %cst_124 : f32 to vector<2x32xf32>
    %196 = arith.subf %195, %189 : vector<2x32xf32>
    %197 = arith.mulf %196, %194 : vector<2x32xf32>
    %198 = arith.mulf %189, %115 : vector<2x32xf32>
    %199 = arith.addf %197, %198 : vector<2x32xf32>
    %c0_125 = arith.constant 0 : index
    %c1_126 = arith.constant 1 : index
    %c0_127 = arith.constant 0 : index
    %c0_128 = arith.constant 0 : index
    %200 = vector.load %arg10[%c0_125, %c1_126, %c0_127, %c0_128] : memref<2x16x2x32xf32, #tpu.memory_space<vmem>>, vector<1x1x2x32xf32>
    %201 = vector.shape_cast %200 : vector<1x1x2x32xf32> to vector<2x32xf32>
    %202 = vector.shape_cast %167 : vector<2x32xf32> to vector<1x1x2x32xf32>
    tpu.vector_store %arg10[%c0_125, %c1_126, %c0_127, %c0_128], %202 {strides = array<i32>} : memref<2x16x2x32xf32, #tpu.memory_space<vmem>>, vector<1x1x2x32xf32>,
    %c1_129 = arith.constant 1 : index
    %c14 = arith.constant 14 : index
    %c0_130 = arith.constant 0 : index
    %c0_131 = arith.constant 0 : index
    %203 = vector.load %arg10[%c1_129, %c14, %c0_130, %c0_131] : memref<2x16x2x32xf32, #tpu.memory_space<vmem>>, vector<1x1x2x32xf32>
    %204 = vector.shape_cast %203 : vector<1x1x2x32xf32> to vector<2x32xf32>
    %205 = vector.shape_cast %199 : vector<2x32xf32> to vector<1x1x2x32xf32>
    tpu.vector_store %arg10[%c1_129, %c14, %c0_130, %c0_131], %205 {strides = array<i32>} : memref<2x16x2x32xf32, #tpu.memory_space<vmem>>, vector<1x1x2x32xf32>,
    %206 = vector.broadcast %47 : vector<1x32xf32> to vector<2x32xf32>
    %207 = arith.mulf %167, %206 : vector<2x32xf32>
    %cst_132 = arith.constant dense<0.000000e+00> : vector<2xf32>
    %208 = vector.multi_reduction <add>, %207, %cst_132 [1] : vector<2x32xf32> to vector<2xf32>
    %209 = vector.shape_cast %208 : vector<2xf32> to vector<2x1xf32>
    %c0_133 = arith.constant 0 : index
    %c1_134 = arith.constant 1 : index
    %c0_135 = arith.constant 0 : index
    %c0_136 = arith.constant 0 : index
    %210 = vector.load %arg11[%c0_133, %c1_134, %c0_135, %c0_136] : memref<2x16x2x1xf32, #tpu.memory_space<vmem>>, vector<1x1x2x1xf32>
    %211 = vector.shape_cast %210 : vector<1x1x2x1xf32> to vector<2x1xf32>
    %212 = vector.shape_cast %209 : vector<2x1xf32> to vector<1x1x2x1xf32>
    tpu.vector_store %arg11[%c0_133, %c1_134, %c0_135, %c0_136], %212 {strides = array<i32>} : memref<2x16x2x1xf32, #tpu.memory_space<vmem>>, vector<1x1x2x1xf32>,
    %213 = vector.broadcast %49 : vector<1x32xf32> to vector<2x32xf32>
    %214 = arith.mulf %199, %213 : vector<2x32xf32>
    %cst_137 = arith.constant dense<0.000000e+00> : vector<2xf32>
    %215 = vector.multi_reduction <add>, %214, %cst_137 [1] : vector<2x32xf32> to vector<2xf32>
    %216 = vector.shape_cast %215 : vector<2xf32> to vector<2x1xf32>
    %c1_138 = arith.constant 1 : index
    %c14_139 = arith.constant 14 : index
    %c0_140 = arith.constant 0 : index
    %c0_141 = arith.constant 0 : index
    %217 = vector.load %arg11[%c1_138, %c14_139, %c0_140, %c0_141] : memref<2x16x2x1xf32, #tpu.memory_space<vmem>>, vector<1x1x2x1xf32>
    %218 = vector.shape_cast %217 : vector<1x1x2x1xf32> to vector<2x1xf32>
    %219 = vector.shape_cast %216 : vector<2x1xf32> to vector<1x1x2x1xf32>
    tpu.vector_store %arg11[%c1_138, %c14_139, %c0_140, %c0_141], %219 {strides = array<i32>} : memref<2x16x2x1xf32, #tpu.memory_space<vmem>>, vector<1x1x2x1xf32>,
    %c0_142 = arith.constant 0 : index
    %c4_143 = arith.constant 4 : index
    %c0_144 = arith.constant 0 : index
    %220 = vector.load %arg9[%c0_142, %c4_143, %c0_144] : memref<6x32x32xf32, #tpu.memory_space<vmem>>, vector<1x2x32xf32>
    %221 = vector.shape_cast %220 : vector<1x2x32xf32> to vector<2x32xf32>
    %c1_145 = arith.constant 1 : index
    %c4_146 = arith.constant 4 : index
    %c0_147 = arith.constant 0 : index
    %222 = vector.load %arg9[%c1_145, %c4_146, %c0_147] : memref<6x32x32xf32, #tpu.memory_space<vmem>>, vector<1x2x32xf32>
    %223 = vector.shape_cast %222 : vector<1x2x32xf32> to vector<2x32xf32>
    %c2_148 = arith.constant 2 : index
    %c4_149 = arith.constant 4 : index
    %c0_150 = arith.constant 0 : index
    %224 = vector.load %arg9[%c2_148, %c4_149, %c0_150] : memref<6x32x32xf32, #tpu.memory_space<vmem>>, vector<1x2x32xf32>
    %225 = vector.shape_cast %224 : vector<1x2x32xf32> to vector<2x32xf32>
    %226 = arith.truncf %167 : vector<2x32xf32> to vector<2x32xbf16>
    %cst_151 = arith.constant dense<0.000000e+00> : vector<2x32xf32>
    %227 = tpu.matmul %226, %31, %cst_151 {dimension_numbers = #tpu.dot_dimension_numbers<[1], [0], [0], [1], [0, 0, 1, 1], [], []>} : vector<2x32xbf16>, vector<32x32xbf16>, vector<2x32xf32> -> vector<2x32xf32>
    %cst_152 = arith.constant dense<0.000000e+00> : vector<2x32xf32>
    %228 = tpu.matmul %226, %33, %cst_152 {dimension_numbers = #tpu.dot_dimension_numbers<[1], [0], [0], [1], [0, 0, 1, 1], [], []>} : vector<2x32xbf16>, vector<32x32xbf16>, vector<2x32xf32> -> vector<2x32xf32>
    %cst_153 = arith.constant dense<0.000000e+00> : vector<2x32xf32>
    %229 = tpu.matmul %226, %35, %cst_153 {dimension_numbers = #tpu.dot_dimension_numbers<[1], [0], [0], [1], [0, 0, 1, 1], [], []>} : vector<2x32xbf16>, vector<32x32xbf16>, vector<2x32xf32> -> vector<2x32xf32>
    %230 = arith.addf %221, %227 : vector<2x32xf32>
    %231 = arith.negf %230 : vector<2x32xf32>
    %232 = math.exp %231 : vector<2x32xf32>
    %cst_154 = arith.constant 1.000000e+00 : f32
    %233 = vector.broadcast %cst_154 : f32 to vector<2x32xf32>
    %234 = arith.addf %233, %232 : vector<2x32xf32>
    %235 = arith.divf %233, %234 : vector<2x32xf32>
    %236 = arith.addf %223, %228 : vector<2x32xf32>
    %237 = arith.negf %236 : vector<2x32xf32>
    %238 = math.exp %237 : vector<2x32xf32>
    %cst_155 = arith.constant 1.000000e+00 : f32
    %239 = vector.broadcast %cst_155 : f32 to vector<2x32xf32>
    %240 = arith.addf %239, %238 : vector<2x32xf32>
    %241 = arith.divf %239, %240 : vector<2x32xf32>
    %242 = vector.broadcast %43 : vector<1x32xf32> to vector<2x32xf32>
    %243 = arith.addf %229, %242 : vector<2x32xf32>
    %244 = arith.mulf %235, %243 : vector<2x32xf32>
    %245 = arith.addf %225, %244 : vector<2x32xf32>
    %246 = math.tanh %245 : vector<2x32xf32>
    %cst_156 = arith.constant 1.000000e+00 : f32
    %247 = vector.broadcast %cst_156 : f32 to vector<2x32xf32>
    %248 = arith.subf %247, %241 : vector<2x32xf32>
    %249 = arith.mulf %248, %246 : vector<2x32xf32>
    %250 = arith.mulf %241, %167 : vector<2x32xf32>
    %251 = arith.addf %249, %250 : vector<2x32xf32>
    %c3_157 = arith.constant 3 : index
    %c26 = arith.constant 26 : index
    %c0_158 = arith.constant 0 : index
    %252 = vector.load %arg9[%c3_157, %c26, %c0_158] : memref<6x32x32xf32, #tpu.memory_space<vmem>>, vector<1x2x32xf32>
    %253 = vector.shape_cast %252 : vector<1x2x32xf32> to vector<2x32xf32>
    %c4_159 = arith.constant 4 : index
    %c26_160 = arith.constant 26 : index
    %c0_161 = arith.constant 0 : index
    %254 = vector.load %arg9[%c4_159, %c26_160, %c0_161] : memref<6x32x32xf32, #tpu.memory_space<vmem>>, vector<1x2x32xf32>
    %255 = vector.shape_cast %254 : vector<1x2x32xf32> to vector<2x32xf32>
    %c5_162 = arith.constant 5 : index
    %c26_163 = arith.constant 26 : index
    %c0_164 = arith.constant 0 : index
    %256 = vector.load %arg9[%c5_162, %c26_163, %c0_164] : memref<6x32x32xf32, #tpu.memory_space<vmem>>, vector<1x2x32xf32>
    %257 = vector.shape_cast %256 : vector<1x2x32xf32> to vector<2x32xf32>
    %258 = arith.truncf %199 : vector<2x32xf32> to vector<2x32xbf16>
    %cst_165 = arith.constant dense<0.000000e+00> : vector<2x32xf32>
    %259 = tpu.matmul %258, %37, %cst_165 {dimension_numbers = #tpu.dot_dimension_numbers<[1], [0], [0], [1], [0, 0, 1, 1], [], []>} : vector<2x32xbf16>, vector<32x32xbf16>, vector<2x32xf32> -> vector<2x32xf32>
    %cst_166 = arith.constant dense<0.000000e+00> : vector<2x32xf32>
    %260 = tpu.matmul %258, %39, %cst_166 {dimension_numbers = #tpu.dot_dimension_numbers<[1], [0], [0], [1], [0, 0, 1, 1], [], []>} : vector<2x32xbf16>, vector<32x32xbf16>, vector<2x32xf32> -> vector<2x32xf32>
    %cst_167 = arith.constant dense<0.000000e+00> : vector<2x32xf32>
    %261 = tpu.matmul %258, %41, %cst_167 {dimension_numbers = #tpu.dot_dimension_numbers<[1], [0], [0], [1], [0, 0, 1, 1], [], []>} : vector<2x32xbf16>, vector<32x32xbf16>, vector<2x32xf32> -> vector<2x32xf32>
    %262 = arith.addf %253, %259 : vector<2x32xf32>
    %263 = arith.negf %262 : vector<2x32xf32>
    %264 = math.exp %263 : vector<2x32xf32>
    %cst_168 = arith.constant 1.000000e+00 : f32
    %265 = vector.broadcast %cst_168 : f32 to vector<2x32xf32>
    %266 = arith.addf %265, %264 : vector<2x32xf32>
    %267 = arith.divf %265, %266 : vector<2x32xf32>
    %268 = arith.addf %255, %260 : vector<2x32xf32>
    %269 = arith.negf %268 : vector<2x32xf32>
    %270 = math.exp %269 : vector<2x32xf32>
    %cst_169 = arith.constant 1.000000e+00 : f32
    %271 = vector.broadcast %cst_169 : f32 to vector<2x32xf32>
    %272 = arith.addf %271, %270 : vector<2x32xf32>
    %273 = arith.divf %271, %272 : vector<2x32xf32>
    %274 = vector.broadcast %45 : vector<1x32xf32> to vector<2x32xf32>
    %275 = arith.addf %261, %274 : vector<2x32xf32>
    %276 = arith.mulf %267, %275 : vector<2x32xf32>
    %277 = arith.addf %257, %276 : vector<2x32xf32>
    %278 = math.tanh %277 : vector<2x32xf32>
    %cst_170 = arith.constant 1.000000e+00 : f32
    %279 = vector.broadcast %cst_170 : f32 to vector<2x32xf32>
    %280 = arith.subf %279, %273 : vector<2x32xf32>
    %281 = arith.mulf %280, %278 : vector<2x32xf32>
    %282 = arith.mulf %273, %199 : vector<2x32xf32>
    %283 = arith.addf %281, %282 : vector<2x32xf32>
    %c0_171 = arith.constant 0 : index
    %c2_172 = arith.constant 2 : index
    %c0_173 = arith.constant 0 : index
    %c0_174 = arith.constant 0 : index
    %284 = vector.load %arg10[%c0_171, %c2_172, %c0_173, %c0_174] : memref<2x16x2x32xf32, #tpu.memory_space<vmem>>, vector<1x1x2x32xf32>
    %285 = vector.shape_cast %284 : vector<1x1x2x32xf32> to vector<2x32xf32>
    %286 = vector.shape_cast %251 : vector<2x32xf32> to vector<1x1x2x32xf32>
    tpu.vector_store %arg10[%c0_171, %c2_172, %c0_173, %c0_174], %286 {strides = array<i32>} : memref<2x16x2x32xf32, #tpu.memory_space<vmem>>, vector<1x1x2x32xf32>,
    %c1_175 = arith.constant 1 : index
    %c13 = arith.constant 13 : index
    %c0_176 = arith.constant 0 : index
    %c0_177 = arith.constant 0 : index
    %287 = vector.load %arg10[%c1_175, %c13, %c0_176, %c0_177] : memref<2x16x2x32xf32, #tpu.memory_space<vmem>>, vector<1x1x2x32xf32>
    %288 = vector.shape_cast %287 : vector<1x1x2x32xf32> to vector<2x32xf32>
    %289 = vector.shape_cast %283 : vector<2x32xf32> to vector<1x1x2x32xf32>
    tpu.vector_store %arg10[%c1_175, %c13, %c0_176, %c0_177], %289 {strides = array<i32>} : memref<2x16x2x32xf32, #tpu.memory_space<vmem>>, vector<1x1x2x32xf32>,
    %290 = vector.broadcast %47 : vector<1x32xf32> to vector<2x32xf32>
    %291 = arith.mulf %251, %290 : vector<2x32xf32>
    %cst_178 = arith.constant dense<0.000000e+00> : vector<2xf32>
    %292 = vector.multi_reduction <add>, %291, %cst_178 [1] : vector<2x32xf32> to vector<2xf32>
    %293 = vector.shape_cast %292 : vector<2xf32> to vector<2x1xf32>
    %c0_179 = arith.constant 0 : index
    %c2_180 = arith.constant 2 : index
    %c0_181 = arith.constant 0 : index
    %c0_182 = arith.constant 0 : index
    %294 = vector.load %arg11[%c0_179, %c2_180, %c0_181, %c0_182] : memref<2x16x2x1xf32, #tpu.memory_space<vmem>>, vector<1x1x2x1xf32>
    %295 = vector.shape_cast %294 : vector<1x1x2x1xf32> to vector<2x1xf32>
    %296 = vector.shape_cast %293 : vector<2x1xf32> to vector<1x1x2x1xf32>
    tpu.vector_store %arg11[%c0_179, %c2_180, %c0_181, %c0_182], %296 {strides = array<i32>} : memref<2x16x2x1xf32, #tpu.memory_space<vmem>>, vector<1x1x2x1xf32>,
    %297 = vector.broadcast %49 : vector<1x32xf32> to vector<2x32xf32>
    %298 = arith.mulf %283, %297 : vector<2x32xf32>
    %cst_183 = arith.constant dense<0.000000e+00> : vector<2xf32>
    %299 = vector.multi_reduction <add>, %298, %cst_183 [1] : vector<2x32xf32> to vector<2xf32>
    %300 = vector.shape_cast %299 : vector<2xf32> to vector<2x1xf32>
    %c1_184 = arith.constant 1 : index
    %c13_185 = arith.constant 13 : index
    %c0_186 = arith.constant 0 : index
    %c0_187 = arith.constant 0 : index
    %301 = vector.load %arg11[%c1_184, %c13_185, %c0_186, %c0_187] : memref<2x16x2x1xf32, #tpu.memory_space<vmem>>, vector<1x1x2x1xf32>
    %302 = vector.shape_cast %301 : vector<1x1x2x1xf32> to vector<2x1xf32>
    %303 = vector.shape_cast %300 : vector<2x1xf32> to vector<1x1x2x1xf32>
    tpu.vector_store %arg11[%c1_184, %c13_185, %c0_186, %c0_187], %303 {strides = array<i32>} : memref<2x16x2x1xf32, #tpu.memory_space<vmem>>, vector<1x1x2x1xf32>,
    %c0_188 = arith.constant 0 : index
    %c6 = arith.constant 6 : index
    %c0_189 = arith.constant 0 : index
    %304 = vector.load %arg9[%c0_188, %c6, %c0_189] : memref<6x32x32xf32, #tpu.memory_space<vmem>>, vector<1x2x32xf32>
    %305 = vector.shape_cast %304 : vector<1x2x32xf32> to vector<2x32xf32>
    %c1_190 = arith.constant 1 : index
    %c6_191 = arith.constant 6 : index
    %c0_192 = arith.constant 0 : index
    %306 = vector.load %arg9[%c1_190, %c6_191, %c0_192] : memref<6x32x32xf32, #tpu.memory_space<vmem>>, vector<1x2x32xf32>
    %307 = vector.shape_cast %306 : vector<1x2x32xf32> to vector<2x32xf32>
    %c2_193 = arith.constant 2 : index
    %c6_194 = arith.constant 6 : index
    %c0_195 = arith.constant 0 : index
    %308 = vector.load %arg9[%c2_193, %c6_194, %c0_195] : memref<6x32x32xf32, #tpu.memory_space<vmem>>, vector<1x2x32xf32>
    %309 = vector.shape_cast %308 : vector<1x2x32xf32> to vector<2x32xf32>
    %310 = arith.truncf %251 : vector<2x32xf32> to vector<2x32xbf16>
    %cst_196 = arith.constant dense<0.000000e+00> : vector<2x32xf32>
    %311 = tpu.matmul %310, %31, %cst_196 {dimension_numbers = #tpu.dot_dimension_numbers<[1], [0], [0], [1], [0, 0, 1, 1], [], []>} : vector<2x32xbf16>, vector<32x32xbf16>, vector<2x32xf32> -> vector<2x32xf32>
    %cst_197 = arith.constant dense<0.000000e+00> : vector<2x32xf32>
    %312 = tpu.matmul %310, %33, %cst_197 {dimension_numbers = #tpu.dot_dimension_numbers<[1], [0], [0], [1], [0, 0, 1, 1], [], []>} : vector<2x32xbf16>, vector<32x32xbf16>, vector<2x32xf32> -> vector<2x32xf32>
    %cst_198 = arith.constant dense<0.000000e+00> : vector<2x32xf32>
    %313 = tpu.matmul %310, %35, %cst_198 {dimension_numbers = #tpu.dot_dimension_numbers<[1], [0], [0], [1], [0, 0, 1, 1], [], []>} : vector<2x32xbf16>, vector<32x32xbf16>, vector<2x32xf32> -> vector<2x32xf32>
    %314 = arith.addf %305, %311 : vector<2x32xf32>
    %315 = arith.negf %314 : vector<2x32xf32>
    %316 = math.exp %315 : vector<2x32xf32>
    %cst_199 = arith.constant 1.000000e+00 : f32
    %317 = vector.broadcast %cst_199 : f32 to vector<2x32xf32>
    %318 = arith.addf %317, %316 : vector<2x32xf32>
    %319 = arith.divf %317, %318 : vector<2x32xf32>
    %320 = arith.addf %307, %312 : vector<2x32xf32>
    %321 = arith.negf %320 : vector<2x32xf32>
    %322 = math.exp %321 : vector<2x32xf32>
    %cst_200 = arith.constant 1.000000e+00 : f32
    %323 = vector.broadcast %cst_200 : f32 to vector<2x32xf32>
    %324 = arith.addf %323, %322 : vector<2x32xf32>
    %325 = arith.divf %323, %324 : vector<2x32xf32>
    %326 = vector.broadcast %43 : vector<1x32xf32> to vector<2x32xf32>
    %327 = arith.addf %313, %326 : vector<2x32xf32>
    %328 = arith.mulf %319, %327 : vector<2x32xf32>
    %329 = arith.addf %309, %328 : vector<2x32xf32>
    %330 = math.tanh %329 : vector<2x32xf32>
    %cst_201 = arith.constant 1.000000e+00 : f32
    %331 = vector.broadcast %cst_201 : f32 to vector<2x32xf32>
    %332 = arith.subf %331, %325 : vector<2x32xf32>
    %333 = arith.mulf %332, %330 : vector<2x32xf32>
    %334 = arith.mulf %325, %251 : vector<2x32xf32>
    %335 = arith.addf %333, %334 : vector<2x32xf32>
    %c3_202 = arith.constant 3 : index
    %c24 = arith.constant 24 : index
    %c0_203 = arith.constant 0 : index
    %336 = vector.load %arg9[%c3_202, %c24, %c0_203] : memref<6x32x32xf32, #tpu.memory_space<vmem>>, vector<1x2x32xf32>
    %337 = vector.shape_cast %336 : vector<1x2x32xf32> to vector<2x32xf32>
    %c4_204 = arith.constant 4 : index
    %c24_205 = arith.constant 24 : index
    %c0_206 = arith.constant 0 : index
    %338 = vector.load %arg9[%c4_204, %c24_205, %c0_206] : memref<6x32x32xf32, #tpu.memory_space<vmem>>, vector<1x2x32xf32>
    %339 = vector.shape_cast %338 : vector<1x2x32xf32> to vector<2x32xf32>
    %c5_207 = arith.constant 5 : index
    %c24_208 = arith.constant 24 : index
    %c0_209 = arith.constant 0 : index
    %340 = vector.load %arg9[%c5_207, %c24_208, %c0_209] : memref<6x32x32xf32, #tpu.memory_space<vmem>>, vector<1x2x32xf32>
    %341 = vector.shape_cast %340 : vector<1x2x32xf32> to vector<2x32xf32>
    %342 = arith.truncf %283 : vector<2x32xf32> to vector<2x32xbf16>
    %cst_210 = arith.constant dense<0.000000e+00> : vector<2x32xf32>
    %343 = tpu.matmul %342, %37, %cst_210 {dimension_numbers = #tpu.dot_dimension_numbers<[1], [0], [0], [1], [0, 0, 1, 1], [], []>} : vector<2x32xbf16>, vector<32x32xbf16>, vector<2x32xf32> -> vector<2x32xf32>
    %cst_211 = arith.constant dense<0.000000e+00> : vector<2x32xf32>
    %344 = tpu.matmul %342, %39, %cst_211 {dimension_numbers = #tpu.dot_dimension_numbers<[1], [0], [0], [1], [0, 0, 1, 1], [], []>} : vector<2x32xbf16>, vector<32x32xbf16>, vector<2x32xf32> -> vector<2x32xf32>
    %cst_212 = arith.constant dense<0.000000e+00> : vector<2x32xf32>
    %345 = tpu.matmul %342, %41, %cst_212 {dimension_numbers = #tpu.dot_dimension_numbers<[1], [0], [0], [1], [0, 0, 1, 1], [], []>} : vector<2x32xbf16>, vector<32x32xbf16>, vector<2x32xf32> -> vector<2x32xf32>
    %346 = arith.addf %337, %343 : vector<2x32xf32>
    %347 = arith.negf %346 : vector<2x32xf32>
    %348 = math.exp %347 : vector<2x32xf32>
    %cst_213 = arith.constant 1.000000e+00 : f32
    %349 = vector.broadcast %cst_213 : f32 to vector<2x32xf32>
    %350 = arith.addf %349, %348 : vector<2x32xf32>
    %351 = arith.divf %349, %350 : vector<2x32xf32>
    %352 = arith.addf %339, %344 : vector<2x32xf32>
    %353 = arith.negf %352 : vector<2x32xf32>
    %354 = math.exp %353 : vector<2x32xf32>
    %cst_214 = arith.constant 1.000000e+00 : f32
    %355 = vector.broadcast %cst_214 : f32 to vector<2x32xf32>
    %356 = arith.addf %355, %354 : vector<2x32xf32>
    %357 = arith.divf %355, %356 : vector<2x32xf32>
    %358 = vector.broadcast %45 : vector<1x32xf32> to vector<2x32xf32>
    %359 = arith.addf %345, %358 : vector<2x32xf32>
    %360 = arith.mulf %351, %359 : vector<2x32xf32>
    %361 = arith.addf %341, %360 : vector<2x32xf32>
    %362 = math.tanh %361 : vector<2x32xf32>
    %cst_215 = arith.constant 1.000000e+00 : f32
    %363 = vector.broadcast %cst_215 : f32 to vector<2x32xf32>
    %364 = arith.subf %363, %357 : vector<2x32xf32>
    %365 = arith.mulf %364, %362 : vector<2x32xf32>
    %366 = arith.mulf %357, %283 : vector<2x32xf32>
    %367 = arith.addf %365, %366 : vector<2x32xf32>
    %c0_216 = arith.constant 0 : index
    %c3_217 = arith.constant 3 : index
    %c0_218 = arith.constant 0 : index
    %c0_219 = arith.constant 0 : index
    %368 = vector.load %arg10[%c0_216, %c3_217, %c0_218, %c0_219] : memref<2x16x2x32xf32, #tpu.memory_space<vmem>>, vector<1x1x2x32xf32>
    %369 = vector.shape_cast %368 : vector<1x1x2x32xf32> to vector<2x32xf32>
    %370 = vector.shape_cast %335 : vector<2x32xf32> to vector<1x1x2x32xf32>
    tpu.vector_store %arg10[%c0_216, %c3_217, %c0_218, %c0_219], %370 {strides = array<i32>} : memref<2x16x2x32xf32, #tpu.memory_space<vmem>>, vector<1x1x2x32xf32>,
    %c1_220 = arith.constant 1 : index
    %c12 = arith.constant 12 : index
    %c0_221 = arith.constant 0 : index
    %c0_222 = arith.constant 0 : index
    %371 = vector.load %arg10[%c1_220, %c12, %c0_221, %c0_222] : memref<2x16x2x32xf32, #tpu.memory_space<vmem>>, vector<1x1x2x32xf32>
    %372 = vector.shape_cast %371 : vector<1x1x2x32xf32> to vector<2x32xf32>
    %373 = vector.shape_cast %367 : vector<2x32xf32> to vector<1x1x2x32xf32>
    tpu.vector_store %arg10[%c1_220, %c12, %c0_221, %c0_222], %373 {strides = array<i32>} : memref<2x16x2x32xf32, #tpu.memory_space<vmem>>, vector<1x1x2x32xf32>,
    %374 = vector.broadcast %47 : vector<1x32xf32> to vector<2x32xf32>
    %375 = arith.mulf %335, %374 : vector<2x32xf32>
    %cst_223 = arith.constant dense<0.000000e+00> : vector<2xf32>
    %376 = vector.multi_reduction <add>, %375, %cst_223 [1] : vector<2x32xf32> to vector<2xf32>
    %377 = vector.shape_cast %376 : vector<2xf32> to vector<2x1xf32>
    %c0_224 = arith.constant 0 : index
    %c3_225 = arith.constant 3 : index
    %c0_226 = arith.constant 0 : index
    %c0_227 = arith.constant 0 : index
    %378 = vector.load %arg11[%c0_224, %c3_225, %c0_226, %c0_227] : memref<2x16x2x1xf32, #tpu.memory_space<vmem>>, vector<1x1x2x1xf32>
    %379 = vector.shape_cast %378 : vector<1x1x2x1xf32> to vector<2x1xf32>
    %380 = vector.shape_cast %377 : vector<2x1xf32> to vector<1x1x2x1xf32>
    tpu.vector_store %arg11[%c0_224, %c3_225, %c0_226, %c0_227], %380 {strides = array<i32>} : memref<2x16x2x1xf32, #tpu.memory_space<vmem>>, vector<1x1x2x1xf32>,
    %381 = vector.broadcast %49 : vector<1x32xf32> to vector<2x32xf32>
    %382 = arith.mulf %367, %381 : vector<2x32xf32>
    %cst_228 = arith.constant dense<0.000000e+00> : vector<2xf32>
    %383 = vector.multi_reduction <add>, %382, %cst_228 [1] : vector<2x32xf32> to vector<2xf32>
    %384 = vector.shape_cast %383 : vector<2xf32> to vector<2x1xf32>
    %c1_229 = arith.constant 1 : index
    %c12_230 = arith.constant 12 : index
    %c0_231 = arith.constant 0 : index
    %c0_232 = arith.constant 0 : index
    %385 = vector.load %arg11[%c1_229, %c12_230, %c0_231, %c0_232] : memref<2x16x2x1xf32, #tpu.memory_space<vmem>>, vector<1x1x2x1xf32>
    %386 = vector.shape_cast %385 : vector<1x1x2x1xf32> to vector<2x1xf32>
    %387 = vector.shape_cast %384 : vector<2x1xf32> to vector<1x1x2x1xf32>
    tpu.vector_store %arg11[%c1_229, %c12_230, %c0_231, %c0_232], %387 {strides = array<i32>} : memref<2x16x2x1xf32, #tpu.memory_space<vmem>>, vector<1x1x2x1xf32>,
    %c0_233 = arith.constant 0 : index
    %c8 = arith.constant 8 : index
    %c0_234 = arith.constant 0 : index
    %388 = vector.load %arg9[%c0_233, %c8, %c0_234] : memref<6x32x32xf32, #tpu.memory_space<vmem>>, vector<1x2x32xf32>
    %389 = vector.shape_cast %388 : vector<1x2x32xf32> to vector<2x32xf32>
    %c1_235 = arith.constant 1 : index
    %c8_236 = arith.constant 8 : index
    %c0_237 = arith.constant 0 : index
    %390 = vector.load %arg9[%c1_235, %c8_236, %c0_237] : memref<6x32x32xf32, #tpu.memory_space<vmem>>, vector<1x2x32xf32>
    %391 = vector.shape_cast %390 : vector<1x2x32xf32> to vector<2x32xf32>
    %c2_238 = arith.constant 2 : index
    %c8_239 = arith.constant 8 : index
    %c0_240 = arith.constant 0 : index
    %392 = vector.load %arg9[%c2_238, %c8_239, %c0_240] : memref<6x32x32xf32, #tpu.memory_space<vmem>>, vector<1x2x32xf32>
    %393 = vector.shape_cast %392 : vector<1x2x32xf32> to vector<2x32xf32>
    %394 = arith.truncf %335 : vector<2x32xf32> to vector<2x32xbf16>
    %cst_241 = arith.constant dense<0.000000e+00> : vector<2x32xf32>
    %395 = tpu.matmul %394, %31, %cst_241 {dimension_numbers = #tpu.dot_dimension_numbers<[1], [0], [0], [1], [0, 0, 1, 1], [], []>} : vector<2x32xbf16>, vector<32x32xbf16>, vector<2x32xf32> -> vector<2x32xf32>
    %cst_242 = arith.constant dense<0.000000e+00> : vector<2x32xf32>
    %396 = tpu.matmul %394, %33, %cst_242 {dimension_numbers = #tpu.dot_dimension_numbers<[1], [0], [0], [1], [0, 0, 1, 1], [], []>} : vector<2x32xbf16>, vector<32x32xbf16>, vector<2x32xf32> -> vector<2x32xf32>
    %cst_243 = arith.constant dense<0.000000e+00> : vector<2x32xf32>
    %397 = tpu.matmul %394, %35, %cst_243 {dimension_numbers = #tpu.dot_dimension_numbers<[1], [0], [0], [1], [0, 0, 1, 1], [], []>} : vector<2x32xbf16>, vector<32x32xbf16>, vector<2x32xf32> -> vector<2x32xf32>
    %398 = arith.addf %389, %395 : vector<2x32xf32>
    %399 = arith.negf %398 : vector<2x32xf32>
    %400 = math.exp %399 : vector<2x32xf32>
    %cst_244 = arith.constant 1.000000e+00 : f32
    %401 = vector.broadcast %cst_244 : f32 to vector<2x32xf32>
    %402 = arith.addf %401, %400 : vector<2x32xf32>
    %403 = arith.divf %401, %402 : vector<2x32xf32>
    %404 = arith.addf %391, %396 : vector<2x32xf32>
    %405 = arith.negf %404 : vector<2x32xf32>
    %406 = math.exp %405 : vector<2x32xf32>
    %cst_245 = arith.constant 1.000000e+00 : f32
    %407 = vector.broadcast %cst_245 : f32 to vector<2x32xf32>
    %408 = arith.addf %407, %406 : vector<2x32xf32>
    %409 = arith.divf %407, %408 : vector<2x32xf32>
    %410 = vector.broadcast %43 : vector<1x32xf32> to vector<2x32xf32>
    %411 = arith.addf %397, %410 : vector<2x32xf32>
    %412 = arith.mulf %403, %411 : vector<2x32xf32>
    %413 = arith.addf %393, %412 : vector<2x32xf32>
    %414 = math.tanh %413 : vector<2x32xf32>
    %cst_246 = arith.constant 1.000000e+00 : f32
    %415 = vector.broadcast %cst_246 : f32 to vector<2x32xf32>
    %416 = arith.subf %415, %409 : vector<2x32xf32>
    %417 = arith.mulf %416, %414 : vector<2x32xf32>
    %418 = arith.mulf %409, %335 : vector<2x32xf32>
    %419 = arith.addf %417, %418 : vector<2x32xf32>
    %c3_247 = arith.constant 3 : index
    %c22 = arith.constant 22 : index
    %c0_248 = arith.constant 0 : index
    %420 = vector.load %arg9[%c3_247, %c22, %c0_248] : memref<6x32x32xf32, #tpu.memory_space<vmem>>, vector<1x2x32xf32>
    %421 = vector.shape_cast %420 : vector<1x2x32xf32> to vector<2x32xf32>
    %c4_249 = arith.constant 4 : index
    %c22_250 = arith.constant 22 : index
    %c0_251 = arith.constant 0 : index
    %422 = vector.load %arg9[%c4_249, %c22_250, %c0_251] : memref<6x32x32xf32, #tpu.memory_space<vmem>>, vector<1x2x32xf32>
    %423 = vector.shape_cast %422 : vector<1x2x32xf32> to vector<2x32xf32>
    %c5_252 = arith.constant 5 : index
    %c22_253 = arith.constant 22 : index
    %c0_254 = arith.constant 0 : index
    %424 = vector.load %arg9[%c5_252, %c22_253, %c0_254] : memref<6x32x32xf32, #tpu.memory_space<vmem>>, vector<1x2x32xf32>
    %425 = vector.shape_cast %424 : vector<1x2x32xf32> to vector<2x32xf32>
    %426 = arith.truncf %367 : vector<2x32xf32> to vector<2x32xbf16>
    %cst_255 = arith.constant dense<0.000000e+00> : vector<2x32xf32>
    %427 = tpu.matmul %426, %37, %cst_255 {dimension_numbers = #tpu.dot_dimension_numbers<[1], [0], [0], [1], [0, 0, 1, 1], [], []>} : vector<2x32xbf16>, vector<32x32xbf16>, vector<2x32xf32> -> vector<2x32xf32>
    %cst_256 = arith.constant dense<0.000000e+00> : vector<2x32xf32>
    %428 = tpu.matmul %426, %39, %cst_256 {dimension_numbers = #tpu.dot_dimension_numbers<[1], [0], [0], [1], [0, 0, 1, 1], [], []>} : vector<2x32xbf16>, vector<32x32xbf16>, vector<2x32xf32> -> vector<2x32xf32>
    %cst_257 = arith.constant dense<0.000000e+00> : vector<2x32xf32>
    %429 = tpu.matmul %426, %41, %cst_257 {dimension_numbers = #tpu.dot_dimension_numbers<[1], [0], [0], [1], [0, 0, 1, 1], [], []>} : vector<2x32xbf16>, vector<32x32xbf16>, vector<2x32xf32> -> vector<2x32xf32>
    %430 = arith.addf %421, %427 : vector<2x32xf32>
    %431 = arith.negf %430 : vector<2x32xf32>
    %432 = math.exp %431 : vector<2x32xf32>
    %cst_258 = arith.constant 1.000000e+00 : f32
    %433 = vector.broadcast %cst_258 : f32 to vector<2x32xf32>
    %434 = arith.addf %433, %432 : vector<2x32xf32>
    %435 = arith.divf %433, %434 : vector<2x32xf32>
    %436 = arith.addf %423, %428 : vector<2x32xf32>
    %437 = arith.negf %436 : vector<2x32xf32>
    %438 = math.exp %437 : vector<2x32xf32>
    %cst_259 = arith.constant 1.000000e+00 : f32
    %439 = vector.broadcast %cst_259 : f32 to vector<2x32xf32>
    %440 = arith.addf %439, %438 : vector<2x32xf32>
    %441 = arith.divf %439, %440 : vector<2x32xf32>
    %442 = vector.broadcast %45 : vector<1x32xf32> to vector<2x32xf32>
    %443 = arith.addf %429, %442 : vector<2x32xf32>
    %444 = arith.mulf %435, %443 : vector<2x32xf32>
    %445 = arith.addf %425, %444 : vector<2x32xf32>
    %446 = math.tanh %445 : vector<2x32xf32>
    %cst_260 = arith.constant 1.000000e+00 : f32
    %447 = vector.broadcast %cst_260 : f32 to vector<2x32xf32>
    %448 = arith.subf %447, %441 : vector<2x32xf32>
    %449 = arith.mulf %448, %446 : vector<2x32xf32>
    %450 = arith.mulf %441, %367 : vector<2x32xf32>
    %451 = arith.addf %449, %450 : vector<2x32xf32>
    %c0_261 = arith.constant 0 : index
    %c4_262 = arith.constant 4 : index
    %c0_263 = arith.constant 0 : index
    %c0_264 = arith.constant 0 : index
    %452 = vector.load %arg10[%c0_261, %c4_262, %c0_263, %c0_264] : memref<2x16x2x32xf32, #tpu.memory_space<vmem>>, vector<1x1x2x32xf32>
    %453 = vector.shape_cast %452 : vector<1x1x2x32xf32> to vector<2x32xf32>
    %454 = vector.shape_cast %419 : vector<2x32xf32> to vector<1x1x2x32xf32>
    tpu.vector_store %arg10[%c0_261, %c4_262, %c0_263, %c0_264], %454 {strides = array<i32>} : memref<2x16x2x32xf32, #tpu.memory_space<vmem>>, vector<1x1x2x32xf32>,
    %c1_265 = arith.constant 1 : index
    %c11 = arith.constant 11 : index
    %c0_266 = arith.constant 0 : index
    %c0_267 = arith.constant 0 : index
    %455 = vector.load %arg10[%c1_265, %c11, %c0_266, %c0_267] : memref<2x16x2x32xf32, #tpu.memory_space<vmem>>, vector<1x1x2x32xf32>
    %456 = vector.shape_cast %455 : vector<1x1x2x32xf32> to vector<2x32xf32>
    %457 = vector.shape_cast %451 : vector<2x32xf32> to vector<1x1x2x32xf32>
    tpu.vector_store %arg10[%c1_265, %c11, %c0_266, %c0_267], %457 {strides = array<i32>} : memref<2x16x2x32xf32, #tpu.memory_space<vmem>>, vector<1x1x2x32xf32>,
    %458 = vector.broadcast %47 : vector<1x32xf32> to vector<2x32xf32>
    %459 = arith.mulf %419, %458 : vector<2x32xf32>
    %cst_268 = arith.constant dense<0.000000e+00> : vector<2xf32>
    %460 = vector.multi_reduction <add>, %459, %cst_268 [1] : vector<2x32xf32> to vector<2xf32>
    %461 = vector.shape_cast %460 : vector<2xf32> to vector<2x1xf32>
    %c0_269 = arith.constant 0 : index
    %c4_270 = arith.constant 4 : index
    %c0_271 = arith.constant 0 : index
    %c0_272 = arith.constant 0 : index
    %462 = vector.load %arg11[%c0_269, %c4_270, %c0_271, %c0_272] : memref<2x16x2x1xf32, #tpu.memory_space<vmem>>, vector<1x1x2x1xf32>
    %463 = vector.shape_cast %462 : vector<1x1x2x1xf32> to vector<2x1xf32>
    %464 = vector.shape_cast %461 : vector<2x1xf32> to vector<1x1x2x1xf32>
    tpu.vector_store %arg11[%c0_269, %c4_270, %c0_271, %c0_272], %464 {strides = array<i32>} : memref<2x16x2x1xf32, #tpu.memory_space<vmem>>, vector<1x1x2x1xf32>,
    %465 = vector.broadcast %49 : vector<1x32xf32> to vector<2x32xf32>
    %466 = arith.mulf %451, %465 : vector<2x32xf32>
    %cst_273 = arith.constant dense<0.000000e+00> : vector<2xf32>
    %467 = vector.multi_reduction <add>, %466, %cst_273 [1] : vector<2x32xf32> to vector<2xf32>
    %468 = vector.shape_cast %467 : vector<2xf32> to vector<2x1xf32>
    %c1_274 = arith.constant 1 : index
    %c11_275 = arith.constant 11 : index
    %c0_276 = arith.constant 0 : index
    %c0_277 = arith.constant 0 : index
    %469 = vector.load %arg11[%c1_274, %c11_275, %c0_276, %c0_277] : memref<2x16x2x1xf32, #tpu.memory_space<vmem>>, vector<1x1x2x1xf32>
    %470 = vector.shape_cast %469 : vector<1x1x2x1xf32> to vector<2x1xf32>
    %471 = vector.shape_cast %468 : vector<2x1xf32> to vector<1x1x2x1xf32>
    tpu.vector_store %arg11[%c1_274, %c11_275, %c0_276, %c0_277], %471 {strides = array<i32>} : memref<2x16x2x1xf32, #tpu.memory_space<vmem>>, vector<1x1x2x1xf32>,
    %c0_278 = arith.constant 0 : index
    %c10 = arith.constant 10 : index
    %c0_279 = arith.constant 0 : index
    %472 = vector.load %arg9[%c0_278, %c10, %c0_279] : memref<6x32x32xf32, #tpu.memory_space<vmem>>, vector<1x2x32xf32>
    %473 = vector.shape_cast %472 : vector<1x2x32xf32> to vector<2x32xf32>
    %c1_280 = arith.constant 1 : index
    %c10_281 = arith.constant 10 : index
    %c0_282 = arith.constant 0 : index
    %474 = vector.load %arg9[%c1_280, %c10_281, %c0_282] : memref<6x32x32xf32, #tpu.memory_space<vmem>>, vector<1x2x32xf32>
    %475 = vector.shape_cast %474 : vector<1x2x32xf32> to vector<2x32xf32>
    %c2_283 = arith.constant 2 : index
    %c10_284 = arith.constant 10 : index
    %c0_285 = arith.constant 0 : index
    %476 = vector.load %arg9[%c2_283, %c10_284, %c0_285] : memref<6x32x32xf32, #tpu.memory_space<vmem>>, vector<1x2x32xf32>
    %477 = vector.shape_cast %476 : vector<1x2x32xf32> to vector<2x32xf32>
    %478 = arith.truncf %419 : vector<2x32xf32> to vector<2x32xbf16>
    %cst_286 = arith.constant dense<0.000000e+00> : vector<2x32xf32>
    %479 = tpu.matmul %478, %31, %cst_286 {dimension_numbers = #tpu.dot_dimension_numbers<[1], [0], [0], [1], [0, 0, 1, 1], [], []>} : vector<2x32xbf16>, vector<32x32xbf16>, vector<2x32xf32> -> vector<2x32xf32>
    %cst_287 = arith.constant dense<0.000000e+00> : vector<2x32xf32>
    %480 = tpu.matmul %478, %33, %cst_287 {dimension_numbers = #tpu.dot_dimension_numbers<[1], [0], [0], [1], [0, 0, 1, 1], [], []>} : vector<2x32xbf16>, vector<32x32xbf16>, vector<2x32xf32> -> vector<2x32xf32>
    %cst_288 = arith.constant dense<0.000000e+00> : vector<2x32xf32>
    %481 = tpu.matmul %478, %35, %cst_288 {dimension_numbers = #tpu.dot_dimension_numbers<[1], [0], [0], [1], [0, 0, 1, 1], [], []>} : vector<2x32xbf16>, vector<32x32xbf16>, vector<2x32xf32> -> vector<2x32xf32>
    %482 = arith.addf %473, %479 : vector<2x32xf32>
    %483 = arith.negf %482 : vector<2x32xf32>
    %484 = math.exp %483 : vector<2x32xf32>
    %cst_289 = arith.constant 1.000000e+00 : f32
    %485 = vector.broadcast %cst_289 : f32 to vector<2x32xf32>
    %486 = arith.addf %485, %484 : vector<2x32xf32>
    %487 = arith.divf %485, %486 : vector<2x32xf32>
    %488 = arith.addf %475, %480 : vector<2x32xf32>
    %489 = arith.negf %488 : vector<2x32xf32>
    %490 = math.exp %489 : vector<2x32xf32>
    %cst_290 = arith.constant 1.000000e+00 : f32
    %491 = vector.broadcast %cst_290 : f32 to vector<2x32xf32>
    %492 = arith.addf %491, %490 : vector<2x32xf32>
    %493 = arith.divf %491, %492 : vector<2x32xf32>
    %494 = vector.broadcast %43 : vector<1x32xf32> to vector<2x32xf32>
    %495 = arith.addf %481, %494 : vector<2x32xf32>
    %496 = arith.mulf %487, %495 : vector<2x32xf32>
    %497 = arith.addf %477, %496 : vector<2x32xf32>
    %498 = math.tanh %497 : vector<2x32xf32>
    %cst_291 = arith.constant 1.000000e+00 : f32
    %499 = vector.broadcast %cst_291 : f32 to vector<2x32xf32>
    %500 = arith.subf %499, %493 : vector<2x32xf32>
    %501 = arith.mulf %500, %498 : vector<2x32xf32>
    %502 = arith.mulf %493, %419 : vector<2x32xf32>
    %503 = arith.addf %501, %502 : vector<2x32xf32>
    %c3_292 = arith.constant 3 : index
    %c20 = arith.constant 20 : index
    %c0_293 = arith.constant 0 : index
    %504 = vector.load %arg9[%c3_292, %c20, %c0_293] : memref<6x32x32xf32, #tpu.memory_space<vmem>>, vector<1x2x32xf32>
    %505 = vector.shape_cast %504 : vector<1x2x32xf32> to vector<2x32xf32>
    %c4_294 = arith.constant 4 : index
    %c20_295 = arith.constant 20 : index
    %c0_296 = arith.constant 0 : index
    %506 = vector.load %arg9[%c4_294, %c20_295, %c0_296] : memref<6x32x32xf32, #tpu.memory_space<vmem>>, vector<1x2x32xf32>
    %507 = vector.shape_cast %506 : vector<1x2x32xf32> to vector<2x32xf32>
    %c5_297 = arith.constant 5 : index
    %c20_298 = arith.constant 20 : index
    %c0_299 = arith.constant 0 : index
    %508 = vector.load %arg9[%c5_297, %c20_298, %c0_299] : memref<6x32x32xf32, #tpu.memory_space<vmem>>, vector<1x2x32xf32>
    %509 = vector.shape_cast %508 : vector<1x2x32xf32> to vector<2x32xf32>
    %510 = arith.truncf %451 : vector<2x32xf32> to vector<2x32xbf16>
    %cst_300 = arith.constant dense<0.000000e+00> : vector<2x32xf32>
    %511 = tpu.matmul %510, %37, %cst_300 {dimension_numbers = #tpu.dot_dimension_numbers<[1], [0], [0], [1], [0, 0, 1, 1], [], []>} : vector<2x32xbf16>, vector<32x32xbf16>, vector<2x32xf32> -> vector<2x32xf32>
    %cst_301 = arith.constant dense<0.000000e+00> : vector<2x32xf32>
    %512 = tpu.matmul %510, %39, %cst_301 {dimension_numbers = #tpu.dot_dimension_numbers<[1], [0], [0], [1], [0, 0, 1, 1], [], []>} : vector<2x32xbf16>, vector<32x32xbf16>, vector<2x32xf32> -> vector<2x32xf32>
    %cst_302 = arith.constant dense<0.000000e+00> : vector<2x32xf32>
    %513 = tpu.matmul %510, %41, %cst_302 {dimension_numbers = #tpu.dot_dimension_numbers<[1], [0], [0], [1], [0, 0, 1, 1], [], []>} : vector<2x32xbf16>, vector<32x32xbf16>, vector<2x32xf32> -> vector<2x32xf32>
    %514 = arith.addf %505, %511 : vector<2x32xf32>
    %515 = arith.negf %514 : vector<2x32xf32>
    %516 = math.exp %515 : vector<2x32xf32>
    %cst_303 = arith.constant 1.000000e+00 : f32
    %517 = vector.broadcast %cst_303 : f32 to vector<2x32xf32>
    %518 = arith.addf %517, %516 : vector<2x32xf32>
    %519 = arith.divf %517, %518 : vector<2x32xf32>
    %520 = arith.addf %507, %512 : vector<2x32xf32>
    %521 = arith.negf %520 : vector<2x32xf32>
    %522 = math.exp %521 : vector<2x32xf32>
    %cst_304 = arith.constant 1.000000e+00 : f32
    %523 = vector.broadcast %cst_304 : f32 to vector<2x32xf32>
    %524 = arith.addf %523, %522 : vector<2x32xf32>
    %525 = arith.divf %523, %524 : vector<2x32xf32>
    %526 = vector.broadcast %45 : vector<1x32xf32> to vector<2x32xf32>
    %527 = arith.addf %513, %526 : vector<2x32xf32>
    %528 = arith.mulf %519, %527 : vector<2x32xf32>
    %529 = arith.addf %509, %528 : vector<2x32xf32>
    %530 = math.tanh %529 : vector<2x32xf32>
    %cst_305 = arith.constant 1.000000e+00 : f32
    %531 = vector.broadcast %cst_305 : f32 to vector<2x32xf32>
    %532 = arith.subf %531, %525 : vector<2x32xf32>
    %533 = arith.mulf %532, %530 : vector<2x32xf32>
    %534 = arith.mulf %525, %451 : vector<2x32xf32>
    %535 = arith.addf %533, %534 : vector<2x32xf32>
    %c0_306 = arith.constant 0 : index
    %c5_307 = arith.constant 5 : index
    %c0_308 = arith.constant 0 : index
    %c0_309 = arith.constant 0 : index
    %536 = vector.load %arg10[%c0_306, %c5_307, %c0_308, %c0_309] : memref<2x16x2x32xf32, #tpu.memory_space<vmem>>, vector<1x1x2x32xf32>
    %537 = vector.shape_cast %536 : vector<1x1x2x32xf32> to vector<2x32xf32>
    %538 = vector.shape_cast %503 : vector<2x32xf32> to vector<1x1x2x32xf32>
    tpu.vector_store %arg10[%c0_306, %c5_307, %c0_308, %c0_309], %538 {strides = array<i32>} : memref<2x16x2x32xf32, #tpu.memory_space<vmem>>, vector<1x1x2x32xf32>,
    %c1_310 = arith.constant 1 : index
    %c10_311 = arith.constant 10 : index
    %c0_312 = arith.constant 0 : index
    %c0_313 = arith.constant 0 : index
    %539 = vector.load %arg10[%c1_310, %c10_311, %c0_312, %c0_313] : memref<2x16x2x32xf32, #tpu.memory_space<vmem>>, vector<1x1x2x32xf32>
    %540 = vector.shape_cast %539 : vector<1x1x2x32xf32> to vector<2x32xf32>
    %541 = vector.shape_cast %535 : vector<2x32xf32> to vector<1x1x2x32xf32>
    tpu.vector_store %arg10[%c1_310, %c10_311, %c0_312, %c0_313], %541 {strides = array<i32>} : memref<2x16x2x32xf32, #tpu.memory_space<vmem>>, vector<1x1x2x32xf32>,
    %542 = vector.broadcast %47 : vector<1x32xf32> to vector<2x32xf32>
    %543 = arith.mulf %503, %542 : vector<2x32xf32>
    %cst_314 = arith.constant dense<0.000000e+00> : vector<2xf32>
    %544 = vector.multi_reduction <add>, %543, %cst_314 [1] : vector<2x32xf32> to vector<2xf32>
    %545 = vector.shape_cast %544 : vector<2xf32> to vector<2x1xf32>
    %c0_315 = arith.constant 0 : index
    %c5_316 = arith.constant 5 : index
    %c0_317 = arith.constant 0 : index
    %c0_318 = arith.constant 0 : index
    %546 = vector.load %arg11[%c0_315, %c5_316, %c0_317, %c0_318] : memref<2x16x2x1xf32, #tpu.memory_space<vmem>>, vector<1x1x2x1xf32>
    %547 = vector.shape_cast %546 : vector<1x1x2x1xf32> to vector<2x1xf32>
    %548 = vector.shape_cast %545 : vector<2x1xf32> to vector<1x1x2x1xf32>
    tpu.vector_store %arg11[%c0_315, %c5_316, %c0_317, %c0_318], %548 {strides = array<i32>} : memref<2x16x2x1xf32, #tpu.memory_space<vmem>>, vector<1x1x2x1xf32>,
    %549 = vector.broadcast %49 : vector<1x32xf32> to vector<2x32xf32>
    %550 = arith.mulf %535, %549 : vector<2x32xf32>
    %cst_319 = arith.constant dense<0.000000e+00> : vector<2xf32>
    %551 = vector.multi_reduction <add>, %550, %cst_319 [1] : vector<2x32xf32> to vector<2xf32>
    %552 = vector.shape_cast %551 : vector<2xf32> to vector<2x1xf32>
    %c1_320 = arith.constant 1 : index
    %c10_321 = arith.constant 10 : index
    %c0_322 = arith.constant 0 : index
    %c0_323 = arith.constant 0 : index
    %553 = vector.load %arg11[%c1_320, %c10_321, %c0_322, %c0_323] : memref<2x16x2x1xf32, #tpu.memory_space<vmem>>, vector<1x1x2x1xf32>
    %554 = vector.shape_cast %553 : vector<1x1x2x1xf32> to vector<2x1xf32>
    %555 = vector.shape_cast %552 : vector<2x1xf32> to vector<1x1x2x1xf32>
    tpu.vector_store %arg11[%c1_320, %c10_321, %c0_322, %c0_323], %555 {strides = array<i32>} : memref<2x16x2x1xf32, #tpu.memory_space<vmem>>, vector<1x1x2x1xf32>,
    %c0_324 = arith.constant 0 : index
    %c12_325 = arith.constant 12 : index
    %c0_326 = arith.constant 0 : index
    %556 = vector.load %arg9[%c0_324, %c12_325, %c0_326] : memref<6x32x32xf32, #tpu.memory_space<vmem>>, vector<1x2x32xf32>
    %557 = vector.shape_cast %556 : vector<1x2x32xf32> to vector<2x32xf32>
    %c1_327 = arith.constant 1 : index
    %c12_328 = arith.constant 12 : index
    %c0_329 = arith.constant 0 : index
    %558 = vector.load %arg9[%c1_327, %c12_328, %c0_329] : memref<6x32x32xf32, #tpu.memory_space<vmem>>, vector<1x2x32xf32>
    %559 = vector.shape_cast %558 : vector<1x2x32xf32> to vector<2x32xf32>
    %c2_330 = arith.constant 2 : index
    %c12_331 = arith.constant 12 : index
    %c0_332 = arith.constant 0 : index
    %560 = vector.load %arg9[%c2_330, %c12_331, %c0_332] : memref<6x32x32xf32, #tpu.memory_space<vmem>>, vector<1x2x32xf32>
    %561 = vector.shape_cast %560 : vector<1x2x32xf32> to vector<2x32xf32>
    %562 = arith.truncf %503 : vector<2x32xf32> to vector<2x32xbf16>
    %cst_333 = arith.constant dense<0.000000e+00> : vector<2x32xf32>
    %563 = tpu.matmul %562, %31, %cst_333 {dimension_numbers = #tpu.dot_dimension_numbers<[1], [0], [0], [1], [0, 0, 1, 1], [], []>} : vector<2x32xbf16>, vector<32x32xbf16>, vector<2x32xf32> -> vector<2x32xf32>
    %cst_334 = arith.constant dense<0.000000e+00> : vector<2x32xf32>
    %564 = tpu.matmul %562, %33, %cst_334 {dimension_numbers = #tpu.dot_dimension_numbers<[1], [0], [0], [1], [0, 0, 1, 1], [], []>} : vector<2x32xbf16>, vector<32x32xbf16>, vector<2x32xf32> -> vector<2x32xf32>
    %cst_335 = arith.constant dense<0.000000e+00> : vector<2x32xf32>
    %565 = tpu.matmul %562, %35, %cst_335 {dimension_numbers = #tpu.dot_dimension_numbers<[1], [0], [0], [1], [0, 0, 1, 1], [], []>} : vector<2x32xbf16>, vector<32x32xbf16>, vector<2x32xf32> -> vector<2x32xf32>
    %566 = arith.addf %557, %563 : vector<2x32xf32>
    %567 = arith.negf %566 : vector<2x32xf32>
    %568 = math.exp %567 : vector<2x32xf32>
    %cst_336 = arith.constant 1.000000e+00 : f32
    %569 = vector.broadcast %cst_336 : f32 to vector<2x32xf32>
    %570 = arith.addf %569, %568 : vector<2x32xf32>
    %571 = arith.divf %569, %570 : vector<2x32xf32>
    %572 = arith.addf %559, %564 : vector<2x32xf32>
    %573 = arith.negf %572 : vector<2x32xf32>
    %574 = math.exp %573 : vector<2x32xf32>
    %cst_337 = arith.constant 1.000000e+00 : f32
    %575 = vector.broadcast %cst_337 : f32 to vector<2x32xf32>
    %576 = arith.addf %575, %574 : vector<2x32xf32>
    %577 = arith.divf %575, %576 : vector<2x32xf32>
    %578 = vector.broadcast %43 : vector<1x32xf32> to vector<2x32xf32>
    %579 = arith.addf %565, %578 : vector<2x32xf32>
    %580 = arith.mulf %571, %579 : vector<2x32xf32>
    %581 = arith.addf %561, %580 : vector<2x32xf32>
    %582 = math.tanh %581 : vector<2x32xf32>
    %cst_338 = arith.constant 1.000000e+00 : f32
    %583 = vector.broadcast %cst_338 : f32 to vector<2x32xf32>
    %584 = arith.subf %583, %577 : vector<2x32xf32>
    %585 = arith.mulf %584, %582 : vector<2x32xf32>
    %586 = arith.mulf %577, %503 : vector<2x32xf32>
    %587 = arith.addf %585, %586 : vector<2x32xf32>
    %c3_339 = arith.constant 3 : index
    %c18 = arith.constant 18 : index
    %c0_340 = arith.constant 0 : index
    %588 = vector.load %arg9[%c3_339, %c18, %c0_340] : memref<6x32x32xf32, #tpu.memory_space<vmem>>, vector<1x2x32xf32>
    %589 = vector.shape_cast %588 : vector<1x2x32xf32> to vector<2x32xf32>
    %c4_341 = arith.constant 4 : index
    %c18_342 = arith.constant 18 : index
    %c0_343 = arith.constant 0 : index
    %590 = vector.load %arg9[%c4_341, %c18_342, %c0_343] : memref<6x32x32xf32, #tpu.memory_space<vmem>>, vector<1x2x32xf32>
    %591 = vector.shape_cast %590 : vector<1x2x32xf32> to vector<2x32xf32>
    %c5_344 = arith.constant 5 : index
    %c18_345 = arith.constant 18 : index
    %c0_346 = arith.constant 0 : index
    %592 = vector.load %arg9[%c5_344, %c18_345, %c0_346] : memref<6x32x32xf32, #tpu.memory_space<vmem>>, vector<1x2x32xf32>
    %593 = vector.shape_cast %592 : vector<1x2x32xf32> to vector<2x32xf32>
    %594 = arith.truncf %535 : vector<2x32xf32> to vector<2x32xbf16>
    %cst_347 = arith.constant dense<0.000000e+00> : vector<2x32xf32>
    %595 = tpu.matmul %594, %37, %cst_347 {dimension_numbers = #tpu.dot_dimension_numbers<[1], [0], [0], [1], [0, 0, 1, 1], [], []>} : vector<2x32xbf16>, vector<32x32xbf16>, vector<2x32xf32> -> vector<2x32xf32>
    %cst_348 = arith.constant dense<0.000000e+00> : vector<2x32xf32>
    %596 = tpu.matmul %594, %39, %cst_348 {dimension_numbers = #tpu.dot_dimension_numbers<[1], [0], [0], [1], [0, 0, 1, 1], [], []>} : vector<2x32xbf16>, vector<32x32xbf16>, vector<2x32xf32> -> vector<2x32xf32>
    %cst_349 = arith.constant dense<0.000000e+00> : vector<2x32xf32>
    %597 = tpu.matmul %594, %41, %cst_349 {dimension_numbers = #tpu.dot_dimension_numbers<[1], [0], [0], [1], [0, 0, 1, 1], [], []>} : vector<2x32xbf16>, vector<32x32xbf16>, vector<2x32xf32> -> vector<2x32xf32>
    %598 = arith.addf %589, %595 : vector<2x32xf32>
    %599 = arith.negf %598 : vector<2x32xf32>
    %600 = math.exp %599 : vector<2x32xf32>
    %cst_350 = arith.constant 1.000000e+00 : f32
    %601 = vector.broadcast %cst_350 : f32 to vector<2x32xf32>
    %602 = arith.addf %601, %600 : vector<2x32xf32>
    %603 = arith.divf %601, %602 : vector<2x32xf32>
    %604 = arith.addf %591, %596 : vector<2x32xf32>
    %605 = arith.negf %604 : vector<2x32xf32>
    %606 = math.exp %605 : vector<2x32xf32>
    %cst_351 = arith.constant 1.000000e+00 : f32
    %607 = vector.broadcast %cst_351 : f32 to vector<2x32xf32>
    %608 = arith.addf %607, %606 : vector<2x32xf32>
    %609 = arith.divf %607, %608 : vector<2x32xf32>
    %610 = vector.broadcast %45 : vector<1x32xf32> to vector<2x32xf32>
    %611 = arith.addf %597, %610 : vector<2x32xf32>
    %612 = arith.mulf %603, %611 : vector<2x32xf32>
    %613 = arith.addf %593, %612 : vector<2x32xf32>
    %614 = math.tanh %613 : vector<2x32xf32>
    %cst_352 = arith.constant 1.000000e+00 : f32
    %615 = vector.broadcast %cst_352 : f32 to vector<2x32xf32>
    %616 = arith.subf %615, %609 : vector<2x32xf32>
    %617 = arith.mulf %616, %614 : vector<2x32xf32>
    %618 = arith.mulf %609, %535 : vector<2x32xf32>
    %619 = arith.addf %617, %618 : vector<2x32xf32>
    %c0_353 = arith.constant 0 : index
    %c6_354 = arith.constant 6 : index
    %c0_355 = arith.constant 0 : index
    %c0_356 = arith.constant 0 : index
    %620 = vector.load %arg10[%c0_353, %c6_354, %c0_355, %c0_356] : memref<2x16x2x32xf32, #tpu.memory_space<vmem>>, vector<1x1x2x32xf32>
    %621 = vector.shape_cast %620 : vector<1x1x2x32xf32> to vector<2x32xf32>
    %622 = vector.shape_cast %587 : vector<2x32xf32> to vector<1x1x2x32xf32>
    tpu.vector_store %arg10[%c0_353, %c6_354, %c0_355, %c0_356], %622 {strides = array<i32>} : memref<2x16x2x32xf32, #tpu.memory_space<vmem>>, vector<1x1x2x32xf32>,
    %c1_357 = arith.constant 1 : index
    %c9 = arith.constant 9 : index
    %c0_358 = arith.constant 0 : index
    %c0_359 = arith.constant 0 : index
    %623 = vector.load %arg10[%c1_357, %c9, %c0_358, %c0_359] : memref<2x16x2x32xf32, #tpu.memory_space<vmem>>, vector<1x1x2x32xf32>
    %624 = vector.shape_cast %623 : vector<1x1x2x32xf32> to vector<2x32xf32>
    %625 = vector.shape_cast %619 : vector<2x32xf32> to vector<1x1x2x32xf32>
    tpu.vector_store %arg10[%c1_357, %c9, %c0_358, %c0_359], %625 {strides = array<i32>} : memref<2x16x2x32xf32, #tpu.memory_space<vmem>>, vector<1x1x2x32xf32>,
    %626 = vector.broadcast %47 : vector<1x32xf32> to vector<2x32xf32>
    %627 = arith.mulf %587, %626 : vector<2x32xf32>
    %cst_360 = arith.constant dense<0.000000e+00> : vector<2xf32>
    %628 = vector.multi_reduction <add>, %627, %cst_360 [1] : vector<2x32xf32> to vector<2xf32>
    %629 = vector.shape_cast %628 : vector<2xf32> to vector<2x1xf32>
    %c0_361 = arith.constant 0 : index
    %c6_362 = arith.constant 6 : index
    %c0_363 = arith.constant 0 : index
    %c0_364 = arith.constant 0 : index
    %630 = vector.load %arg11[%c0_361, %c6_362, %c0_363, %c0_364] : memref<2x16x2x1xf32, #tpu.memory_space<vmem>>, vector<1x1x2x1xf32>
    %631 = vector.shape_cast %630 : vector<1x1x2x1xf32> to vector<2x1xf32>
    %632 = vector.shape_cast %629 : vector<2x1xf32> to vector<1x1x2x1xf32>
    tpu.vector_store %arg11[%c0_361, %c6_362, %c0_363, %c0_364], %632 {strides = array<i32>} : memref<2x16x2x1xf32, #tpu.memory_space<vmem>>, vector<1x1x2x1xf32>,
    %633 = vector.broadcast %49 : vector<1x32xf32> to vector<2x32xf32>
    %634 = arith.mulf %619, %633 : vector<2x32xf32>
    %cst_365 = arith.constant dense<0.000000e+00> : vector<2xf32>
    %635 = vector.multi_reduction <add>, %634, %cst_365 [1] : vector<2x32xf32> to vector<2xf32>
    %636 = vector.shape_cast %635 : vector<2xf32> to vector<2x1xf32>
    %c1_366 = arith.constant 1 : index
    %c9_367 = arith.constant 9 : index
    %c0_368 = arith.constant 0 : index
    %c0_369 = arith.constant 0 : index
    %637 = vector.load %arg11[%c1_366, %c9_367, %c0_368, %c0_369] : memref<2x16x2x1xf32, #tpu.memory_space<vmem>>, vector<1x1x2x1xf32>
    %638 = vector.shape_cast %637 : vector<1x1x2x1xf32> to vector<2x1xf32>
    %639 = vector.shape_cast %636 : vector<2x1xf32> to vector<1x1x2x1xf32>
    tpu.vector_store %arg11[%c1_366, %c9_367, %c0_368, %c0_369], %639 {strides = array<i32>} : memref<2x16x2x1xf32, #tpu.memory_space<vmem>>, vector<1x1x2x1xf32>,
    %c0_370 = arith.constant 0 : index
    %c14_371 = arith.constant 14 : index
    %c0_372 = arith.constant 0 : index
    %640 = vector.load %arg9[%c0_370, %c14_371, %c0_372] : memref<6x32x32xf32, #tpu.memory_space<vmem>>, vector<1x2x32xf32>
    %641 = vector.shape_cast %640 : vector<1x2x32xf32> to vector<2x32xf32>
    %c1_373 = arith.constant 1 : index
    %c14_374 = arith.constant 14 : index
    %c0_375 = arith.constant 0 : index
    %642 = vector.load %arg9[%c1_373, %c14_374, %c0_375] : memref<6x32x32xf32, #tpu.memory_space<vmem>>, vector<1x2x32xf32>
    %643 = vector.shape_cast %642 : vector<1x2x32xf32> to vector<2x32xf32>
    %c2_376 = arith.constant 2 : index
    %c14_377 = arith.constant 14 : index
    %c0_378 = arith.constant 0 : index
    %644 = vector.load %arg9[%c2_376, %c14_377, %c0_378] : memref<6x32x32xf32, #tpu.memory_space<vmem>>, vector<1x2x32xf32>
    %645 = vector.shape_cast %644 : vector<1x2x32xf32> to vector<2x32xf32>
    %646 = arith.truncf %587 : vector<2x32xf32> to vector<2x32xbf16>
    %cst_379 = arith.constant dense<0.000000e+00> : vector<2x32xf32>
    %647 = tpu.matmul %646, %31, %cst_379 {dimension_numbers = #tpu.dot_dimension_numbers<[1], [0], [0], [1], [0, 0, 1, 1], [], []>} : vector<2x32xbf16>, vector<32x32xbf16>, vector<2x32xf32> -> vector<2x32xf32>
    %cst_380 = arith.constant dense<0.000000e+00> : vector<2x32xf32>
    %648 = tpu.matmul %646, %33, %cst_380 {dimension_numbers = #tpu.dot_dimension_numbers<[1], [0], [0], [1], [0, 0, 1, 1], [], []>} : vector<2x32xbf16>, vector<32x32xbf16>, vector<2x32xf32> -> vector<2x32xf32>
    %cst_381 = arith.constant dense<0.000000e+00> : vector<2x32xf32>
    %649 = tpu.matmul %646, %35, %cst_381 {dimension_numbers = #tpu.dot_dimension_numbers<[1], [0], [0], [1], [0, 0, 1, 1], [], []>} : vector<2x32xbf16>, vector<32x32xbf16>, vector<2x32xf32> -> vector<2x32xf32>
    %650 = arith.addf %641, %647 : vector<2x32xf32>
    %651 = arith.negf %650 : vector<2x32xf32>
    %652 = math.exp %651 : vector<2x32xf32>
    %cst_382 = arith.constant 1.000000e+00 : f32
    %653 = vector.broadcast %cst_382 : f32 to vector<2x32xf32>
    %654 = arith.addf %653, %652 : vector<2x32xf32>
    %655 = arith.divf %653, %654 : vector<2x32xf32>
    %656 = arith.addf %643, %648 : vector<2x32xf32>
    %657 = arith.negf %656 : vector<2x32xf32>
    %658 = math.exp %657 : vector<2x32xf32>
    %cst_383 = arith.constant 1.000000e+00 : f32
    %659 = vector.broadcast %cst_383 : f32 to vector<2x32xf32>
    %660 = arith.addf %659, %658 : vector<2x32xf32>
    %661 = arith.divf %659, %660 : vector<2x32xf32>
    %662 = vector.broadcast %43 : vector<1x32xf32> to vector<2x32xf32>
    %663 = arith.addf %649, %662 : vector<2x32xf32>
    %664 = arith.mulf %655, %663 : vector<2x32xf32>
    %665 = arith.addf %645, %664 : vector<2x32xf32>
    %666 = math.tanh %665 : vector<2x32xf32>
    %cst_384 = arith.constant 1.000000e+00 : f32
    %667 = vector.broadcast %cst_384 : f32 to vector<2x32xf32>
    %668 = arith.subf %667, %661 : vector<2x32xf32>
    %669 = arith.mulf %668, %666 : vector<2x32xf32>
    %670 = arith.mulf %661, %587 : vector<2x32xf32>
    %671 = arith.addf %669, %670 : vector<2x32xf32>
    %c3_385 = arith.constant 3 : index
    %c16 = arith.constant 16 : index
    %c0_386 = arith.constant 0 : index
    %672 = vector.load %arg9[%c3_385, %c16, %c0_386] : memref<6x32x32xf32, #tpu.memory_space<vmem>>, vector<1x2x32xf32>
    %673 = vector.shape_cast %672 : vector<1x2x32xf32> to vector<2x32xf32>
    %c4_387 = arith.constant 4 : index
    %c16_388 = arith.constant 16 : index
    %c0_389 = arith.constant 0 : index
    %674 = vector.load %arg9[%c4_387, %c16_388, %c0_389] : memref<6x32x32xf32, #tpu.memory_space<vmem>>, vector<1x2x32xf32>
    %675 = vector.shape_cast %674 : vector<1x2x32xf32> to vector<2x32xf32>
    %c5_390 = arith.constant 5 : index
    %c16_391 = arith.constant 16 : index
    %c0_392 = arith.constant 0 : index
    %676 = vector.load %arg9[%c5_390, %c16_391, %c0_392] : memref<6x32x32xf32, #tpu.memory_space<vmem>>, vector<1x2x32xf32>
    %677 = vector.shape_cast %676 : vector<1x2x32xf32> to vector<2x32xf32>
    %678 = arith.truncf %619 : vector<2x32xf32> to vector<2x32xbf16>
    %cst_393 = arith.constant dense<0.000000e+00> : vector<2x32xf32>
    %679 = tpu.matmul %678, %37, %cst_393 {dimension_numbers = #tpu.dot_dimension_numbers<[1], [0], [0], [1], [0, 0, 1, 1], [], []>} : vector<2x32xbf16>, vector<32x32xbf16>, vector<2x32xf32> -> vector<2x32xf32>
    %cst_394 = arith.constant dense<0.000000e+00> : vector<2x32xf32>
    %680 = tpu.matmul %678, %39, %cst_394 {dimension_numbers = #tpu.dot_dimension_numbers<[1], [0], [0], [1], [0, 0, 1, 1], [], []>} : vector<2x32xbf16>, vector<32x32xbf16>, vector<2x32xf32> -> vector<2x32xf32>
    %cst_395 = arith.constant dense<0.000000e+00> : vector<2x32xf32>
    %681 = tpu.matmul %678, %41, %cst_395 {dimension_numbers = #tpu.dot_dimension_numbers<[1], [0], [0], [1], [0, 0, 1, 1], [], []>} : vector<2x32xbf16>, vector<32x32xbf16>, vector<2x32xf32> -> vector<2x32xf32>
    %682 = arith.addf %673, %679 : vector<2x32xf32>
    %683 = arith.negf %682 : vector<2x32xf32>
    %684 = math.exp %683 : vector<2x32xf32>
    %cst_396 = arith.constant 1.000000e+00 : f32
    %685 = vector.broadcast %cst_396 : f32 to vector<2x32xf32>
    %686 = arith.addf %685, %684 : vector<2x32xf32>
    %687 = arith.divf %685, %686 : vector<2x32xf32>
    %688 = arith.addf %675, %680 : vector<2x32xf32>
    %689 = arith.negf %688 : vector<2x32xf32>
    %690 = math.exp %689 : vector<2x32xf32>
    %cst_397 = arith.constant 1.000000e+00 : f32
    %691 = vector.broadcast %cst_397 : f32 to vector<2x32xf32>
    %692 = arith.addf %691, %690 : vector<2x32xf32>
    %693 = arith.divf %691, %692 : vector<2x32xf32>
    %694 = vector.broadcast %45 : vector<1x32xf32> to vector<2x32xf32>
    %695 = arith.addf %681, %694 : vector<2x32xf32>
    %696 = arith.mulf %687, %695 : vector<2x32xf32>
    %697 = arith.addf %677, %696 : vector<2x32xf32>
    %698 = math.tanh %697 : vector<2x32xf32>
    %cst_398 = arith.constant 1.000000e+00 : f32
    %699 = vector.broadcast %cst_398 : f32 to vector<2x32xf32>
    %700 = arith.subf %699, %693 : vector<2x32xf32>
    %701 = arith.mulf %700, %698 : vector<2x32xf32>
    %702 = arith.mulf %693, %619 : vector<2x32xf32>
    %703 = arith.addf %701, %702 : vector<2x32xf32>
    %c0_399 = arith.constant 0 : index
    %c7 = arith.constant 7 : index
    %c0_400 = arith.constant 0 : index
    %c0_401 = arith.constant 0 : index
    %704 = vector.load %arg10[%c0_399, %c7, %c0_400, %c0_401] : memref<2x16x2x32xf32, #tpu.memory_space<vmem>>, vector<1x1x2x32xf32>
    %705 = vector.shape_cast %704 : vector<1x1x2x32xf32> to vector<2x32xf32>
    %706 = vector.shape_cast %671 : vector<2x32xf32> to vector<1x1x2x32xf32>
    tpu.vector_store %arg10[%c0_399, %c7, %c0_400, %c0_401], %706 {strides = array<i32>} : memref<2x16x2x32xf32, #tpu.memory_space<vmem>>, vector<1x1x2x32xf32>,
    %c1_402 = arith.constant 1 : index
    %c8_403 = arith.constant 8 : index
    %c0_404 = arith.constant 0 : index
    %c0_405 = arith.constant 0 : index
    %707 = vector.load %arg10[%c1_402, %c8_403, %c0_404, %c0_405] : memref<2x16x2x32xf32, #tpu.memory_space<vmem>>, vector<1x1x2x32xf32>
    %708 = vector.shape_cast %707 : vector<1x1x2x32xf32> to vector<2x32xf32>
    %709 = vector.shape_cast %703 : vector<2x32xf32> to vector<1x1x2x32xf32>
    tpu.vector_store %arg10[%c1_402, %c8_403, %c0_404, %c0_405], %709 {strides = array<i32>} : memref<2x16x2x32xf32, #tpu.memory_space<vmem>>, vector<1x1x2x32xf32>,
    %710 = vector.broadcast %47 : vector<1x32xf32> to vector<2x32xf32>
    %711 = arith.mulf %671, %710 : vector<2x32xf32>
    %cst_406 = arith.constant dense<0.000000e+00> : vector<2xf32>
    %712 = vector.multi_reduction <add>, %711, %cst_406 [1] : vector<2x32xf32> to vector<2xf32>
    %713 = vector.shape_cast %712 : vector<2xf32> to vector<2x1xf32>
    %c0_407 = arith.constant 0 : index
    %c7_408 = arith.constant 7 : index
    %c0_409 = arith.constant 0 : index
    %c0_410 = arith.constant 0 : index
    %714 = vector.load %arg11[%c0_407, %c7_408, %c0_409, %c0_410] : memref<2x16x2x1xf32, #tpu.memory_space<vmem>>, vector<1x1x2x1xf32>
    %715 = vector.shape_cast %714 : vector<1x1x2x1xf32> to vector<2x1xf32>
    %716 = vector.shape_cast %713 : vector<2x1xf32> to vector<1x1x2x1xf32>
    tpu.vector_store %arg11[%c0_407, %c7_408, %c0_409, %c0_410], %716 {strides = array<i32>} : memref<2x16x2x1xf32, #tpu.memory_space<vmem>>, vector<1x1x2x1xf32>,
    %717 = vector.broadcast %49 : vector<1x32xf32> to vector<2x32xf32>
    %718 = arith.mulf %703, %717 : vector<2x32xf32>
    %cst_411 = arith.constant dense<0.000000e+00> : vector<2xf32>
    %719 = vector.multi_reduction <add>, %718, %cst_411 [1] : vector<2x32xf32> to vector<2xf32>
    %720 = vector.shape_cast %719 : vector<2xf32> to vector<2x1xf32>
    %c1_412 = arith.constant 1 : index
    %c8_413 = arith.constant 8 : index
    %c0_414 = arith.constant 0 : index
    %c0_415 = arith.constant 0 : index
    %721 = vector.load %arg11[%c1_412, %c8_413, %c0_414, %c0_415] : memref<2x16x2x1xf32, #tpu.memory_space<vmem>>, vector<1x1x2x1xf32>
    %722 = vector.shape_cast %721 : vector<1x1x2x1xf32> to vector<2x1xf32>
    %723 = vector.shape_cast %720 : vector<2x1xf32> to vector<1x1x2x1xf32>
    tpu.vector_store %arg11[%c1_412, %c8_413, %c0_414, %c0_415], %723 {strides = array<i32>} : memref<2x16x2x1xf32, #tpu.memory_space<vmem>>, vector<1x1x2x1xf32>,
    %c0_416 = arith.constant 0 : index
    %c16_417 = arith.constant 16 : index
    %c0_418 = arith.constant 0 : index
    %724 = vector.load %arg9[%c0_416, %c16_417, %c0_418] : memref<6x32x32xf32, #tpu.memory_space<vmem>>, vector<1x2x32xf32>
    %725 = vector.shape_cast %724 : vector<1x2x32xf32> to vector<2x32xf32>
    %c1_419 = arith.constant 1 : index
    %c16_420 = arith.constant 16 : index
    %c0_421 = arith.constant 0 : index
    %726 = vector.load %arg9[%c1_419, %c16_420, %c0_421] : memref<6x32x32xf32, #tpu.memory_space<vmem>>, vector<1x2x32xf32>
    %727 = vector.shape_cast %726 : vector<1x2x32xf32> to vector<2x32xf32>
    %c2_422 = arith.constant 2 : index
    %c16_423 = arith.constant 16 : index
    %c0_424 = arith.constant 0 : index
    %728 = vector.load %arg9[%c2_422, %c16_423, %c0_424] : memref<6x32x32xf32, #tpu.memory_space<vmem>>, vector<1x2x32xf32>
    %729 = vector.shape_cast %728 : vector<1x2x32xf32> to vector<2x32xf32>
    %730 = arith.truncf %671 : vector<2x32xf32> to vector<2x32xbf16>
    %cst_425 = arith.constant dense<0.000000e+00> : vector<2x32xf32>
    %731 = tpu.matmul %730, %31, %cst_425 {dimension_numbers = #tpu.dot_dimension_numbers<[1], [0], [0], [1], [0, 0, 1, 1], [], []>} : vector<2x32xbf16>, vector<32x32xbf16>, vector<2x32xf32> -> vector<2x32xf32>
    %cst_426 = arith.constant dense<0.000000e+00> : vector<2x32xf32>
    %732 = tpu.matmul %730, %33, %cst_426 {dimension_numbers = #tpu.dot_dimension_numbers<[1], [0], [0], [1], [0, 0, 1, 1], [], []>} : vector<2x32xbf16>, vector<32x32xbf16>, vector<2x32xf32> -> vector<2x32xf32>
    %cst_427 = arith.constant dense<0.000000e+00> : vector<2x32xf32>
    %733 = tpu.matmul %730, %35, %cst_427 {dimension_numbers = #tpu.dot_dimension_numbers<[1], [0], [0], [1], [0, 0, 1, 1], [], []>} : vector<2x32xbf16>, vector<32x32xbf16>, vector<2x32xf32> -> vector<2x32xf32>
    %734 = arith.addf %725, %731 : vector<2x32xf32>
    %735 = arith.negf %734 : vector<2x32xf32>
    %736 = math.exp %735 : vector<2x32xf32>
    %cst_428 = arith.constant 1.000000e+00 : f32
    %737 = vector.broadcast %cst_428 : f32 to vector<2x32xf32>
    %738 = arith.addf %737, %736 : vector<2x32xf32>
    %739 = arith.divf %737, %738 : vector<2x32xf32>
    %740 = arith.addf %727, %732 : vector<2x32xf32>
    %741 = arith.negf %740 : vector<2x32xf32>
    %742 = math.exp %741 : vector<2x32xf32>
    %cst_429 = arith.constant 1.000000e+00 : f32
    %743 = vector.broadcast %cst_429 : f32 to vector<2x32xf32>
    %744 = arith.addf %743, %742 : vector<2x32xf32>
    %745 = arith.divf %743, %744 : vector<2x32xf32>
    %746 = vector.broadcast %43 : vector<1x32xf32> to vector<2x32xf32>
    %747 = arith.addf %733, %746 : vector<2x32xf32>
    %748 = arith.mulf %739, %747 : vector<2x32xf32>
    %749 = arith.addf %729, %748 : vector<2x32xf32>
    %750 = math.tanh %749 : vector<2x32xf32>
    %cst_430 = arith.constant 1.000000e+00 : f32
    %751 = vector.broadcast %cst_430 : f32 to vector<2x32xf32>
    %752 = arith.subf %751, %745 : vector<2x32xf32>
    %753 = arith.mulf %752, %750 : vector<2x32xf32>
    %754 = arith.mulf %745, %671 : vector<2x32xf32>
    %755 = arith.addf %753, %754 : vector<2x32xf32>
    %c3_431 = arith.constant 3 : index
    %c14_432 = arith.constant 14 : index
    %c0_433 = arith.constant 0 : index
    %756 = vector.load %arg9[%c3_431, %c14_432, %c0_433] : memref<6x32x32xf32, #tpu.memory_space<vmem>>, vector<1x2x32xf32>
    %757 = vector.shape_cast %756 : vector<1x2x32xf32> to vector<2x32xf32>
    %c4_434 = arith.constant 4 : index
    %c14_435 = arith.constant 14 : index
    %c0_436 = arith.constant 0 : index
    %758 = vector.load %arg9[%c4_434, %c14_435, %c0_436] : memref<6x32x32xf32, #tpu.memory_space<vmem>>, vector<1x2x32xf32>
    %759 = vector.shape_cast %758 : vector<1x2x32xf32> to vector<2x32xf32>
    %c5_437 = arith.constant 5 : index
    %c14_438 = arith.constant 14 : index
    %c0_439 = arith.constant 0 : index
    %760 = vector.load %arg9[%c5_437, %c14_438, %c0_439] : memref<6x32x32xf32, #tpu.memory_space<vmem>>, vector<1x2x32xf32>
    %761 = vector.shape_cast %760 : vector<1x2x32xf32> to vector<2x32xf32>
    %762 = arith.truncf %703 : vector<2x32xf32> to vector<2x32xbf16>
    %cst_440 = arith.constant dense<0.000000e+00> : vector<2x32xf32>
    %763 = tpu.matmul %762, %37, %cst_440 {dimension_numbers = #tpu.dot_dimension_numbers<[1], [0], [0], [1], [0, 0, 1, 1], [], []>} : vector<2x32xbf16>, vector<32x32xbf16>, vector<2x32xf32> -> vector<2x32xf32>
    %cst_441 = arith.constant dense<0.000000e+00> : vector<2x32xf32>
    %764 = tpu.matmul %762, %39, %cst_441 {dimension_numbers = #tpu.dot_dimension_numbers<[1], [0], [0], [1], [0, 0, 1, 1], [], []>} : vector<2x32xbf16>, vector<32x32xbf16>, vector<2x32xf32> -> vector<2x32xf32>
    %cst_442 = arith.constant dense<0.000000e+00> : vector<2x32xf32>
    %765 = tpu.matmul %762, %41, %cst_442 {dimension_numbers = #tpu.dot_dimension_numbers<[1], [0], [0], [1], [0, 0, 1, 1], [], []>} : vector<2x32xbf16>, vector<32x32xbf16>, vector<2x32xf32> -> vector<2x32xf32>
    %766 = arith.addf %757, %763 : vector<2x32xf32>
    %767 = arith.negf %766 : vector<2x32xf32>
    %768 = math.exp %767 : vector<2x32xf32>
    %cst_443 = arith.constant 1.000000e+00 : f32
    %769 = vector.broadcast %cst_443 : f32 to vector<2x32xf32>
    %770 = arith.addf %769, %768 : vector<2x32xf32>
    %771 = arith.divf %769, %770 : vector<2x32xf32>
    %772 = arith.addf %759, %764 : vector<2x32xf32>
    %773 = arith.negf %772 : vector<2x32xf32>
    %774 = math.exp %773 : vector<2x32xf32>
    %cst_444 = arith.constant 1.000000e+00 : f32
    %775 = vector.broadcast %cst_444 : f32 to vector<2x32xf32>
    %776 = arith.addf %775, %774 : vector<2x32xf32>
    %777 = arith.divf %775, %776 : vector<2x32xf32>
    %778 = vector.broadcast %45 : vector<1x32xf32> to vector<2x32xf32>
    %779 = arith.addf %765, %778 : vector<2x32xf32>
    %780 = arith.mulf %771, %779 : vector<2x32xf32>
    %781 = arith.addf %761, %780 : vector<2x32xf32>
    %782 = math.tanh %781 : vector<2x32xf32>
    %cst_445 = arith.constant 1.000000e+00 : f32
    %783 = vector.broadcast %cst_445 : f32 to vector<2x32xf32>
    %784 = arith.subf %783, %777 : vector<2x32xf32>
    %785 = arith.mulf %784, %782 : vector<2x32xf32>
    %786 = arith.mulf %777, %703 : vector<2x32xf32>
    %787 = arith.addf %785, %786 : vector<2x32xf32>
    %c0_446 = arith.constant 0 : index
    %c8_447 = arith.constant 8 : index
    %c0_448 = arith.constant 0 : index
    %c0_449 = arith.constant 0 : index
    %788 = vector.load %arg10[%c0_446, %c8_447, %c0_448, %c0_449] : memref<2x16x2x32xf32, #tpu.memory_space<vmem>>, vector<1x1x2x32xf32>
    %789 = vector.shape_cast %788 : vector<1x1x2x32xf32> to vector<2x32xf32>
    %790 = vector.shape_cast %755 : vector<2x32xf32> to vector<1x1x2x32xf32>
    tpu.vector_store %arg10[%c0_446, %c8_447, %c0_448, %c0_449], %790 {strides = array<i32>} : memref<2x16x2x32xf32, #tpu.memory_space<vmem>>, vector<1x1x2x32xf32>,
    %c1_450 = arith.constant 1 : index
    %c7_451 = arith.constant 7 : index
    %c0_452 = arith.constant 0 : index
    %c0_453 = arith.constant 0 : index
    %791 = vector.load %arg10[%c1_450, %c7_451, %c0_452, %c0_453] : memref<2x16x2x32xf32, #tpu.memory_space<vmem>>, vector<1x1x2x32xf32>
    %792 = vector.shape_cast %791 : vector<1x1x2x32xf32> to vector<2x32xf32>
    %793 = vector.shape_cast %787 : vector<2x32xf32> to vector<1x1x2x32xf32>
    tpu.vector_store %arg10[%c1_450, %c7_451, %c0_452, %c0_453], %793 {strides = array<i32>} : memref<2x16x2x32xf32, #tpu.memory_space<vmem>>, vector<1x1x2x32xf32>,
    %794 = vector.broadcast %47 : vector<1x32xf32> to vector<2x32xf32>
    %795 = arith.mulf %755, %794 : vector<2x32xf32>
    %cst_454 = arith.constant dense<0.000000e+00> : vector<2xf32>
    %796 = vector.multi_reduction <add>, %795, %cst_454 [1] : vector<2x32xf32> to vector<2xf32>
    %797 = vector.shape_cast %796 : vector<2xf32> to vector<2x1xf32>
    %c0_455 = arith.constant 0 : index
    %c8_456 = arith.constant 8 : index
    %c0_457 = arith.constant 0 : index
    %c0_458 = arith.constant 0 : index
    %798 = vector.load %arg11[%c0_455, %c8_456, %c0_457, %c0_458] : memref<2x16x2x1xf32, #tpu.memory_space<vmem>>, vector<1x1x2x1xf32>
    %799 = vector.shape_cast %798 : vector<1x1x2x1xf32> to vector<2x1xf32>
    %800 = vector.shape_cast %797 : vector<2x1xf32> to vector<1x1x2x1xf32>
    tpu.vector_store %arg11[%c0_455, %c8_456, %c0_457, %c0_458], %800 {strides = array<i32>} : memref<2x16x2x1xf32, #tpu.memory_space<vmem>>, vector<1x1x2x1xf32>,
    %801 = vector.broadcast %49 : vector<1x32xf32> to vector<2x32xf32>
    %802 = arith.mulf %787, %801 : vector<2x32xf32>
    %cst_459 = arith.constant dense<0.000000e+00> : vector<2xf32>
    %803 = vector.multi_reduction <add>, %802, %cst_459 [1] : vector<2x32xf32> to vector<2xf32>
    %804 = vector.shape_cast %803 : vector<2xf32> to vector<2x1xf32>
    %c1_460 = arith.constant 1 : index
    %c7_461 = arith.constant 7 : index
    %c0_462 = arith.constant 0 : index
    %c0_463 = arith.constant 0 : index
    %805 = vector.load %arg11[%c1_460, %c7_461, %c0_462, %c0_463] : memref<2x16x2x1xf32, #tpu.memory_space<vmem>>, vector<1x1x2x1xf32>
    %806 = vector.shape_cast %805 : vector<1x1x2x1xf32> to vector<2x1xf32>
    %807 = vector.shape_cast %804 : vector<2x1xf32> to vector<1x1x2x1xf32>
    tpu.vector_store %arg11[%c1_460, %c7_461, %c0_462, %c0_463], %807 {strides = array<i32>} : memref<2x16x2x1xf32, #tpu.memory_space<vmem>>, vector<1x1x2x1xf32>,
    %c0_464 = arith.constant 0 : index
    %c18_465 = arith.constant 18 : index
    %c0_466 = arith.constant 0 : index
    %808 = vector.load %arg9[%c0_464, %c18_465, %c0_466] : memref<6x32x32xf32, #tpu.memory_space<vmem>>, vector<1x2x32xf32>
    %809 = vector.shape_cast %808 : vector<1x2x32xf32> to vector<2x32xf32>
    %c1_467 = arith.constant 1 : index
    %c18_468 = arith.constant 18 : index
    %c0_469 = arith.constant 0 : index
    %810 = vector.load %arg9[%c1_467, %c18_468, %c0_469] : memref<6x32x32xf32, #tpu.memory_space<vmem>>, vector<1x2x32xf32>
    %811 = vector.shape_cast %810 : vector<1x2x32xf32> to vector<2x32xf32>
    %c2_470 = arith.constant 2 : index
    %c18_471 = arith.constant 18 : index
    %c0_472 = arith.constant 0 : index
    %812 = vector.load %arg9[%c2_470, %c18_471, %c0_472] : memref<6x32x32xf32, #tpu.memory_space<vmem>>, vector<1x2x32xf32>
    %813 = vector.shape_cast %812 : vector<1x2x32xf32> to vector<2x32xf32>
    %814 = arith.truncf %755 : vector<2x32xf32> to vector<2x32xbf16>
    %cst_473 = arith.constant dense<0.000000e+00> : vector<2x32xf32>
    %815 = tpu.matmul %814, %31, %cst_473 {dimension_numbers = #tpu.dot_dimension_numbers<[1], [0], [0], [1], [0, 0, 1, 1], [], []>} : vector<2x32xbf16>, vector<32x32xbf16>, vector<2x32xf32> -> vector<2x32xf32>
    %cst_474 = arith.constant dense<0.000000e+00> : vector<2x32xf32>
    %816 = tpu.matmul %814, %33, %cst_474 {dimension_numbers = #tpu.dot_dimension_numbers<[1], [0], [0], [1], [0, 0, 1, 1], [], []>} : vector<2x32xbf16>, vector<32x32xbf16>, vector<2x32xf32> -> vector<2x32xf32>
    %cst_475 = arith.constant dense<0.000000e+00> : vector<2x32xf32>
    %817 = tpu.matmul %814, %35, %cst_475 {dimension_numbers = #tpu.dot_dimension_numbers<[1], [0], [0], [1], [0, 0, 1, 1], [], []>} : vector<2x32xbf16>, vector<32x32xbf16>, vector<2x32xf32> -> vector<2x32xf32>
    %818 = arith.addf %809, %815 : vector<2x32xf32>
    %819 = arith.negf %818 : vector<2x32xf32>
    %820 = math.exp %819 : vector<2x32xf32>
    %cst_476 = arith.constant 1.000000e+00 : f32
    %821 = vector.broadcast %cst_476 : f32 to vector<2x32xf32>
    %822 = arith.addf %821, %820 : vector<2x32xf32>
    %823 = arith.divf %821, %822 : vector<2x32xf32>
    %824 = arith.addf %811, %816 : vector<2x32xf32>
    %825 = arith.negf %824 : vector<2x32xf32>
    %826 = math.exp %825 : vector<2x32xf32>
    %cst_477 = arith.constant 1.000000e+00 : f32
    %827 = vector.broadcast %cst_477 : f32 to vector<2x32xf32>
    %828 = arith.addf %827, %826 : vector<2x32xf32>
    %829 = arith.divf %827, %828 : vector<2x32xf32>
    %830 = vector.broadcast %43 : vector<1x32xf32> to vector<2x32xf32>
    %831 = arith.addf %817, %830 : vector<2x32xf32>
    %832 = arith.mulf %823, %831 : vector<2x32xf32>
    %833 = arith.addf %813, %832 : vector<2x32xf32>
    %834 = math.tanh %833 : vector<2x32xf32>
    %cst_478 = arith.constant 1.000000e+00 : f32
    %835 = vector.broadcast %cst_478 : f32 to vector<2x32xf32>
    %836 = arith.subf %835, %829 : vector<2x32xf32>
    %837 = arith.mulf %836, %834 : vector<2x32xf32>
    %838 = arith.mulf %829, %755 : vector<2x32xf32>
    %839 = arith.addf %837, %838 : vector<2x32xf32>
    %c3_479 = arith.constant 3 : index
    %c12_480 = arith.constant 12 : index
    %c0_481 = arith.constant 0 : index
    %840 = vector.load %arg9[%c3_479, %c12_480, %c0_481] : memref<6x32x32xf32, #tpu.memory_space<vmem>>, vector<1x2x32xf32>
    %841 = vector.shape_cast %840 : vector<1x2x32xf32> to vector<2x32xf32>
    %c4_482 = arith.constant 4 : index
    %c12_483 = arith.constant 12 : index
    %c0_484 = arith.constant 0 : index
    %842 = vector.load %arg9[%c4_482, %c12_483, %c0_484] : memref<6x32x32xf32, #tpu.memory_space<vmem>>, vector<1x2x32xf32>
    %843 = vector.shape_cast %842 : vector<1x2x32xf32> to vector<2x32xf32>
    %c5_485 = arith.constant 5 : index
    %c12_486 = arith.constant 12 : index
    %c0_487 = arith.constant 0 : index
    %844 = vector.load %arg9[%c5_485, %c12_486, %c0_487] : memref<6x32x32xf32, #tpu.memory_space<vmem>>, vector<1x2x32xf32>
    %845 = vector.shape_cast %844 : vector<1x2x32xf32> to vector<2x32xf32>
    %846 = arith.truncf %787 : vector<2x32xf32> to vector<2x32xbf16>
    %cst_488 = arith.constant dense<0.000000e+00> : vector<2x32xf32>
    %847 = tpu.matmul %846, %37, %cst_488 {dimension_numbers = #tpu.dot_dimension_numbers<[1], [0], [0], [1], [0, 0, 1, 1], [], []>} : vector<2x32xbf16>, vector<32x32xbf16>, vector<2x32xf32> -> vector<2x32xf32>
    %cst_489 = arith.constant dense<0.000000e+00> : vector<2x32xf32>
    %848 = tpu.matmul %846, %39, %cst_489 {dimension_numbers = #tpu.dot_dimension_numbers<[1], [0], [0], [1], [0, 0, 1, 1], [], []>} : vector<2x32xbf16>, vector<32x32xbf16>, vector<2x32xf32> -> vector<2x32xf32>
    %cst_490 = arith.constant dense<0.000000e+00> : vector<2x32xf32>
    %849 = tpu.matmul %846, %41, %cst_490 {dimension_numbers = #tpu.dot_dimension_numbers<[1], [0], [0], [1], [0, 0, 1, 1], [], []>} : vector<2x32xbf16>, vector<32x32xbf16>, vector<2x32xf32> -> vector<2x32xf32>
    %850 = arith.addf %841, %847 : vector<2x32xf32>
    %851 = arith.negf %850 : vector<2x32xf32>
    %852 = math.exp %851 : vector<2x32xf32>
    %cst_491 = arith.constant 1.000000e+00 : f32
    %853 = vector.broadcast %cst_491 : f32 to vector<2x32xf32>
    %854 = arith.addf %853, %852 : vector<2x32xf32>
    %855 = arith.divf %853, %854 : vector<2x32xf32>
    %856 = arith.addf %843, %848 : vector<2x32xf32>
    %857 = arith.negf %856 : vector<2x32xf32>
    %858 = math.exp %857 : vector<2x32xf32>
    %cst_492 = arith.constant 1.000000e+00 : f32
    %859 = vector.broadcast %cst_492 : f32 to vector<2x32xf32>
    %860 = arith.addf %859, %858 : vector<2x32xf32>
    %861 = arith.divf %859, %860 : vector<2x32xf32>
    %862 = vector.broadcast %45 : vector<1x32xf32> to vector<2x32xf32>
    %863 = arith.addf %849, %862 : vector<2x32xf32>
    %864 = arith.mulf %855, %863 : vector<2x32xf32>
    %865 = arith.addf %845, %864 : vector<2x32xf32>
    %866 = math.tanh %865 : vector<2x32xf32>
    %cst_493 = arith.constant 1.000000e+00 : f32
    %867 = vector.broadcast %cst_493 : f32 to vector<2x32xf32>
    %868 = arith.subf %867, %861 : vector<2x32xf32>
    %869 = arith.mulf %868, %866 : vector<2x32xf32>
    %870 = arith.mulf %861, %787 : vector<2x32xf32>
    %871 = arith.addf %869, %870 : vector<2x32xf32>
    %c0_494 = arith.constant 0 : index
    %c9_495 = arith.constant 9 : index
    %c0_496 = arith.constant 0 : index
    %c0_497 = arith.constant 0 : index
    %872 = vector.load %arg10[%c0_494, %c9_495, %c0_496, %c0_497] : memref<2x16x2x32xf32, #tpu.memory_space<vmem>>, vector<1x1x2x32xf32>
    %873 = vector.shape_cast %872 : vector<1x1x2x32xf32> to vector<2x32xf32>
    %874 = vector.shape_cast %839 : vector<2x32xf32> to vector<1x1x2x32xf32>
    tpu.vector_store %arg10[%c0_494, %c9_495, %c0_496, %c0_497], %874 {strides = array<i32>} : memref<2x16x2x32xf32, #tpu.memory_space<vmem>>, vector<1x1x2x32xf32>,
    %c1_498 = arith.constant 1 : index
    %c6_499 = arith.constant 6 : index
    %c0_500 = arith.constant 0 : index
    %c0_501 = arith.constant 0 : index
    %875 = vector.load %arg10[%c1_498, %c6_499, %c0_500, %c0_501] : memref<2x16x2x32xf32, #tpu.memory_space<vmem>>, vector<1x1x2x32xf32>
    %876 = vector.shape_cast %875 : vector<1x1x2x32xf32> to vector<2x32xf32>
    %877 = vector.shape_cast %871 : vector<2x32xf32> to vector<1x1x2x32xf32>
    tpu.vector_store %arg10[%c1_498, %c6_499, %c0_500, %c0_501], %877 {strides = array<i32>} : memref<2x16x2x32xf32, #tpu.memory_space<vmem>>, vector<1x1x2x32xf32>,
    %878 = vector.broadcast %47 : vector<1x32xf32> to vector<2x32xf32>
    %879 = arith.mulf %839, %878 : vector<2x32xf32>
    %cst_502 = arith.constant dense<0.000000e+00> : vector<2xf32>
    %880 = vector.multi_reduction <add>, %879, %cst_502 [1] : vector<2x32xf32> to vector<2xf32>
    %881 = vector.shape_cast %880 : vector<2xf32> to vector<2x1xf32>
    %c0_503 = arith.constant 0 : index
    %c9_504 = arith.constant 9 : index
    %c0_505 = arith.constant 0 : index
    %c0_506 = arith.constant 0 : index
    %882 = vector.load %arg11[%c0_503, %c9_504, %c0_505, %c0_506] : memref<2x16x2x1xf32, #tpu.memory_space<vmem>>, vector<1x1x2x1xf32>
    %883 = vector.shape_cast %882 : vector<1x1x2x1xf32> to vector<2x1xf32>
    %884 = vector.shape_cast %881 : vector<2x1xf32> to vector<1x1x2x1xf32>
    tpu.vector_store %arg11[%c0_503, %c9_504, %c0_505, %c0_506], %884 {strides = array<i32>} : memref<2x16x2x1xf32, #tpu.memory_space<vmem>>, vector<1x1x2x1xf32>,
    %885 = vector.broadcast %49 : vector<1x32xf32> to vector<2x32xf32>
    %886 = arith.mulf %871, %885 : vector<2x32xf32>
    %cst_507 = arith.constant dense<0.000000e+00> : vector<2xf32>
    %887 = vector.multi_reduction <add>, %886, %cst_507 [1] : vector<2x32xf32> to vector<2xf32>
    %888 = vector.shape_cast %887 : vector<2xf32> to vector<2x1xf32>
    %c1_508 = arith.constant 1 : index
    %c6_509 = arith.constant 6 : index
    %c0_510 = arith.constant 0 : index
    %c0_511 = arith.constant 0 : index
    %889 = vector.load %arg11[%c1_508, %c6_509, %c0_510, %c0_511] : memref<2x16x2x1xf32, #tpu.memory_space<vmem>>, vector<1x1x2x1xf32>
    %890 = vector.shape_cast %889 : vector<1x1x2x1xf32> to vector<2x1xf32>
    %891 = vector.shape_cast %888 : vector<2x1xf32> to vector<1x1x2x1xf32>
    tpu.vector_store %arg11[%c1_508, %c6_509, %c0_510, %c0_511], %891 {strides = array<i32>} : memref<2x16x2x1xf32, #tpu.memory_space<vmem>>, vector<1x1x2x1xf32>,
    %c0_512 = arith.constant 0 : index
    %c20_513 = arith.constant 20 : index
    %c0_514 = arith.constant 0 : index
    %892 = vector.load %arg9[%c0_512, %c20_513, %c0_514] : memref<6x32x32xf32, #tpu.memory_space<vmem>>, vector<1x2x32xf32>
    %893 = vector.shape_cast %892 : vector<1x2x32xf32> to vector<2x32xf32>
    %c1_515 = arith.constant 1 : index
    %c20_516 = arith.constant 20 : index
    %c0_517 = arith.constant 0 : index
    %894 = vector.load %arg9[%c1_515, %c20_516, %c0_517] : memref<6x32x32xf32, #tpu.memory_space<vmem>>, vector<1x2x32xf32>
    %895 = vector.shape_cast %894 : vector<1x2x32xf32> to vector<2x32xf32>
    %c2_518 = arith.constant 2 : index
    %c20_519 = arith.constant 20 : index
    %c0_520 = arith.constant 0 : index
    %896 = vector.load %arg9[%c2_518, %c20_519, %c0_520] : memref<6x32x32xf32, #tpu.memory_space<vmem>>, vector<1x2x32xf32>
    %897 = vector.shape_cast %896 : vector<1x2x32xf32> to vector<2x32xf32>
    %898 = arith.truncf %839 : vector<2x32xf32> to vector<2x32xbf16>
    %cst_521 = arith.constant dense<0.000000e+00> : vector<2x32xf32>
    %899 = tpu.matmul %898, %31, %cst_521 {dimension_numbers = #tpu.dot_dimension_numbers<[1], [0], [0], [1], [0, 0, 1, 1], [], []>} : vector<2x32xbf16>, vector<32x32xbf16>, vector<2x32xf32> -> vector<2x32xf32>
    %cst_522 = arith.constant dense<0.000000e+00> : vector<2x32xf32>
    %900 = tpu.matmul %898, %33, %cst_522 {dimension_numbers = #tpu.dot_dimension_numbers<[1], [0], [0], [1], [0, 0, 1, 1], [], []>} : vector<2x32xbf16>, vector<32x32xbf16>, vector<2x32xf32> -> vector<2x32xf32>
    %cst_523 = arith.constant dense<0.000000e+00> : vector<2x32xf32>
    %901 = tpu.matmul %898, %35, %cst_523 {dimension_numbers = #tpu.dot_dimension_numbers<[1], [0], [0], [1], [0, 0, 1, 1], [], []>} : vector<2x32xbf16>, vector<32x32xbf16>, vector<2x32xf32> -> vector<2x32xf32>
    %902 = arith.addf %893, %899 : vector<2x32xf32>
    %903 = arith.negf %902 : vector<2x32xf32>
    %904 = math.exp %903 : vector<2x32xf32>
    %cst_524 = arith.constant 1.000000e+00 : f32
    %905 = vector.broadcast %cst_524 : f32 to vector<2x32xf32>
    %906 = arith.addf %905, %904 : vector<2x32xf32>
    %907 = arith.divf %905, %906 : vector<2x32xf32>
    %908 = arith.addf %895, %900 : vector<2x32xf32>
    %909 = arith.negf %908 : vector<2x32xf32>
    %910 = math.exp %909 : vector<2x32xf32>
    %cst_525 = arith.constant 1.000000e+00 : f32
    %911 = vector.broadcast %cst_525 : f32 to vector<2x32xf32>
    %912 = arith.addf %911, %910 : vector<2x32xf32>
    %913 = arith.divf %911, %912 : vector<2x32xf32>
    %914 = vector.broadcast %43 : vector<1x32xf32> to vector<2x32xf32>
    %915 = arith.addf %901, %914 : vector<2x32xf32>
    %916 = arith.mulf %907, %915 : vector<2x32xf32>
    %917 = arith.addf %897, %916 : vector<2x32xf32>
    %918 = math.tanh %917 : vector<2x32xf32>
    %cst_526 = arith.constant 1.000000e+00 : f32
    %919 = vector.broadcast %cst_526 : f32 to vector<2x32xf32>
    %920 = arith.subf %919, %913 : vector<2x32xf32>
    %921 = arith.mulf %920, %918 : vector<2x32xf32>
    %922 = arith.mulf %913, %839 : vector<2x32xf32>
    %923 = arith.addf %921, %922 : vector<2x32xf32>
    %c3_527 = arith.constant 3 : index
    %c10_528 = arith.constant 10 : index
    %c0_529 = arith.constant 0 : index
    %924 = vector.load %arg9[%c3_527, %c10_528, %c0_529] : memref<6x32x32xf32, #tpu.memory_space<vmem>>, vector<1x2x32xf32>
    %925 = vector.shape_cast %924 : vector<1x2x32xf32> to vector<2x32xf32>
    %c4_530 = arith.constant 4 : index
    %c10_531 = arith.constant 10 : index
    %c0_532 = arith.constant 0 : index
    %926 = vector.load %arg9[%c4_530, %c10_531, %c0_532] : memref<6x32x32xf32, #tpu.memory_space<vmem>>, vector<1x2x32xf32>
    %927 = vector.shape_cast %926 : vector<1x2x32xf32> to vector<2x32xf32>
    %c5_533 = arith.constant 5 : index
    %c10_534 = arith.constant 10 : index
    %c0_535 = arith.constant 0 : index
    %928 = vector.load %arg9[%c5_533, %c10_534, %c0_535] : memref<6x32x32xf32, #tpu.memory_space<vmem>>, vector<1x2x32xf32>
    %929 = vector.shape_cast %928 : vector<1x2x32xf32> to vector<2x32xf32>
    %930 = arith.truncf %871 : vector<2x32xf32> to vector<2x32xbf16>
    %cst_536 = arith.constant dense<0.000000e+00> : vector<2x32xf32>
    %931 = tpu.matmul %930, %37, %cst_536 {dimension_numbers = #tpu.dot_dimension_numbers<[1], [0], [0], [1], [0, 0, 1, 1], [], []>} : vector<2x32xbf16>, vector<32x32xbf16>, vector<2x32xf32> -> vector<2x32xf32>
    %cst_537 = arith.constant dense<0.000000e+00> : vector<2x32xf32>
    %932 = tpu.matmul %930, %39, %cst_537 {dimension_numbers = #tpu.dot_dimension_numbers<[1], [0], [0], [1], [0, 0, 1, 1], [], []>} : vector<2x32xbf16>, vector<32x32xbf16>, vector<2x32xf32> -> vector<2x32xf32>
    %cst_538 = arith.constant dense<0.000000e+00> : vector<2x32xf32>
    %933 = tpu.matmul %930, %41, %cst_538 {dimension_numbers = #tpu.dot_dimension_numbers<[1], [0], [0], [1], [0, 0, 1, 1], [], []>} : vector<2x32xbf16>, vector<32x32xbf16>, vector<2x32xf32> -> vector<2x32xf32>
    %934 = arith.addf %925, %931 : vector<2x32xf32>
    %935 = arith.negf %934 : vector<2x32xf32>
    %936 = math.exp %935 : vector<2x32xf32>
    %cst_539 = arith.constant 1.000000e+00 : f32
    %937 = vector.broadcast %cst_539 : f32 to vector<2x32xf32>
    %938 = arith.addf %937, %936 : vector<2x32xf32>
    %939 = arith.divf %937, %938 : vector<2x32xf32>
    %940 = arith.addf %927, %932 : vector<2x32xf32>
    %941 = arith.negf %940 : vector<2x32xf32>
    %942 = math.exp %941 : vector<2x32xf32>
    %cst_540 = arith.constant 1.000000e+00 : f32
    %943 = vector.broadcast %cst_540 : f32 to vector<2x32xf32>
    %944 = arith.addf %943, %942 : vector<2x32xf32>
    %945 = arith.divf %943, %944 : vector<2x32xf32>
    %946 = vector.broadcast %45 : vector<1x32xf32> to vector<2x32xf32>
    %947 = arith.addf %933, %946 : vector<2x32xf32>
    %948 = arith.mulf %939, %947 : vector<2x32xf32>
    %949 = arith.addf %929, %948 : vector<2x32xf32>
    %950 = math.tanh %949 : vector<2x32xf32>
    %cst_541 = arith.constant 1.000000e+00 : f32
    %951 = vector.broadcast %cst_541 : f32 to vector<2x32xf32>
    %952 = arith.subf %951, %945 : vector<2x32xf32>
    %953 = arith.mulf %952, %950 : vector<2x32xf32>
    %954 = arith.mulf %945, %871 : vector<2x32xf32>
    %955 = arith.addf %953, %954 : vector<2x32xf32>
    %c0_542 = arith.constant 0 : index
    %c10_543 = arith.constant 10 : index
    %c0_544 = arith.constant 0 : index
    %c0_545 = arith.constant 0 : index
    %956 = vector.load %arg10[%c0_542, %c10_543, %c0_544, %c0_545] : memref<2x16x2x32xf32, #tpu.memory_space<vmem>>, vector<1x1x2x32xf32>
    %957 = vector.shape_cast %956 : vector<1x1x2x32xf32> to vector<2x32xf32>
    %958 = vector.shape_cast %923 : vector<2x32xf32> to vector<1x1x2x32xf32>
    tpu.vector_store %arg10[%c0_542, %c10_543, %c0_544, %c0_545], %958 {strides = array<i32>} : memref<2x16x2x32xf32, #tpu.memory_space<vmem>>, vector<1x1x2x32xf32>,
    %c1_546 = arith.constant 1 : index
    %c5_547 = arith.constant 5 : index
    %c0_548 = arith.constant 0 : index
    %c0_549 = arith.constant 0 : index
    %959 = vector.load %arg10[%c1_546, %c5_547, %c0_548, %c0_549] : memref<2x16x2x32xf32, #tpu.memory_space<vmem>>, vector<1x1x2x32xf32>
    %960 = vector.shape_cast %959 : vector<1x1x2x32xf32> to vector<2x32xf32>
    %961 = vector.shape_cast %955 : vector<2x32xf32> to vector<1x1x2x32xf32>
    tpu.vector_store %arg10[%c1_546, %c5_547, %c0_548, %c0_549], %961 {strides = array<i32>} : memref<2x16x2x32xf32, #tpu.memory_space<vmem>>, vector<1x1x2x32xf32>,
    %962 = vector.broadcast %47 : vector<1x32xf32> to vector<2x32xf32>
    %963 = arith.mulf %923, %962 : vector<2x32xf32>
    %cst_550 = arith.constant dense<0.000000e+00> : vector<2xf32>
    %964 = vector.multi_reduction <add>, %963, %cst_550 [1] : vector<2x32xf32> to vector<2xf32>
    %965 = vector.shape_cast %964 : vector<2xf32> to vector<2x1xf32>
    %c0_551 = arith.constant 0 : index
    %c10_552 = arith.constant 10 : index
    %c0_553 = arith.constant 0 : index
    %c0_554 = arith.constant 0 : index
    %966 = vector.load %arg11[%c0_551, %c10_552, %c0_553, %c0_554] : memref<2x16x2x1xf32, #tpu.memory_space<vmem>>, vector<1x1x2x1xf32>
    %967 = vector.shape_cast %966 : vector<1x1x2x1xf32> to vector<2x1xf32>
    %968 = vector.shape_cast %965 : vector<2x1xf32> to vector<1x1x2x1xf32>
    tpu.vector_store %arg11[%c0_551, %c10_552, %c0_553, %c0_554], %968 {strides = array<i32>} : memref<2x16x2x1xf32, #tpu.memory_space<vmem>>, vector<1x1x2x1xf32>,
    %969 = vector.broadcast %49 : vector<1x32xf32> to vector<2x32xf32>
    %970 = arith.mulf %955, %969 : vector<2x32xf32>
    %cst_555 = arith.constant dense<0.000000e+00> : vector<2xf32>
    %971 = vector.multi_reduction <add>, %970, %cst_555 [1] : vector<2x32xf32> to vector<2xf32>
    %972 = vector.shape_cast %971 : vector<2xf32> to vector<2x1xf32>
    %c1_556 = arith.constant 1 : index
    %c5_557 = arith.constant 5 : index
    %c0_558 = arith.constant 0 : index
    %c0_559 = arith.constant 0 : index
    %973 = vector.load %arg11[%c1_556, %c5_557, %c0_558, %c0_559] : memref<2x16x2x1xf32, #tpu.memory_space<vmem>>, vector<1x1x2x1xf32>
    %974 = vector.shape_cast %973 : vector<1x1x2x1xf32> to vector<2x1xf32>
    %975 = vector.shape_cast %972 : vector<2x1xf32> to vector<1x1x2x1xf32>
    tpu.vector_store %arg11[%c1_556, %c5_557, %c0_558, %c0_559], %975 {strides = array<i32>} : memref<2x16x2x1xf32, #tpu.memory_space<vmem>>, vector<1x1x2x1xf32>,
    %c0_560 = arith.constant 0 : index
    %c22_561 = arith.constant 22 : index
    %c0_562 = arith.constant 0 : index
    %976 = vector.load %arg9[%c0_560, %c22_561, %c0_562] : memref<6x32x32xf32, #tpu.memory_space<vmem>>, vector<1x2x32xf32>
    %977 = vector.shape_cast %976 : vector<1x2x32xf32> to vector<2x32xf32>
    %c1_563 = arith.constant 1 : index
    %c22_564 = arith.constant 22 : index
    %c0_565 = arith.constant 0 : index
    %978 = vector.load %arg9[%c1_563, %c22_564, %c0_565] : memref<6x32x32xf32, #tpu.memory_space<vmem>>, vector<1x2x32xf32>
    %979 = vector.shape_cast %978 : vector<1x2x32xf32> to vector<2x32xf32>
    %c2_566 = arith.constant 2 : index
    %c22_567 = arith.constant 22 : index
    %c0_568 = arith.constant 0 : index
    %980 = vector.load %arg9[%c2_566, %c22_567, %c0_568] : memref<6x32x32xf32, #tpu.memory_space<vmem>>, vector<1x2x32xf32>
    %981 = vector.shape_cast %980 : vector<1x2x32xf32> to vector<2x32xf32>
    %982 = arith.truncf %923 : vector<2x32xf32> to vector<2x32xbf16>
    %cst_569 = arith.constant dense<0.000000e+00> : vector<2x32xf32>
    %983 = tpu.matmul %982, %31, %cst_569 {dimension_numbers = #tpu.dot_dimension_numbers<[1], [0], [0], [1], [0, 0, 1, 1], [], []>} : vector<2x32xbf16>, vector<32x32xbf16>, vector<2x32xf32> -> vector<2x32xf32>
    %cst_570 = arith.constant dense<0.000000e+00> : vector<2x32xf32>
    %984 = tpu.matmul %982, %33, %cst_570 {dimension_numbers = #tpu.dot_dimension_numbers<[1], [0], [0], [1], [0, 0, 1, 1], [], []>} : vector<2x32xbf16>, vector<32x32xbf16>, vector<2x32xf32> -> vector<2x32xf32>
    %cst_571 = arith.constant dense<0.000000e+00> : vector<2x32xf32>
    %985 = tpu.matmul %982, %35, %cst_571 {dimension_numbers = #tpu.dot_dimension_numbers<[1], [0], [0], [1], [0, 0, 1, 1], [], []>} : vector<2x32xbf16>, vector<32x32xbf16>, vector<2x32xf32> -> vector<2x32xf32>
    %986 = arith.addf %977, %983 : vector<2x32xf32>
    %987 = arith.negf %986 : vector<2x32xf32>
    %988 = math.exp %987 : vector<2x32xf32>
    %cst_572 = arith.constant 1.000000e+00 : f32
    %989 = vector.broadcast %cst_572 : f32 to vector<2x32xf32>
    %990 = arith.addf %989, %988 : vector<2x32xf32>
    %991 = arith.divf %989, %990 : vector<2x32xf32>
    %992 = arith.addf %979, %984 : vector<2x32xf32>
    %993 = arith.negf %992 : vector<2x32xf32>
    %994 = math.exp %993 : vector<2x32xf32>
    %cst_573 = arith.constant 1.000000e+00 : f32
    %995 = vector.broadcast %cst_573 : f32 to vector<2x32xf32>
    %996 = arith.addf %995, %994 : vector<2x32xf32>
    %997 = arith.divf %995, %996 : vector<2x32xf32>
    %998 = vector.broadcast %43 : vector<1x32xf32> to vector<2x32xf32>
    %999 = arith.addf %985, %998 : vector<2x32xf32>
    %1000 = arith.mulf %991, %999 : vector<2x32xf32>
    %1001 = arith.addf %981, %1000 : vector<2x32xf32>
    %1002 = math.tanh %1001 : vector<2x32xf32>
    %cst_574 = arith.constant 1.000000e+00 : f32
    %1003 = vector.broadcast %cst_574 : f32 to vector<2x32xf32>
    %1004 = arith.subf %1003, %997 : vector<2x32xf32>
    %1005 = arith.mulf %1004, %1002 : vector<2x32xf32>
    %1006 = arith.mulf %997, %923 : vector<2x32xf32>
    %1007 = arith.addf %1005, %1006 : vector<2x32xf32>
    %c3_575 = arith.constant 3 : index
    %c8_576 = arith.constant 8 : index
    %c0_577 = arith.constant 0 : index
    %1008 = vector.load %arg9[%c3_575, %c8_576, %c0_577] : memref<6x32x32xf32, #tpu.memory_space<vmem>>, vector<1x2x32xf32>
    %1009 = vector.shape_cast %1008 : vector<1x2x32xf32> to vector<2x32xf32>
    %c4_578 = arith.constant 4 : index
    %c8_579 = arith.constant 8 : index
    %c0_580 = arith.constant 0 : index
    %1010 = vector.load %arg9[%c4_578, %c8_579, %c0_580] : memref<6x32x32xf32, #tpu.memory_space<vmem>>, vector<1x2x32xf32>
    %1011 = vector.shape_cast %1010 : vector<1x2x32xf32> to vector<2x32xf32>
    %c5_581 = arith.constant 5 : index
    %c8_582 = arith.constant 8 : index
    %c0_583 = arith.constant 0 : index
    %1012 = vector.load %arg9[%c5_581, %c8_582, %c0_583] : memref<6x32x32xf32, #tpu.memory_space<vmem>>, vector<1x2x32xf32>
    %1013 = vector.shape_cast %1012 : vector<1x2x32xf32> to vector<2x32xf32>
    %1014 = arith.truncf %955 : vector<2x32xf32> to vector<2x32xbf16>
    %cst_584 = arith.constant dense<0.000000e+00> : vector<2x32xf32>
    %1015 = tpu.matmul %1014, %37, %cst_584 {dimension_numbers = #tpu.dot_dimension_numbers<[1], [0], [0], [1], [0, 0, 1, 1], [], []>} : vector<2x32xbf16>, vector<32x32xbf16>, vector<2x32xf32> -> vector<2x32xf32>
    %cst_585 = arith.constant dense<0.000000e+00> : vector<2x32xf32>
    %1016 = tpu.matmul %1014, %39, %cst_585 {dimension_numbers = #tpu.dot_dimension_numbers<[1], [0], [0], [1], [0, 0, 1, 1], [], []>} : vector<2x32xbf16>, vector<32x32xbf16>, vector<2x32xf32> -> vector<2x32xf32>
    %cst_586 = arith.constant dense<0.000000e+00> : vector<2x32xf32>
    %1017 = tpu.matmul %1014, %41, %cst_586 {dimension_numbers = #tpu.dot_dimension_numbers<[1], [0], [0], [1], [0, 0, 1, 1], [], []>} : vector<2x32xbf16>, vector<32x32xbf16>, vector<2x32xf32> -> vector<2x32xf32>
    %1018 = arith.addf %1009, %1015 : vector<2x32xf32>
    %1019 = arith.negf %1018 : vector<2x32xf32>
    %1020 = math.exp %1019 : vector<2x32xf32>
    %cst_587 = arith.constant 1.000000e+00 : f32
    %1021 = vector.broadcast %cst_587 : f32 to vector<2x32xf32>
    %1022 = arith.addf %1021, %1020 : vector<2x32xf32>
    %1023 = arith.divf %1021, %1022 : vector<2x32xf32>
    %1024 = arith.addf %1011, %1016 : vector<2x32xf32>
    %1025 = arith.negf %1024 : vector<2x32xf32>
    %1026 = math.exp %1025 : vector<2x32xf32>
    %cst_588 = arith.constant 1.000000e+00 : f32
    %1027 = vector.broadcast %cst_588 : f32 to vector<2x32xf32>
    %1028 = arith.addf %1027, %1026 : vector<2x32xf32>
    %1029 = arith.divf %1027, %1028 : vector<2x32xf32>
    %1030 = vector.broadcast %45 : vector<1x32xf32> to vector<2x32xf32>
    %1031 = arith.addf %1017, %1030 : vector<2x32xf32>
    %1032 = arith.mulf %1023, %1031 : vector<2x32xf32>
    %1033 = arith.addf %1013, %1032 : vector<2x32xf32>
    %1034 = math.tanh %1033 : vector<2x32xf32>
    %cst_589 = arith.constant 1.000000e+00 : f32
    %1035 = vector.broadcast %cst_589 : f32 to vector<2x32xf32>
    %1036 = arith.subf %1035, %1029 : vector<2x32xf32>
    %1037 = arith.mulf %1036, %1034 : vector<2x32xf32>
    %1038 = arith.mulf %1029, %955 : vector<2x32xf32>
    %1039 = arith.addf %1037, %1038 : vector<2x32xf32>
    %c0_590 = arith.constant 0 : index
    %c11_591 = arith.constant 11 : index
    %c0_592 = arith.constant 0 : index
    %c0_593 = arith.constant 0 : index
    %1040 = vector.load %arg10[%c0_590, %c11_591, %c0_592, %c0_593] : memref<2x16x2x32xf32, #tpu.memory_space<vmem>>, vector<1x1x2x32xf32>
    %1041 = vector.shape_cast %1040 : vector<1x1x2x32xf32> to vector<2x32xf32>
    %1042 = vector.shape_cast %1007 : vector<2x32xf32> to vector<1x1x2x32xf32>
    tpu.vector_store %arg10[%c0_590, %c11_591, %c0_592, %c0_593], %1042 {strides = array<i32>} : memref<2x16x2x32xf32, #tpu.memory_space<vmem>>, vector<1x1x2x32xf32>,
    %c1_594 = arith.constant 1 : index
    %c4_595 = arith.constant 4 : index
    %c0_596 = arith.constant 0 : index
    %c0_597 = arith.constant 0 : index
    %1043 = vector.load %arg10[%c1_594, %c4_595, %c0_596, %c0_597] : memref<2x16x2x32xf32, #tpu.memory_space<vmem>>, vector<1x1x2x32xf32>
    %1044 = vector.shape_cast %1043 : vector<1x1x2x32xf32> to vector<2x32xf32>
    %1045 = vector.shape_cast %1039 : vector<2x32xf32> to vector<1x1x2x32xf32>
    tpu.vector_store %arg10[%c1_594, %c4_595, %c0_596, %c0_597], %1045 {strides = array<i32>} : memref<2x16x2x32xf32, #tpu.memory_space<vmem>>, vector<1x1x2x32xf32>,
    %1046 = vector.broadcast %47 : vector<1x32xf32> to vector<2x32xf32>
    %1047 = arith.mulf %1007, %1046 : vector<2x32xf32>
    %cst_598 = arith.constant dense<0.000000e+00> : vector<2xf32>
    %1048 = vector.multi_reduction <add>, %1047, %cst_598 [1] : vector<2x32xf32> to vector<2xf32>
    %1049 = vector.shape_cast %1048 : vector<2xf32> to vector<2x1xf32>
    %c0_599 = arith.constant 0 : index
    %c11_600 = arith.constant 11 : index
    %c0_601 = arith.constant 0 : index
    %c0_602 = arith.constant 0 : index
    %1050 = vector.load %arg11[%c0_599, %c11_600, %c0_601, %c0_602] : memref<2x16x2x1xf32, #tpu.memory_space<vmem>>, vector<1x1x2x1xf32>
    %1051 = vector.shape_cast %1050 : vector<1x1x2x1xf32> to vector<2x1xf32>
    %1052 = vector.shape_cast %1049 : vector<2x1xf32> to vector<1x1x2x1xf32>
    tpu.vector_store %arg11[%c0_599, %c11_600, %c0_601, %c0_602], %1052 {strides = array<i32>} : memref<2x16x2x1xf32, #tpu.memory_space<vmem>>, vector<1x1x2x1xf32>,
    %1053 = vector.broadcast %49 : vector<1x32xf32> to vector<2x32xf32>
    %1054 = arith.mulf %1039, %1053 : vector<2x32xf32>
    %cst_603 = arith.constant dense<0.000000e+00> : vector<2xf32>
    %1055 = vector.multi_reduction <add>, %1054, %cst_603 [1] : vector<2x32xf32> to vector<2xf32>
    %1056 = vector.shape_cast %1055 : vector<2xf32> to vector<2x1xf32>
    %c1_604 = arith.constant 1 : index
    %c4_605 = arith.constant 4 : index
    %c0_606 = arith.constant 0 : index
    %c0_607 = arith.constant 0 : index
    %1057 = vector.load %arg11[%c1_604, %c4_605, %c0_606, %c0_607] : memref<2x16x2x1xf32, #tpu.memory_space<vmem>>, vector<1x1x2x1xf32>
    %1058 = vector.shape_cast %1057 : vector<1x1x2x1xf32> to vector<2x1xf32>
    %1059 = vector.shape_cast %1056 : vector<2x1xf32> to vector<1x1x2x1xf32>
    tpu.vector_store %arg11[%c1_604, %c4_605, %c0_606, %c0_607], %1059 {strides = array<i32>} : memref<2x16x2x1xf32, #tpu.memory_space<vmem>>, vector<1x1x2x1xf32>,
    %c0_608 = arith.constant 0 : index
    %c24_609 = arith.constant 24 : index
    %c0_610 = arith.constant 0 : index
    %1060 = vector.load %arg9[%c0_608, %c24_609, %c0_610] : memref<6x32x32xf32, #tpu.memory_space<vmem>>, vector<1x2x32xf32>
    %1061 = vector.shape_cast %1060 : vector<1x2x32xf32> to vector<2x32xf32>
    %c1_611 = arith.constant 1 : index
    %c24_612 = arith.constant 24 : index
    %c0_613 = arith.constant 0 : index
    %1062 = vector.load %arg9[%c1_611, %c24_612, %c0_613] : memref<6x32x32xf32, #tpu.memory_space<vmem>>, vector<1x2x32xf32>
    %1063 = vector.shape_cast %1062 : vector<1x2x32xf32> to vector<2x32xf32>
    %c2_614 = arith.constant 2 : index
    %c24_615 = arith.constant 24 : index
    %c0_616 = arith.constant 0 : index
    %1064 = vector.load %arg9[%c2_614, %c24_615, %c0_616] : memref<6x32x32xf32, #tpu.memory_space<vmem>>, vector<1x2x32xf32>
    %1065 = vector.shape_cast %1064 : vector<1x2x32xf32> to vector<2x32xf32>
    %1066 = arith.truncf %1007 : vector<2x32xf32> to vector<2x32xbf16>
    %cst_617 = arith.constant dense<0.000000e+00> : vector<2x32xf32>
    %1067 = tpu.matmul %1066, %31, %cst_617 {dimension_numbers = #tpu.dot_dimension_numbers<[1], [0], [0], [1], [0, 0, 1, 1], [], []>} : vector<2x32xbf16>, vector<32x32xbf16>, vector<2x32xf32> -> vector<2x32xf32>
    %cst_618 = arith.constant dense<0.000000e+00> : vector<2x32xf32>
    %1068 = tpu.matmul %1066, %33, %cst_618 {dimension_numbers = #tpu.dot_dimension_numbers<[1], [0], [0], [1], [0, 0, 1, 1], [], []>} : vector<2x32xbf16>, vector<32x32xbf16>, vector<2x32xf32> -> vector<2x32xf32>
    %cst_619 = arith.constant dense<0.000000e+00> : vector<2x32xf32>
    %1069 = tpu.matmul %1066, %35, %cst_619 {dimension_numbers = #tpu.dot_dimension_numbers<[1], [0], [0], [1], [0, 0, 1, 1], [], []>} : vector<2x32xbf16>, vector<32x32xbf16>, vector<2x32xf32> -> vector<2x32xf32>
    %1070 = arith.addf %1061, %1067 : vector<2x32xf32>
    %1071 = arith.negf %1070 : vector<2x32xf32>
    %1072 = math.exp %1071 : vector<2x32xf32>
    %cst_620 = arith.constant 1.000000e+00 : f32
    %1073 = vector.broadcast %cst_620 : f32 to vector<2x32xf32>
    %1074 = arith.addf %1073, %1072 : vector<2x32xf32>
    %1075 = arith.divf %1073, %1074 : vector<2x32xf32>
    %1076 = arith.addf %1063, %1068 : vector<2x32xf32>
    %1077 = arith.negf %1076 : vector<2x32xf32>
    %1078 = math.exp %1077 : vector<2x32xf32>
    %cst_621 = arith.constant 1.000000e+00 : f32
    %1079 = vector.broadcast %cst_621 : f32 to vector<2x32xf32>
    %1080 = arith.addf %1079, %1078 : vector<2x32xf32>
    %1081 = arith.divf %1079, %1080 : vector<2x32xf32>
    %1082 = vector.broadcast %43 : vector<1x32xf32> to vector<2x32xf32>
    %1083 = arith.addf %1069, %1082 : vector<2x32xf32>
    %1084 = arith.mulf %1075, %1083 : vector<2x32xf32>
    %1085 = arith.addf %1065, %1084 : vector<2x32xf32>
    %1086 = math.tanh %1085 : vector<2x32xf32>
    %cst_622 = arith.constant 1.000000e+00 : f32
    %1087 = vector.broadcast %cst_622 : f32 to vector<2x32xf32>
    %1088 = arith.subf %1087, %1081 : vector<2x32xf32>
    %1089 = arith.mulf %1088, %1086 : vector<2x32xf32>
    %1090 = arith.mulf %1081, %1007 : vector<2x32xf32>
    %1091 = arith.addf %1089, %1090 : vector<2x32xf32>
    %c3_623 = arith.constant 3 : index
    %c6_624 = arith.constant 6 : index
    %c0_625 = arith.constant 0 : index
    %1092 = vector.load %arg9[%c3_623, %c6_624, %c0_625] : memref<6x32x32xf32, #tpu.memory_space<vmem>>, vector<1x2x32xf32>
    %1093 = vector.shape_cast %1092 : vector<1x2x32xf32> to vector<2x32xf32>
    %c4_626 = arith.constant 4 : index
    %c6_627 = arith.constant 6 : index
    %c0_628 = arith.constant 0 : index
    %1094 = vector.load %arg9[%c4_626, %c6_627, %c0_628] : memref<6x32x32xf32, #tpu.memory_space<vmem>>, vector<1x2x32xf32>
    %1095 = vector.shape_cast %1094 : vector<1x2x32xf32> to vector<2x32xf32>
    %c5_629 = arith.constant 5 : index
    %c6_630 = arith.constant 6 : index
    %c0_631 = arith.constant 0 : index
    %1096 = vector.load %arg9[%c5_629, %c6_630, %c0_631] : memref<6x32x32xf32, #tpu.memory_space<vmem>>, vector<1x2x32xf32>
    %1097 = vector.shape_cast %1096 : vector<1x2x32xf32> to vector<2x32xf32>
    %1098 = arith.truncf %1039 : vector<2x32xf32> to vector<2x32xbf16>
    %cst_632 = arith.constant dense<0.000000e+00> : vector<2x32xf32>
    %1099 = tpu.matmul %1098, %37, %cst_632 {dimension_numbers = #tpu.dot_dimension_numbers<[1], [0], [0], [1], [0, 0, 1, 1], [], []>} : vector<2x32xbf16>, vector<32x32xbf16>, vector<2x32xf32> -> vector<2x32xf32>
    %cst_633 = arith.constant dense<0.000000e+00> : vector<2x32xf32>
    %1100 = tpu.matmul %1098, %39, %cst_633 {dimension_numbers = #tpu.dot_dimension_numbers<[1], [0], [0], [1], [0, 0, 1, 1], [], []>} : vector<2x32xbf16>, vector<32x32xbf16>, vector<2x32xf32> -> vector<2x32xf32>
    %cst_634 = arith.constant dense<0.000000e+00> : vector<2x32xf32>
    %1101 = tpu.matmul %1098, %41, %cst_634 {dimension_numbers = #tpu.dot_dimension_numbers<[1], [0], [0], [1], [0, 0, 1, 1], [], []>} : vector<2x32xbf16>, vector<32x32xbf16>, vector<2x32xf32> -> vector<2x32xf32>
    %1102 = arith.addf %1093, %1099 : vector<2x32xf32>
    %1103 = arith.negf %1102 : vector<2x32xf32>
    %1104 = math.exp %1103 : vector<2x32xf32>
    %cst_635 = arith.constant 1.000000e+00 : f32
    %1105 = vector.broadcast %cst_635 : f32 to vector<2x32xf32>
    %1106 = arith.addf %1105, %1104 : vector<2x32xf32>
    %1107 = arith.divf %1105, %1106 : vector<2x32xf32>
    %1108 = arith.addf %1095, %1100 : vector<2x32xf32>
    %1109 = arith.negf %1108 : vector<2x32xf32>
    %1110 = math.exp %1109 : vector<2x32xf32>
    %cst_636 = arith.constant 1.000000e+00 : f32
    %1111 = vector.broadcast %cst_636 : f32 to vector<2x32xf32>
    %1112 = arith.addf %1111, %1110 : vector<2x32xf32>
    %1113 = arith.divf %1111, %1112 : vector<2x32xf32>
    %1114 = vector.broadcast %45 : vector<1x32xf32> to vector<2x32xf32>
    %1115 = arith.addf %1101, %1114 : vector<2x32xf32>
    %1116 = arith.mulf %1107, %1115 : vector<2x32xf32>
    %1117 = arith.addf %1097, %1116 : vector<2x32xf32>
    %1118 = math.tanh %1117 : vector<2x32xf32>
    %cst_637 = arith.constant 1.000000e+00 : f32
    %1119 = vector.broadcast %cst_637 : f32 to vector<2x32xf32>
    %1120 = arith.subf %1119, %1113 : vector<2x32xf32>
    %1121 = arith.mulf %1120, %1118 : vector<2x32xf32>
    %1122 = arith.mulf %1113, %1039 : vector<2x32xf32>
    %1123 = arith.addf %1121, %1122 : vector<2x32xf32>
    %c0_638 = arith.constant 0 : index
    %c12_639 = arith.constant 12 : index
    %c0_640 = arith.constant 0 : index
    %c0_641 = arith.constant 0 : index
    %1124 = vector.load %arg10[%c0_638, %c12_639, %c0_640, %c0_641] : memref<2x16x2x32xf32, #tpu.memory_space<vmem>>, vector<1x1x2x32xf32>
    %1125 = vector.shape_cast %1124 : vector<1x1x2x32xf32> to vector<2x32xf32>
    %1126 = vector.shape_cast %1091 : vector<2x32xf32> to vector<1x1x2x32xf32>
    tpu.vector_store %arg10[%c0_638, %c12_639, %c0_640, %c0_641], %1126 {strides = array<i32>} : memref<2x16x2x32xf32, #tpu.memory_space<vmem>>, vector<1x1x2x32xf32>,
    %c1_642 = arith.constant 1 : index
    %c3_643 = arith.constant 3 : index
    %c0_644 = arith.constant 0 : index
    %c0_645 = arith.constant 0 : index
    %1127 = vector.load %arg10[%c1_642, %c3_643, %c0_644, %c0_645] : memref<2x16x2x32xf32, #tpu.memory_space<vmem>>, vector<1x1x2x32xf32>
    %1128 = vector.shape_cast %1127 : vector<1x1x2x32xf32> to vector<2x32xf32>
    %1129 = vector.shape_cast %1123 : vector<2x32xf32> to vector<1x1x2x32xf32>
    tpu.vector_store %arg10[%c1_642, %c3_643, %c0_644, %c0_645], %1129 {strides = array<i32>} : memref<2x16x2x32xf32, #tpu.memory_space<vmem>>, vector<1x1x2x32xf32>,
    %1130 = vector.broadcast %47 : vector<1x32xf32> to vector<2x32xf32>
    %1131 = arith.mulf %1091, %1130 : vector<2x32xf32>
    %cst_646 = arith.constant dense<0.000000e+00> : vector<2xf32>
    %1132 = vector.multi_reduction <add>, %1131, %cst_646 [1] : vector<2x32xf32> to vector<2xf32>
    %1133 = vector.shape_cast %1132 : vector<2xf32> to vector<2x1xf32>
    %c0_647 = arith.constant 0 : index
    %c12_648 = arith.constant 12 : index
    %c0_649 = arith.constant 0 : index
    %c0_650 = arith.constant 0 : index
    %1134 = vector.load %arg11[%c0_647, %c12_648, %c0_649, %c0_650] : memref<2x16x2x1xf32, #tpu.memory_space<vmem>>, vector<1x1x2x1xf32>
    %1135 = vector.shape_cast %1134 : vector<1x1x2x1xf32> to vector<2x1xf32>
    %1136 = vector.shape_cast %1133 : vector<2x1xf32> to vector<1x1x2x1xf32>
    tpu.vector_store %arg11[%c0_647, %c12_648, %c0_649, %c0_650], %1136 {strides = array<i32>} : memref<2x16x2x1xf32, #tpu.memory_space<vmem>>, vector<1x1x2x1xf32>,
    %1137 = vector.broadcast %49 : vector<1x32xf32> to vector<2x32xf32>
    %1138 = arith.mulf %1123, %1137 : vector<2x32xf32>
    %cst_651 = arith.constant dense<0.000000e+00> : vector<2xf32>
    %1139 = vector.multi_reduction <add>, %1138, %cst_651 [1] : vector<2x32xf32> to vector<2xf32>
    %1140 = vector.shape_cast %1139 : vector<2xf32> to vector<2x1xf32>
    %c1_652 = arith.constant 1 : index
    %c3_653 = arith.constant 3 : index
    %c0_654 = arith.constant 0 : index
    %c0_655 = arith.constant 0 : index
    %1141 = vector.load %arg11[%c1_652, %c3_653, %c0_654, %c0_655] : memref<2x16x2x1xf32, #tpu.memory_space<vmem>>, vector<1x1x2x1xf32>
    %1142 = vector.shape_cast %1141 : vector<1x1x2x1xf32> to vector<2x1xf32>
    %1143 = vector.shape_cast %1140 : vector<2x1xf32> to vector<1x1x2x1xf32>
    tpu.vector_store %arg11[%c1_652, %c3_653, %c0_654, %c0_655], %1143 {strides = array<i32>} : memref<2x16x2x1xf32, #tpu.memory_space<vmem>>, vector<1x1x2x1xf32>,
    %c0_656 = arith.constant 0 : index
    %c26_657 = arith.constant 26 : index
    %c0_658 = arith.constant 0 : index
    %1144 = vector.load %arg9[%c0_656, %c26_657, %c0_658] : memref<6x32x32xf32, #tpu.memory_space<vmem>>, vector<1x2x32xf32>
    %1145 = vector.shape_cast %1144 : vector<1x2x32xf32> to vector<2x32xf32>
    %c1_659 = arith.constant 1 : index
    %c26_660 = arith.constant 26 : index
    %c0_661 = arith.constant 0 : index
    %1146 = vector.load %arg9[%c1_659, %c26_660, %c0_661] : memref<6x32x32xf32, #tpu.memory_space<vmem>>, vector<1x2x32xf32>
    %1147 = vector.shape_cast %1146 : vector<1x2x32xf32> to vector<2x32xf32>
    %c2_662 = arith.constant 2 : index
    %c26_663 = arith.constant 26 : index
    %c0_664 = arith.constant 0 : index
    %1148 = vector.load %arg9[%c2_662, %c26_663, %c0_664] : memref<6x32x32xf32, #tpu.memory_space<vmem>>, vector<1x2x32xf32>
    %1149 = vector.shape_cast %1148 : vector<1x2x32xf32> to vector<2x32xf32>
    %1150 = arith.truncf %1091 : vector<2x32xf32> to vector<2x32xbf16>
    %cst_665 = arith.constant dense<0.000000e+00> : vector<2x32xf32>
    %1151 = tpu.matmul %1150, %31, %cst_665 {dimension_numbers = #tpu.dot_dimension_numbers<[1], [0], [0], [1], [0, 0, 1, 1], [], []>} : vector<2x32xbf16>, vector<32x32xbf16>, vector<2x32xf32> -> vector<2x32xf32>
    %cst_666 = arith.constant dense<0.000000e+00> : vector<2x32xf32>
    %1152 = tpu.matmul %1150, %33, %cst_666 {dimension_numbers = #tpu.dot_dimension_numbers<[1], [0], [0], [1], [0, 0, 1, 1], [], []>} : vector<2x32xbf16>, vector<32x32xbf16>, vector<2x32xf32> -> vector<2x32xf32>
    %cst_667 = arith.constant dense<0.000000e+00> : vector<2x32xf32>
    %1153 = tpu.matmul %1150, %35, %cst_667 {dimension_numbers = #tpu.dot_dimension_numbers<[1], [0], [0], [1], [0, 0, 1, 1], [], []>} : vector<2x32xbf16>, vector<32x32xbf16>, vector<2x32xf32> -> vector<2x32xf32>
    %1154 = arith.addf %1145, %1151 : vector<2x32xf32>
    %1155 = arith.negf %1154 : vector<2x32xf32>
    %1156 = math.exp %1155 : vector<2x32xf32>
    %cst_668 = arith.constant 1.000000e+00 : f32
    %1157 = vector.broadcast %cst_668 : f32 to vector<2x32xf32>
    %1158 = arith.addf %1157, %1156 : vector<2x32xf32>
    %1159 = arith.divf %1157, %1158 : vector<2x32xf32>
    %1160 = arith.addf %1147, %1152 : vector<2x32xf32>
    %1161 = arith.negf %1160 : vector<2x32xf32>
    %1162 = math.exp %1161 : vector<2x32xf32>
    %cst_669 = arith.constant 1.000000e+00 : f32
    %1163 = vector.broadcast %cst_669 : f32 to vector<2x32xf32>
    %1164 = arith.addf %1163, %1162 : vector<2x32xf32>
    %1165 = arith.divf %1163, %1164 : vector<2x32xf32>
    %1166 = vector.broadcast %43 : vector<1x32xf32> to vector<2x32xf32>
    %1167 = arith.addf %1153, %1166 : vector<2x32xf32>
    %1168 = arith.mulf %1159, %1167 : vector<2x32xf32>
    %1169 = arith.addf %1149, %1168 : vector<2x32xf32>
    %1170 = math.tanh %1169 : vector<2x32xf32>
    %cst_670 = arith.constant 1.000000e+00 : f32
    %1171 = vector.broadcast %cst_670 : f32 to vector<2x32xf32>
    %1172 = arith.subf %1171, %1165 : vector<2x32xf32>
    %1173 = arith.mulf %1172, %1170 : vector<2x32xf32>
    %1174 = arith.mulf %1165, %1091 : vector<2x32xf32>
    %1175 = arith.addf %1173, %1174 : vector<2x32xf32>
    %c3_671 = arith.constant 3 : index
    %c4_672 = arith.constant 4 : index
    %c0_673 = arith.constant 0 : index
    %1176 = vector.load %arg9[%c3_671, %c4_672, %c0_673] : memref<6x32x32xf32, #tpu.memory_space<vmem>>, vector<1x2x32xf32>
    %1177 = vector.shape_cast %1176 : vector<1x2x32xf32> to vector<2x32xf32>
    %c4_674 = arith.constant 4 : index
    %c4_675 = arith.constant 4 : index
    %c0_676 = arith.constant 0 : index
    %1178 = vector.load %arg9[%c4_674, %c4_675, %c0_676] : memref<6x32x32xf32, #tpu.memory_space<vmem>>, vector<1x2x32xf32>
    %1179 = vector.shape_cast %1178 : vector<1x2x32xf32> to vector<2x32xf32>
    %c5_677 = arith.constant 5 : index
    %c4_678 = arith.constant 4 : index
    %c0_679 = arith.constant 0 : index
    %1180 = vector.load %arg9[%c5_677, %c4_678, %c0_679] : memref<6x32x32xf32, #tpu.memory_space<vmem>>, vector<1x2x32xf32>
    %1181 = vector.shape_cast %1180 : vector<1x2x32xf32> to vector<2x32xf32>
    %1182 = arith.truncf %1123 : vector<2x32xf32> to vector<2x32xbf16>
    %cst_680 = arith.constant dense<0.000000e+00> : vector<2x32xf32>
    %1183 = tpu.matmul %1182, %37, %cst_680 {dimension_numbers = #tpu.dot_dimension_numbers<[1], [0], [0], [1], [0, 0, 1, 1], [], []>} : vector<2x32xbf16>, vector<32x32xbf16>, vector<2x32xf32> -> vector<2x32xf32>
    %cst_681 = arith.constant dense<0.000000e+00> : vector<2x32xf32>
    %1184 = tpu.matmul %1182, %39, %cst_681 {dimension_numbers = #tpu.dot_dimension_numbers<[1], [0], [0], [1], [0, 0, 1, 1], [], []>} : vector<2x32xbf16>, vector<32x32xbf16>, vector<2x32xf32> -> vector<2x32xf32>
    %cst_682 = arith.constant dense<0.000000e+00> : vector<2x32xf32>
    %1185 = tpu.matmul %1182, %41, %cst_682 {dimension_numbers = #tpu.dot_dimension_numbers<[1], [0], [0], [1], [0, 0, 1, 1], [], []>} : vector<2x32xbf16>, vector<32x32xbf16>, vector<2x32xf32> -> vector<2x32xf32>
    %1186 = arith.addf %1177, %1183 : vector<2x32xf32>
    %1187 = arith.negf %1186 : vector<2x32xf32>
    %1188 = math.exp %1187 : vector<2x32xf32>
    %cst_683 = arith.constant 1.000000e+00 : f32
    %1189 = vector.broadcast %cst_683 : f32 to vector<2x32xf32>
    %1190 = arith.addf %1189, %1188 : vector<2x32xf32>
    %1191 = arith.divf %1189, %1190 : vector<2x32xf32>
    %1192 = arith.addf %1179, %1184 : vector<2x32xf32>
    %1193 = arith.negf %1192 : vector<2x32xf32>
    %1194 = math.exp %1193 : vector<2x32xf32>
    %cst_684 = arith.constant 1.000000e+00 : f32
    %1195 = vector.broadcast %cst_684 : f32 to vector<2x32xf32>
    %1196 = arith.addf %1195, %1194 : vector<2x32xf32>
    %1197 = arith.divf %1195, %1196 : vector<2x32xf32>
    %1198 = vector.broadcast %45 : vector<1x32xf32> to vector<2x32xf32>
    %1199 = arith.addf %1185, %1198 : vector<2x32xf32>
    %1200 = arith.mulf %1191, %1199 : vector<2x32xf32>
    %1201 = arith.addf %1181, %1200 : vector<2x32xf32>
    %1202 = math.tanh %1201 : vector<2x32xf32>
    %cst_685 = arith.constant 1.000000e+00 : f32
    %1203 = vector.broadcast %cst_685 : f32 to vector<2x32xf32>
    %1204 = arith.subf %1203, %1197 : vector<2x32xf32>
    %1205 = arith.mulf %1204, %1202 : vector<2x32xf32>
    %1206 = arith.mulf %1197, %1123 : vector<2x32xf32>
    %1207 = arith.addf %1205, %1206 : vector<2x32xf32>
    %c0_686 = arith.constant 0 : index
    %c13_687 = arith.constant 13 : index
    %c0_688 = arith.constant 0 : index
    %c0_689 = arith.constant 0 : index
    %1208 = vector.load %arg10[%c0_686, %c13_687, %c0_688, %c0_689] : memref<2x16x2x32xf32, #tpu.memory_space<vmem>>, vector<1x1x2x32xf32>
    %1209 = vector.shape_cast %1208 : vector<1x1x2x32xf32> to vector<2x32xf32>
    %1210 = vector.shape_cast %1175 : vector<2x32xf32> to vector<1x1x2x32xf32>
    tpu.vector_store %arg10[%c0_686, %c13_687, %c0_688, %c0_689], %1210 {strides = array<i32>} : memref<2x16x2x32xf32, #tpu.memory_space<vmem>>, vector<1x1x2x32xf32>,
    %c1_690 = arith.constant 1 : index
    %c2_691 = arith.constant 2 : index
    %c0_692 = arith.constant 0 : index
    %c0_693 = arith.constant 0 : index
    %1211 = vector.load %arg10[%c1_690, %c2_691, %c0_692, %c0_693] : memref<2x16x2x32xf32, #tpu.memory_space<vmem>>, vector<1x1x2x32xf32>
    %1212 = vector.shape_cast %1211 : vector<1x1x2x32xf32> to vector<2x32xf32>
    %1213 = vector.shape_cast %1207 : vector<2x32xf32> to vector<1x1x2x32xf32>
    tpu.vector_store %arg10[%c1_690, %c2_691, %c0_692, %c0_693], %1213 {strides = array<i32>} : memref<2x16x2x32xf32, #tpu.memory_space<vmem>>, vector<1x1x2x32xf32>,
    %1214 = vector.broadcast %47 : vector<1x32xf32> to vector<2x32xf32>
    %1215 = arith.mulf %1175, %1214 : vector<2x32xf32>
    %cst_694 = arith.constant dense<0.000000e+00> : vector<2xf32>
    %1216 = vector.multi_reduction <add>, %1215, %cst_694 [1] : vector<2x32xf32> to vector<2xf32>
    %1217 = vector.shape_cast %1216 : vector<2xf32> to vector<2x1xf32>
    %c0_695 = arith.constant 0 : index
    %c13_696 = arith.constant 13 : index
    %c0_697 = arith.constant 0 : index
    %c0_698 = arith.constant 0 : index
    %1218 = vector.load %arg11[%c0_695, %c13_696, %c0_697, %c0_698] : memref<2x16x2x1xf32, #tpu.memory_space<vmem>>, vector<1x1x2x1xf32>
    %1219 = vector.shape_cast %1218 : vector<1x1x2x1xf32> to vector<2x1xf32>
    %1220 = vector.shape_cast %1217 : vector<2x1xf32> to vector<1x1x2x1xf32>
    tpu.vector_store %arg11[%c0_695, %c13_696, %c0_697, %c0_698], %1220 {strides = array<i32>} : memref<2x16x2x1xf32, #tpu.memory_space<vmem>>, vector<1x1x2x1xf32>,
    %1221 = vector.broadcast %49 : vector<1x32xf32> to vector<2x32xf32>
    %1222 = arith.mulf %1207, %1221 : vector<2x32xf32>
    %cst_699 = arith.constant dense<0.000000e+00> : vector<2xf32>
    %1223 = vector.multi_reduction <add>, %1222, %cst_699 [1] : vector<2x32xf32> to vector<2xf32>
    %1224 = vector.shape_cast %1223 : vector<2xf32> to vector<2x1xf32>
    %c1_700 = arith.constant 1 : index
    %c2_701 = arith.constant 2 : index
    %c0_702 = arith.constant 0 : index
    %c0_703 = arith.constant 0 : index
    %1225 = vector.load %arg11[%c1_700, %c2_701, %c0_702, %c0_703] : memref<2x16x2x1xf32, #tpu.memory_space<vmem>>, vector<1x1x2x1xf32>
    %1226 = vector.shape_cast %1225 : vector<1x1x2x1xf32> to vector<2x1xf32>
    %1227 = vector.shape_cast %1224 : vector<2x1xf32> to vector<1x1x2x1xf32>
    tpu.vector_store %arg11[%c1_700, %c2_701, %c0_702, %c0_703], %1227 {strides = array<i32>} : memref<2x16x2x1xf32, #tpu.memory_space<vmem>>, vector<1x1x2x1xf32>,
    %c0_704 = arith.constant 0 : index
    %c28_705 = arith.constant 28 : index
    %c0_706 = arith.constant 0 : index
    %1228 = vector.load %arg9[%c0_704, %c28_705, %c0_706] : memref<6x32x32xf32, #tpu.memory_space<vmem>>, vector<1x2x32xf32>
    %1229 = vector.shape_cast %1228 : vector<1x2x32xf32> to vector<2x32xf32>
    %c1_707 = arith.constant 1 : index
    %c28_708 = arith.constant 28 : index
    %c0_709 = arith.constant 0 : index
    %1230 = vector.load %arg9[%c1_707, %c28_708, %c0_709] : memref<6x32x32xf32, #tpu.memory_space<vmem>>, vector<1x2x32xf32>
    %1231 = vector.shape_cast %1230 : vector<1x2x32xf32> to vector<2x32xf32>
    %c2_710 = arith.constant 2 : index
    %c28_711 = arith.constant 28 : index
    %c0_712 = arith.constant 0 : index
    %1232 = vector.load %arg9[%c2_710, %c28_711, %c0_712] : memref<6x32x32xf32, #tpu.memory_space<vmem>>, vector<1x2x32xf32>
    %1233 = vector.shape_cast %1232 : vector<1x2x32xf32> to vector<2x32xf32>
    %1234 = arith.truncf %1175 : vector<2x32xf32> to vector<2x32xbf16>
    %cst_713 = arith.constant dense<0.000000e+00> : vector<2x32xf32>
    %1235 = tpu.matmul %1234, %31, %cst_713 {dimension_numbers = #tpu.dot_dimension_numbers<[1], [0], [0], [1], [0, 0, 1, 1], [], []>} : vector<2x32xbf16>, vector<32x32xbf16>, vector<2x32xf32> -> vector<2x32xf32>
    %cst_714 = arith.constant dense<0.000000e+00> : vector<2x32xf32>
    %1236 = tpu.matmul %1234, %33, %cst_714 {dimension_numbers = #tpu.dot_dimension_numbers<[1], [0], [0], [1], [0, 0, 1, 1], [], []>} : vector<2x32xbf16>, vector<32x32xbf16>, vector<2x32xf32> -> vector<2x32xf32>
    %cst_715 = arith.constant dense<0.000000e+00> : vector<2x32xf32>
    %1237 = tpu.matmul %1234, %35, %cst_715 {dimension_numbers = #tpu.dot_dimension_numbers<[1], [0], [0], [1], [0, 0, 1, 1], [], []>} : vector<2x32xbf16>, vector<32x32xbf16>, vector<2x32xf32> -> vector<2x32xf32>
    %1238 = arith.addf %1229, %1235 : vector<2x32xf32>
    %1239 = arith.negf %1238 : vector<2x32xf32>
    %1240 = math.exp %1239 : vector<2x32xf32>
    %cst_716 = arith.constant 1.000000e+00 : f32
    %1241 = vector.broadcast %cst_716 : f32 to vector<2x32xf32>
    %1242 = arith.addf %1241, %1240 : vector<2x32xf32>
    %1243 = arith.divf %1241, %1242 : vector<2x32xf32>
    %1244 = arith.addf %1231, %1236 : vector<2x32xf32>
    %1245 = arith.negf %1244 : vector<2x32xf32>
    %1246 = math.exp %1245 : vector<2x32xf32>
    %cst_717 = arith.constant 1.000000e+00 : f32
    %1247 = vector.broadcast %cst_717 : f32 to vector<2x32xf32>
    %1248 = arith.addf %1247, %1246 : vector<2x32xf32>
    %1249 = arith.divf %1247, %1248 : vector<2x32xf32>
    %1250 = vector.broadcast %43 : vector<1x32xf32> to vector<2x32xf32>
    %1251 = arith.addf %1237, %1250 : vector<2x32xf32>
    %1252 = arith.mulf %1243, %1251 : vector<2x32xf32>
    %1253 = arith.addf %1233, %1252 : vector<2x32xf32>
    %1254 = math.tanh %1253 : vector<2x32xf32>
    %cst_718 = arith.constant 1.000000e+00 : f32
    %1255 = vector.broadcast %cst_718 : f32 to vector<2x32xf32>
    %1256 = arith.subf %1255, %1249 : vector<2x32xf32>
    %1257 = arith.mulf %1256, %1254 : vector<2x32xf32>
    %1258 = arith.mulf %1249, %1175 : vector<2x32xf32>
    %1259 = arith.addf %1257, %1258 : vector<2x32xf32>
    %c3_719 = arith.constant 3 : index
    %c2_720 = arith.constant 2 : index
    %c0_721 = arith.constant 0 : index
    %1260 = vector.load %arg9[%c3_719, %c2_720, %c0_721] : memref<6x32x32xf32, #tpu.memory_space<vmem>>, vector<1x2x32xf32>
    %1261 = vector.shape_cast %1260 : vector<1x2x32xf32> to vector<2x32xf32>
    %c4_722 = arith.constant 4 : index
    %c2_723 = arith.constant 2 : index
    %c0_724 = arith.constant 0 : index
    %1262 = vector.load %arg9[%c4_722, %c2_723, %c0_724] : memref<6x32x32xf32, #tpu.memory_space<vmem>>, vector<1x2x32xf32>
    %1263 = vector.shape_cast %1262 : vector<1x2x32xf32> to vector<2x32xf32>
    %c5_725 = arith.constant 5 : index
    %c2_726 = arith.constant 2 : index
    %c0_727 = arith.constant 0 : index
    %1264 = vector.load %arg9[%c5_725, %c2_726, %c0_727] : memref<6x32x32xf32, #tpu.memory_space<vmem>>, vector<1x2x32xf32>
    %1265 = vector.shape_cast %1264 : vector<1x2x32xf32> to vector<2x32xf32>
    %1266 = arith.truncf %1207 : vector<2x32xf32> to vector<2x32xbf16>
    %cst_728 = arith.constant dense<0.000000e+00> : vector<2x32xf32>
    %1267 = tpu.matmul %1266, %37, %cst_728 {dimension_numbers = #tpu.dot_dimension_numbers<[1], [0], [0], [1], [0, 0, 1, 1], [], []>} : vector<2x32xbf16>, vector<32x32xbf16>, vector<2x32xf32> -> vector<2x32xf32>
    %cst_729 = arith.constant dense<0.000000e+00> : vector<2x32xf32>
    %1268 = tpu.matmul %1266, %39, %cst_729 {dimension_numbers = #tpu.dot_dimension_numbers<[1], [0], [0], [1], [0, 0, 1, 1], [], []>} : vector<2x32xbf16>, vector<32x32xbf16>, vector<2x32xf32> -> vector<2x32xf32>
    %cst_730 = arith.constant dense<0.000000e+00> : vector<2x32xf32>
    %1269 = tpu.matmul %1266, %41, %cst_730 {dimension_numbers = #tpu.dot_dimension_numbers<[1], [0], [0], [1], [0, 0, 1, 1], [], []>} : vector<2x32xbf16>, vector<32x32xbf16>, vector<2x32xf32> -> vector<2x32xf32>
    %1270 = arith.addf %1261, %1267 : vector<2x32xf32>
    %1271 = arith.negf %1270 : vector<2x32xf32>
    %1272 = math.exp %1271 : vector<2x32xf32>
    %cst_731 = arith.constant 1.000000e+00 : f32
    %1273 = vector.broadcast %cst_731 : f32 to vector<2x32xf32>
    %1274 = arith.addf %1273, %1272 : vector<2x32xf32>
    %1275 = arith.divf %1273, %1274 : vector<2x32xf32>
    %1276 = arith.addf %1263, %1268 : vector<2x32xf32>
    %1277 = arith.negf %1276 : vector<2x32xf32>
    %1278 = math.exp %1277 : vector<2x32xf32>
    %cst_732 = arith.constant 1.000000e+00 : f32
    %1279 = vector.broadcast %cst_732 : f32 to vector<2x32xf32>
    %1280 = arith.addf %1279, %1278 : vector<2x32xf32>
    %1281 = arith.divf %1279, %1280 : vector<2x32xf32>
    %1282 = vector.broadcast %45 : vector<1x32xf32> to vector<2x32xf32>
    %1283 = arith.addf %1269, %1282 : vector<2x32xf32>
    %1284 = arith.mulf %1275, %1283 : vector<2x32xf32>
    %1285 = arith.addf %1265, %1284 : vector<2x32xf32>
    %1286 = math.tanh %1285 : vector<2x32xf32>
    %cst_733 = arith.constant 1.000000e+00 : f32
    %1287 = vector.broadcast %cst_733 : f32 to vector<2x32xf32>
    %1288 = arith.subf %1287, %1281 : vector<2x32xf32>
    %1289 = arith.mulf %1288, %1286 : vector<2x32xf32>
    %1290 = arith.mulf %1281, %1207 : vector<2x32xf32>
    %1291 = arith.addf %1289, %1290 : vector<2x32xf32>
    %c0_734 = arith.constant 0 : index
    %c14_735 = arith.constant 14 : index
    %c0_736 = arith.constant 0 : index
    %c0_737 = arith.constant 0 : index
    %1292 = vector.load %arg10[%c0_734, %c14_735, %c0_736, %c0_737] : memref<2x16x2x32xf32, #tpu.memory_space<vmem>>, vector<1x1x2x32xf32>
    %1293 = vector.shape_cast %1292 : vector<1x1x2x32xf32> to vector<2x32xf32>
    %1294 = vector.shape_cast %1259 : vector<2x32xf32> to vector<1x1x2x32xf32>
    tpu.vector_store %arg10[%c0_734, %c14_735, %c0_736, %c0_737], %1294 {strides = array<i32>} : memref<2x16x2x32xf32, #tpu.memory_space<vmem>>, vector<1x1x2x32xf32>,
    %c1_738 = arith.constant 1 : index
    %c1_739 = arith.constant 1 : index
    %c0_740 = arith.constant 0 : index
    %c0_741 = arith.constant 0 : index
    %1295 = vector.load %arg10[%c1_738, %c1_739, %c0_740, %c0_741] : memref<2x16x2x32xf32, #tpu.memory_space<vmem>>, vector<1x1x2x32xf32>
    %1296 = vector.shape_cast %1295 : vector<1x1x2x32xf32> to vector<2x32xf32>
    %1297 = vector.shape_cast %1291 : vector<2x32xf32> to vector<1x1x2x32xf32>
    tpu.vector_store %arg10[%c1_738, %c1_739, %c0_740, %c0_741], %1297 {strides = array<i32>} : memref<2x16x2x32xf32, #tpu.memory_space<vmem>>, vector<1x1x2x32xf32>,
    %1298 = vector.broadcast %47 : vector<1x32xf32> to vector<2x32xf32>
    %1299 = arith.mulf %1259, %1298 : vector<2x32xf32>
    %cst_742 = arith.constant dense<0.000000e+00> : vector<2xf32>
    %1300 = vector.multi_reduction <add>, %1299, %cst_742 [1] : vector<2x32xf32> to vector<2xf32>
    %1301 = vector.shape_cast %1300 : vector<2xf32> to vector<2x1xf32>
    %c0_743 = arith.constant 0 : index
    %c14_744 = arith.constant 14 : index
    %c0_745 = arith.constant 0 : index
    %c0_746 = arith.constant 0 : index
    %1302 = vector.load %arg11[%c0_743, %c14_744, %c0_745, %c0_746] : memref<2x16x2x1xf32, #tpu.memory_space<vmem>>, vector<1x1x2x1xf32>
    %1303 = vector.shape_cast %1302 : vector<1x1x2x1xf32> to vector<2x1xf32>
    %1304 = vector.shape_cast %1301 : vector<2x1xf32> to vector<1x1x2x1xf32>
    tpu.vector_store %arg11[%c0_743, %c14_744, %c0_745, %c0_746], %1304 {strides = array<i32>} : memref<2x16x2x1xf32, #tpu.memory_space<vmem>>, vector<1x1x2x1xf32>,
    %1305 = vector.broadcast %49 : vector<1x32xf32> to vector<2x32xf32>
    %1306 = arith.mulf %1291, %1305 : vector<2x32xf32>
    %cst_747 = arith.constant dense<0.000000e+00> : vector<2xf32>
    %1307 = vector.multi_reduction <add>, %1306, %cst_747 [1] : vector<2x32xf32> to vector<2xf32>
    %1308 = vector.shape_cast %1307 : vector<2xf32> to vector<2x1xf32>
    %c1_748 = arith.constant 1 : index
    %c1_749 = arith.constant 1 : index
    %c0_750 = arith.constant 0 : index
    %c0_751 = arith.constant 0 : index
    %1309 = vector.load %arg11[%c1_748, %c1_749, %c0_750, %c0_751] : memref<2x16x2x1xf32, #tpu.memory_space<vmem>>, vector<1x1x2x1xf32>
    %1310 = vector.shape_cast %1309 : vector<1x1x2x1xf32> to vector<2x1xf32>
    %1311 = vector.shape_cast %1308 : vector<2x1xf32> to vector<1x1x2x1xf32>
    tpu.vector_store %arg11[%c1_748, %c1_749, %c0_750, %c0_751], %1311 {strides = array<i32>} : memref<2x16x2x1xf32, #tpu.memory_space<vmem>>, vector<1x1x2x1xf32>,
    %c0_752 = arith.constant 0 : index
    %c30_753 = arith.constant 30 : index
    %c0_754 = arith.constant 0 : index
    %1312 = vector.load %arg9[%c0_752, %c30_753, %c0_754] : memref<6x32x32xf32, #tpu.memory_space<vmem>>, vector<1x2x32xf32>
    %1313 = vector.shape_cast %1312 : vector<1x2x32xf32> to vector<2x32xf32>
    %c1_755 = arith.constant 1 : index
    %c30_756 = arith.constant 30 : index
    %c0_757 = arith.constant 0 : index
    %1314 = vector.load %arg9[%c1_755, %c30_756, %c0_757] : memref<6x32x32xf32, #tpu.memory_space<vmem>>, vector<1x2x32xf32>
    %1315 = vector.shape_cast %1314 : vector<1x2x32xf32> to vector<2x32xf32>
    %c2_758 = arith.constant 2 : index
    %c30_759 = arith.constant 30 : index
    %c0_760 = arith.constant 0 : index
    %1316 = vector.load %arg9[%c2_758, %c30_759, %c0_760] : memref<6x32x32xf32, #tpu.memory_space<vmem>>, vector<1x2x32xf32>
    %1317 = vector.shape_cast %1316 : vector<1x2x32xf32> to vector<2x32xf32>
    %1318 = arith.truncf %1259 : vector<2x32xf32> to vector<2x32xbf16>
    %cst_761 = arith.constant dense<0.000000e+00> : vector<2x32xf32>
    %1319 = tpu.matmul %1318, %31, %cst_761 {dimension_numbers = #tpu.dot_dimension_numbers<[1], [0], [0], [1], [0, 0, 1, 1], [], []>} : vector<2x32xbf16>, vector<32x32xbf16>, vector<2x32xf32> -> vector<2x32xf32>
    %cst_762 = arith.constant dense<0.000000e+00> : vector<2x32xf32>
    %1320 = tpu.matmul %1318, %33, %cst_762 {dimension_numbers = #tpu.dot_dimension_numbers<[1], [0], [0], [1], [0, 0, 1, 1], [], []>} : vector<2x32xbf16>, vector<32x32xbf16>, vector<2x32xf32> -> vector<2x32xf32>
    %cst_763 = arith.constant dense<0.000000e+00> : vector<2x32xf32>
    %1321 = tpu.matmul %1318, %35, %cst_763 {dimension_numbers = #tpu.dot_dimension_numbers<[1], [0], [0], [1], [0, 0, 1, 1], [], []>} : vector<2x32xbf16>, vector<32x32xbf16>, vector<2x32xf32> -> vector<2x32xf32>
    %1322 = arith.addf %1313, %1319 : vector<2x32xf32>
    %1323 = arith.negf %1322 : vector<2x32xf32>
    %1324 = math.exp %1323 : vector<2x32xf32>
    %cst_764 = arith.constant 1.000000e+00 : f32
    %1325 = vector.broadcast %cst_764 : f32 to vector<2x32xf32>
    %1326 = arith.addf %1325, %1324 : vector<2x32xf32>
    %1327 = arith.divf %1325, %1326 : vector<2x32xf32>
    %1328 = arith.addf %1315, %1320 : vector<2x32xf32>
    %1329 = arith.negf %1328 : vector<2x32xf32>
    %1330 = math.exp %1329 : vector<2x32xf32>
    %cst_765 = arith.constant 1.000000e+00 : f32
    %1331 = vector.broadcast %cst_765 : f32 to vector<2x32xf32>
    %1332 = arith.addf %1331, %1330 : vector<2x32xf32>
    %1333 = arith.divf %1331, %1332 : vector<2x32xf32>
    %1334 = vector.broadcast %43 : vector<1x32xf32> to vector<2x32xf32>
    %1335 = arith.addf %1321, %1334 : vector<2x32xf32>
    %1336 = arith.mulf %1327, %1335 : vector<2x32xf32>
    %1337 = arith.addf %1317, %1336 : vector<2x32xf32>
    %1338 = math.tanh %1337 : vector<2x32xf32>
    %cst_766 = arith.constant 1.000000e+00 : f32
    %1339 = vector.broadcast %cst_766 : f32 to vector<2x32xf32>
    %1340 = arith.subf %1339, %1333 : vector<2x32xf32>
    %1341 = arith.mulf %1340, %1338 : vector<2x32xf32>
    %1342 = arith.mulf %1333, %1259 : vector<2x32xf32>
    %1343 = arith.addf %1341, %1342 : vector<2x32xf32>
    %c3_767 = arith.constant 3 : index
    %c0_768 = arith.constant 0 : index
    %c0_769 = arith.constant 0 : index
    %1344 = vector.load %arg9[%c3_767, %c0_768, %c0_769] : memref<6x32x32xf32, #tpu.memory_space<vmem>>, vector<1x2x32xf32>
    %1345 = vector.shape_cast %1344 : vector<1x2x32xf32> to vector<2x32xf32>
    %c4_770 = arith.constant 4 : index
    %c0_771 = arith.constant 0 : index
    %c0_772 = arith.constant 0 : index
    %1346 = vector.load %arg9[%c4_770, %c0_771, %c0_772] : memref<6x32x32xf32, #tpu.memory_space<vmem>>, vector<1x2x32xf32>
    %1347 = vector.shape_cast %1346 : vector<1x2x32xf32> to vector<2x32xf32>
    %c5_773 = arith.constant 5 : index
    %c0_774 = arith.constant 0 : index
    %c0_775 = arith.constant 0 : index
    %1348 = vector.load %arg9[%c5_773, %c0_774, %c0_775] : memref<6x32x32xf32, #tpu.memory_space<vmem>>, vector<1x2x32xf32>
    %1349 = vector.shape_cast %1348 : vector<1x2x32xf32> to vector<2x32xf32>
    %1350 = arith.truncf %1291 : vector<2x32xf32> to vector<2x32xbf16>
    %cst_776 = arith.constant dense<0.000000e+00> : vector<2x32xf32>
    %1351 = tpu.matmul %1350, %37, %cst_776 {dimension_numbers = #tpu.dot_dimension_numbers<[1], [0], [0], [1], [0, 0, 1, 1], [], []>} : vector<2x32xbf16>, vector<32x32xbf16>, vector<2x32xf32> -> vector<2x32xf32>
    %cst_777 = arith.constant dense<0.000000e+00> : vector<2x32xf32>
    %1352 = tpu.matmul %1350, %39, %cst_777 {dimension_numbers = #tpu.dot_dimension_numbers<[1], [0], [0], [1], [0, 0, 1, 1], [], []>} : vector<2x32xbf16>, vector<32x32xbf16>, vector<2x32xf32> -> vector<2x32xf32>
    %cst_778 = arith.constant dense<0.000000e+00> : vector<2x32xf32>
    %1353 = tpu.matmul %1350, %41, %cst_778 {dimension_numbers = #tpu.dot_dimension_numbers<[1], [0], [0], [1], [0, 0, 1, 1], [], []>} : vector<2x32xbf16>, vector<32x32xbf16>, vector<2x32xf32> -> vector<2x32xf32>
    %1354 = arith.addf %1345, %1351 : vector<2x32xf32>
    %1355 = arith.negf %1354 : vector<2x32xf32>
    %1356 = math.exp %1355 : vector<2x32xf32>
    %cst_779 = arith.constant 1.000000e+00 : f32
    %1357 = vector.broadcast %cst_779 : f32 to vector<2x32xf32>
    %1358 = arith.addf %1357, %1356 : vector<2x32xf32>
    %1359 = arith.divf %1357, %1358 : vector<2x32xf32>
    %1360 = arith.addf %1347, %1352 : vector<2x32xf32>
    %1361 = arith.negf %1360 : vector<2x32xf32>
    %1362 = math.exp %1361 : vector<2x32xf32>
    %cst_780 = arith.constant 1.000000e+00 : f32
    %1363 = vector.broadcast %cst_780 : f32 to vector<2x32xf32>
    %1364 = arith.addf %1363, %1362 : vector<2x32xf32>
    %1365 = arith.divf %1363, %1364 : vector<2x32xf32>
    %1366 = vector.broadcast %45 : vector<1x32xf32> to vector<2x32xf32>
    %1367 = arith.addf %1353, %1366 : vector<2x32xf32>
    %1368 = arith.mulf %1359, %1367 : vector<2x32xf32>
    %1369 = arith.addf %1349, %1368 : vector<2x32xf32>
    %1370 = math.tanh %1369 : vector<2x32xf32>
    %cst_781 = arith.constant 1.000000e+00 : f32
    %1371 = vector.broadcast %cst_781 : f32 to vector<2x32xf32>
    %1372 = arith.subf %1371, %1365 : vector<2x32xf32>
    %1373 = arith.mulf %1372, %1370 : vector<2x32xf32>
    %1374 = arith.mulf %1365, %1291 : vector<2x32xf32>
    %1375 = arith.addf %1373, %1374 : vector<2x32xf32>
    %c0_782 = arith.constant 0 : index
    %c15_783 = arith.constant 15 : index
    %c0_784 = arith.constant 0 : index
    %c0_785 = arith.constant 0 : index
    %1376 = vector.load %arg10[%c0_782, %c15_783, %c0_784, %c0_785] : memref<2x16x2x32xf32, #tpu.memory_space<vmem>>, vector<1x1x2x32xf32>
    %1377 = vector.shape_cast %1376 : vector<1x1x2x32xf32> to vector<2x32xf32>
    %1378 = vector.shape_cast %1343 : vector<2x32xf32> to vector<1x1x2x32xf32>
    tpu.vector_store %arg10[%c0_782, %c15_783, %c0_784, %c0_785], %1378 {strides = array<i32>} : memref<2x16x2x32xf32, #tpu.memory_space<vmem>>, vector<1x1x2x32xf32>,
    %c1_786 = arith.constant 1 : index
    %c0_787 = arith.constant 0 : index
    %c0_788 = arith.constant 0 : index
    %c0_789 = arith.constant 0 : index
    %1379 = vector.load %arg10[%c1_786, %c0_787, %c0_788, %c0_789] : memref<2x16x2x32xf32, #tpu.memory_space<vmem>>, vector<1x1x2x32xf32>
    %1380 = vector.shape_cast %1379 : vector<1x1x2x32xf32> to vector<2x32xf32>
    %1381 = vector.shape_cast %1375 : vector<2x32xf32> to vector<1x1x2x32xf32>
    tpu.vector_store %arg10[%c1_786, %c0_787, %c0_788, %c0_789], %1381 {strides = array<i32>} : memref<2x16x2x32xf32, #tpu.memory_space<vmem>>, vector<1x1x2x32xf32>,
    %1382 = vector.broadcast %47 : vector<1x32xf32> to vector<2x32xf32>
    %1383 = arith.mulf %1343, %1382 : vector<2x32xf32>
    %cst_790 = arith.constant dense<0.000000e+00> : vector<2xf32>
    %1384 = vector.multi_reduction <add>, %1383, %cst_790 [1] : vector<2x32xf32> to vector<2xf32>
    %1385 = vector.shape_cast %1384 : vector<2xf32> to vector<2x1xf32>
    %c0_791 = arith.constant 0 : index
    %c15_792 = arith.constant 15 : index
    %c0_793 = arith.constant 0 : index
    %c0_794 = arith.constant 0 : index
    %1386 = vector.load %arg11[%c0_791, %c15_792, %c0_793, %c0_794] : memref<2x16x2x1xf32, #tpu.memory_space<vmem>>, vector<1x1x2x1xf32>
    %1387 = vector.shape_cast %1386 : vector<1x1x2x1xf32> to vector<2x1xf32>
    %1388 = vector.shape_cast %1385 : vector<2x1xf32> to vector<1x1x2x1xf32>
    tpu.vector_store %arg11[%c0_791, %c15_792, %c0_793, %c0_794], %1388 {strides = array<i32>} : memref<2x16x2x1xf32, #tpu.memory_space<vmem>>, vector<1x1x2x1xf32>,
    %1389 = vector.broadcast %49 : vector<1x32xf32> to vector<2x32xf32>
    %1390 = arith.mulf %1375, %1389 : vector<2x32xf32>
    %cst_795 = arith.constant dense<0.000000e+00> : vector<2xf32>
    %1391 = vector.multi_reduction <add>, %1390, %cst_795 [1] : vector<2x32xf32> to vector<2xf32>
    %1392 = vector.shape_cast %1391 : vector<2xf32> to vector<2x1xf32>
    %c1_796 = arith.constant 1 : index
    %c0_797 = arith.constant 0 : index
    %c0_798 = arith.constant 0 : index
    %c0_799 = arith.constant 0 : index
    %1393 = vector.load %arg11[%c1_796, %c0_797, %c0_798, %c0_799] : memref<2x16x2x1xf32, #tpu.memory_space<vmem>>, vector<1x1x2x1xf32>
    %1394 = vector.shape_cast %1393 : vector<1x1x2x1xf32> to vector<2x1xf32>
    %1395 = vector.shape_cast %1392 : vector<2x1xf32> to vector<1x1x2x1xf32>
    tpu.vector_store %arg11[%c1_796, %c0_797, %c0_798, %c0_799], %1395 {strides = array<i32>} : memref<2x16x2x1xf32, #tpu.memory_space<vmem>>, vector<1x1x2x1xf32>,
    %c0_800 = arith.constant 0 : index
    %c0_801 = arith.constant 0 : index
    %c0_802 = arith.constant 0 : index
    %c0_803 = arith.constant 0 : index
    %1396 = vector.load %arg11[%c0_800, %c0_801, %c0_802, %c0_803] : memref<2x16x2x1xf32, #tpu.memory_space<vmem>>, vector<1x16x2x1xf32>
    %1397 = vector.shape_cast %1396 : vector<1x16x2x1xf32> to vector<16x2x1xf32>
    %c1_804 = arith.constant 1 : index
    %c0_805 = arith.constant 0 : index
    %c0_806 = arith.constant 0 : index
    %c0_807 = arith.constant 0 : index
    %1398 = vector.load %arg11[%c1_804, %c0_805, %c0_806, %c0_807] : memref<2x16x2x1xf32, #tpu.memory_space<vmem>>, vector<1x16x2x1xf32>
    %1399 = vector.shape_cast %1398 : vector<1x16x2x1xf32> to vector<16x2x1xf32>
    %1400 = arith.addf %1397, %1399 : vector<16x2x1xf32>
    %cst_808 = arith.constant dense<0xFF800000> : vector<2x1xf32>
    %1401 = vector.multi_reduction <maximumf>, %1400, %cst_808 [0] : vector<16x2x1xf32> to vector<2x1xf32>
    %1402 = vector.shape_cast %1401 : vector<2x1xf32> to vector<1x2x1xf32>
    %1403 = vector.broadcast %1402 : vector<1x2x1xf32> to vector<16x2x1xf32>
    %1404 = arith.subf %1400, %1403 : vector<16x2x1xf32>
    %1405 = math.exp %1404 : vector<16x2x1xf32>
    %cst_809 = arith.constant dense<0.000000e+00> : vector<2x1xf32>
    %1406 = vector.multi_reduction <add>, %1405, %cst_809 [0] : vector<16x2x1xf32> to vector<2x1xf32>
    %1407 = vector.shape_cast %1406 : vector<2x1xf32> to vector<1x2x1xf32>
    %1408 = tpu.reciprocal %1407 {approx = true} : vector<1x2x1xf32> -> vector<1x2x1xf32>
    %1409 = vector.broadcast %1408 : vector<1x2x1xf32> to vector<16x2x1xf32>
    %1410 = arith.mulf %1405, %1409 : vector<16x2x1xf32>
    %c0_810 = arith.constant 0 : index
    %c0_811 = arith.constant 0 : index
    %c0_812 = arith.constant 0 : index
    %c0_813 = arith.constant 0 : index
    %1411 = vector.load %arg10[%c0_810, %c0_811, %c0_812, %c0_813] : memref<2x16x2x32xf32, #tpu.memory_space<vmem>>, vector<1x16x2x32xf32>
    %1412 = vector.shape_cast %1411 : vector<1x16x2x32xf32> to vector<16x2x32xf32>
    %1413 = vector.broadcast %1410 : vector<16x2x1xf32> to vector<16x2x32xf32>
    %1414 = arith.mulf %1413, %1412 : vector<16x2x32xf32>
    %cst_814 = arith.constant dense<0.000000e+00> : vector<2x32xf32>
    %1415 = vector.multi_reduction <add>, %1414, %cst_814 [0] : vector<16x2x32xf32> to vector<2x32xf32>
    %c1_815 = arith.constant 1 : index
    %c0_816 = arith.constant 0 : index
    %c0_817 = arith.constant 0 : index
    %c0_818 = arith.constant 0 : index
    %1416 = vector.load %arg10[%c1_815, %c0_816, %c0_817, %c0_818] : memref<2x16x2x32xf32, #tpu.memory_space<vmem>>, vector<1x16x2x32xf32>
    %1417 = vector.shape_cast %1416 : vector<1x16x2x32xf32> to vector<16x2x32xf32>
    %1418 = vector.broadcast %1410 : vector<16x2x1xf32> to vector<16x2x32xf32>
    %1419 = arith.mulf %1418, %1417 : vector<16x2x32xf32>
    %cst_819 = arith.constant dense<0.000000e+00> : vector<2x32xf32>
    %1420 = vector.multi_reduction <add>, %1419, %cst_819 [0] : vector<16x2x32xf32> to vector<2x32xf32>
    %1421 = arith.truncf %1415 : vector<2x32xf32> to vector<2x32xbf16>
    %c0_820 = arith.constant 0 : index
    %c0_821 = arith.constant 0 : index
    %c0_822 = arith.constant 0 : index
    %1422 = vector.load %arg6[%c0_820, %c0_821, %c0_822] : memref<2x32x8xbf16, #tpu.memory_space<vmem>>, vector<1x32x8xbf16>
    %1423 = vector.shape_cast %1422 : vector<1x32x8xbf16> to vector<32x8xbf16>
    %cst_823 = arith.constant dense<0.000000e+00> : vector<2x8xf32>
    %1424 = tpu.matmul %1421, %1423, %cst_823 {dimension_numbers = #tpu.dot_dimension_numbers<[1], [0], [0], [1], [0, 0, 1, 1], [], []>} : vector<2x32xbf16>, vector<32x8xbf16>, vector<2x8xf32> -> vector<2x8xf32>
    %1425 = arith.truncf %1420 : vector<2x32xf32> to vector<2x32xbf16>
    %c1_824 = arith.constant 1 : index
    %c0_825 = arith.constant 0 : index
    %c0_826 = arith.constant 0 : index
    %1426 = vector.load %arg6[%c1_824, %c0_825, %c0_826] : memref<2x32x8xbf16, #tpu.memory_space<vmem>>, vector<1x32x8xbf16>
    %1427 = vector.shape_cast %1426 : vector<1x32x8xbf16> to vector<32x8xbf16>
    %cst_827 = arith.constant dense<0.000000e+00> : vector<2x8xf32>
    %1428 = tpu.matmul %1425, %1427, %cst_827 {dimension_numbers = #tpu.dot_dimension_numbers<[1], [0], [0], [1], [0, 0, 1, 1], [], []>} : vector<2x32xbf16>, vector<32x8xbf16>, vector<2x8xf32> -> vector<2x8xf32>
    %1429 = arith.addf %1424, %1428 : vector<2x8xf32>
    %c0_828 = arith.constant 0 : index
    %c0_829 = arith.constant 0 : index
    %1430 = vector.load %arg7[%c0_828, %c0_829] : memref<1x8xf32, #tpu.memory_space<vmem>>, vector<1x8xf32>
    %1431 = vector.broadcast %1430 : vector<1x8xf32> to vector<2x8xf32>
    %1432 = arith.addf %1429, %1431 : vector<2x8xf32>
    %c0_830 = arith.constant 0 : index
    %c0_831 = arith.constant 0 : index
    %1433 = vector.load %arg8[%c0_830, %c0_831] : memref<2x8xf32, #tpu.memory_space<vmem>>, vector<2x8xf32>
    tpu.vector_store %arg8[%c0_830, %c0_831], %1432 {strides = array<i32>} : memref<2x8xf32, #tpu.memory_space<vmem>>, vector<2x8xf32>,
    return
  }
}

</mosaic_0001>

<bundles_post_ra>
// kernel: tpu_custom_call.1
= control target key start
LH: loop header
LB: loop body
LE: loop exit
PB: predicated region body
PF: predicated region fallthrough
CT: control target
= control target key end

     0   :  { %13 = vsyncpa [#allocation6], 0  ;;  %s5956_s0 = inlined_call_operand.vmem [shape: bf16[32,16], index: 0, kind: input, shape index: {}]   ;;  %s5957_s1 = inlined_call_operand.vmem [shape: bf16[16,192], index: 1, kind: input, shape index: {}]   ;;  %s5958_s2 = inlined_call_operand.vmem [shape: f32[1,192], index: 2, kind: input, shape index: {}]   ;;  %s5959_s3 = inlined_call_operand.hbm [shape: bf16[6,32,32], index: 3, kind: input, shape index: {}]   ;;  %s5960_s4 = inlined_call_operand.vmem [shape: f32[2,1,32], index: 4, kind: input, shape index: {}]   ;;  %s5961_s5 = inlined_call_operand.vmem [shape: f32[2,1,32], index: 5, kind: input, shape index: {}]   ;;  %s5962_s6 = inlined_call_operand.vmem [shape: bf16[2,32,8], index: 6, kind: input, shape index: {}]   ;;  %s5963_s7 = inlined_call_operand.vmem [shape: f32[1,8], index: 7, kind: input, shape index: {}]   ;;  %s5964_s8 = inlined_call_operand.hbm [shape: f32[2,8], index: 8, kind: output, shape index: {}]  }
   0x1   :  { %14 = vsyncpa [#allocation7], 0  ;;  %s25_s29 = sshll.u32 %s5959_s3, 4  ;;  %s4764_s30 = smov [#allocation5]   ;;  %s26_s29 = int_to_ptr.hbm [resolvable:$true] %s25_s29 }
   0x2   :  { %s27_s9 = sshll.u32 %s4764_s30, 4  ;;  %s4765_s10 = smov 64   ;;  %s28_s9 = int_to_ptr.vmem [resolvable:$true] %s27_s9 }
   0x3   :  { %s4766_s11 = smov 4  }
   0x4   :  { %33 = dma.hbm_to_vmem [thread:$0]  %s26_s29, 1536, %s28_s9, [#allocation6], %s4765_s10, %s4765_s10, %s4766_s11  }
   0x5   :  { %4760 = dma.done.wait [#allocation6], 1536  }
   0x6   :  { %4761 = vsyncadd [#allocation6], 4294965760  ;;  %v4767_v0 = vmov 0   ;;  %v4038_v1 = vld [vmem:[%s5957_s1] sm:$0xf]  ;;  %v4836_v6 = vld [vmem:[#allocation5 + $0x8] sm:$0xff] }
   0x7   :  { %4303 = vset.pattern.permute.xlu1 %v4767_v0  ;;  %4302 = vset.pattern.permute.xlu0 %v4767_v0  ;;  %v4277_v2 = vld [vmem:[%s5957_s1 + $0x4] sm:$0xf0]  ;;  %v4276_v3 = vld [vmem:[%s5957_s1 + $0x4] sm:$0xf]  ;;  %v4040_v5 = vld [vmem:[%s5957_s1 + $0x8] sm:$0xf0] }
   0x8   :  { %4301 = vset.pattern.permute.xlu2 %v4767_v0  ;;  %v4039_v4 = vor.u32 %v4277_v2, %v4038_v1  ;;  %v4043_v7 = vor.u32 %v4276_v3, %v4040_v5  ;;  %v4274_v8 = vld [vmem:[%s5956_s0] sm:$0xff]  ;;  %269 = vmatpush.bf16.msra.mxu2 %v4836_v6  ;;  %vm79_vm0 = vcmask 130048   ;;  %v4844_v10 = vld [vmem:[#allocation5 + $0x28] sm:$0xff]  ;;  %v4852_v13 = vld [vmem:[#allocation5 + $0x18] sm:$0xff]  ;;  %vm124_vm1 = vcmask 261120   ;;  %s4769_s23 = smov 32  }
   0x9   :  { %v4842_v9 = vld [vmem:[#allocation5] sm:$0xff]  ;;  %v4846_v11 = vld [vmem:[#allocation5 + $0x48] sm:$0xff]  ;;  %294 = vmatpush.bf16.msra.mxu3 %v4852_v13  ;;  %v4860_v15 = vld [vmem:[#allocation5 + $0x10] sm:$0xff]  ;;  %vm504_vm10 = vcmask 254976   ;;  %s4770_s16 = smov [#allocation8]   ;;  %s4018_s20 = sshll.u32 %s5964_s8, 4  ;;  %s4019_s20 = int_to_ptr.hbm [resolvable:$true] %s4018_s20 }
   0xa   :  { %93 = vmatpush.bf16.msra.mxu0 %v4039_v4  ;;  %112 = vmatpush.bf16.msra.mxu1 %v4043_v7  ;;  %v4849_v12 = vld [vmem:[#allocation5 + $0x40] sm:$0xff]  ;;  %v4275_v16 = vld [vmem:[%s5956_s0 + $0x8] sm:$0xff]  ;;  %v4882_v17 = vld [vmem:[#allocation5 + $0x38] sm:$0xff]  ;;  %s4016_s17 = sshll.u32 %s4770_s16, 4  ;;  %s4017_s17 = int_to_ptr.vmem [resolvable:$true] %s4016_s17 }
   0xb   :  { %v4857_v14 = vld [vmem:[#allocation5 + $0x20] sm:$0xff]  ;;  %v4885_v18 = vld [vmem:[#allocation5 + $0x30] sm:$0xff]  ;;  %v4891_v19 = vld [vmem:[#allocation5 + $0x58] sm:$0xff] }
   0xc   :  { %270 = vmatpush.bf16.msra.mxu2 %v4842_v9  ;;  %v53_v20 = vld [vmem:[%s5958_s2] sm:$0x3]  ;;  %s4768_s2 = smov 96   ;;  %v4910_v27 = vld [vmem:[#allocation5 + $0x50] sm:$0xff] }
   0xd   :  { %4044 = vmatmul.msk.bf16.vlgmr.msra.gmra.mxu0 %vm79_vm0, %v4274_v8  ;;  %4046 = vmatmul.msk.bf16.vlgmr.msra.gmra.mxu1 %vm79_vm0, %v4274_v8  ;;  %v55_v21 = vperm.slane %v53_v20, 0  ;;  %v56_v23 = vperm.slane %v53_v20, 1  ;;  %v4933_v52 = vld [vmem:[%s5960_s4] ss:$0 sm:$0xff] }
   0xe   :  { %422 = vmatpush.bf16.msrb.mxu0 %v4846_v11  ;;  %295 = vmatpush.bf16.msra.mxu3 %v4860_v15 }
   0xf   :  { %271 = vmatmul.bf16.vlgmr.msra.gmra.mxu2 %v4767_v0  ;;  %490 = vmatpush.bf16.msrb.mxu1 %v4891_v19 }
  0x10   :  { %362 = vmatpush.bf16.msrb.mxu2 %v4844_v10 }
  0x11   :  { %296 = vmatmul.bf16.vlgmr.msra.gmra.mxu3 %v4767_v0 }
  0x12   :  { %423 = vmatpush.bf16.msrb.mxu0 %v4849_v12  ;;  %397 = vmatpush.bf16.msrb.mxu3 %v4882_v17 }
  0x13   :  { %491 = vmatpush.bf16.msrb.mxu1 %v4910_v27 }
  0x14   :  { %363 = vmatpush.bf16.msrb.mxu2 %v4857_v14 }
  0x16   :  { %605 = vmatpush.bf16.msra.mxu0 %v4844_v10  ;;  %398 = vmatpush.bf16.msrb.mxu3 %v4885_v18 }
  0x17   :  { %632 = vmatpush.bf16.msra.mxu1 %v4882_v17 }
  0x18   :  { %539 = vmatpush.bf16.msra.mxu2 %v4836_v6 }
  0x1a   :  { %606 = vmatpush.bf16.msra.mxu0 %v4857_v14  ;;  %552 = vmatpush.bf16.msra.mxu3 %v4852_v13 }
  0x1b   :  { %633 = vmatpush.bf16.msra.mxu1 %v4885_v18 }
  0x1c   :  { %540 = vmatpush.bf16.msra.mxu2 %v4842_v9 }
  0x1d   :  { %4045 = vmatmul.msk.bf16.gmra.mxu0 %vm79_vm0, %v4275_v16  ;;  %4047 = vmatmul.msk.bf16.gmra.mxu1 %vm79_vm0, %v4275_v16 }
  0x1e   :  { %553 = vmatpush.bf16.msra.mxu3 %v4860_v15 }
  0x1f   :  { %364 = vmatmul.bf16.vlgmr.msrb.gmra.mxu2 %v4767_v0 }
  0x20   :  { %645 = vmatpush.bf16.msrb.mxu2 %v4846_v11 }
  0x21   :  { %399 = vmatmul.bf16.vlgmr.msrb.gmra.mxu3 %v4767_v0 }
  0x22   :  { %698 = vmatpush.bf16.msrb.mxu3 %v4891_v19 }
  0x24   :  { %646 = vmatpush.bf16.msrb.mxu2 %v4849_v12 }
  0x26   :  { %699 = vmatpush.bf16.msrb.mxu3 %v4910_v27 }
  0x2d   :  { %424 = vmatmul.bf16.vlgmr.msrb.gmra.mxu0 %v4767_v0  ;;  %492 = vmatmul.bf16.vlgmr.msrb.gmra.mxu1 %v4767_v0 }
  0x2e   :  { %741 = vmatpush.bf16.msrb.mxu0 %v4836_v6  ;;  %754 = vmatpush.bf16.msrb.mxu1 %v4852_v13 }
  0x32   :  { %742 = vmatpush.bf16.msrb.mxu0 %v4842_v9  ;;  %755 = vmatpush.bf16.msrb.mxu1 %v4860_v15 }
  0x8a   :  { %v95_v22 = vpop.f32.mrf.mxu0  ;;  %v114_v25 = vpop.f32.mrf.mxu1 }
  0x8b   :  { %v4898_v24 = vadd.f32 %v95_v22, %v55_v21  ;;  %v4900_v26 = vadd.f32 %v114_v25, %v56_v23 }
  0x8d   :  { %125 = vst.msk [vmem:[#allocation2] sm:$0xff] %vm124_vm1, %v4898_v24  ;;  %150 = vrot.lane.b32.xlu1 %v4898_v24, %s4765_s10  ;;  %133 = vrot.lane.b32.xlu0 %v4898_v24, %s4768_s2 }
  0x8e   :  { %185 = vst.msk [vmem:[#allocation2 + $0x80] sm:$0xff] %vm124_vm1, %v4900_v26 }
  0x92   :  { %v97_v28 = vpop.f32.mrf.mxu0  ;;  %v116_v30 = vpop.f32.mrf.mxu1 }
  0x93   :  { %v98_v29 = vadd.f32 %v97_v28, %v55_v21  ;;  %v117_v31 = vadd.f32 %v116_v30, %v56_v23  ;;  %v272_v33 = vpop.f32.mrf.mxu2 }
  0x94   :  { %v245_v32 = vld [vmem:[#allocation2] sm:$0x3]  ;;  %v297_v0 = vpop.f32.mrf.mxu3 }
  0x95   :  { %126 = vst.msk [vmem:[#allocation2 + $0x8] sm:$0xff] %vm124_vm1, %v98_v29  ;;  %v301_v34 = vadd.f32 %v272_v33, %v245_v32  ;;  %135 = vrot.lane.b32.xlu2 %v98_v29, %s4768_s2 }
  0x96   :  { %186 = vst.msk [vmem:[#allocation2 + $0x88] sm:$0xff] %vm124_vm1, %v117_v31 }
  0x97   :  { %v4066_v35 = vmul.f32 -1.442695, %v301_v34 }
  0x99   :  { %4309 = vpow2.f32 %v4066_v35 }
  0x9a   :  { %v100_v36 = vpop.f32.mrf.mxu0  ;;  %v119_v38 = vpop.f32.mrf.mxu1 }
  0x9b   :  { %v101_v37 = vadd.f32 %v100_v36, %v55_v21  ;;  %v120_v39 = vadd.f32 %v119_v38, %v56_v23  ;;  %v274_v40 = vpop.f32.mrf.mxu2 }
  0x9c   :  { %v299_v2 = vpop.f32.mrf.mxu3 }
  0x9d   :  { %127 = vst.msk [vmem:[#allocation2 + $0x10] sm:$0xff] %vm124_vm1, %v101_v37  ;;  %171 = vrot.lane.b32.xlu2 %v101_v37, %s4769_s23 }
  0x9e   :  { %187 = vst.msk [vmem:[#allocation2 + $0x90] sm:$0xff] %vm124_vm1, %v120_v39 }
  0x9f   :  { %v4310_v41 = vpop.eup %4309 }
  0xa0   :  { %v305_v42 = vadd.f32 1.0, %v4310_v41 }
  0xa2   :  { %4311 = vrcp.f32 %v305_v42  ;;  %v102_v43 = vpop.f32.mrf.mxu0  ;;  %v121_v45 = vpop.f32.mrf.mxu1  ;;  %v317_v53 = vand.u32 2147483648, %v305_v42  ;;  %v315_v56 = vand.u32 2147483647, %v305_v42  ;;  %vm311_vm3 = vweird.f32 %v305_v42 }
  0xa3   :  { %v103_v44 = vadd.f32 %v102_v43, %v55_v21  ;;  %v122_v46 = vadd.f32 %v121_v45, %v56_v23  ;;  %v365_v47 = vpop.f32.mrf.mxu2 }
  0xa4   :  { %v366_v58 = vadd.f32 %v4933_v52, %v365_v47  ;;  %v318_v59 = vor.u32 1.1754944e-38, %v317_v53  ;;  %vm316_vm5 = vcmp.eq.f32.partialorder %v315_v56, 8.507059e+37  ;;  %v400_v4 = vpop.f32.mrf.mxu3 }
  0xa5   :  { %128 = vst.msk [vmem:[#allocation2 + $0x18] sm:$0xff] %vm124_vm1, %v103_v44  ;;  %137 = vrot.lane.b32.xlu2 %v101_v37, %s4768_s2  ;;  %173 = vrot.lane.b32.xlu0 %v103_v44, %s4769_s23 }
  0xa6   :  { %188 = vst.msk [vmem:[#allocation2 + $0x98] sm:$0xff] %vm124_vm1, %v122_v46  ;;  %199 = vrot.lane.b32.xlu1 %v122_v46, %s4768_s2 }
  0xa8   :  { %v4312_v48 = vpop.eup %4311 }
  0xa9   :  { %v307_v49 = vmul.f32 %v4312_v48, %v305_v42  ;;  %vm312_vm2 = vweird.f32 %v4312_v48 }
  0xaa   :  { %v425_v50 = vpop.f32.mrf.mxu0  ;;  %vm313_vm4 = vmor %vm311_vm3, %vm312_vm2  ;;  %v4954_v30 = vpop.f32.mrf.mxu1 }
  0xab   :  { %v308_v51 = vsub.f32 1.0, %v307_v49  ;;  %v367_v54 = vpop.f32.mrf.mxu2 }
  0xac   :  { %v402_v16 = vpop.f32.mrf.mxu3 }
  0xad   :  { %195 = vrot.lane.b32.xlu2 %v117_v31, %s4768_s2  ;;  %152 = vrot.lane.b32.xlu0 %v98_v29, %s4765_s10  ;;  %v309_v55 = vmul.f32 %v4312_v48, %v308_v51  ;;  %v377_v25 = vld [vmem:[#allocation2 + $0x9e] sm:$0x3] }
  0xae   :  { %197 = vrot.lane.b32.xlu1 %v120_v39, %s4768_s2 }
  0xaf   :  { %v310_v57 = vadd.f32 %v4312_v48, %v309_v55 }
  0xb1   :  { %v314_v60 = vsel %vm313_vm4, %v4312_v48, %v310_v57  ;;  %vm515_vm4 = vcmask 1024  }
  0xb2   :  { %v319_v61 = vsel %vm316_vm5, %v318_v59, %v314_v60  ;;  %v427_v62 = vpop.f32.mrf.mxu0 }
  0xb3   :  { %v369_v63 = vmul.f32 %v366_v58, %v319_v61  ;;  %v4968_v62 = vld [vmem:[%s5961_s5] ss:$0 sm:$0xff] }
  0xb5   :  { %156 = vrot.lane.b32.xlu2 %v103_v44, %s4765_s10  ;;  %169 = vrot.lane.b32.xlu0 %v98_v29, %s4769_s23 }
  0xb6   :  { %154 = vrot.lane.b32.xlu1 %v101_v37, %s4765_s10  ;;  %v495_v37 = vpop.f32.mrf.mxu1 }
  0xbd   :  { %139 = vrot.lane.b32.xlu0 %v103_v44, %s4768_s2 }
  0xbe   :  { %167 = vrot.lane.b32.xlu1 %v4898_v24, %s4769_s23 }
  0xc5   :  { %193 = vrot.lane.b32.xlu0 %v4900_v26, %s4768_s2  ;;  %v449_v26 = vadd.f32 %v425_v50, %v377_v25 }
  0xc7   :  { %v4093_v31 = vmul.f32 -1.442695, %v449_v26 }
  0xef   :  { %v136_v1 = vpop.permute.xlu2 %135 }
  0xf0   :  { %147 = vst.msk [vmem:[#allocation2 + $0x28] sm:$0xff] %vm124_vm1, %v136_v1 }
  0xf7   :  { %v172_v3 = vpop.permute.xlu2 %171 }
  0xf8   :  { %182 = vst.msk [vmem:[#allocation2 + $0x70] sm:$0xff] %vm124_vm1, %v172_v3 }
  0xff   :  { %v138_v5 = vpop.permute.xlu2 %137  ;;  %v151_v7 = vpop.permute.xlu1 %150 }
 0x100   :  { %148 = vst.msk [vmem:[#allocation2 + $0x30] sm:$0xff] %vm124_vm1, %v138_v5  ;;  %v134_v8 = vpop.permute.xlu0 %133 }
 0x101   :  { %163 = vst.msk [vmem:[#allocation2 + $0x40] sm:$0xff] %vm124_vm1, %v151_v7 }
 0x102   :  { %146 = vst.msk [vmem:[#allocation2 + $0x20] sm:$0xff] %vm124_vm1, %v134_v8 }
 0x107   :  { %v196_v20 = vpop.permute.xlu2 %195 }
 0x108   :  { %207 = vst.msk [vmem:[#allocation2 + $0xa8] sm:$0xff] %vm124_vm1, %v196_v20  ;;  %v247_v34 = vld [vmem:[#allocation2 + $0x40] sm:$0x3] }
 0x109   :  { %v246_v21 = vld [vmem:[#allocation2 + $0x20] sm:$0x3]  ;;  %v370_v38 = vadd.f32 %v369_v63, %v247_v34 }
 0x10a   :  { %v321_v22 = vadd.f32 %v297_v0, %v246_v21 }
 0x10c   :  { %v4067_v23 = vmul.f32 -1.442695, %v321_v22 }
 0x10e   :  { %4313 = vpow2.f32 %v4067_v23  ;;  %v4991_v23 = vld [vmem:[%s5960_s4 + $0x1] ss:$0 sm:$0xff] }
 0x10f   :  { %v157_v24 = vpop.permute.xlu2 %156 }
 0x110   :  { %166 = vst.msk [vmem:[#allocation2 + $0x58] sm:$0xff] %vm124_vm1, %v157_v24 }
 0x114   :  { %v4314_v28 = vpop.eup %4313 }
 0x115   :  { %v325_v29 = vadd.f32 1.0, %v4314_v28 }
 0x117   :  { %4315 = vrcp.f32 %v325_v29  ;;  %v174_v32 = vpop.permute.xlu0 %173  ;;  %v337_v45 = vand.u32 2147483648, %v325_v29  ;;  %v335_v47 = vand.u32 2147483647, %v325_v29  ;;  %vm331_vm7 = vweird.f32 %v325_v29 }
 0x118   :  { %v200_v33 = vpop.permute.xlu1 %199  ;;  %183 = vst.msk [vmem:[#allocation2 + $0x78] sm:$0xff] %vm124_vm1, %v174_v32  ;;  %4317 = vpow2.f32 %v4093_v31  ;;  %v494_v32 = vadd.f32 %v4991_v23, %v4954_v30 }
 0x119   :  { %209 = vst.msk [vmem:[#allocation2 + $0xb8] sm:$0xff] %vm124_vm1, %v200_v33  ;;  %4319 = vtanh.f32 %v370_v38  ;;  %v338_v51 = vor.u32 1.1754944e-38, %v337_v45  ;;  %vm336_vm9 = vcmp.eq.f32.partialorder %v335_v47, 8.507059e+37 }
 0x11d   :  { %v4316_v35 = vpop.eup %4315 }
 0x11e   :  { %v327_v36 = vmul.f32 %v4316_v35, %v325_v29  ;;  %v4318_v44 = vpop.eup %4317  ;;  %vm332_vm6 = vweird.f32 %v4316_v35 }
 0x11f   :  { %v153_v39 = vpop.permute.xlu0 %152  ;;  %v376_v40 = vld [vmem:[#allocation2 + $0x7e] sm:$0x3]  ;;  %v4960_v49 = vadd.f32 1.0, %v4318_v44  ;;  %vm333_vm8 = vmor %vm331_vm7, %vm332_vm6  ;;  %v4320_v58 = vpop.eup %4319 }
 0x120   :  { %v328_v41 = vsub.f32 1.0, %v327_v36  ;;  %v198_v42 = vpop.permute.xlu1 %197  ;;  %164 = vst.msk [vmem:[#allocation2 + $0x48] sm:$0xff] %vm124_vm1, %v153_v39  ;;  %v429_v43 = vadd.f32 %v400_v4, %v376_v40  ;;  %v378_v40 = vld [vmem:[#allocation2 + $0xbe] sm:$0x3] }
 0x121   :  { %208 = vst.msk [vmem:[#allocation2 + $0xb0] sm:$0xff] %vm124_vm1, %v198_v42  ;;  %vm459_vm13 = vweird.f32 %v4960_v49  ;;  %v465_v34 = vand.u32 2147483648, %v4960_v49  ;;  %v463_v37 = vand.u32 2147483647, %v4960_v49 }
 0x122   :  { %v329_v46 = vmul.f32 %v4316_v35, %v328_v41  ;;  %v4092_v48 = vmul.f32 -1.442695, %v429_v43 }
 0x123   :  { %v466_v41 = vor.u32 1.1754944e-38, %v465_v34  ;;  %vm464_vm3 = vcmp.eq.f32.partialorder %v463_v37, 8.507059e+37 }
 0x124   :  { %v330_v50 = vadd.f32 %v4316_v35, %v329_v46  ;;  %4321 = vpow2.f32 %v4092_v48  ;;  %v5005_v48 = vld [vmem:[%s5961_s5 + $0x1] ss:$0 sm:$0xff] }
 0x125   :  { %4323 = vrcp.f32 %v4960_v49 }
 0x126   :  { %v334_v53 = vsel %vm333_vm8, %v4316_v35, %v330_v50 }
 0x127   :  { %v339_v54 = vsel %vm336_vm9, %v338_v51, %v334_v53  ;;  %v170_v55 = vpop.permute.xlu0 %169 }
 0x128   :  { %v372_v56 = vsub.f32 1.0, %v339_v54  ;;  %v155_v57 = vpop.permute.xlu1 %154  ;;  %181 = vst.msk [vmem:[#allocation2 + $0x68] sm:$0xff] %vm124_vm1, %v170_v55  ;;  %v374_v61 = vmul.f32 0.0, %v339_v54 }
 0x129   :  { %165 = vst.msk [vmem:[#allocation2 + $0x50] sm:$0xff] %vm124_vm1, %v155_v57 }
 0x12a   :  { %v4322_v59 = vpop.eup %4321  ;;  %v373_v60 = vmul.f32 %v4320_v58, %v372_v56  ;;  %v526_v56 = vld [vmem:[#allocation2 + $0x2] sm:$0x3] }
 0x12b   :  { %v433_v63 = vadd.f32 1.0, %v4322_v59  ;;  %v4324_v1 = vpop.eup %4323  ;;  %v527_v58 = vld [vmem:[#allocation2 + $0x22] sm:$0x3] }
 0x12c   :  { %v4970_v0 = vadd.f32 %v374_v61, %v373_v60  ;;  %v455_v8 = vmul.f32 %v4324_v1, %v4960_v49  ;;  %vm460_vm14 = vweird.f32 %v4324_v1 }
 0x12d   :  { %4325 = vrcp.f32 %v433_v63  ;;  %v445_v24 = vand.u32 2147483648, %v433_v63  ;;  %v443_v28 = vand.u32 2147483647, %v433_v63  ;;  %vm439_vm12 = vweird.f32 %v433_v63  ;;  %vm461_vm2 = vmor %vm459_vm13, %vm460_vm14 }
 0x12e   :  { %505 = vst.msk [vmem:[#allocation3] sm:$0x3] %vm504_vm10, %v4970_v0  ;;  %v529_v2 = vpack.c.bf16 %v4970_v0, %v4970_v0  ;;  %v511_v3 = vmul.f32 %v4968_v62, %v4970_v0  ;;  %v456_v21 = vsub.f32 1.0, %v455_v8 }
 0x12f   :  { %v140_v4 = vpop.permute.xlu0 %139  ;;  %v446_v33 = vor.u32 1.1754944e-38, %v445_v24  ;;  %vm444_vm0 = vcmp.eq.f32.partialorder %v443_v28, 8.507059e+37 }
 0x130   :  { %4102 = vmatmul.msk.bf16.vlgmr.msra.gmra.mxu2 %vm124_vm1, %v529_v2  ;;  %4103 = vmatmul.msk.bf16.vlgmr.msra.gmra.mxu3 %vm124_vm1, %v529_v2  ;;  %v168_v5 = vpop.permute.xlu1 %167  ;;  %149 = vst.msk [vmem:[#allocation2 + $0x38] sm:$0xff] %vm124_vm1, %v140_v4  ;;  %v512_v7 = vsel %vm504_vm10, %v511_v3, 0.0  ;;  %v457_v29 = vmul.f32 %v4324_v1, %v456_v21 }
 0x131   :  { %4106 = vmatmul.msk.bf16.vlgmr.msra.gmra.mxu0 %vm124_vm1, %v529_v2  ;;  %180 = vst.msk [vmem:[#allocation2 + $0x60] sm:$0xff] %vm124_vm1, %v168_v5  ;;  %513 = vadd.xlane.f32.xlu1 %v512_v7 }
 0x132   :  { %807 = vmatpush.bf16.msra.mxu2 %v4844_v10  ;;  %834 = vmatpush.bf16.msra.mxu3 %v4882_v17  ;;  %v458_v36 = vadd.f32 %v4324_v1, %v457_v29 }
 0x133   :  { %v4326_v16 = vpop.eup %4325  ;;  %847 = vmatpush.bf16.msra.mxu0 %v4846_v11 }
 0x134   :  { %v435_v20 = vmul.f32 %v4326_v16, %v433_v63  ;;  %vm440_vm11 = vweird.f32 %v4326_v16  ;;  %v462_v30 = vsel %vm461_vm2, %v4324_v1, %v458_v36 }
 0x135   :  { %vm441_vm15 = vmor %vm439_vm12, %vm440_vm11  ;;  %v467_v43 = vsel %vm464_vm3, %v466_v41, %v462_v30 }
 0x136   :  { %v436_v22 = vsub.f32 1.0, %v435_v20  ;;  %808 = vmatpush.bf16.msra.mxu2 %v4857_v14  ;;  %835 = vmatpush.bf16.msra.mxu3 %v4885_v18  ;;  %v500_v44 = vsub.f32 1.0, %v467_v43  ;;  %v502_v47 = vmul.f32 0.0, %v467_v43 }
 0x137   :  { %v194_v25 = vpop.permute.xlu0 %193  ;;  %848 = vmatpush.bf16.msra.mxu0 %v4849_v12 }
 0x138   :  { %v437_v26 = vmul.f32 %v4326_v16, %v436_v22  ;;  %206 = vst.msk [vmem:[#allocation2 + $0xa0] sm:$0xff] %vm124_vm1, %v194_v25 }
 0x13a   :  { %v438_v31 = vadd.f32 %v4326_v16, %v437_v26 }
 0x13c   :  { %v442_v35 = vsel %vm441_vm15, %v4326_v16, %v438_v31 }
 0x13d   :  { %v447_v38 = vsel %vm444_vm0, %v446_v33, %v442_v35  ;;  %v619_v33 = vld [vmem:[#allocation2 + $0x7c] sm:$0x3] }
 0x13e   :  { %v497_v39 = vmul.f32 %v494_v32, %v447_v38 }
 0x140   :  { %v498_v42 = vadd.f32 %v497_v39, %v378_v40 }
 0x142   :  { %4327 = vtanh.f32 %v498_v42 }
 0x148   :  { %v4328_v45 = vpop.eup %4327 }
 0x149   :  { %v501_v46 = vmul.f32 %v4328_v45, %v500_v44  ;;  %v620_v45 = vld [vmem:[#allocation2 + $0x9c] sm:$0x3] }
 0x14b   :  { %v5007_v49 = vadd.f32 %v502_v47, %v501_v46  ;;  %v528_v47 = vld [vmem:[#allocation2 + $0x42] sm:$0x3] }
 0x14d   :  { %507 = vst.msk [vmem:[#allocation3 + $0x3e] sm:$0x3] %vm504_vm10, %v5007_v49  ;;  %v622_v50 = vpack.c.bf16 %v5007_v49, %v5007_v49  ;;  %v520_v51 = vmul.f32 %v5005_v48, %v5007_v49 }
 0x14f   :  { %4107 = vmatmul.msk.bf16.vlgmr.msra.gmra.mxu1 %vm124_vm1, %v622_v50  ;;  %4108 = vmatmul.msk.bf16.vlgmr.msrb.gmra.mxu2 %vm124_vm1, %v622_v50  ;;  %v521_v53 = vsel %vm504_vm10, %v520_v51, 0.0 }
 0x150   :  { %4111 = vmatmul.msk.bf16.vlgmr.msrb.gmra.mxu3 %vm124_vm1, %v622_v50  ;;  %522 = vadd.xlane.f32.xlu0 %v521_v53 }
 0x151   :  { %900 = vmatpush.bf16.msra.mxu1 %v4891_v19  ;;  %943 = vmatpush.bf16.msrb.mxu2 %v4836_v6 }
 0x152   :  { %956 = vmatpush.bf16.msrb.mxu3 %v4852_v13 }
 0x155   :  { %901 = vmatpush.bf16.msra.mxu1 %v4910_v27  ;;  %944 = vmatpush.bf16.msrb.mxu2 %v4842_v9 }
 0x156   :  { %957 = vmatpush.bf16.msrb.mxu3 %v4860_v15 }
 0x1a4   :  { %v514_v54 = vpop.xlane.xlu1 %513 }
 0x1a5   :  { %516 = vst.msk [vmem:[#allocation4] sm:$0x3] %vm515_vm4, %v514_v54 }
 0x1ae   :  { %v608_v55 = vpop.f32.mrf.mxu0 }
 0x1af   :  { %v609_v40 = vadd.f32 %v4933_v52, %v608_v55 }
 0x1b3   :  { %v542_v57 = vpop.f32.mrf.mxu2  ;;  %v555_v59 = vpop.f32.mrf.mxu3 }
 0x1b4   :  { %v559_v60 = vadd.f32 %v542_v57, %v526_v56  ;;  %v579_v61 = vadd.f32 %v555_v59, %v527_v58 }
 0x1b6   :  { %v4104_v63 = vmul.f32 -1.442695, %v559_v60  ;;  %v4105_v1 = vmul.f32 -1.442695, %v579_v61  ;;  %v610_v2 = vpop.f32.mrf.mxu0 }
 0x1b8   :  { %4329 = vpow2.f32 %v4104_v63 }
 0x1b9   :  { %4331 = vpow2.f32 %v4105_v1 }
 0x1bb   :  { %v544_v3 = vpop.f32.mrf.mxu2  ;;  %v557_v4 = vpop.f32.mrf.mxu3 }
 0x1be   :  { %v4330_v5 = vpop.eup %4329 }
 0x1bf   :  { %v4332_v7 = vpop.eup %4331  ;;  %v563_v8 = vadd.f32 1.0, %v4330_v5 }
 0x1c0   :  { %v583_v16 = vadd.f32 1.0, %v4332_v7 }
 0x1c1   :  { %4333 = vrcp.f32 %v563_v8  ;;  %v575_v28 = vand.u32 2147483648, %v563_v8  ;;  %v573_v32 = vand.u32 2147483647, %v563_v8  ;;  %vm569_vm6 = vweird.f32 %v563_v8 }
 0x1c2   :  { %4335 = vrcp.f32 %v583_v16  ;;  %v595_v44 = vand.u32 2147483648, %v583_v16  ;;  %vm589_vm11 = vweird.f32 %v583_v16  ;;  %v593_v50 = vand.u32 2147483647, %v583_v16 }
 0x1c3   :  { %v523_v20 = vpop.xlane.xlu0 %522  ;;  %v576_v38 = vor.u32 1.1754944e-38, %v575_v28  ;;  %vm574_vm8 = vcmp.eq.f32.partialorder %v573_v32, 8.507059e+37 }
 0x1c4   :  { %525 = vst.msk [vmem:[#allocation4 + $0x3e] sm:$0x3] %vm515_vm4, %v523_v20  ;;  %v596_v58 = vor.u32 1.1754944e-38, %v595_v44  ;;  %vm594_vm13 = vcmp.eq.f32.partialorder %v593_v50, 8.507059e+37 }
 0x1c7   :  { %v4334_v21 = vpop.eup %4333 }
 0x1c8   :  { %v4336_v22 = vpop.eup %4335  ;;  %v565_v24 = vmul.f32 %v4334_v21, %v563_v8  ;;  %vm570_vm5 = vweird.f32 %v4334_v21 }
 0x1c9   :  { %v585_v25 = vmul.f32 %v4336_v22, %v583_v16  ;;  %vm571_vm7 = vmor %vm569_vm6, %vm570_vm5  ;;  %vm590_vm9 = vweird.f32 %v4336_v22 }
 0x1ca   :  { %v566_v26 = vsub.f32 1.0, %v565_v24  ;;  %vm591_vm12 = vmor %vm589_vm11, %vm590_vm9 }
 0x1cb   :  { %v586_v29 = vsub.f32 1.0, %v585_v25 }
 0x1cc   :  { %v567_v31 = vmul.f32 %v4334_v21, %v566_v26  ;;  %v635_v34 = vpop.f32.mrf.mxu1 }
 0x1cd   :  { %v587_v35 = vmul.f32 %v4336_v22, %v586_v29  ;;  %v652_v36 = vadd.f32 %v635_v34, %v619_v33 }
 0x1ce   :  { %v568_v37 = vadd.f32 %v4334_v21, %v567_v31 }
 0x1cf   :  { %v4109_v39 = vmul.f32 -1.442695, %v652_v36  ;;  %v588_v30 = vadd.f32 %v4336_v22, %v587_v35 }
 0x1d0   :  { %v572_v41 = vsel %vm571_vm7, %v4334_v21, %v568_v37 }
 0x1d1   :  { %v577_v42 = vsel %vm574_vm8, %v576_v38, %v572_v41  ;;  %4337 = vpow2.f32 %v4109_v39  ;;  %v592_v57 = vsel %vm591_vm12, %v4336_v22, %v588_v30  ;;  %v621_v41 = vld [vmem:[#allocation2 + $0xbc] sm:$0x3] }
 0x1d2   :  { %v612_v43 = vmul.f32 %v609_v40, %v577_v42  ;;  %v648_v46 = vpop.f32.mrf.mxu2  ;;  %v597_v60 = vsel %vm594_vm13, %v596_v58, %v592_v57 }
 0x1d3   :  { %v672_v51 = vadd.f32 %v648_v46, %v620_v45  ;;  %v701_v53 = vpop.f32.mrf.mxu3  ;;  %v615_v1 = vsub.f32 1.0, %v597_v60  ;;  %v617_v7 = vmul.f32 %v597_v60, %v4970_v0 }
 0x1d4   :  { %v613_v54 = vadd.f32 %v612_v43, %v528_v47  ;;  %v637_v56 = vpop.f32.mrf.mxu1  ;;  %v702_v37 = vadd.f32 %v4991_v23, %v701_v53 }
 0x1d5   :  { %v4110_v55 = vmul.f32 -1.442695, %v672_v51  ;;  %v728_v56 = vld [vmem:[#allocation2 + $0x4] sm:$0x3] }
 0x1d6   :  { %4339 = vtanh.f32 %v613_v54 }
 0x1d7   :  { %v4338_v59 = vpop.eup %4337  ;;  %4341 = vpow2.f32 %v4110_v55  ;;  %v729_v55 = vld [vmem:[#allocation2 + $0x24] sm:$0x3] }
 0x1d8   :  { %v656_v61 = vadd.f32 1.0, %v4338_v59 }
 0x1da   :  { %4343 = vrcp.f32 %v656_v61  ;;  %v650_v63 = vpop.f32.mrf.mxu2  ;;  %v668_v26 = vand.u32 2147483648, %v656_v61  ;;  %v666_v29 = vand.u32 2147483647, %v656_v61  ;;  %vm662_vm15 = vweird.f32 %v656_v61 }
 0x1db   :  { %v703_v2 = vpop.f32.mrf.mxu3 }
 0x1dc   :  { %v4340_v3 = vpop.eup %4339  ;;  %v669_v34 = vor.u32 1.1754944e-38, %v668_v26  ;;  %vm667_vm2 = vcmp.eq.f32.partialorder %v666_v29, 8.507059e+37 }
 0x1dd   :  { %v4342_v4 = vpop.eup %4341  ;;  %v616_v5 = vmul.f32 %v4340_v3, %v615_v1 }
 0x1de   :  { %v676_v8 = vadd.f32 1.0, %v4342_v4 }
 0x1df   :  { %v5029_v16 = vadd.f32 %v617_v7, %v616_v5 }
 0x1e0   :  { %v4344_v20 = vpop.eup %4343  ;;  %4345 = vrcp.f32 %v676_v8  ;;  %v686_v40 = vand.u32 2147483647, %v676_v8  ;;  %vm682_vm5 = vweird.f32 %v676_v8 }
 0x1e1   :  { %v658_v21 = vmul.f32 %v4344_v20, %v656_v61  ;;  %713 = vst.msk [vmem:[#allocation3 + $0x2] sm:$0x3] %vm504_vm10, %v5029_v16  ;;  %v731_v22 = vpack.c.bf16 %v5029_v16, %v5029_v16  ;;  %v716_v24 = vmul.f32 %v4968_v62, %v5029_v16  ;;  %vm663_vm14 = vweird.f32 %v4344_v20 }
 0x1e2   :  { %vm664_vm0 = vmor %vm662_vm15, %vm663_vm14  ;;  %vm687_vm7 = vcmp.eq.f32.partialorder %v686_v40, 8.507059e+37 }
 0x1e3   :  { %v659_v25 = vsub.f32 1.0, %v658_v21  ;;  %4112 = vmatmul.msk.bf16.vlgmr.msrb.gmra.mxu0 %vm124_vm1, %v731_v22  ;;  %4113 = vmatmul.msk.bf16.vlgmr.msrb.gmra.mxu1 %vm124_vm1, %v731_v22  ;;  %v717_v0 = vsel %vm504_vm10, %v716_v24, 0.0 }
 0x1e4   :  { %4116 = vmatmul.msk.bf16.vlgmr.msra.gmra.mxu2 %vm124_vm1, %v731_v22  ;;  %718 = vadd.xlane.f32.xlu2 %v717_v0  ;;  %v822_v0 = vld [vmem:[#allocation2 + $0x9a] sm:$0x3] }
 0x1e5   :  { %v660_v28 = vmul.f32 %v4344_v20, %v659_v25  ;;  %1009 = vmatpush.bf16.msrb.mxu0 %v4844_v10  ;;  %1036 = vmatpush.bf16.msrb.mxu1 %v4882_v17 }
 0x1e6   :  { %v4346_v31 = vpop.eup %4345  ;;  %1049 = vmatpush.bf16.msra.mxu2 %v4846_v11  ;;  %v688_v11 = vand.u32 2147483648, %v676_v8 }
 0x1e7   :  { %v678_v32 = vmul.f32 %v4346_v31, %v676_v8  ;;  %v661_v33 = vadd.f32 %v4344_v20, %v660_v28  ;;  %vm683_vm3 = vweird.f32 %v4346_v31 }
 0x1e8   :  { %vm684_vm6 = vmor %vm682_vm5, %vm683_vm3  ;;  %v689_v43 = vor.u32 1.1754944e-38, %v688_v11 }
 0x1e9   :  { %v679_v35 = vsub.f32 1.0, %v678_v32  ;;  %v665_v36 = vsel %vm664_vm0, %v4344_v20, %v661_v33  ;;  %1010 = vmatpush.bf16.msrb.mxu0 %v4857_v14  ;;  %1037 = vmatpush.bf16.msrb.mxu1 %v4885_v18 }
 0x1ea   :  { %v670_v10 = vsel %vm667_vm2, %v669_v34, %v665_v36  ;;  %1050 = vmatpush.bf16.msra.mxu2 %v4849_v12 }
 0x1eb   :  { %v680_v38 = vmul.f32 %v4346_v31, %v679_v35  ;;  %v705_v39 = vmul.f32 %v702_v37, %v670_v10 }
 0x1ed   :  { %v681_v42 = vadd.f32 %v4346_v31, %v680_v38  ;;  %v706_v30 = vadd.f32 %v705_v39, %v621_v41  ;;  %v821_v39 = vld [vmem:[#allocation2 + $0x7a] sm:$0x3] }
 0x1ef   :  { %v685_v44 = vsel %vm684_vm6, %v4346_v31, %v681_v42  ;;  %4347 = vtanh.f32 %v706_v30  ;;  %v730_v42 = vld [vmem:[#allocation2 + $0x44] sm:$0x3] }
 0x1f0   :  { %v690_v14 = vsel %vm687_vm7, %v689_v43, %v685_v44 }
 0x1f1   :  { %v708_v45 = vsub.f32 1.0, %v690_v14  ;;  %v710_v12 = vmul.f32 %v690_v14, %v5007_v49 }
 0x1f5   :  { %v4348_v46 = vpop.eup %4347 }
 0x1f6   :  { %v709_v47 = vmul.f32 %v4348_v46, %v708_v45 }
 0x1f8   :  { %v5049_v50 = vadd.f32 %v710_v12, %v709_v47 }
 0x1fa   :  { %715 = vst.msk [vmem:[#allocation3 + $0x3c] sm:$0x3] %vm504_vm10, %v5049_v50  ;;  %v824_v51 = vpack.c.bf16 %v5049_v50, %v5049_v50  ;;  %v722_v53 = vmul.f32 %v5005_v48, %v5049_v50 }
 0x1fc   :  { %4117 = vmatmul.msk.bf16.vlgmr.msra.gmra.mxu3 %vm124_vm1, %v824_v51  ;;  %4118 = vmatmul.msk.bf16.vlgmr.msra.gmra.mxu0 %vm124_vm1, %v824_v51  ;;  %v723_v54 = vsel %vm504_vm10, %v722_v53, 0.0 }
 0x1fd   :  { %4121 = vmatmul.msk.bf16.vlgmr.msra.gmra.mxu1 %vm124_vm1, %v824_v51  ;;  %724 = vadd.xlane.f32.xlu1 %v723_v54 }
 0x1fe   :  { %1102 = vmatpush.bf16.msra.mxu3 %v4891_v19  ;;  %1145 = vmatpush.bf16.msra.mxu0 %v4836_v6 }
 0x1ff   :  { %1158 = vmatpush.bf16.msra.mxu1 %v4852_v13 }
 0x202   :  { %1103 = vmatpush.bf16.msra.mxu3 %v4910_v27  ;;  %1146 = vmatpush.bf16.msra.mxu0 %v4842_v9 }
 0x203   :  { %1159 = vmatpush.bf16.msra.mxu1 %v4860_v15 }
 0x257   :  { %v719_v49 = vpop.xlane.xlu2 %718 }
 0x258   :  { %721 = vst.msk [vmem:[#allocation4 + $0x2] sm:$0x3] %vm515_vm4, %v719_v49 }
 0x260   :  { %v744_v57 = vpop.f32.mrf.mxu0  ;;  %v757_v58 = vpop.f32.mrf.mxu1 }
 0x261   :  { %v761_v59 = vadd.f32 %v744_v57, %v728_v56  ;;  %v781_v60 = vadd.f32 %v757_v58, %v729_v55 }
 0x263   :  { %v4114_v19 = vmul.f32 -1.442695, %v761_v59  ;;  %v4115_v61 = vmul.f32 -1.442695, %v781_v60 }
 0x265   :  { %4349 = vpow2.f32 %v4114_v19 }
 0x266   :  { %4351 = vpow2.f32 %v4115_v61 }
 0x267   :  { %v810_v6 = vpop.f32.mrf.mxu2 }
 0x268   :  { %v746_v13 = vpop.f32.mrf.mxu0  ;;  %v759_v27 = vpop.f32.mrf.mxu1  ;;  %v811_v36 = vadd.f32 %v4933_v52, %v810_v6 }
 0x269   :  { %v5085_v13 = vld [vmem:[#allocation5 + $0x28] sm:$0xff] }
 0x26b   :  { %v4350_v63 = vpop.eup %4349 }
 0x26c   :  { %v4352_v9 = vpop.eup %4351  ;;  %v765_v1 = vadd.f32 1.0, %v4350_v63  ;;  %v5089_v63 = vld [vmem:[#allocation5 + $0x48] sm:$0xff] }
 0x26d   :  { %v785_v15 = vadd.f32 1.0, %v4352_v9 }
 0x26e   :  { %4353 = vrcp.f32 %v765_v1  ;;  %v777_v22 = vand.u32 2147483648, %v765_v1  ;;  %v775_v25 = vand.u32 2147483647, %v765_v1  ;;  %vm771_vm9 = vweird.f32 %v765_v1 }
 0x26f   :  { %4355 = vrcp.f32 %v785_v15  ;;  %v812_v2 = vpop.f32.mrf.mxu2  ;;  %v797_v38 = vand.u32 2147483648, %v785_v15  ;;  %vm791_vm14 = vweird.f32 %v785_v15  ;;  %v795_v41 = vand.u32 2147483647, %v785_v15 }
 0x270   :  { %v725_v3 = vpop.xlane.xlu1 %724  ;;  %v778_v33 = vor.u32 1.1754944e-38, %v777_v22  ;;  %vm776_vm12 = vcmp.eq.f32.partialorder %v775_v25, 8.507059e+37  ;;  %v5092_v2 = vld [vmem:[#allocation5 + $0x20] sm:$0xff] }
 0x271   :  { %727 = vst.msk [vmem:[#allocation4 + $0x3c] sm:$0x3] %vm515_vm4, %v725_v3  ;;  %v798_v47 = vor.u32 1.1754944e-38, %v797_v38  ;;  %vm796_vm0 = vcmp.eq.f32.partialorder %v795_v41, 8.507059e+37  ;;  %v5120_v41 = vld [vmem:[#allocation5 + $0x18] sm:$0xff] }
 0x274   :  { %v4354_v4 = vpop.eup %4353 }
 0x275   :  { %v4356_v5 = vpop.eup %4355  ;;  %v767_v7 = vmul.f32 %v4354_v4, %v765_v1  ;;  %vm772_vm8 = vweird.f32 %v4354_v4 }
 0x276   :  { %v787_v8 = vmul.f32 %v4356_v5, %v785_v15  ;;  %vm773_vm11 = vmor %vm771_vm9, %vm772_vm8  ;;  %vm792_vm13 = vweird.f32 %v4356_v5 }
 0x277   :  { %v768_v20 = vsub.f32 1.0, %v767_v7  ;;  %vm793_vm15 = vmor %vm791_vm14, %vm792_vm13 }
 0x278   :  { %v788_v21 = vsub.f32 1.0, %v787_v8 }
 0x279   :  { %v769_v24 = vmul.f32 %v4354_v4, %v768_v20  ;;  %v850_v26 = vpop.f32.mrf.mxu0 }
 0x27a   :  { %v789_v28 = vmul.f32 %v4356_v5, %v788_v21  ;;  %v874_v29 = vadd.f32 %v850_v26, %v822_v0  ;;  %v5069_v31 = vpop.f32.mrf.mxu1 }
 0x27b   :  { %v770_v32 = vadd.f32 %v4354_v4, %v769_v24  ;;  %v904_v21 = vadd.f32 %v4991_v23, %v5069_v31 }
 0x27c   :  { %v4120_v34 = vmul.f32 -1.442695, %v874_v29  ;;  %v790_v37 = vadd.f32 %v4356_v5, %v789_v28  ;;  %v823_v28 = vld [vmem:[#allocation2 + $0xba] sm:$0x3] }
 0x27d   :  { %v774_v35 = vsel %vm773_vm11, %v4354_v4, %v770_v32  ;;  %v5096_v4 = vld [vmem:[#allocation5 + $0x40] sm:$0xff] }
 0x27e   :  { %v779_v10 = vsel %vm776_vm12, %v778_v33, %v774_v35  ;;  %4357 = vpow2.f32 %v4120_v34  ;;  %v794_v14 = vsel %vm793_vm15, %v4356_v5, %v790_v37 }
 0x27f   :  { %v814_v11 = vmul.f32 %v811_v36, %v779_v10  ;;  %v837_v40 = vpop.f32.mrf.mxu3  ;;  %v799_v12 = vsel %vm796_vm0, %v798_v47, %v794_v14  ;;  %v931_v47 = vld [vmem:[#allocation2 + $0x26] sm:$0x3] }
 0x280   :  { %v854_v30 = vadd.f32 %v837_v40, %v821_v39  ;;  %v817_v54 = vsub.f32 1.0, %v799_v12  ;;  %v819_v55 = vmul.f32 %v799_v12, %v5029_v16  ;;  %v5117_v40 = vld [vmem:[#allocation5 + $0x8] sm:$0xff] }
 0x281   :  { %v815_v43 = vadd.f32 %v814_v11, %v730_v42  ;;  %v852_v44 = vpop.f32.mrf.mxu0  ;;  %v5123_v42 = vld [vmem:[#allocation5 + $0x50] sm:$0xff] }
 0x282   :  { %v4119_v45 = vmul.f32 -1.442695, %v854_v30  ;;  %v905_v46 = vpop.f32.mrf.mxu1  ;;  %v5126_v30 = vld [vmem:[#allocation5] sm:$0xff] }
 0x283   :  { %4359 = vtanh.f32 %v815_v43  ;;  %v5129_v43 = vld [vmem:[#allocation5 + $0x10] sm:$0xff] }
 0x284   :  { %v4358_v52 = vpop.eup %4357  ;;  %4361 = vpow2.f32 %v4119_v45  ;;  %v930_v45 = vld [vmem:[#allocation2 + $0x6] sm:$0x3] }
 0x285   :  { %v878_v51 = vadd.f32 1.0, %v4358_v52 }
 0x287   :  { %v839_v53 = vpop.f32.mrf.mxu3  ;;  %4363 = vrcp.f32 %v878_v51  ;;  %v890_v25 = vand.u32 2147483648, %v878_v51  ;;  %vm884_vm8 = vweird.f32 %v878_v51  ;;  %v888_v26 = vand.u32 2147483647, %v878_v51 }
 0x289   :  { %v4360_v49 = vpop.eup %4359  ;;  %v891_v33 = vor.u32 1.1754944e-38, %v890_v25  ;;  %vm889_vm11 = vcmp.eq.f32.partialorder %v888_v26, 8.507059e+37  ;;  %v5137_v25 = vld [vmem:[%s5960_s4] ss:$0 sm:$0xff] }
 0x28a   :  { %v4362_v56 = vpop.eup %4361  ;;  %v818_v57 = vmul.f32 %v4360_v49, %v817_v54 }
 0x28b   :  { %v858_v58 = vadd.f32 1.0, %v4362_v56 }
 0x28c   :  { %v5073_v59 = vadd.f32 %v819_v55, %v818_v57 }
 0x28d   :  { %4365 = vrcp.f32 %v858_v58  ;;  %v4364_v60 = vpop.eup %4363  ;;  %v870_v3 = vand.u32 2147483648, %v858_v58  ;;  %v868_v5 = vand.u32 2147483647, %v858_v58  ;;  %vm864_vm3 = vweird.f32 %v858_v58 }
 0x28e   :  { %915 = vst.msk [vmem:[#allocation3 + $0x4] sm:$0x3] %vm504_vm10, %v5073_v59  ;;  %v933_v19 = vpack.c.bf16 %v5073_v59, %v5073_v59  ;;  %v918_v61 = vmul.f32 %v4968_v62, %v5073_v59  ;;  %v880_v6 = vmul.f32 %v4364_v60, %v878_v51  ;;  %vm885_vm7 = vweird.f32 %v4364_v60 }
 0x28f   :  { %v871_v20 = vor.u32 1.1754944e-38, %v870_v3  ;;  %vm869_vm6 = vcmp.eq.f32.partialorder %v868_v5, 8.507059e+37  ;;  %vm886_vm9 = vmor %vm884_vm8, %vm885_vm7 }
 0x290   :  { %4122 = vmatmul.msk.bf16.vlgmr.msrb.gmra.mxu2 %vm124_vm1, %v933_v19  ;;  %4123 = vmatmul.msk.bf16.vlgmr.msrb.gmra.mxu3 %vm124_vm1, %v933_v19  ;;  %v919_v16 = vsel %vm504_vm10, %v918_v61, 0.0  ;;  %v881_v1 = vsub.f32 1.0, %v880_v6 }
 0x291   :  { %4126 = vmatmul.msk.bf16.vlgmr.msrb.gmra.mxu0 %vm124_vm1, %v933_v19  ;;  %920 = vadd.xlane.f32.xlu0 %v919_v16 }
 0x292   :  { %1211 = vmatpush.bf16.msrb.mxu2 %v5085_v13  ;;  %1238 = vmatpush.bf16.msrb.mxu3 %v4882_v17  ;;  %v882_v7 = vmul.f32 %v4364_v60, %v881_v1 }
 0x293   :  { %v4366_v27 = vpop.eup %4365  ;;  %1251 = vmatpush.bf16.msrb.mxu0 %v5089_v63 }
 0x294   :  { %v860_v9 = vmul.f32 %v4366_v27, %v858_v58  ;;  %vm865_vm2 = vweird.f32 %v4366_v27  ;;  %v883_v24 = vadd.f32 %v4364_v60, %v882_v7  ;;  %v1023_v7 = vld [vmem:[#allocation2 + $0x78] sm:$0x3] }
 0x295   :  { %vm866_vm5 = vmor %vm864_vm3, %vm865_vm2 }
 0x296   :  { %v861_v15 = vsub.f32 1.0, %v860_v9  ;;  %1212 = vmatpush.bf16.msrb.mxu2 %v5092_v2  ;;  %1239 = vmatpush.bf16.msrb.mxu3 %v4885_v18  ;;  %v887_v32 = vsel %vm886_vm9, %v4364_v60, %v883_v24 }
 0x297   :  { %1252 = vmatpush.bf16.msrb.mxu0 %v5096_v4  ;;  %v892_v34 = vsel %vm889_vm11, %v891_v33, %v887_v32 }
 0x298   :  { %v862_v17 = vmul.f32 %v4366_v27, %v861_v15  ;;  %v910_v35 = vsub.f32 1.0, %v892_v34  ;;  %v912_v31 = vmul.f32 %v892_v34, %v5049_v50  ;;  %v5114_v50 = vld [vmem:[#allocation5 + $0x58] sm:$0xff] }
 0x299   :  { %v1024_v34 = vld [vmem:[#allocation2 + $0x98] sm:$0x3] }
 0x29a   :  { %v863_v8 = vadd.f32 %v4366_v27, %v862_v17 }
 0x29c   :  { %v867_v22 = vsel %vm866_vm5, %v4366_v27, %v863_v8 }
 0x29d   :  { %v872_v18 = vsel %vm869_vm6, %v871_v20, %v867_v22 }
 0x29e   :  { %v907_v0 = vmul.f32 %v904_v21, %v872_v18 }
 0x2a0   :  { %v908_v29 = vadd.f32 %v907_v0, %v823_v28 }
 0x2a2   :  { %4367 = vtanh.f32 %v908_v29 }
 0x2a8   :  { %v4368_v36 = vpop.eup %4367 }
 0x2a9   :  { %v911_v37 = vmul.f32 %v4368_v36, %v910_v35  ;;  %v932_v36 = vld [vmem:[#allocation2 + $0x46] sm:$0x3] }
 0x2ab   :  { %v5102_v10 = vadd.f32 %v912_v31, %v911_v37 }
 0x2ad   :  { %917 = vst.msk [vmem:[#allocation3 + $0x3a] sm:$0x3] %vm504_vm10, %v5102_v10  ;;  %v1026_v38 = vpack.c.bf16 %v5102_v10, %v5102_v10  ;;  %v924_v11 = vmul.f32 %v5005_v48, %v5102_v10 }
 0x2af   :  { %4127 = vmatmul.msk.bf16.vlgmr.msrb.gmra.mxu1 %vm124_vm1, %v1026_v38  ;;  %4128 = vmatmul.msk.bf16.vlgmr.msra.gmra.mxu2 %vm124_vm1, %v1026_v38  ;;  %v925_v39 = vsel %vm504_vm10, %v924_v11, 0.0 }
 0x2b0   :  { %4131 = vmatmul.msk.bf16.vlgmr.msra.gmra.mxu3 %vm124_vm1, %v1026_v38  ;;  %926 = vadd.xlane.f32.xlu2 %v925_v39 }
 0x2b1   :  { %1304 = vmatpush.bf16.msrb.mxu1 %v5114_v50  ;;  %1347 = vmatpush.bf16.msra.mxu2 %v5117_v40 }
 0x2b2   :  { %1360 = vmatpush.bf16.msra.mxu3 %v5120_v41 }
 0x2b5   :  { %1305 = vmatpush.bf16.msrb.mxu1 %v5123_v42  ;;  %1348 = vmatpush.bf16.msra.mxu2 %v5126_v30 }
 0x2b6   :  { %1361 = vmatpush.bf16.msra.mxu3 %v5129_v43 }
 0x304   :  { %v921_v44 = vpop.xlane.xlu0 %920 }
 0x305   :  { %923 = vst.msk [vmem:[#allocation4 + $0x4] sm:$0x3] %vm515_vm4, %v921_v44 }
 0x30e   :  { %v1012_v14 = vpop.f32.mrf.mxu0 }
 0x30f   :  { %v1013_v0 = vadd.f32 %v5137_v25, %v1012_v14 }
 0x313   :  { %v946_v46 = vpop.f32.mrf.mxu2  ;;  %v959_v52 = vpop.f32.mrf.mxu3 }
 0x314   :  { %v963_v12 = vadd.f32 %v946_v46, %v930_v45  ;;  %v983_v51 = vadd.f32 %v959_v52, %v931_v47 }
 0x316   :  { %v4124_v53 = vmul.f32 -1.442695, %v963_v12  ;;  %v4125_v54 = vmul.f32 -1.442695, %v983_v51  ;;  %v1014_v49 = vpop.f32.mrf.mxu0 }
 0x318   :  { %4369 = vpow2.f32 %v4124_v53 }
 0x319   :  { %4371 = vpow2.f32 %v4125_v54 }
 0x31b   :  { %v948_v56 = vpop.f32.mrf.mxu2  ;;  %v961_v57 = vpop.f32.mrf.mxu3 }
 0x31e   :  { %v4370_v55 = vpop.eup %4369 }
 0x31f   :  { %v4372_v58 = vpop.eup %4371  ;;  %v967_v60 = vadd.f32 1.0, %v4370_v55 }
 0x320   :  { %v987_v19 = vadd.f32 1.0, %v4372_v58 }
 0x321   :  { %4373 = vrcp.f32 %v967_v60  ;;  %v979_v15 = vand.u32 2147483648, %v967_v60  ;;  %v977_v5 = vand.u32 2147483647, %v967_v60  ;;  %vm973_vm13 = vweird.f32 %v967_v60 }
 0x322   :  { %4375 = vrcp.f32 %v987_v19  ;;  %v999_v33 = vand.u32 2147483648, %v987_v19  ;;  %vm993_vm2 = vweird.f32 %v987_v19  ;;  %v997_v31 = vand.u32 2147483647, %v987_v19 }
 0x323   :  { %v927_v61 = vpop.xlane.xlu2 %926  ;;  %v980_v24 = vor.u32 1.1754944e-38, %v979_v15  ;;  %vm978_vm15 = vcmp.eq.f32.partialorder %v977_v5, 8.507059e+37  ;;  %v5154_v15 = vld [vmem:[#allocation5 + $0x38] sm:$0xff] }
 0x324   :  { %929 = vst.msk [vmem:[#allocation4 + $0x3a] sm:$0x3] %vm515_vm4, %v927_v61  ;;  %v1000_v45 = vor.u32 1.1754944e-38, %v999_v33  ;;  %vm998_vm5 = vcmp.eq.f32.partialorder %v997_v31, 8.507059e+37 }
 0x327   :  { %v4374_v16 = vpop.eup %4373 }
 0x328   :  { %v4376_v6 = vpop.eup %4375  ;;  %v969_v27 = vmul.f32 %v4374_v16, %v967_v60  ;;  %vm974_vm12 = vweird.f32 %v4374_v16 }
 0x329   :  { %v989_v9 = vmul.f32 %v4376_v6, %v987_v19  ;;  %vm975_vm14 = vmor %vm973_vm13, %vm974_vm12  ;;  %vm994_vm0 = vweird.f32 %v4376_v6 }
 0x32a   :  { %v970_v1 = vsub.f32 1.0, %v969_v27  ;;  %vm995_vm3 = vmor %vm993_vm2, %vm994_vm0 }
 0x32b   :  { %v990_v3 = vsub.f32 1.0, %v989_v9 }
 0x32c   :  { %v971_v17 = vmul.f32 %v4374_v16, %v970_v1  ;;  %v1039_v8 = vpop.f32.mrf.mxu1 }
 0x32d   :  { %v991_v20 = vmul.f32 %v4376_v6, %v990_v3  ;;  %v1056_v21 = vadd.f32 %v1039_v8, %v1023_v7 }
 0x32e   :  { %v972_v22 = vadd.f32 %v4374_v16, %v971_v17 }
 0x32f   :  { %v4129_v18 = vmul.f32 -1.442695, %v1056_v21  ;;  %v992_v29 = vadd.f32 %v4376_v6, %v991_v20  ;;  %v5160_v21 = vld [vmem:[#allocation5 + $0x30] sm:$0xff] }
 0x330   :  { %v976_v26 = vsel %vm975_vm14, %v4374_v16, %v972_v22 }
 0x331   :  { %v981_v28 = vsel %vm978_vm15, %v980_v24, %v976_v26  ;;  %4377 = vpow2.f32 %v4129_v18  ;;  %v996_v44 = vsel %vm995_vm3, %v4376_v6, %v992_v29 }
 0x332   :  { %v1016_v32 = vmul.f32 %v1013_v0, %v981_v28  ;;  %v1052_v35 = vpop.f32.mrf.mxu2  ;;  %v1001_v47 = vsel %vm998_vm5, %v1000_v45, %v996_v44  ;;  %v1025_v28 = vld [vmem:[#allocation2 + $0xb8] sm:$0x3]  ;;  %v1133_v45 = vld [vmem:[#allocation2 + $0x28] sm:$0x3] }
 0x333   :  { %v1076_v37 = vadd.f32 %v1052_v35, %v1024_v34  ;;  %v1105_v38 = vpop.f32.mrf.mxu3  ;;  %v1019_v51 = vsub.f32 1.0, %v1001_v47  ;;  %v1021_v57 = vmul.f32 %v1001_v47, %v5073_v59 }
 0x334   :  { %v1017_v11 = vadd.f32 %v1016_v32, %v932_v36  ;;  %v1041_v39 = vpop.f32.mrf.mxu1  ;;  %v1106_v20 = vadd.f32 %v4991_v23, %v1105_v38 }
 0x335   :  { %v4130_v14 = vmul.f32 -1.442695, %v1076_v37 }
 0x336   :  { %4379 = vtanh.f32 %v1017_v11 }
 0x337   :  { %v4378_v46 = vpop.eup %4377  ;;  %4381 = vpow2.f32 %v4130_v14 }
 0x338   :  { %v1060_v52 = vadd.f32 1.0, %v4378_v46 }
 0x33a   :  { %4383 = vrcp.f32 %v1060_v52  ;;  %v1054_v12 = vpop.f32.mrf.mxu2  ;;  %v1072_v27 = vand.u32 2147483648, %v1060_v52  ;;  %v1070_v1 = vand.u32 2147483647, %v1060_v52  ;;  %vm1066_vm7 = vweird.f32 %v1060_v52 }
 0x33b   :  { %v1107_v53 = vpop.f32.mrf.mxu3 }
 0x33c   :  { %v4380_v54 = vpop.eup %4379  ;;  %v1073_v5 = vor.u32 1.1754944e-38, %v1072_v27  ;;  %vm1071_vm9 = vcmp.eq.f32.partialorder %v1070_v1, 8.507059e+37 }
 0x33d   :  { %v4382_v49 = vpop.eup %4381  ;;  %v1020_v56 = vmul.f32 %v4380_v54, %v1019_v51 }
 0x33e   :  { %v1080_v55 = vadd.f32 1.0, %v4382_v49 }
 0x33f   :  { %v5141_v58 = vadd.f32 %v1021_v57, %v1020_v56 }
 0x340   :  { %v4384_v60 = vpop.eup %4383  ;;  %4385 = vrcp.f32 %v1080_v55  ;;  %v1092_v18 = vand.u32 2147483648, %v1080_v55  ;;  %v1090_v26 = vand.u32 2147483647, %v1080_v55  ;;  %vm1086_vm12 = vweird.f32 %v1080_v55 }
 0x341   :  { %v1062_v19 = vmul.f32 %v4384_v60, %v1060_v52  ;;  %1117 = vst.msk [vmem:[#allocation3 + $0x6] sm:$0x3] %vm504_vm10, %v5141_v58  ;;  %v1135_v61 = vpack.c.bf16 %v5141_v58, %v5141_v58  ;;  %v1120_v16 = vmul.f32 %v4968_v62, %v5141_v58  ;;  %vm1067_vm6 = vweird.f32 %v4384_v60 }
 0x342   :  { %vm1068_vm8 = vmor %vm1066_vm7, %vm1067_vm6  ;;  %v1093_v23 = vor.u32 1.1754944e-38, %v1092_v18  ;;  %vm1091_vm14 = vcmp.eq.f32.partialorder %v1090_v26, 8.507059e+37 }
 0x343   :  { %v1063_v6 = vsub.f32 1.0, %v1062_v19  ;;  %4132 = vmatmul.msk.bf16.vlgmr.msra.gmra.mxu0 %vm124_vm1, %v1135_v61  ;;  %4133 = vmatmul.msk.bf16.vlgmr.msra.gmra.mxu1 %vm124_vm1, %v1135_v61  ;;  %v1121_v59 = vsel %vm504_vm10, %v1120_v16, 0.0 }
 0x344   :  { %4136 = vmatmul.msk.bf16.vlgmr.msrb.gmra.mxu2 %vm124_vm1, %v1135_v61  ;;  %1122 = vadd.xlane.f32.xlu2 %v1121_v59 }
 0x345   :  { %v1064_v9 = vmul.f32 %v4384_v60, %v1063_v6  ;;  %1413 = vmatpush.bf16.msra.mxu0 %v5085_v13  ;;  %1440 = vmatpush.bf16.msra.mxu1 %v5154_v15 }
 0x346   :  { %v4386_v62 = vpop.eup %4385  ;;  %1453 = vmatpush.bf16.msrb.mxu2 %v5089_v63 }
 0x347   :  { %v1082_v3 = vmul.f32 %v4386_v62, %v1080_v55  ;;  %v1065_v17 = vadd.f32 %v4384_v60, %v1064_v9  ;;  %vm1087_vm11 = vweird.f32 %v4386_v62 }
 0x348   :  { %vm1088_vm13 = vmor %vm1086_vm12, %vm1087_vm11 }
 0x349   :  { %v1083_v7 = vsub.f32 1.0, %v1082_v3  ;;  %v1069_v8 = vsel %vm1068_vm8, %v4384_v60, %v1065_v17  ;;  %1414 = vmatpush.bf16.msra.mxu0 %v5092_v2  ;;  %1441 = vmatpush.bf16.msra.mxu1 %v5160_v21 }
 0x34a   :  { %v1074_v22 = vsel %vm1071_vm9, %v1073_v5, %v1069_v8  ;;  %1454 = vmatpush.bf16.msrb.mxu2 %v5096_v4  ;;  %v1226_v5 = vld [vmem:[#allocation2 + $0x96] sm:$0x3] }
 0x34b   :  { %v1084_v24 = vmul.f32 %v4386_v62, %v1083_v7  ;;  %v1109_v0 = vmul.f32 %v1106_v20, %v1074_v22 }
 0x34d   :  { %v1085_v29 = vadd.f32 %v4386_v62, %v1084_v24  ;;  %v1110_v32 = vadd.f32 %v1109_v0, %v1025_v28 }
 0x34f   :  { %v1089_v33 = vsel %vm1088_vm13, %v4386_v62, %v1085_v29  ;;  %4387 = vtanh.f32 %v1110_v32 }
 0x350   :  { %v1094_v34 = vsel %vm1091_vm14, %v1093_v23, %v1089_v33 }
 0x351   :  { %v1112_v35 = vsub.f32 1.0, %v1094_v34  ;;  %v1114_v37 = vmul.f32 %v1094_v34, %v5102_v10  ;;  %v1132_v10 = vld [vmem:[#allocation2 + $0x8] sm:$0x3]  ;;  %v1225_v34 = vld [vmem:[#allocation2 + $0x76] sm:$0x3] }
 0x355   :  { %v4388_v36 = vpop.eup %4387 }
 0x356   :  { %v1113_v31 = vmul.f32 %v4388_v36, %v1112_v35 }
 0x358   :  { %v5165_v38 = vadd.f32 %v1114_v37, %v1113_v31  ;;  %v1134_v31 = vld [vmem:[#allocation2 + $0x48] sm:$0x3] }
 0x35a   :  { %1119 = vst.msk [vmem:[#allocation3 + $0x38] sm:$0x3] %vm504_vm10, %v5165_v38  ;;  %v1228_v11 = vpack.c.bf16 %v5165_v38, %v5165_v38  ;;  %v1126_v39 = vmul.f32 %v5005_v48, %v5165_v38 }
 0x35c   :  { %4137 = vmatmul.msk.bf16.vlgmr.msrb.gmra.mxu3 %vm124_vm1, %v1228_v11  ;;  %4138 = vmatmul.msk.bf16.vlgmr.msrb.gmra.mxu0 %vm124_vm1, %v1228_v11  ;;  %v1127_v44 = vsel %vm504_vm10, %v1126_v39, 0.0 }
 0x35d   :  { %4141 = vmatmul.msk.bf16.vlgmr.msrb.gmra.mxu1 %vm124_vm1, %v1228_v11  ;;  %1128 = vadd.xlane.f32.xlu0 %v1127_v44 }
 0x35e   :  { %1506 = vmatpush.bf16.msrb.mxu3 %v5114_v50  ;;  %1549 = vmatpush.bf16.msrb.mxu0 %v5117_v40 }
 0x35f   :  { %1562 = vmatpush.bf16.msrb.mxu1 %v5120_v41 }
 0x362   :  { %1507 = vmatpush.bf16.msrb.mxu3 %v5123_v42  ;;  %1550 = vmatpush.bf16.msrb.mxu0 %v5126_v30 }
 0x363   :  { %1563 = vmatpush.bf16.msrb.mxu1 %v5129_v43 }
 0x3b7   :  { %v1123_v48 = vpop.xlane.xlu2 %1122 }
 0x3b8   :  { %1125 = vst.msk [vmem:[#allocation4 + $0x6] sm:$0x3] %vm515_vm4, %v1123_v48 }
 0x3c0   :  { %v1148_v14 = vpop.f32.mrf.mxu0  ;;  %v1161_v46 = vpop.f32.mrf.mxu1 }
 0x3c1   :  { %v1165_v47 = vadd.f32 %v1148_v14, %v1132_v10  ;;  %v1185_v52 = vadd.f32 %v1161_v46, %v1133_v45 }
 0x3c3   :  { %v4134_v12 = vmul.f32 -1.442695, %v1165_v47  ;;  %v4135_v51 = vmul.f32 -1.442695, %v1185_v52 }
 0x3c5   :  { %4389 = vpow2.f32 %v4134_v12 }
 0x3c6   :  { %4391 = vpow2.f32 %v4135_v51 }
 0x3c7   :  { %v1214_v53 = vpop.f32.mrf.mxu2 }
 0x3c8   :  { %v1150_v54 = vpop.f32.mrf.mxu0  ;;  %v1163_v49 = vpop.f32.mrf.mxu1  ;;  %v1215_v28 = vadd.f32 %v5137_v25, %v1214_v53 }
 0x3cb   :  { %v4390_v56 = vpop.eup %4389 }
 0x3cc   :  { %v4392_v57 = vpop.eup %4391  ;;  %v1169_v55 = vadd.f32 1.0, %v4390_v56 }
 0x3cd   :  { %v1189_v60 = vadd.f32 1.0, %v4392_v57 }
 0x3ce   :  { %4393 = vrcp.f32 %v1169_v55  ;;  %v1181_v62 = vand.u32 2147483648, %v1169_v55  ;;  %v1179_v17 = vand.u32 2147483647, %v1169_v55  ;;  %vm1175_vm0 = vweird.f32 %v1169_v55 }
 0x3cf   :  { %4395 = vrcp.f32 %v1189_v60  ;;  %v1216_v19 = vpop.f32.mrf.mxu2  ;;  %v1201_v23 = vand.u32 2147483648, %v1189_v60  ;;  %vm1195_vm6 = vweird.f32 %v1189_v60  ;;  %v1199_v36 = vand.u32 2147483647, %v1189_v60 }
 0x3d0   :  { %v1129_v61 = vpop.xlane.xlu0 %1128  ;;  %v1182_v18 = vor.u32 1.1754944e-38, %v1181_v62  ;;  %vm1180_vm3 = vcmp.eq.f32.partialorder %v1179_v17, 8.507059e+37  ;;  %v5198_v19 = vld [vmem:[%s5961_s5] ss:$0 sm:$0xff] }
 0x3d1   :  { %1131 = vst.msk [vmem:[#allocation4 + $0x38] sm:$0x3] %vm515_vm4, %v1129_v61  ;;  %v1202_v14 = vor.u32 1.1754944e-38, %v1201_v23  ;;  %vm1200_vm8 = vcmp.eq.f32.partialorder %v1199_v36, 8.507059e+37 }
 0x3d4   :  { %v4394_v16 = vpop.eup %4393 }
 0x3d5   :  { %v4396_v6 = vpop.eup %4395  ;;  %v1171_v59 = vmul.f32 %v4394_v16, %v1169_v55  ;;  %vm1176_vm15 = vweird.f32 %v4394_v16 }
 0x3d6   :  { %v1191_v27 = vmul.f32 %v4396_v6, %v1189_v60  ;;  %vm1177_vm2 = vmor %vm1175_vm0, %vm1176_vm15  ;;  %vm1196_vm5 = vweird.f32 %v4396_v6 }
 0x3d7   :  { %v1172_v9 = vsub.f32 1.0, %v1171_v59  ;;  %vm1197_vm7 = vmor %vm1195_vm6, %vm1196_vm5 }
 0x3d8   :  { %v1192_v1 = vsub.f32 1.0, %v1191_v27 }
 0x3d9   :  { %v1173_v3 = vmul.f32 %v4394_v16, %v1172_v9  ;;  %v1254_v7 = vpop.f32.mrf.mxu0 }
 0x3da   :  { %v1193_v8 = vmul.f32 %v4396_v6, %v1192_v1  ;;  %v1278_v20 = vadd.f32 %v1254_v7, %v1226_v5  ;;  %v5185_v22 = vpop.f32.mrf.mxu1 }
 0x3db   :  { %v1174_v24 = vadd.f32 %v4394_v16, %v1173_v3 }
 0x3dc   :  { %v4140_v0 = vmul.f32 -1.442695, %v1278_v20  ;;  %v1194_v29 = vadd.f32 %v4396_v6, %v1193_v8  ;;  %v5215_v8 = vld [vmem:[%s5960_s4 + $0x1] ss:$0 sm:$0xff] }
 0x3dd   :  { %v1178_v26 = vsel %vm1177_vm2, %v4394_v16, %v1174_v24  ;;  %v1308_v20 = vadd.f32 %v5215_v8, %v5185_v22 }
 0x3de   :  { %v1183_v32 = vsel %vm1180_vm3, %v1182_v18, %v1178_v26  ;;  %4397 = vpow2.f32 %v4140_v0  ;;  %v1198_v44 = vsel %vm1197_vm7, %v4396_v6, %v1194_v29 }
 0x3df   :  { %v1218_v33 = vmul.f32 %v1215_v28, %v1183_v32  ;;  %v1241_v35 = vpop.f32.mrf.mxu3  ;;  %v1203_v46 = vsel %vm1200_vm8, %v1202_v14, %v1198_v44  ;;  %v1227_v32 = vld [vmem:[#allocation2 + $0xb6] sm:$0x3]  ;;  %v5229_v44 = vld [vmem:[%s5961_s5 + $0x1] ss:$0 sm:$0xff] }
 0x3e0   :  { %v1258_v37 = vadd.f32 %v1241_v35, %v1225_v34  ;;  %v1221_v12 = vsub.f32 1.0, %v1203_v46  ;;  %v1223_v49 = vmul.f32 %v1203_v46, %v5141_v58 }
 0x3e1   :  { %v1219_v11 = vadd.f32 %v1218_v33, %v1134_v31  ;;  %v1256_v39 = vpop.f32.mrf.mxu0 }
 0x3e2   :  { %v4139_v48 = vmul.f32 -1.442695, %v1258_v37  ;;  %v1309_v10 = vpop.f32.mrf.mxu1 }
 0x3e3   :  { %4399 = vtanh.f32 %v1219_v11 }
 0x3e4   :  { %v4398_v45 = vpop.eup %4397  ;;  %4401 = vpow2.f32 %v4139_v48 }
 0x3e5   :  { %v1282_v47 = vadd.f32 1.0, %v4398_v45  ;;  %v1334_v45 = vld [vmem:[#allocation2 + $0xa] sm:$0x3] }
 0x3e7   :  { %v1243_v52 = vpop.f32.mrf.mxu3  ;;  %4403 = vrcp.f32 %v1282_v47  ;;  %v1294_v26 = vand.u32 2147483648, %v1282_v47  ;;  %vm1288_vm15 = vweird.f32 %v1282_v47  ;;  %v1292_v29 = vand.u32 2147483647, %v1282_v47 }
 0x3e9   :  { %v4400_v51 = vpop.eup %4399  ;;  %v1295_v34 = vor.u32 1.1754944e-38, %v1294_v26  ;;  %vm1293_vm2 = vcmp.eq.f32.partialorder %v1292_v29, 8.507059e+37 }
 0x3ea   :  { %v4402_v53 = vpop.eup %4401  ;;  %v1222_v54 = vmul.f32 %v4400_v51, %v1221_v12 }
 0x3eb   :  { %v1262_v56 = vadd.f32 1.0, %v4402_v53 }
 0x3ec   :  { %v5189_v57 = vadd.f32 %v1223_v49, %v1222_v54 }
 0x3ed   :  { %4405 = vrcp.f32 %v1262_v56  ;;  %v4404_v55 = vpop.eup %4403  ;;  %v1274_v1 = vand.u32 2147483648, %v1262_v56  ;;  %v1272_v3 = vand.u32 2147483647, %v1262_v56  ;;  %vm1268_vm11 = vweird.f32 %v1262_v56 }
 0x3ee   :  { %1319 = vst.msk [vmem:[#allocation3 + $0x8] sm:$0x3] %vm504_vm10, %v5189_v57  ;;  %v1337_v60 = vpack.c.bf16 %v5189_v57, %v5189_v57  ;;  %v1322_v61 = vmul.f32 %v5198_v19, %v5189_v57  ;;  %v1284_v16 = vmul.f32 %v4404_v55, %v1282_v47  ;;  %vm1289_vm14 = vweird.f32 %v4404_v55  ;;  %v1335_v47 = vld [vmem:[#allocation2 + $0x2a] sm:$0x3] }
 0x3ef   :  { %v1275_v7 = vor.u32 1.1754944e-38, %v1274_v1  ;;  %vm1273_vm13 = vcmp.eq.f32.partialorder %v1272_v3, 8.507059e+37  ;;  %vm1290_vm0 = vmor %vm1288_vm15, %vm1289_vm14 }
 0x3f0   :  { %4142 = vmatmul.msk.bf16.vlgmr.msra.gmra.mxu2 %vm124_vm1, %v1337_v60  ;;  %4143 = vmatmul.msk.bf16.vlgmr.msra.gmra.mxu3 %vm124_vm1, %v1337_v60  ;;  %v1323_v58 = vsel %vm504_vm10, %v1322_v61, 0.0  ;;  %v1285_v27 = vsub.f32 1.0, %v1284_v16 }
 0x3f1   :  { %4146 = vmatmul.msk.bf16.vlgmr.msra.gmra.mxu0 %vm124_vm1, %v1337_v60  ;;  %1324 = vadd.xlane.f32.xlu1 %v1323_v58 }
 0x3f2   :  { %1615 = vmatpush.bf16.msra.mxu2 %v5085_v13  ;;  %1642 = vmatpush.bf16.msra.mxu3 %v5154_v15  ;;  %v1286_v17 = vmul.f32 %v4404_v55, %v1285_v27 }
 0x3f3   :  { %v4406_v6 = vpop.eup %4405  ;;  %1655 = vmatpush.bf16.msra.mxu0 %v5089_v63 }
 0x3f4   :  { %v1264_v59 = vmul.f32 %v4406_v6, %v1262_v56  ;;  %vm1269_vm9 = vweird.f32 %v4406_v6  ;;  %v1287_v18 = vadd.f32 %v4404_v55, %v1286_v17 }
 0x3f5   :  { %vm1270_vm12 = vmor %vm1268_vm11, %vm1269_vm9 }
 0x3f6   :  { %v1265_v9 = vsub.f32 1.0, %v1264_v59  ;;  %1616 = vmatpush.bf16.msra.mxu2 %v5092_v2  ;;  %1643 = vmatpush.bf16.msra.mxu3 %v5160_v21  ;;  %v1291_v33 = vsel %vm1290_vm0, %v4404_v55, %v1287_v18 }
 0x3f7   :  { %1656 = vmatpush.bf16.msra.mxu0 %v5096_v4  ;;  %v1296_v35 = vsel %vm1293_vm2, %v1295_v34, %v1291_v33 }
 0x3f8   :  { %v1266_v62 = vmul.f32 %v4406_v6, %v1265_v9  ;;  %v1314_v36 = vsub.f32 1.0, %v1296_v35  ;;  %v1316_v22 = vmul.f32 %v1296_v35, %v5165_v38 }
 0x3fa   :  { %v1267_v5 = vadd.f32 %v4406_v6, %v1266_v62 }
 0x3fc   :  { %v1271_v24 = vsel %vm1270_vm12, %v4406_v6, %v1267_v5 }
 0x3fd   :  { %v1276_v0 = vsel %vm1273_vm13, %v1275_v7, %v1271_v24 }
 0x3fe   :  { %v1311_v28 = vmul.f32 %v1308_v20, %v1276_v0  ;;  %v1427_v20 = vld [vmem:[#allocation2 + $0x74] sm:$0x3] }
 0x400   :  { %v1312_v23 = vadd.f32 %v1311_v28, %v1227_v32 }
 0x402   :  { %4407 = vtanh.f32 %v1312_v23 }
 0x408   :  { %v4408_v31 = vpop.eup %4407 }
 0x409   :  { %v1315_v37 = vmul.f32 %v4408_v31, %v1314_v36  ;;  %v1428_v31 = vld [vmem:[#allocation2 + $0x94] sm:$0x3] }
 0x40b   :  { %v5220_v11 = vadd.f32 %v1316_v22, %v1315_v37  ;;  %v1336_v37 = vld [vmem:[#allocation2 + $0x4a] sm:$0x3] }
 0x40d   :  { %1321 = vst.msk [vmem:[#allocation3 + $0x36] sm:$0x3] %vm504_vm10, %v5220_v11  ;;  %v1430_v39 = vpack.c.bf16 %v5220_v11, %v5220_v11  ;;  %v1328_v48 = vmul.f32 %v5229_v44, %v5220_v11 }
 0x40f   :  { %4147 = vmatmul.msk.bf16.vlgmr.msra.gmra.mxu1 %vm124_vm1, %v1430_v39  ;;  %4148 = vmatmul.msk.bf16.vlgmr.msrb.gmra.mxu2 %vm124_vm1, %v1430_v39  ;;  %v1329_v38 = vsel %vm504_vm10, %v1328_v48, 0.0 }
 0x410   :  { %4151 = vmatmul.msk.bf16.vlgmr.msrb.gmra.mxu3 %vm124_vm1, %v1430_v39  ;;  %1330 = vadd.xlane.f32.xlu1 %v1329_v38 }
 0x411   :  { %1708 = vmatpush.bf16.msra.mxu1 %v5114_v50  ;;  %1751 = vmatpush.bf16.msrb.mxu2 %v5117_v40 }
 0x412   :  { %1764 = vmatpush.bf16.msrb.mxu3 %v5120_v41 }
 0x415   :  { %1709 = vmatpush.bf16.msra.mxu1 %v5123_v42  ;;  %1752 = vmatpush.bf16.msrb.mxu2 %v5126_v30 }
 0x416   :  { %1765 = vmatpush.bf16.msrb.mxu3 %v5129_v43 }
 0x464   :  { %v1325_v10 = vpop.xlane.xlu1 %1324 }
 0x465   :  { %1327 = vst.msk [vmem:[#allocation4 + $0x8] sm:$0x3] %vm515_vm4, %v1325_v10 }
 0x46e   :  { %v1416_v14 = vpop.f32.mrf.mxu0 }
 0x46f   :  { %v1417_v32 = vadd.f32 %v5137_v25, %v1416_v14 }
 0x473   :  { %v1350_v46 = vpop.f32.mrf.mxu2  ;;  %v1363_v52 = vpop.f32.mrf.mxu3 }
 0x474   :  { %v1367_v12 = vadd.f32 %v1350_v46, %v1334_v45  ;;  %v1387_v51 = vadd.f32 %v1363_v52, %v1335_v47 }
 0x476   :  { %v4144_v53 = vmul.f32 -1.442695, %v1367_v12  ;;  %v4145_v54 = vmul.f32 -1.442695, %v1387_v51  ;;  %v1418_v49 = vpop.f32.mrf.mxu0 }
 0x478   :  { %4409 = vpow2.f32 %v4144_v53 }
 0x479   :  { %4411 = vpow2.f32 %v4145_v54 }
 0x47b   :  { %v1352_v56 = vpop.f32.mrf.mxu2  ;;  %v1365_v55 = vpop.f32.mrf.mxu3 }
 0x47e   :  { %v4410_v60 = vpop.eup %4409 }
 0x47f   :  { %v4412_v61 = vpop.eup %4411  ;;  %v1371_v58 = vadd.f32 1.0, %v4410_v60 }
 0x480   :  { %v1391_v16 = vadd.f32 1.0, %v4412_v61 }
 0x481   :  { %4413 = vrcp.f32 %v1371_v58  ;;  %v1383_v3 = vand.u32 2147483648, %v1371_v58  ;;  %v1381_v7 = vand.u32 2147483647, %v1371_v58  ;;  %vm1377_vm5 = vweird.f32 %v1371_v58 }
 0x482   :  { %4415 = vrcp.f32 %v1391_v16  ;;  %v1403_v36 = vand.u32 2147483648, %v1391_v16  ;;  %vm1397_vm9 = vweird.f32 %v1391_v16  ;;  %v1401_v39 = vand.u32 2147483647, %v1391_v16 }
 0x483   :  { %v1331_v6 = vpop.xlane.xlu1 %1330  ;;  %v1384_v28 = vor.u32 1.1754944e-38, %v1383_v3  ;;  %vm1382_vm7 = vcmp.eq.f32.partialorder %v1381_v7, 8.507059e+37 }
 0x484   :  { %1333 = vst.msk [vmem:[#allocation4 + $0x36] sm:$0x3] %vm515_vm4, %v1331_v6  ;;  %v1404_v47 = vor.u32 1.1754944e-38, %v1403_v36  ;;  %vm1402_vm12 = vcmp.eq.f32.partialorder %v1401_v39, 8.507059e+37 }
 0x487   :  { %v4414_v59 = vpop.eup %4413 }
 0x488   :  { %v4416_v27 = vpop.eup %4415  ;;  %v1373_v9 = vmul.f32 %v4414_v59, %v1371_v58  ;;  %vm1378_vm3 = vweird.f32 %v4414_v59 }
 0x489   :  { %v1393_v1 = vmul.f32 %v4416_v27, %v1391_v16  ;;  %vm1379_vm6 = vmor %vm1377_vm5, %vm1378_vm3  ;;  %vm1398_vm8 = vweird.f32 %v4416_v27 }
 0x48a   :  { %v1374_v62 = vsub.f32 1.0, %v1373_v9  ;;  %vm1399_vm11 = vmor %vm1397_vm9, %vm1398_vm8 }
 0x48b   :  { %v1394_v17 = vsub.f32 1.0, %v1393_v1 }
 0x48c   :  { %v1375_v5 = vmul.f32 %v4414_v59, %v1374_v62  ;;  %v1443_v24 = vpop.f32.mrf.mxu1 }
 0x48d   :  { %v1395_v18 = vmul.f32 %v4416_v27, %v1394_v17  ;;  %v1460_v0 = vadd.f32 %v1443_v24, %v1427_v20 }
 0x48e   :  { %v1376_v26 = vadd.f32 %v4414_v59, %v1375_v5 }
 0x48f   :  { %v4149_v29 = vmul.f32 -1.442695, %v1460_v0  ;;  %v1396_v34 = vadd.f32 %v4416_v27, %v1395_v18 }
 0x490   :  { %v1380_v23 = vsel %vm1379_vm6, %v4414_v59, %v1376_v26 }
 0x491   :  { %v1385_v33 = vsel %vm1382_vm7, %v1384_v28, %v1380_v23  ;;  %4417 = vpow2.f32 %v4149_v29  ;;  %v1400_v46 = vsel %vm1399_vm11, %v4416_v27, %v1396_v34  ;;  %v1429_v23 = vld [vmem:[#allocation2 + $0xb4] sm:$0x3] }
 0x492   :  { %v1420_v35 = vmul.f32 %v1417_v32, %v1385_v33  ;;  %v1456_v22 = vpop.f32.mrf.mxu2  ;;  %v1405_v12 = vsel %vm1402_vm12, %v1404_v47, %v1400_v46 }
 0x493   :  { %v1480_v48 = vadd.f32 %v1456_v22, %v1428_v31  ;;  %v1509_v38 = vpop.f32.mrf.mxu3  ;;  %v1423_v54 = vsub.f32 1.0, %v1405_v12  ;;  %v1425_v61 = vmul.f32 %v1405_v12, %v5189_v57 }
 0x494   :  { %v1421_v10 = vadd.f32 %v1420_v35, %v1336_v37  ;;  %v1445_v45 = vpop.f32.mrf.mxu1  ;;  %v1510_v26 = vadd.f32 %v5215_v8, %v1509_v38 }
 0x495   :  { %v4150_v14 = vmul.f32 -1.442695, %v1480_v48  ;;  %v1536_v45 = vld [vmem:[#allocation2 + $0xc] sm:$0x3] }
 0x496   :  { %4419 = vtanh.f32 %v1421_v10 }
 0x497   :  { %v4418_v52 = vpop.eup %4417  ;;  %4421 = vpow2.f32 %v4150_v14  ;;  %v1537_v14 = vld [vmem:[#allocation2 + $0x2c] sm:$0x3] }
 0x498   :  { %v1464_v51 = vadd.f32 1.0, %v4418_v52 }
 0x49a   :  { %4423 = vrcp.f32 %v1464_v51  ;;  %v1458_v53 = vpop.f32.mrf.mxu2  ;;  %v1476_v62 = vand.u32 2147483648, %v1464_v51  ;;  %v1474_v17 = vand.u32 2147483647, %v1464_v51  ;;  %vm1470_vm14 = vweird.f32 %v1464_v51 }
 0x49b   :  { %v1511_v49 = vpop.f32.mrf.mxu3 }
 0x49c   :  { %v4420_v56 = vpop.eup %4419  ;;  %v1477_v24 = vor.u32 1.1754944e-38, %v1476_v62  ;;  %vm1475_vm0 = vcmp.eq.f32.partialorder %v1474_v17, 8.507059e+37 }
 0x49d   :  { %v4422_v55 = vpop.eup %4421  ;;  %v1424_v60 = vmul.f32 %v4420_v56, %v1423_v54 }
 0x49e   :  { %v1484_v58 = vadd.f32 1.0, %v4422_v55 }
 0x49f   :  { %v5247_v16 = vadd.f32 %v1425_v61, %v1424_v60 }
 0x4a0   :  { %v4424_v6 = vpop.eup %4423  ;;  %4425 = vrcp.f32 %v1484_v58  ;;  %v1494_v32 = vand.u32 2147483647, %v1484_v58  ;;  %vm1490_vm3 = vweird.f32 %v1484_v58 }
 0x4a1   :  { %v1466_v59 = vmul.f32 %v4424_v6, %v1464_v51  ;;  %1521 = vst.msk [vmem:[#allocation3 + $0xa] sm:$0x3] %vm504_vm10, %v5247_v16  ;;  %v1539_v27 = vpack.c.bf16 %v5247_v16, %v5247_v16  ;;  %v1524_v9 = vmul.f32 %v5198_v19, %v5247_v16  ;;  %vm1471_vm13 = vweird.f32 %v4424_v6 }
 0x4a2   :  { %vm1472_vm15 = vmor %vm1470_vm14, %vm1471_vm13  ;;  %vm1495_vm6 = vcmp.eq.f32.partialorder %v1494_v32, 8.507059e+37 }
 0x4a3   :  { %v1467_v1 = vsub.f32 1.0, %v1466_v59  ;;  %4152 = vmatmul.msk.bf16.vlgmr.msrb.gmra.mxu0 %vm124_vm1, %v1539_v27  ;;  %4153 = vmatmul.msk.bf16.vlgmr.msrb.gmra.mxu1 %vm124_vm1, %v1539_v27  ;;  %v1525_v57 = vsel %vm504_vm10, %v1524_v9, 0.0 }
 0x4a4   :  { %4156 = vmatmul.msk.bf16.vlgmr.msra.gmra.mxu2 %vm124_vm1, %v1539_v27  ;;  %1526 = vadd.xlane.f32.xlu2 %v1525_v57  ;;  %v1630_v57 = vld [vmem:[#allocation2 + $0x92] sm:$0x3] }
 0x4a5   :  { %v1468_v3 = vmul.f32 %v4424_v6, %v1467_v1  ;;  %1817 = vmatpush.bf16.msrb.mxu0 %v5085_v13  ;;  %1844 = vmatpush.bf16.msrb.mxu1 %v5154_v15 }
 0x4a6   :  { %v4426_v5 = vpop.eup %4425  ;;  %1857 = vmatpush.bf16.msra.mxu2 %v5089_v63  ;;  %v1496_v63 = vand.u32 2147483648, %v1484_v58 }
 0x4a7   :  { %v1486_v7 = vmul.f32 %v4426_v5, %v1484_v58  ;;  %v1469_v20 = vadd.f32 %v4424_v6, %v1468_v3  ;;  %vm1491_vm2 = vweird.f32 %v4426_v5 }
 0x4a8   :  { %vm1492_vm5 = vmor %vm1490_vm3, %vm1491_vm2  ;;  %v1497_v35 = vor.u32 1.1754944e-38, %v1496_v63 }
 0x4a9   :  { %v1487_v18 = vsub.f32 1.0, %v1486_v7  ;;  %v1473_v0 = vsel %vm1472_vm15, %v4424_v6, %v1469_v20  ;;  %1818 = vmatpush.bf16.msrb.mxu0 %v5092_v2  ;;  %1845 = vmatpush.bf16.msrb.mxu1 %v5160_v21 }
 0x4aa   :  { %v1478_v13 = vsel %vm1475_vm0, %v1477_v24, %v1473_v0  ;;  %1858 = vmatpush.bf16.msra.mxu2 %v5096_v4 }
 0x4ab   :  { %v1488_v28 = vmul.f32 %v4426_v5, %v1487_v18  ;;  %v1513_v29 = vmul.f32 %v1510_v26, %v1478_v13 }
 0x4ad   :  { %v1489_v33 = vadd.f32 %v4426_v5, %v1488_v28  ;;  %v1514_v34 = vadd.f32 %v1513_v29, %v1429_v23  ;;  %v1629_v29 = vld [vmem:[#allocation2 + $0x72] sm:$0x3] }
 0x4af   :  { %v1493_v36 = vsel %vm1492_vm5, %v4426_v5, %v1489_v33  ;;  %4427 = vtanh.f32 %v1514_v34  ;;  %v1538_v33 = vld [vmem:[#allocation2 + $0x4c] sm:$0x3] }
 0x4b0   :  { %v1498_v2 = vsel %vm1495_vm6, %v1497_v35, %v1493_v36 }
 0x4b1   :  { %v1516_v31 = vsub.f32 1.0, %v1498_v2  ;;  %v1518_v4 = vmul.f32 %v1498_v2, %v5220_v11 }
 0x4b5   :  { %v4428_v22 = vpop.eup %4427 }
 0x4b6   :  { %v1517_v37 = vmul.f32 %v4428_v22, %v1516_v31 }
 0x4b8   :  { %v5267_v39 = vadd.f32 %v1518_v4, %v1517_v37 }
 0x4ba   :  { %1523 = vst.msk [vmem:[#allocation3 + $0x34] sm:$0x3] %vm504_vm10, %v5267_v39  ;;  %v1632_v48 = vpack.c.bf16 %v5267_v39, %v5267_v39  ;;  %v1530_v38 = vmul.f32 %v5229_v44, %v5267_v39 }
 0x4bc   :  { %4157 = vmatmul.msk.bf16.vlgmr.msra.gmra.mxu3 %vm124_vm1, %v1632_v48  ;;  %4158 = vmatmul.msk.bf16.vlgmr.msra.gmra.mxu0 %vm124_vm1, %v1632_v48  ;;  %v1531_v10 = vsel %vm504_vm10, %v1530_v38, 0.0 }
 0x4bd   :  { %4161 = vmatmul.msk.bf16.vlgmr.msra.gmra.mxu1 %vm124_vm1, %v1632_v48  ;;  %1532 = vadd.xlane.f32.xlu2 %v1531_v10 }
 0x4be   :  { %1910 = vmatpush.bf16.msra.mxu3 %v5114_v50  ;;  %1953 = vmatpush.bf16.msra.mxu0 %v5117_v40 }
 0x4bf   :  { %1966 = vmatpush.bf16.msra.mxu1 %v5120_v41 }
 0x4c2   :  { %1911 = vmatpush.bf16.msra.mxu3 %v5123_v42  ;;  %1954 = vmatpush.bf16.msra.mxu0 %v5126_v30 }
 0x4c3   :  { %1967 = vmatpush.bf16.msra.mxu1 %v5129_v43 }
 0x517   :  { %v1527_v11 = vpop.xlane.xlu2 %1526 }
 0x518   :  { %1529 = vst.msk [vmem:[#allocation4 + $0xa] sm:$0x3] %vm515_vm4, %v1527_v11 }
 0x520   :  { %v1552_v46 = vpop.f32.mrf.mxu0  ;;  %v1565_v47 = vpop.f32.mrf.mxu1 }
 0x521   :  { %v1569_v52 = vadd.f32 %v1552_v46, %v1536_v45  ;;  %v1589_v12 = vadd.f32 %v1565_v47, %v1537_v14 }
 0x523   :  { %v4154_v50 = vmul.f32 -1.442695, %v1569_v52  ;;  %v4155_v51 = vmul.f32 -1.442695, %v1589_v12 }
 0x525   :  { %4429 = vpow2.f32 %v4154_v50 }
 0x526   :  { %4431 = vpow2.f32 %v4155_v51 }
 0x527   :  { %v1618_v40 = vpop.f32.mrf.mxu2 }
 0x528   :  { %v1554_v41 = vpop.f32.mrf.mxu0  ;;  %v1567_v42 = vpop.f32.mrf.mxu1  ;;  %v1619_v0 = vadd.f32 %v5137_v25, %v1618_v40 }
 0x529   :  { %v5303_v41 = vld [vmem:[#allocation5 + $0x28] sm:$0xff] }
 0x52b   :  { %v4430_v53 = vpop.eup %4429 }
 0x52c   :  { %v4432_v30 = vpop.eup %4431  ;;  %v1573_v54 = vadd.f32 1.0, %v4430_v53  ;;  %v5307_v53 = vld [vmem:[#allocation5 + $0x48] sm:$0xff] }
 0x52d   :  { %v1593_v43 = vadd.f32 1.0, %v4432_v30 }
 0x52e   :  { %4433 = vrcp.f32 %v1573_v54  ;;  %v1585_v27 = vand.u32 2147483648, %v1573_v54  ;;  %v1583_v1 = vand.u32 2147483647, %v1573_v54  ;;  %vm1579_vm8 = vweird.f32 %v1573_v54 }
 0x52f   :  { %4435 = vrcp.f32 %v1593_v43  ;;  %v1620_v49 = vpop.f32.mrf.mxu2  ;;  %v1605_v28 = vand.u32 2147483648, %v1593_v43  ;;  %vm1599_vm13 = vweird.f32 %v1593_v43  ;;  %v1603_v23 = vand.u32 2147483647, %v1593_v43 }
 0x530   :  { %v1533_v56 = vpop.xlane.xlu2 %1532  ;;  %v1586_v20 = vor.u32 1.1754944e-38, %v1585_v27  ;;  %vm1584_vm11 = vcmp.eq.f32.partialorder %v1583_v1, 8.507059e+37  ;;  %v5310_v49 = vld [vmem:[#allocation5 + $0x20] sm:$0xff] }
 0x531   :  { %1535 = vst.msk [vmem:[#allocation4 + $0x34] sm:$0x3] %vm515_vm4, %v1533_v56  ;;  %v1606_v37 = vor.u32 1.1754944e-38, %v1605_v28  ;;  %vm1604_vm15 = vcmp.eq.f32.partialorder %v1603_v23, 8.507059e+37  ;;  %v5338_v23 = vld [vmem:[#allocation5 + $0x18] sm:$0xff] }
 0x534   :  { %v4434_v55 = vpop.eup %4433 }
 0x535   :  { %v4436_v60 = vpop.eup %4435  ;;  %v1575_v61 = vmul.f32 %v4434_v55, %v1573_v54  ;;  %vm1580_vm7 = vweird.f32 %v4434_v55 }
 0x536   :  { %v1595_v58 = vmul.f32 %v4436_v60, %v1593_v43  ;;  %vm1581_vm9 = vmor %vm1579_vm8, %vm1580_vm7  ;;  %vm1600_vm12 = vweird.f32 %v4436_v60 }
 0x537   :  { %v1576_v6 = vsub.f32 1.0, %v1575_v61  ;;  %vm1601_vm14 = vmor %vm1599_vm13, %vm1600_vm12 }
 0x538   :  { %v1596_v59 = vsub.f32 1.0, %v1595_v58 }
 0x539   :  { %v1577_v9 = vmul.f32 %v4434_v55, %v1576_v6  ;;  %v1658_v62 = vpop.f32.mrf.mxu0 }
 0x53a   :  { %v1597_v3 = vmul.f32 %v4436_v60, %v1596_v59  ;;  %v1682_v17 = vadd.f32 %v1658_v62, %v1630_v57  ;;  %v5287_v5 = vpop.f32.mrf.mxu1 }
 0x53b   :  { %v1578_v7 = vadd.f32 %v4434_v55, %v1577_v9  ;;  %v1712_v59 = vadd.f32 %v5215_v8, %v5287_v5 }
 0x53c   :  { %v4160_v24 = vmul.f32 -1.442695, %v1682_v17  ;;  %v1598_v26 = vadd.f32 %v4436_v60, %v1597_v3  ;;  %v1631_v3 = vld [vmem:[#allocation2 + $0xb2] sm:$0x3] }
 0x53d   :  { %v1582_v18 = vsel %vm1581_vm9, %v4434_v55, %v1578_v7  ;;  %v5314_v55 = vld [vmem:[#allocation5 + $0x40] sm:$0xff] }
 0x53e   :  { %v1587_v13 = vsel %vm1584_vm11, %v1586_v20, %v1582_v18  ;;  %4437 = vpow2.f32 %v4160_v24  ;;  %v1602_v2 = vsel %vm1601_vm14, %v4436_v60, %v1598_v26 }
 0x53f   :  { %v1622_v63 = vmul.f32 %v1619_v0, %v1587_v13  ;;  %v1645_v32 = vpop.f32.mrf.mxu3  ;;  %v1607_v4 = vsel %vm1604_vm15, %v1606_v37, %v1602_v2  ;;  %v1739_v37 = vld [vmem:[#allocation2 + $0x2e] sm:$0x3] }
 0x540   :  { %v1662_v34 = vadd.f32 %v1645_v32, %v1629_v29  ;;  %v1625_v10 = vsub.f32 1.0, %v1607_v4  ;;  %v1627_v14 = vmul.f32 %v1607_v4, %v5247_v16  ;;  %v5335_v32 = vld [vmem:[#allocation5 + $0x8] sm:$0xff] }
 0x541   :  { %v1623_v35 = vadd.f32 %v1622_v63, %v1538_v33  ;;  %v1660_v36 = vpop.f32.mrf.mxu0  ;;  %v5341_v33 = vld [vmem:[#allocation5 + $0x50] sm:$0xff] }
 0x542   :  { %v4159_v31 = vmul.f32 -1.442695, %v1662_v34  ;;  %v1713_v22 = vpop.f32.mrf.mxu1  ;;  %v5344_v34 = vld [vmem:[#allocation5] sm:$0xff] }
 0x543   :  { %4439 = vtanh.f32 %v1623_v35  ;;  %v5347_v35 = vld [vmem:[#allocation5 + $0x10] sm:$0xff] }
 0x544   :  { %v4438_v25 = vpop.eup %4437  ;;  %4441 = vpow2.f32 %v4159_v31  ;;  %v1738_v31 = vld [vmem:[#allocation2 + $0xe] sm:$0x3] }
 0x545   :  { %v1686_v48 = vadd.f32 1.0, %v4438_v25 }
 0x547   :  { %v1647_v38 = vpop.f32.mrf.mxu3  ;;  %4443 = vrcp.f32 %v1686_v48  ;;  %v1698_v1 = vand.u32 2147483648, %v1686_v48  ;;  %vm1692_vm7 = vweird.f32 %v1686_v48  ;;  %v1696_v62 = vand.u32 2147483647, %v1686_v48 }
 0x549   :  { %v4440_v11 = vpop.eup %4439  ;;  %v1699_v20 = vor.u32 1.1754944e-38, %v1698_v1  ;;  %vm1697_vm9 = vcmp.eq.f32.partialorder %v1696_v62, 8.507059e+37  ;;  %v5355_v1 = vld [vmem:[%s5960_s4] ss:$0 sm:$0xff] }
 0x54a   :  { %v4442_v45 = vpop.eup %4441  ;;  %v1626_v46 = vmul.f32 %v4440_v11, %v1625_v10 }
 0x54b   :  { %v1666_v47 = vadd.f32 1.0, %v4442_v45 }
 0x54c   :  { %v5291_v52 = vadd.f32 %v1627_v14, %v1626_v46 }
 0x54d   :  { %4445 = vrcp.f32 %v1666_v47  ;;  %v4444_v12 = vpop.eup %4443  ;;  %v1678_v56 = vand.u32 2147483648, %v1666_v47  ;;  %v1676_v60 = vand.u32 2147483647, %v1666_v47  ;;  %vm1672_vm2 = vweird.f32 %v1666_v47 }
 0x54e   :  { %1723 = vst.msk [vmem:[#allocation3 + $0xc] sm:$0x3] %vm504_vm10, %v5291_v52  ;;  %v1741_v50 = vpack.c.bf16 %v5291_v52, %v5291_v52  ;;  %v1726_v51 = vmul.f32 %v5198_v19, %v5291_v52  ;;  %v1688_v40 = vmul.f32 %v4444_v12, %v1686_v48  ;;  %vm1693_vm6 = vweird.f32 %v4444_v12 }
 0x54f   :  { %v1679_v6 = vor.u32 1.1754944e-38, %v1678_v56  ;;  %vm1677_vm5 = vcmp.eq.f32.partialorder %v1676_v60, 8.507059e+37  ;;  %vm1694_vm8 = vmor %vm1692_vm7, %vm1693_vm6 }
 0x550   :  { %4162 = vmatmul.msk.bf16.vlgmr.msrb.gmra.mxu2 %vm124_vm1, %v1741_v50  ;;  %4163 = vmatmul.msk.bf16.vlgmr.msrb.gmra.mxu3 %vm124_vm1, %v1741_v50  ;;  %v1727_v16 = vsel %vm504_vm10, %v1726_v51, 0.0  ;;  %v1689_v54 = vsub.f32 1.0, %v1688_v40 }
 0x551   :  { %4166 = vmatmul.msk.bf16.vlgmr.msrb.gmra.mxu0 %vm124_vm1, %v1741_v50  ;;  %1728 = vadd.xlane.f32.xlu0 %v1727_v16 }
 0x552   :  { %2019 = vmatpush.bf16.msrb.mxu2 %v5303_v41  ;;  %2046 = vmatpush.bf16.msrb.mxu3 %v5154_v15  ;;  %v1690_v61 = vmul.f32 %v4444_v12, %v1689_v54 }
 0x553   :  { %v4446_v42 = vpop.eup %4445  ;;  %2059 = vmatpush.bf16.msrb.mxu0 %v5307_v53 }
 0x554   :  { %v1668_v30 = vmul.f32 %v4446_v42, %v1666_v47  ;;  %vm1673_vm0 = vweird.f32 %v4446_v42  ;;  %v1691_v9 = vadd.f32 %v4444_v12, %v1690_v61  ;;  %v1831_v61 = vld [vmem:[#allocation2 + $0x70] sm:$0x3] }
 0x555   :  { %vm1674_vm3 = vmor %vm1672_vm2, %vm1673_vm0 }
 0x556   :  { %v1669_v43 = vsub.f32 1.0, %v1668_v30  ;;  %2020 = vmatpush.bf16.msrb.mxu2 %v5310_v49  ;;  %2047 = vmatpush.bf16.msrb.mxu3 %v5160_v21  ;;  %v1695_v7 = vsel %vm1694_vm8, %v4444_v12, %v1691_v9 }
 0x557   :  { %2060 = vmatpush.bf16.msrb.mxu0 %v5314_v55  ;;  %v1700_v24 = vsel %vm1697_vm9, %v1699_v20, %v1695_v7 }
 0x558   :  { %v1670_v15 = vmul.f32 %v4446_v42, %v1669_v43  ;;  %v1718_v18 = vsub.f32 1.0, %v1700_v24  ;;  %v1720_v5 = vmul.f32 %v1700_v24, %v5267_v39  ;;  %v5332_v39 = vld [vmem:[#allocation5 + $0x58] sm:$0xff]  ;;  %v1832_v24 = vld [vmem:[#allocation2 + $0x90] sm:$0x3] }
 0x55a   :  { %v1671_v58 = vadd.f32 %v4446_v42, %v1670_v15 }
 0x55c   :  { %v1675_v27 = vsel %vm1674_vm3, %v4446_v42, %v1671_v58 }
 0x55d   :  { %v1680_v21 = vsel %vm1677_vm5, %v1679_v6, %v1675_v27 }
 0x55e   :  { %v1715_v57 = vmul.f32 %v1712_v59, %v1680_v21 }
 0x560   :  { %v1716_v17 = vadd.f32 %v1715_v57, %v1631_v3 }
 0x562   :  { %4447 = vtanh.f32 %v1716_v17 }
 0x568   :  { %v4448_v0 = vpop.eup %4447 }
 0x569   :  { %v1719_v26 = vmul.f32 %v4448_v0, %v1718_v18  ;;  %v1740_v0 = vld [vmem:[#allocation2 + $0x4e] sm:$0x3] }
 0x56b   :  { %v5320_v13 = vadd.f32 %v1720_v5, %v1719_v26 }
 0x56d   :  { %1725 = vst.msk [vmem:[#allocation3 + $0x32] sm:$0x3] %vm504_vm10, %v5320_v13  ;;  %v1834_v28 = vpack.c.bf16 %v5320_v13, %v5320_v13  ;;  %v1732_v63 = vmul.f32 %v5229_v44, %v5320_v13 }
 0x56f   :  { %4167 = vmatmul.msk.bf16.vlgmr.msrb.gmra.mxu1 %vm124_vm1, %v1834_v28  ;;  %4168 = vmatmul.msk.bf16.vlgmr.msra.gmra.mxu2 %vm124_vm1, %v1834_v28  ;;  %v1733_v29 = vsel %vm504_vm10, %v1732_v63, 0.0 }
 0x570   :  { %4171 = vmatmul.msk.bf16.vlgmr.msra.gmra.mxu3 %vm124_vm1, %v1834_v28  ;;  %1734 = vadd.xlane.f32.xlu0 %v1733_v29 }
 0x571   :  { %2112 = vmatpush.bf16.msrb.mxu1 %v5332_v39  ;;  %2155 = vmatpush.bf16.msra.mxu2 %v5335_v32 }
 0x572   :  { %2168 = vmatpush.bf16.msra.mxu3 %v5338_v23 }
 0x575   :  { %2113 = vmatpush.bf16.msrb.mxu1 %v5341_v33  ;;  %2156 = vmatpush.bf16.msra.mxu2 %v5344_v34 }
 0x576   :  { %2169 = vmatpush.bf16.msra.mxu3 %v5347_v35 }
 0x5c4   :  { %v1729_v36 = vpop.xlane.xlu0 %1728 }
 0x5c5   :  { %1731 = vst.msk [vmem:[#allocation4 + $0xc] sm:$0x3] %vm515_vm4, %v1729_v36 }
 0x5ce   :  { %v1820_v2 = vpop.f32.mrf.mxu0 }
 0x5cf   :  { %v1821_v57 = vadd.f32 %v5355_v1, %v1820_v2 }
 0x5d3   :  { %v1754_v22 = vpop.f32.mrf.mxu2  ;;  %v1767_v25 = vpop.f32.mrf.mxu3 }
 0x5d4   :  { %v1771_v4 = vadd.f32 %v1754_v22, %v1738_v31  ;;  %v1791_v48 = vadd.f32 %v1767_v25, %v1739_v37 }
 0x5d6   :  { %v4164_v38 = vmul.f32 -1.442695, %v1771_v4  ;;  %v4165_v10 = vmul.f32 -1.442695, %v1791_v48  ;;  %v1822_v11 = vpop.f32.mrf.mxu0 }
 0x5d8   :  { %4449 = vpow2.f32 %v4164_v38 }
 0x5d9   :  { %4451 = vpow2.f32 %v4165_v10 }
 0x5db   :  { %v1756_v45 = vpop.f32.mrf.mxu2  ;;  %v1769_v46 = vpop.f32.mrf.mxu3 }
 0x5de   :  { %v4450_v14 = vpop.eup %4449 }
 0x5df   :  { %v4452_v47 = vpop.eup %4451  ;;  %v1775_v12 = vadd.f32 1.0, %v4450_v14 }
 0x5e0   :  { %v1795_v50 = vadd.f32 1.0, %v4452_v47 }
 0x5e1   :  { %4453 = vrcp.f32 %v1775_v12  ;;  %v1787_v43 = vand.u32 2147483648, %v1775_v12  ;;  %v1785_v60 = vand.u32 2147483647, %v1775_v12  ;;  %vm1781_vm12 = vweird.f32 %v1775_v12 }
 0x5e2   :  { %4455 = vrcp.f32 %v1795_v50  ;;  %v1807_v20 = vand.u32 2147483648, %v1795_v50  ;;  %vm1801_vm0 = vweird.f32 %v1795_v50  ;;  %v1805_v5 = vand.u32 2147483647, %v1795_v50 }
 0x5e3   :  { %v1735_v51 = vpop.xlane.xlu0 %1734  ;;  %v1788_v9 = vor.u32 1.1754944e-38, %v1787_v43  ;;  %vm1786_vm14 = vcmp.eq.f32.partialorder %v1785_v60, 8.507059e+37  ;;  %v5372_v43 = vld [vmem:[#allocation5 + $0x38] sm:$0xff] }
 0x5e4   :  { %1737 = vst.msk [vmem:[#allocation4 + $0x32] sm:$0x3] %vm515_vm4, %v1735_v51  ;;  %v1808_v31 = vor.u32 1.1754944e-38, %v1807_v20  ;;  %vm1806_vm3 = vcmp.eq.f32.partialorder %v1805_v5, 8.507059e+37 }
 0x5e7   :  { %v4454_v16 = vpop.eup %4453 }
 0x5e8   :  { %v4456_v40 = vpop.eup %4455  ;;  %v1777_v42 = vmul.f32 %v4454_v16, %v1775_v12  ;;  %vm1782_vm11 = vweird.f32 %v4454_v16 }
 0x5e9   :  { %v1797_v30 = vmul.f32 %v4456_v40, %v1795_v50  ;;  %vm1783_vm13 = vmor %vm1781_vm12, %vm1782_vm11  ;;  %vm1802_vm15 = vweird.f32 %v4456_v40 }
 0x5ea   :  { %v1778_v54 = vsub.f32 1.0, %v1777_v42  ;;  %vm1803_vm2 = vmor %vm1801_vm0, %vm1802_vm15 }
 0x5eb   :  { %v1798_v56 = vsub.f32 1.0, %v1797_v30 }
 0x5ec   :  { %v1779_v15 = vmul.f32 %v4454_v16, %v1778_v54  ;;  %v1847_v58 = vpop.f32.mrf.mxu1 }
 0x5ed   :  { %v1799_v6 = vmul.f32 %v4456_v40, %v1798_v56  ;;  %v1864_v59 = vadd.f32 %v1847_v58, %v1831_v61 }
 0x5ee   :  { %v1780_v27 = vadd.f32 %v4454_v16, %v1779_v15 }
 0x5ef   :  { %v4169_v21 = vmul.f32 -1.442695, %v1864_v59  ;;  %v1800_v17 = vadd.f32 %v4456_v40, %v1799_v6  ;;  %v5378_v59 = vld [vmem:[#allocation5 + $0x30] sm:$0xff] }
 0x5f0   :  { %v1784_v62 = vsel %vm1783_vm13, %v4454_v16, %v1780_v27 }
 0x5f1   :  { %v1789_v3 = vsel %vm1786_vm14, %v1788_v9, %v1784_v62  ;;  %4457 = vpow2.f32 %v4169_v21  ;;  %v1804_v36 = vsel %vm1803_vm2, %v4456_v40, %v1800_v17 }
 0x5f2   :  { %v1824_v7 = vmul.f32 %v1821_v57, %v1789_v3  ;;  %v1860_v18 = vpop.f32.mrf.mxu2  ;;  %v1809_v37 = vsel %vm1806_vm3, %v1808_v31, %v1804_v36  ;;  %v1833_v3 = vld [vmem:[#allocation2 + $0xb0] sm:$0x3] }
 0x5f3   :  { %v1884_v26 = vadd.f32 %v1860_v18, %v1832_v24  ;;  %v1913_v28 = vpop.f32.mrf.mxu3  ;;  %v1827_v48 = vsub.f32 1.0, %v1809_v37  ;;  %v1829_v46 = vmul.f32 %v1809_v37, %v5291_v52  ;;  %v1941_v31 = vld [vmem:[#allocation2 + $0x30] sm:$0x3] }
 0x5f4   :  { %v1825_v63 = vadd.f32 %v1824_v7, %v1740_v0  ;;  %v1849_v29 = vpop.f32.mrf.mxu1  ;;  %v1914_v6 = vadd.f32 %v5215_v8, %v1913_v28 }
 0x5f5   :  { %v4170_v2 = vmul.f32 -1.442695, %v1884_v26 }
 0x5f6   :  { %4459 = vtanh.f32 %v1825_v63 }
 0x5f7   :  { %v4458_v22 = vpop.eup %4457  ;;  %4461 = vpow2.f32 %v4170_v2 }
 0x5f8   :  { %v1868_v25 = vadd.f32 1.0, %v4458_v22 }
 0x5fa   :  { %4463 = vrcp.f32 %v1868_v25  ;;  %v1862_v4 = vpop.f32.mrf.mxu2  ;;  %v1880_v42 = vand.u32 2147483648, %v1868_v25  ;;  %v1878_v54 = vand.u32 2147483647, %v1868_v25  ;;  %vm1874_vm6 = vweird.f32 %v1868_v25 }
 0x5fb   :  { %v1915_v38 = vpop.f32.mrf.mxu3 }
 0x5fc   :  { %v4460_v10 = vpop.eup %4459  ;;  %v1881_v60 = vor.u32 1.1754944e-38, %v1880_v42  ;;  %vm1879_vm8 = vcmp.eq.f32.partialorder %v1878_v54, 8.507059e+37 }
 0x5fd   :  { %v4462_v11 = vpop.eup %4461  ;;  %v1828_v45 = vmul.f32 %v4460_v10, %v1827_v48 }
 0x5fe   :  { %v1888_v14 = vadd.f32 1.0, %v4462_v11 }
 0x5ff   :  { %v5359_v47 = vadd.f32 %v1829_v46, %v1828_v45 }
 0x600   :  { %v4464_v12 = vpop.eup %4463  ;;  %4465 = vrcp.f32 %v1888_v14  ;;  %v1900_v21 = vand.u32 2147483648, %v1888_v14  ;;  %v1898_v62 = vand.u32 2147483647, %v1888_v14  ;;  %vm1894_vm11 = vweird.f32 %v1888_v14 }
 0x601   :  { %1925 = vst.msk [vmem:[#allocation3 + $0xe] sm:$0x3] %vm504_vm10, %v5359_v47  ;;  %v1870_v50 = vmul.f32 %v4464_v12, %v1868_v25  ;;  %v1943_v51 = vpack.c.bf16 %v5359_v47, %v5359_v47  ;;  %v1928_v16 = vmul.f32 %v5198_v19, %v5359_v47  ;;  %vm1875_vm5 = vweird.f32 %v4464_v12 }
 0x602   :  { %vm1876_vm7 = vmor %vm1874_vm6, %vm1875_vm5  ;;  %v1901_v8 = vor.u32 1.1754944e-38, %v1900_v21  ;;  %vm1899_vm13 = vcmp.eq.f32.partialorder %v1898_v62, 8.507059e+37 }
 0x603   :  { %v1871_v40 = vsub.f32 1.0, %v1870_v50  ;;  %4172 = vmatmul.msk.bf16.vlgmr.msra.gmra.mxu0 %vm124_vm1, %v1943_v51  ;;  %4173 = vmatmul.msk.bf16.vlgmr.msra.gmra.mxu1 %vm124_vm1, %v1943_v51  ;;  %v1929_v52 = vsel %vm504_vm10, %v1928_v16, 0.0 }
 0x604   :  { %4176 = vmatmul.msk.bf16.vlgmr.msrb.gmra.mxu2 %vm124_vm1, %v1943_v51  ;;  %1930 = vadd.xlane.f32.xlu1 %v1929_v52 }
 0x605   :  { %v1872_v30 = vmul.f32 %v4464_v12, %v1871_v40  ;;  %2221 = vmatpush.bf16.msra.mxu0 %v5303_v41  ;;  %2248 = vmatpush.bf16.msra.mxu1 %v5372_v43 }
 0x606   :  { %v4466_v19 = vpop.eup %4465  ;;  %2261 = vmatpush.bf16.msrb.mxu2 %v5307_v53 }
 0x607   :  { %v1890_v56 = vmul.f32 %v4466_v19, %v1888_v14  ;;  %v1873_v15 = vadd.f32 %v4464_v12, %v1872_v30  ;;  %vm1895_vm9 = vweird.f32 %v4466_v19 }
 0x608   :  { %vm1896_vm12 = vmor %vm1894_vm11, %vm1895_vm9 }
 0x609   :  { %v1891_v61 = vsub.f32 1.0, %v1890_v56  ;;  %v1877_v58 = vsel %vm1876_vm7, %v4464_v12, %v1873_v15  ;;  %2222 = vmatpush.bf16.msra.mxu0 %v5310_v49  ;;  %2249 = vmatpush.bf16.msra.mxu1 %v5378_v59 }
 0x60a   :  { %v1882_v27 = vsel %vm1879_vm8, %v1881_v60, %v1877_v58  ;;  %2262 = vmatpush.bf16.msrb.mxu2 %v5314_v55  ;;  %v2034_v60 = vld [vmem:[#allocation2 + $0x8e] sm:$0x3] }
 0x60b   :  { %v1892_v9 = vmul.f32 %v4466_v19, %v1891_v61  ;;  %v1917_v57 = vmul.f32 %v1914_v6, %v1882_v27 }
 0x60d   :  { %v1893_v17 = vadd.f32 %v4466_v19, %v1892_v9  ;;  %v1918_v7 = vadd.f32 %v1917_v57, %v1833_v3 }
 0x60f   :  { %v1897_v20 = vsel %vm1896_vm12, %v4466_v19, %v1893_v17  ;;  %4467 = vtanh.f32 %v1918_v7 }
 0x610   :  { %v1902_v24 = vsel %vm1899_vm13, %v1901_v8, %v1897_v20 }
 0x611   :  { %v1920_v18 = vsub.f32 1.0, %v1902_v24  ;;  %v1922_v26 = vmul.f32 %v1902_v24, %v5320_v13  ;;  %v1940_v13 = vld [vmem:[#allocation2 + $0x10] sm:$0x3]  ;;  %v2033_v24 = vld [vmem:[#allocation2 + $0x6e] sm:$0x3] }
 0x615   :  { %v4468_v0 = vpop.eup %4467 }
 0x616   :  { %v1921_v5 = vmul.f32 %v4468_v0, %v1920_v18 }
 0x618   :  { %v5383_v28 = vadd.f32 %v1922_v26, %v1921_v5  ;;  %v1942_v5 = vld [vmem:[#allocation2 + $0x50] sm:$0x3] }
 0x61a   :  { %1927 = vst.msk [vmem:[#allocation3 + $0x30] sm:$0x3] %vm504_vm10, %v5383_v28  ;;  %v2036_v63 = vpack.c.bf16 %v5383_v28, %v5383_v28  ;;  %v1934_v29 = vmul.f32 %v5229_v44, %v5383_v28 }
 0x61c   :  { %4177 = vmatmul.msk.bf16.vlgmr.msrb.gmra.mxu3 %vm124_vm1, %v2036_v63  ;;  %4178 = vmatmul.msk.bf16.vlgmr.msrb.gmra.mxu0 %vm124_vm1, %v2036_v63  ;;  %v1935_v36 = vsel %vm504_vm10, %v1934_v29, 0.0 }
 0x61d   :  { %4181 = vmatmul.msk.bf16.vlgmr.msrb.gmra.mxu1 %vm124_vm1, %v2036_v63  ;;  %1936 = vadd.xlane.f32.xlu1 %v1935_v36 }
 0x61e   :  { %2314 = vmatpush.bf16.msrb.mxu3 %v5332_v39  ;;  %2357 = vmatpush.bf16.msrb.mxu0 %v5335_v32 }
 0x61f   :  { %2370 = vmatpush.bf16.msrb.mxu1 %v5338_v23 }
 0x622   :  { %2315 = vmatpush.bf16.msrb.mxu3 %v5341_v33  ;;  %2358 = vmatpush.bf16.msrb.mxu0 %v5344_v34 }
 0x623   :  { %2371 = vmatpush.bf16.msrb.mxu1 %v5347_v35 }
 0x677   :  { %v1931_v44 = vpop.xlane.xlu1 %1930 }
 0x678   :  { %1933 = vst.msk [vmem:[#allocation4 + $0xe] sm:$0x3] %vm515_vm4, %v1931_v44 }
 0x680   :  { %v1956_v2 = vpop.f32.mrf.mxu0  ;;  %v1969_v22 = vpop.f32.mrf.mxu1 }
 0x681   :  { %v1973_v37 = vadd.f32 %v1956_v2, %v1940_v13  ;;  %v1993_v25 = vadd.f32 %v1969_v22, %v1941_v31 }
 0x683   :  { %v4174_v4 = vmul.f32 -1.442695, %v1973_v37  ;;  %v4175_v48 = vmul.f32 -1.442695, %v1993_v25 }
 0x685   :  { %4469 = vpow2.f32 %v4174_v4 }
 0x686   :  { %4471 = vpow2.f32 %v4175_v48 }
 0x687   :  { %v2022_v38 = vpop.f32.mrf.mxu2 }
 0x688   :  { %v1958_v10 = vpop.f32.mrf.mxu0  ;;  %v1971_v11 = vpop.f32.mrf.mxu1  ;;  %v2023_v3 = vadd.f32 %v5355_v1, %v2022_v38 }
 0x68b   :  { %v4470_v45 = vpop.eup %4469 }
 0x68c   :  { %v4472_v46 = vpop.eup %4471  ;;  %v1977_v14 = vadd.f32 1.0, %v4470_v45 }
 0x68d   :  { %v1997_v12 = vadd.f32 1.0, %v4472_v46 }
 0x68e   :  { %4473 = vrcp.f32 %v1977_v14  ;;  %v1989_v19 = vand.u32 2147483648, %v1977_v14  ;;  %v1987_v15 = vand.u32 2147483647, %v1977_v14  ;;  %vm1983_vm15 = vweird.f32 %v1977_v14 }
 0x68f   :  { %4475 = vrcp.f32 %v1997_v12  ;;  %v2024_v50 = vpop.f32.mrf.mxu2  ;;  %v2009_v8 = vand.u32 2147483648, %v1997_v12  ;;  %vm2003_vm5 = vweird.f32 %v1997_v12  ;;  %v2007_v0 = vand.u32 2147483647, %v1997_v12 }
 0x690   :  { %v1937_v51 = vpop.xlane.xlu1 %1936  ;;  %v1990_v21 = vor.u32 1.1754944e-38, %v1989_v19  ;;  %vm1988_vm2 = vcmp.eq.f32.partialorder %v1987_v15, 8.507059e+37  ;;  %v5416_v50 = vld [vmem:[%s5961_s5] ss:$0 sm:$0xff] }
 0x691   :  { %1939 = vst.msk [vmem:[#allocation4 + $0x30] sm:$0x3] %vm515_vm4, %v1937_v51  ;;  %v2010_v2 = vor.u32 1.1754944e-38, %v2009_v8  ;;  %vm2008_vm7 = vcmp.eq.f32.partialorder %v2007_v0, 8.507059e+37 }
 0x694   :  { %v4474_v16 = vpop.eup %4473 }
 0x695   :  { %v4476_v40 = vpop.eup %4475  ;;  %v1979_v52 = vmul.f32 %v4474_v16, %v1977_v14  ;;  %vm1984_vm14 = vweird.f32 %v4474_v16 }
 0x696   :  { %v1999_v42 = vmul.f32 %v4476_v40, %v1997_v12  ;;  %vm1985_vm0 = vmor %vm1983_vm15, %vm1984_vm14  ;;  %vm2004_vm3 = vweird.f32 %v4476_v40 }
 0x697   :  { %v1980_v30 = vsub.f32 1.0, %v1979_v52  ;;  %vm2005_vm6 = vmor %vm2003_vm5, %vm2004_vm3 }
 0x698   :  { %v2000_v54 = vsub.f32 1.0, %v1999_v42 }
 0x699   :  { %v1981_v56 = vmul.f32 %v4474_v16, %v1980_v30  ;;  %v2062_v61 = vpop.f32.mrf.mxu0 }
 0x69a   :  { %v2001_v58 = vmul.f32 %v4476_v40, %v2000_v54  ;;  %v2086_v6 = vadd.f32 %v2062_v61, %v2034_v60  ;;  %v5403_v27 = vpop.f32.mrf.mxu1 }
 0x69b   :  { %v1982_v9 = vadd.f32 %v4474_v16, %v1981_v56 }
 0x69c   :  { %v4180_v57 = vmul.f32 -1.442695, %v2086_v6  ;;  %v2002_v17 = vadd.f32 %v4476_v40, %v2001_v58  ;;  %v5433_v58 = vld [vmem:[%s5960_s4 + $0x1] ss:$0 sm:$0xff] }
 0x69d   :  { %v1986_v62 = vsel %vm1985_vm0, %v4474_v16, %v1982_v9  ;;  %v2116_v6 = vadd.f32 %v5433_v58, %v5403_v27 }
 0x69e   :  { %v1991_v7 = vsel %vm1988_vm2, %v1990_v21, %v1986_v62  ;;  %4477 = vpow2.f32 %v4180_v57  ;;  %v2006_v36 = vsel %vm2005_vm6, %v4476_v40, %v2002_v17 }
 0x69f   :  { %v2026_v20 = vmul.f32 %v2023_v3, %v1991_v7  ;;  %v2049_v18 = vpop.f32.mrf.mxu3  ;;  %v2011_v22 = vsel %vm2008_vm7, %v2010_v2, %v2006_v36  ;;  %v2035_v7 = vld [vmem:[#allocation2 + $0xae] sm:$0x3]  ;;  %v5447_v36 = vld [vmem:[%s5961_s5 + $0x1] ss:$0 sm:$0xff] }
 0x6a0   :  { %v2066_v26 = vadd.f32 %v2049_v18, %v2033_v24  ;;  %v2029_v4 = vsub.f32 1.0, %v2011_v22  ;;  %v2031_v11 = vmul.f32 %v2011_v22, %v5359_v47 }
 0x6a1   :  { %v2027_v63 = vadd.f32 %v2026_v20, %v1942_v5  ;;  %v2064_v29 = vpop.f32.mrf.mxu0 }
 0x6a2   :  { %v4179_v44 = vmul.f32 -1.442695, %v2066_v26  ;;  %v2117_v13 = vpop.f32.mrf.mxu1 }
 0x6a3   :  { %4479 = vtanh.f32 %v2027_v63 }
 0x6a4   :  { %v4478_v31 = vpop.eup %4477  ;;  %4481 = vpow2.f32 %v4179_v44 }
 0x6a5   :  { %v2090_v37 = vadd.f32 1.0, %v4478_v31  ;;  %v2142_v31 = vld [vmem:[#allocation2 + $0x12] sm:$0x3] }
 0x6a7   :  { %v2051_v25 = vpop.f32.mrf.mxu3  ;;  %4483 = vrcp.f32 %v2090_v37  ;;  %v2102_v62 = vand.u32 2147483648, %v2090_v37  ;;  %vm2096_vm14 = vweird.f32 %v2090_v37  ;;  %v2100_v17 = vand.u32 2147483647, %v2090_v37 }
 0x6a9   :  { %v4480_v48 = vpop.eup %4479  ;;  %v2103_v24 = vor.u32 1.1754944e-38, %v2102_v62  ;;  %vm2101_vm0 = vcmp.eq.f32.partialorder %v2100_v17, 8.507059e+37 }
 0x6aa   :  { %v4482_v38 = vpop.eup %4481  ;;  %v2030_v10 = vmul.f32 %v4480_v48, %v2029_v4 }
 0x6ab   :  { %v2070_v45 = vadd.f32 1.0, %v4482_v38 }
 0x6ac   :  { %v5407_v46 = vadd.f32 %v2031_v11, %v2030_v10 }
 0x6ad   :  { %4485 = vrcp.f32 %v2070_v45  ;;  %v4484_v14 = vpop.eup %4483  ;;  %v2082_v54 = vand.u32 2147483648, %v2070_v45  ;;  %v2080_v56 = vand.u32 2147483647, %v2070_v45  ;;  %vm2076_vm9 = vweird.f32 %v2070_v45 }
 0x6ae   :  { %2127 = vst.msk [vmem:[#allocation3 + $0x10] sm:$0x3] %vm504_vm10, %v5407_v46  ;;  %v2145_v12 = vpack.c.bf16 %v5407_v46, %v5407_v46  ;;  %v2130_v51 = vmul.f32 %v5416_v50, %v5407_v46  ;;  %v2092_v16 = vmul.f32 %v4484_v14, %v2090_v37  ;;  %vm2097_vm13 = vweird.f32 %v4484_v14  ;;  %v2143_v37 = vld [vmem:[#allocation2 + $0x32] sm:$0x3] }
 0x6af   :  { %v2083_v61 = vor.u32 1.1754944e-38, %v2082_v54  ;;  %vm2081_vm12 = vcmp.eq.f32.partialorder %v2080_v56, 8.507059e+37  ;;  %vm2098_vm15 = vmor %vm2096_vm14, %vm2097_vm13 }
 0x6b0   :  { %4182 = vmatmul.msk.bf16.vlgmr.msra.gmra.mxu2 %vm124_vm1, %v2145_v12  ;;  %4183 = vmatmul.msk.bf16.vlgmr.msra.gmra.mxu3 %vm124_vm1, %v2145_v12  ;;  %v2131_v47 = vsel %vm504_vm10, %v2130_v51, 0.0  ;;  %v2093_v42 = vsub.f32 1.0, %v2092_v16 }
 0x6b1   :  { %4186 = vmatmul.msk.bf16.vlgmr.msra.gmra.mxu0 %vm124_vm1, %v2145_v12  ;;  %2132 = vadd.xlane.f32.xlu2 %v2131_v47 }
 0x6b2   :  { %2423 = vmatpush.bf16.msra.mxu2 %v5303_v41  ;;  %2450 = vmatpush.bf16.msra.mxu3 %v5372_v43  ;;  %v2094_v15 = vmul.f32 %v4484_v14, %v2093_v42 }
 0x6b3   :  { %v4486_v40 = vpop.eup %4485  ;;  %2463 = vmatpush.bf16.msra.mxu0 %v5307_v53 }
 0x6b4   :  { %v2072_v52 = vmul.f32 %v4486_v40, %v2070_v45  ;;  %vm2077_vm8 = vweird.f32 %v4486_v40  ;;  %v2095_v21 = vadd.f32 %v4484_v14, %v2094_v15 }
 0x6b5   :  { %vm2078_vm11 = vmor %vm2076_vm9, %vm2077_vm8 }
 0x6b6   :  { %v2073_v30 = vsub.f32 1.0, %v2072_v52  ;;  %2424 = vmatpush.bf16.msra.mxu2 %v5310_v49  ;;  %2451 = vmatpush.bf16.msra.mxu3 %v5378_v59  ;;  %v2099_v20 = vsel %vm2098_vm15, %v4484_v14, %v2095_v21 }
 0x6b7   :  { %2464 = vmatpush.bf16.msra.mxu0 %v5314_v55  ;;  %v2104_v18 = vsel %vm2101_vm0, %v2103_v24, %v2099_v20 }
 0x6b8   :  { %v2074_v19 = vmul.f32 %v4486_v40, %v2073_v30  ;;  %v2122_v0 = vsub.f32 1.0, %v2104_v18  ;;  %v2124_v27 = vmul.f32 %v2104_v18, %v5383_v28 }
 0x6ba   :  { %v2075_v60 = vadd.f32 %v4486_v40, %v2074_v19 }
 0x6bc   :  { %v2079_v9 = vsel %vm2078_vm11, %v4486_v40, %v2075_v60 }
 0x6bd   :  { %v2084_v57 = vsel %vm2081_vm12, %v2083_v61, %v2079_v9 }
 0x6be   :  { %v2119_v3 = vmul.f32 %v2116_v6, %v2084_v57  ;;  %v2235_v6 = vld [vmem:[#allocation2 + $0x6c] sm:$0x3] }
 0x6c0   :  { %v2120_v8 = vadd.f32 %v2119_v3, %v2035_v7 }
 0x6c2   :  { %4487 = vtanh.f32 %v2120_v8 }
 0x6c8   :  { %v4488_v5 = vpop.eup %4487 }
 0x6c9   :  { %v2123_v26 = vmul.f32 %v4488_v5, %v2122_v0  ;;  %v2236_v5 = vld [vmem:[#allocation2 + $0x8c] sm:$0x3] }
 0x6cb   :  { %v5438_v63 = vadd.f32 %v2124_v27, %v2123_v26  ;;  %v2144_v26 = vld [vmem:[#allocation2 + $0x52] sm:$0x3] }
 0x6cd   :  { %2129 = vst.msk [vmem:[#allocation3 + $0x2e] sm:$0x3] %vm504_vm10, %v5438_v63  ;;  %v2238_v29 = vpack.c.bf16 %v5438_v63, %v5438_v63  ;;  %v2136_v44 = vmul.f32 %v5447_v36, %v5438_v63 }
 0x6cf   :  { %4187 = vmatmul.msk.bf16.vlgmr.msra.gmra.mxu1 %vm124_vm1, %v2238_v29  ;;  %4188 = vmatmul.msk.bf16.vlgmr.msrb.gmra.mxu2 %vm124_vm1, %v2238_v29  ;;  %v2137_v28 = vsel %vm504_vm10, %v2136_v44, 0.0 }
 0x6d0   :  { %4191 = vmatmul.msk.bf16.vlgmr.msrb.gmra.mxu3 %vm124_vm1, %v2238_v29  ;;  %2138 = vadd.xlane.f32.xlu2 %v2137_v28 }
 0x6d1   :  { %2516 = vmatpush.bf16.msra.mxu1 %v5332_v39  ;;  %2559 = vmatpush.bf16.msrb.mxu2 %v5335_v32 }
 0x6d2   :  { %2572 = vmatpush.bf16.msrb.mxu3 %v5338_v23 }
 0x6d5   :  { %2517 = vmatpush.bf16.msra.mxu1 %v5341_v33  ;;  %2560 = vmatpush.bf16.msrb.mxu2 %v5344_v34 }
 0x6d6   :  { %2573 = vmatpush.bf16.msrb.mxu3 %v5347_v35 }
 0x724   :  { %v2133_v13 = vpop.xlane.xlu2 %2132 }
 0x725   :  { %2135 = vst.msk [vmem:[#allocation4 + $0x10] sm:$0x3] %vm515_vm4, %v2133_v13 }
 0x72e   :  { %v2224_v2 = vpop.f32.mrf.mxu0 }
 0x72f   :  { %v2225_v7 = vadd.f32 %v5355_v1, %v2224_v2 }
 0x733   :  { %v2158_v22 = vpop.f32.mrf.mxu2  ;;  %v2171_v25 = vpop.f32.mrf.mxu3 }
 0x734   :  { %v2175_v4 = vadd.f32 %v2158_v22, %v2142_v31  ;;  %v2195_v48 = vadd.f32 %v2171_v25, %v2143_v37 }
 0x736   :  { %v4184_v38 = vmul.f32 -1.442695, %v2175_v4  ;;  %v4185_v10 = vmul.f32 -1.442695, %v2195_v48  ;;  %v2226_v11 = vpop.f32.mrf.mxu0 }
 0x738   :  { %4489 = vpow2.f32 %v4184_v38 }
 0x739   :  { %4491 = vpow2.f32 %v4185_v10 }
 0x73b   :  { %v2160_v45 = vpop.f32.mrf.mxu2  ;;  %v2173_v14 = vpop.f32.mrf.mxu3 }
 0x73e   :  { %v4490_v12 = vpop.eup %4489 }
 0x73f   :  { %v4492_v51 = vpop.eup %4491  ;;  %v2179_v47 = vadd.f32 1.0, %v4490_v12 }
 0x740   :  { %v2199_v16 = vadd.f32 1.0, %v4492_v51 }
 0x741   :  { %4493 = vrcp.f32 %v2179_v47  ;;  %v2191_v56 = vand.u32 2147483648, %v2179_v47  ;;  %v2189_v61 = vand.u32 2147483647, %v2179_v47  ;;  %vm2185_vm3 = vweird.f32 %v2179_v47 }
 0x742   :  { %4495 = vrcp.f32 %v2199_v16  ;;  %v2211_v0 = vand.u32 2147483648, %v2199_v16  ;;  %vm2205_vm8 = vweird.f32 %v2199_v16  ;;  %v2209_v29 = vand.u32 2147483647, %v2199_v16 }
 0x743   :  { %v2139_v40 = vpop.xlane.xlu2 %2138  ;;  %v2192_v3 = vor.u32 1.1754944e-38, %v2191_v56  ;;  %vm2190_vm6 = vcmp.eq.f32.partialorder %v2189_v61, 8.507059e+37 }
 0x744   :  { %2141 = vst.msk [vmem:[#allocation4 + $0x2e] sm:$0x3] %vm515_vm4, %v2139_v40  ;;  %v2212_v37 = vor.u32 1.1754944e-38, %v2211_v0  ;;  %vm2210_vm11 = vcmp.eq.f32.partialorder %v2209_v29, 8.507059e+37 }
 0x747   :  { %v4494_v52 = vpop.eup %4493 }
 0x748   :  { %v4496_v42 = vpop.eup %4495  ;;  %v2181_v30 = vmul.f32 %v4494_v52, %v2179_v47  ;;  %vm2186_vm2 = vweird.f32 %v4494_v52 }
 0x749   :  { %v2201_v54 = vmul.f32 %v4496_v42, %v2199_v16  ;;  %vm2187_vm5 = vmor %vm2185_vm3, %vm2186_vm2  ;;  %vm2206_vm7 = vweird.f32 %v4496_v42 }
 0x74a   :  { %v2182_v19 = vsub.f32 1.0, %v2181_v30  ;;  %vm2207_vm9 = vmor %vm2205_vm8, %vm2206_vm7 }
 0x74b   :  { %v2202_v15 = vsub.f32 1.0, %v2201_v54 }
 0x74c   :  { %v2183_v60 = vmul.f32 %v4494_v52, %v2182_v19  ;;  %v2251_v9 = vpop.f32.mrf.mxu1 }
 0x74d   :  { %v2203_v21 = vmul.f32 %v4496_v42, %v2202_v15  ;;  %v2268_v57 = vadd.f32 %v2251_v9, %v2235_v6 }
 0x74e   :  { %v2184_v62 = vadd.f32 %v4494_v52, %v2183_v60 }
 0x74f   :  { %v4189_v17 = vmul.f32 -1.442695, %v2268_v57  ;;  %v2204_v24 = vadd.f32 %v4496_v42, %v2203_v21 }
 0x750   :  { %v2188_v8 = vsel %vm2187_vm5, %v4494_v52, %v2184_v62 }
 0x751   :  { %v2193_v20 = vsel %vm2190_vm6, %v2192_v3, %v2188_v8  ;;  %4497 = vpow2.f32 %v4189_v17  ;;  %v2208_v22 = vsel %vm2207_vm9, %v4496_v42, %v2204_v24  ;;  %v2237_v8 = vld [vmem:[#allocation2 + $0xac] sm:$0x3] }
 0x752   :  { %v2228_v18 = vmul.f32 %v2225_v7, %v2193_v20  ;;  %v2264_v27 = vpop.f32.mrf.mxu2  ;;  %v2213_v4 = vsel %vm2210_vm11, %v2212_v37, %v2208_v22 }
 0x753   :  { %v2288_v44 = vadd.f32 %v2264_v27, %v2236_v5  ;;  %v2317_v28 = vpop.f32.mrf.mxu3  ;;  %v2231_v10 = vsub.f32 1.0, %v2213_v4  ;;  %v2233_v51 = vmul.f32 %v2213_v4, %v5407_v46 }
 0x754   :  { %v2229_v13 = vadd.f32 %v2228_v18, %v2144_v26  ;;  %v2253_v31 = vpop.f32.mrf.mxu1  ;;  %v2318_v62 = vadd.f32 %v5433_v58, %v2317_v28 }
 0x755   :  { %v4190_v2 = vmul.f32 -1.442695, %v2288_v44  ;;  %v2344_v31 = vld [vmem:[#allocation2 + $0x14] sm:$0x3] }
 0x756   :  { %4499 = vtanh.f32 %v2229_v13 }
 0x757   :  { %v4498_v25 = vpop.eup %4497  ;;  %4501 = vpow2.f32 %v4190_v2  ;;  %v2345_v2 = vld [vmem:[#allocation2 + $0x34] sm:$0x3] }
 0x758   :  { %v2272_v48 = vadd.f32 1.0, %v4498_v25 }
 0x75a   :  { %4503 = vrcp.f32 %v2272_v48  ;;  %v2266_v38 = vpop.f32.mrf.mxu2  ;;  %v2284_v19 = vand.u32 2147483648, %v2272_v48  ;;  %v2282_v15 = vand.u32 2147483647, %v2272_v48  ;;  %vm2278_vm13 = vweird.f32 %v2272_v48 }
 0x75b   :  { %v2319_v11 = vpop.f32.mrf.mxu3 }
 0x75c   :  { %v4500_v45 = vpop.eup %4499  ;;  %v2285_v9 = vor.u32 1.1754944e-38, %v2284_v19  ;;  %vm2283_vm15 = vcmp.eq.f32.partialorder %v2282_v15, 8.507059e+37 }
 0x75d   :  { %v4502_v14 = vpop.eup %4501  ;;  %v2232_v12 = vmul.f32 %v4500_v45, %v2231_v10 }
 0x75e   :  { %v2292_v47 = vadd.f32 1.0, %v4502_v14 }
 0x75f   :  { %v5465_v16 = vadd.f32 %v2233_v51, %v2232_v12 }
 0x760   :  { %v4504_v40 = vpop.eup %4503  ;;  %4505 = vrcp.f32 %v2292_v47  ;;  %v2302_v7 = vand.u32 2147483647, %v2292_v47  ;;  %vm2298_vm2 = vweird.f32 %v2292_v47 }
 0x761   :  { %2329 = vst.msk [vmem:[#allocation3 + $0x12] sm:$0x3] %vm504_vm10, %v5465_v16  ;;  %v2274_v52 = vmul.f32 %v4504_v40, %v2272_v48  ;;  %v2347_v42 = vpack.c.bf16 %v5465_v16, %v5465_v16  ;;  %v2332_v30 = vmul.f32 %v5416_v50, %v5465_v16  ;;  %vm2279_vm12 = vweird.f32 %v4504_v40 }
 0x762   :  { %vm2280_vm14 = vmor %vm2278_vm13, %vm2279_vm12  ;;  %vm2303_vm5 = vcmp.eq.f32.partialorder %v2302_v7, 8.507059e+37 }
 0x763   :  { %v2275_v54 = vsub.f32 1.0, %v2274_v52  ;;  %4192 = vmatmul.msk.bf16.vlgmr.msrb.gmra.mxu0 %vm124_vm1, %v2347_v42  ;;  %4193 = vmatmul.msk.bf16.vlgmr.msrb.gmra.mxu1 %vm124_vm1, %v2347_v42  ;;  %v2333_v46 = vsel %vm504_vm10, %v2332_v30, 0.0 }
 0x764   :  { %4196 = vmatmul.msk.bf16.vlgmr.msra.gmra.mxu2 %vm124_vm1, %v2347_v42  ;;  %2334 = vadd.xlane.f32.xlu0 %v2333_v46  ;;  %v2438_v46 = vld [vmem:[#allocation2 + $0x8a] sm:$0x3] }
 0x765   :  { %v2276_v56 = vmul.f32 %v4504_v40, %v2275_v54  ;;  %2625 = vmatpush.bf16.msrb.mxu0 %v5303_v41  ;;  %2652 = vmatpush.bf16.msrb.mxu1 %v5372_v43 }
 0x766   :  { %v4506_v60 = vpop.eup %4505  ;;  %2665 = vmatpush.bf16.msra.mxu2 %v5307_v53  ;;  %v2304_v53 = vand.u32 2147483648, %v2292_v47 }
 0x767   :  { %v2294_v61 = vmul.f32 %v4506_v60, %v2292_v47  ;;  %v2277_v6 = vadd.f32 %v4504_v40, %v2276_v56  ;;  %vm2299_vm0 = vweird.f32 %v4506_v60 }
 0x768   :  { %vm2300_vm3 = vmor %vm2298_vm2, %vm2299_vm0  ;;  %v2305_v18 = vor.u32 1.1754944e-38, %v2304_v53 }
 0x769   :  { %v2295_v21 = vsub.f32 1.0, %v2294_v61  ;;  %v2281_v57 = vsel %vm2280_vm14, %v4504_v40, %v2277_v6  ;;  %2626 = vmatpush.bf16.msrb.mxu0 %v5310_v49  ;;  %2653 = vmatpush.bf16.msrb.mxu1 %v5378_v59 }
 0x76a   :  { %v2286_v41 = vsel %vm2283_vm15, %v2285_v9, %v2281_v57  ;;  %2666 = vmatpush.bf16.msra.mxu2 %v5314_v55 }
 0x76b   :  { %v2296_v3 = vmul.f32 %v4506_v60, %v2295_v21  ;;  %v2321_v17 = vmul.f32 %v2318_v62, %v2286_v41 }
 0x76d   :  { %v2297_v20 = vadd.f32 %v4506_v60, %v2296_v3  ;;  %v2322_v24 = vadd.f32 %v2321_v17, %v2237_v8  ;;  %v2437_v17 = vld [vmem:[#allocation2 + $0x6a] sm:$0x3] }
 0x76f   :  { %v2301_v0 = vsel %vm2300_vm3, %v4506_v60, %v2297_v20  ;;  %4507 = vtanh.f32 %v2322_v24  ;;  %v2346_v20 = vld [vmem:[#allocation2 + $0x54] sm:$0x3] }
 0x770   :  { %v2306_v49 = vsel %vm2303_vm5, %v2305_v18, %v2301_v0 }
 0x771   :  { %v2324_v5 = vsub.f32 1.0, %v2306_v49  ;;  %v2326_v55 = vmul.f32 %v2306_v49, %v5438_v63 }
 0x775   :  { %v4508_v27 = vpop.eup %4507 }
 0x776   :  { %v2325_v26 = vmul.f32 %v4508_v27, %v2324_v5 }
 0x778   :  { %v5485_v29 = vadd.f32 %v2326_v55, %v2325_v26 }
 0x77a   :  { %2331 = vst.msk [vmem:[#allocation3 + $0x2c] sm:$0x3] %vm504_vm10, %v5485_v29  ;;  %v2440_v44 = vpack.c.bf16 %v5485_v29, %v5485_v29  ;;  %v2338_v28 = vmul.f32 %v5447_v36, %v5485_v29 }
 0x77c   :  { %4197 = vmatmul.msk.bf16.vlgmr.msra.gmra.mxu3 %vm124_vm1, %v2440_v44  ;;  %4198 = vmatmul.msk.bf16.vlgmr.msra.gmra.mxu0 %vm124_vm1, %v2440_v44  ;;  %v2339_v13 = vsel %vm504_vm10, %v2338_v28, 0.0 }
 0x77d   :  { %4201 = vmatmul.msk.bf16.vlgmr.msra.gmra.mxu1 %vm124_vm1, %v2440_v44  ;;  %2340 = vadd.xlane.f32.xlu0 %v2339_v13 }
 0x77e   :  { %2718 = vmatpush.bf16.msra.mxu3 %v5332_v39  ;;  %2761 = vmatpush.bf16.msra.mxu0 %v5335_v32 }
 0x77f   :  { %2774 = vmatpush.bf16.msra.mxu1 %v5338_v23 }
 0x782   :  { %2719 = vmatpush.bf16.msra.mxu3 %v5341_v33  ;;  %2762 = vmatpush.bf16.msra.mxu0 %v5344_v34 }
 0x783   :  { %2775 = vmatpush.bf16.msra.mxu1 %v5347_v35 }
 0x7d7   :  { %v2335_v63 = vpop.xlane.xlu0 %2334 }
 0x7d8   :  { %2337 = vst.msk [vmem:[#allocation4 + $0x12] sm:$0x3] %vm515_vm4, %v2335_v63 }
 0x7e0   :  { %v2360_v22 = vpop.f32.mrf.mxu0  ;;  %v2373_v37 = vpop.f32.mrf.mxu1 }
 0x7e1   :  { %v2377_v25 = vadd.f32 %v2360_v22, %v2344_v31  ;;  %v2397_v4 = vadd.f32 %v2373_v37, %v2345_v2 }
 0x7e3   :  { %v4194_v39 = vmul.f32 -1.442695, %v2377_v25  ;;  %v4195_v48 = vmul.f32 -1.442695, %v2397_v4 }
 0x7e5   :  { %4509 = vpow2.f32 %v4194_v39 }
 0x7e6   :  { %4511 = vpow2.f32 %v4195_v48 }
 0x7e7   :  { %v2426_v32 = vpop.f32.mrf.mxu2 }
 0x7e8   :  { %v2362_v23 = vpop.f32.mrf.mxu0  ;;  %v2375_v33 = vpop.f32.mrf.mxu1  ;;  %v2427_v57 = vadd.f32 %v5355_v1, %v2426_v32 }
 0x7e9   :  { %v5521_v23 = vld [vmem:[#allocation5 + $0x28] sm:$0xff] }
 0x7eb   :  { %v4510_v38 = vpop.eup %4509 }
 0x7ec   :  { %v4512_v34 = vpop.eup %4511  ;;  %v2381_v10 = vadd.f32 1.0, %v4510_v38  ;;  %v5525_v38 = vld [vmem:[#allocation5 + $0x48] sm:$0xff] }
 0x7ed   :  { %v2401_v35 = vadd.f32 1.0, %v4512_v34 }
 0x7ee   :  { %4513 = vrcp.f32 %v2381_v10  ;;  %v2393_v42 = vand.u32 2147483648, %v2381_v10  ;;  %v2391_v54 = vand.u32 2147483647, %v2381_v10  ;;  %vm2387_vm7 = vweird.f32 %v2381_v10 }
 0x7ef   :  { %4515 = vrcp.f32 %v2401_v35  ;;  %v2428_v11 = vpop.f32.mrf.mxu2  ;;  %v2413_v3 = vand.u32 2147483648, %v2401_v35  ;;  %vm2407_vm12 = vweird.f32 %v2401_v35  ;;  %v2411_v8 = vand.u32 2147483647, %v2401_v35 }
 0x7f0   :  { %v2341_v45 = vpop.xlane.xlu0 %2340  ;;  %v2394_v6 = vor.u32 1.1754944e-38, %v2393_v42  ;;  %vm2392_vm9 = vcmp.eq.f32.partialorder %v2391_v54, 8.507059e+37  ;;  %v5528_v11 = vld [vmem:[#allocation5 + $0x20] sm:$0xff] }
 0x7f1   :  { %2343 = vst.msk [vmem:[#allocation4 + $0x2c] sm:$0x3] %vm515_vm4, %v2341_v45  ;;  %v2414_v26 = vor.u32 1.1754944e-38, %v2413_v3  ;;  %vm2412_vm14 = vcmp.eq.f32.partialorder %v2411_v8, 8.507059e+37  ;;  %v5556_v8 = vld [vmem:[#allocation5 + $0x18] sm:$0xff] }
 0x7f4   :  { %v4514_v14 = vpop.eup %4513 }
 0x7f5   :  { %v4516_v12 = vpop.eup %4515  ;;  %v2383_v51 = vmul.f32 %v4514_v14, %v2381_v10  ;;  %vm2388_vm6 = vweird.f32 %v4514_v14 }
 0x7f6   :  { %v2403_v47 = vmul.f32 %v4516_v12, %v2401_v35  ;;  %vm2389_vm8 = vmor %vm2387_vm7, %vm2388_vm6  ;;  %vm2408_vm11 = vweird.f32 %v4516_v12 }
 0x7f7   :  { %v2384_v40 = vsub.f32 1.0, %v2383_v51  ;;  %vm2409_vm13 = vmor %vm2407_vm12, %vm2408_vm11 }
 0x7f8   :  { %v2404_v52 = vsub.f32 1.0, %v2403_v47 }
 0x7f9   :  { %v2385_v30 = vmul.f32 %v4514_v14, %v2384_v40  ;;  %v2466_v19 = vpop.f32.mrf.mxu0 }
 0x7fa   :  { %v2405_v56 = vmul.f32 %v4516_v12, %v2404_v52  ;;  %v2490_v15 = vadd.f32 %v2466_v19, %v2438_v46  ;;  %v5505_v60 = vpop.f32.mrf.mxu1 }
 0x7fb   :  { %v2386_v61 = vadd.f32 %v4514_v14, %v2385_v30  ;;  %v2520_v52 = vadd.f32 %v5433_v58, %v5505_v60 }
 0x7fc   :  { %v4200_v9 = vmul.f32 -1.442695, %v2490_v15  ;;  %v2406_v62 = vadd.f32 %v4516_v12, %v2405_v56  ;;  %v2439_v56 = vld [vmem:[#allocation2 + $0xaa] sm:$0x3] }
 0x7fd   :  { %v2390_v21 = vsel %vm2389_vm8, %v4514_v14, %v2386_v61  ;;  %v5532_v14 = vld [vmem:[#allocation5 + $0x40] sm:$0xff] }
 0x7fe   :  { %v2395_v41 = vsel %vm2392_vm9, %v2394_v6, %v2390_v21  ;;  %4517 = vpow2.f32 %v4200_v9  ;;  %v2410_v49 = vsel %vm2409_vm13, %v4516_v12, %v2406_v62 }
 0x7ff   :  { %v2430_v53 = vmul.f32 %v2427_v57, %v2395_v41  ;;  %v2453_v7 = vpop.f32.mrf.mxu3  ;;  %v2415_v55 = vsel %vm2412_vm14, %v2414_v26, %v2410_v49  ;;  %v2547_v26 = vld [vmem:[#allocation2 + $0x36] sm:$0x3] }
 0x800   :  { %v2470_v24 = vadd.f32 %v2453_v7, %v2437_v17  ;;  %v2433_v13 = vsub.f32 1.0, %v2415_v55  ;;  %v2435_v2 = vmul.f32 %v2415_v55, %v5465_v16  ;;  %v5553_v7 = vld [vmem:[#allocation5 + $0x8] sm:$0xff] }
 0x801   :  { %v2431_v18 = vadd.f32 %v2430_v53, %v2346_v20  ;;  %v2468_v0 = vpop.f32.mrf.mxu0  ;;  %v5559_v20 = vld [vmem:[#allocation5 + $0x50] sm:$0xff] }
 0x802   :  { %v4199_v5 = vmul.f32 -1.442695, %v2470_v24  ;;  %v2521_v27 = vpop.f32.mrf.mxu1  ;;  %v5562_v24 = vld [vmem:[#allocation5] sm:$0xff] }
 0x803   :  { %4519 = vtanh.f32 %v2431_v18  ;;  %v5565_v18 = vld [vmem:[#allocation5 + $0x10] sm:$0xff] }
 0x804   :  { %v4518_v1 = vpop.eup %4517  ;;  %4521 = vpow2.f32 %v4199_v5  ;;  %v2546_v5 = vld [vmem:[#allocation2 + $0x16] sm:$0x3] }
 0x805   :  { %v2494_v44 = vadd.f32 1.0, %v4518_v1 }
 0x807   :  { %v2455_v28 = vpop.f32.mrf.mxu3  ;;  %4523 = vrcp.f32 %v2494_v44  ;;  %v2506_v54 = vand.u32 2147483648, %v2494_v44  ;;  %vm2500_vm6 = vweird.f32 %v2494_v44  ;;  %v2504_v19 = vand.u32 2147483647, %v2494_v44 }
 0x809   :  { %v4520_v63 = vpop.eup %4519  ;;  %v2507_v6 = vor.u32 1.1754944e-38, %v2506_v54  ;;  %vm2505_vm8 = vcmp.eq.f32.partialorder %v2504_v19, 8.507059e+37  ;;  %v5573_v54 = vld [vmem:[%s5960_s4] ss:$0 sm:$0xff] }
 0x80a   :  { %v4522_v31 = vpop.eup %4521  ;;  %v2434_v22 = vmul.f32 %v4520_v63, %v2433_v13 }
 0x80b   :  { %v2474_v37 = vadd.f32 1.0, %v4522_v31 }
 0x80c   :  { %v5509_v25 = vadd.f32 %v2435_v2, %v2434_v22 }
 0x80d   :  { %4525 = vrcp.f32 %v2474_v37  ;;  %v4524_v4 = vpop.eup %4523  ;;  %v2486_v45 = vand.u32 2147483648, %v2474_v37  ;;  %v2484_v12 = vand.u32 2147483647, %v2474_v37  ;;  %vm2480_vm0 = vweird.f32 %v2474_v37 }
 0x80e   :  { %2531 = vst.msk [vmem:[#allocation3 + $0x14] sm:$0x3] %vm504_vm10, %v5509_v25  ;;  %v2549_v39 = vpack.c.bf16 %v5509_v25, %v5509_v25  ;;  %v2534_v48 = vmul.f32 %v5416_v50, %v5509_v25  ;;  %v2496_v32 = vmul.f32 %v4524_v4, %v2494_v44  ;;  %vm2501_vm5 = vweird.f32 %v4524_v4 }
 0x80f   :  { %v2487_v40 = vor.u32 1.1754944e-38, %v2486_v45  ;;  %vm2485_vm3 = vcmp.eq.f32.partialorder %v2484_v12, 8.507059e+37  ;;  %vm2502_vm7 = vmor %vm2500_vm6, %vm2501_vm5 }
 0x810   :  { %4202 = vmatmul.msk.bf16.vlgmr.msrb.gmra.mxu2 %vm124_vm1, %v2549_v39  ;;  %4203 = vmatmul.msk.bf16.vlgmr.msrb.gmra.mxu3 %vm124_vm1, %v2549_v39  ;;  %v2535_v16 = vsel %vm504_vm10, %v2534_v48, 0.0  ;;  %v2497_v10 = vsub.f32 1.0, %v2496_v32 }
 0x811   :  { %4206 = vmatmul.msk.bf16.vlgmr.msrb.gmra.mxu0 %vm124_vm1, %v2549_v39  ;;  %2536 = vadd.xlane.f32.xlu1 %v2535_v16 }
 0x812   :  { %2827 = vmatpush.bf16.msrb.mxu2 %v5521_v23  ;;  %2854 = vmatpush.bf16.msrb.mxu3 %v5372_v43  ;;  %v2498_v51 = vmul.f32 %v4524_v4, %v2497_v10 }
 0x813   :  { %v4526_v33 = vpop.eup %4525  ;;  %2867 = vmatpush.bf16.msrb.mxu0 %v5525_v38 }
 0x814   :  { %v2476_v34 = vmul.f32 %v4526_v33, %v2474_v37  ;;  %vm2481_vm15 = vweird.f32 %v4526_v33  ;;  %v2499_v30 = vadd.f32 %v4524_v4, %v2498_v51  ;;  %v2639_v51 = vld [vmem:[#allocation2 + $0x68] sm:$0x3] }
 0x815   :  { %vm2482_vm2 = vmor %vm2480_vm0, %vm2481_vm15 }
 0x816   :  { %v2477_v35 = vsub.f32 1.0, %v2476_v34  ;;  %2828 = vmatpush.bf16.msrb.mxu2 %v5528_v11  ;;  %2855 = vmatpush.bf16.msrb.mxu3 %v5378_v59  ;;  %v2503_v61 = vsel %vm2502_vm7, %v4524_v4, %v2499_v30 }
 0x817   :  { %2868 = vmatpush.bf16.msrb.mxu0 %v5532_v14  ;;  %v2508_v9 = vsel %vm2505_vm8, %v2507_v6, %v2503_v61 }
 0x818   :  { %v2478_v43 = vmul.f32 %v4526_v33, %v2477_v35  ;;  %v2526_v21 = vsub.f32 1.0, %v2508_v9  ;;  %v2528_v60 = vmul.f32 %v2508_v9, %v5485_v29  ;;  %v5550_v29 = vld [vmem:[#allocation5 + $0x58] sm:$0xff]  ;;  %v2640_v9 = vld [vmem:[#allocation2 + $0x88] sm:$0x3] }
 0x81a   :  { %v2479_v47 = vadd.f32 %v4526_v33, %v2478_v43 }
 0x81c   :  { %v2483_v42 = vsel %vm2482_vm2, %v4526_v33, %v2479_v47 }
 0x81d   :  { %v2488_v59 = vsel %vm2485_vm3, %v2487_v40, %v2483_v42 }
 0x81e   :  { %v2523_v46 = vmul.f32 %v2520_v52, %v2488_v59 }
 0x820   :  { %v2524_v15 = vadd.f32 %v2523_v46, %v2439_v56 }
 0x822   :  { %4527 = vtanh.f32 %v2524_v15 }
 0x828   :  { %v4528_v57 = vpop.eup %4527 }
 0x829   :  { %v2527_v62 = vmul.f32 %v4528_v57, %v2526_v21  ;;  %v2548_v57 = vld [vmem:[#allocation2 + $0x56] sm:$0x3] }
 0x82b   :  { %v5538_v41 = vadd.f32 %v2528_v60, %v2527_v62 }
 0x82d   :  { %2533 = vst.msk [vmem:[#allocation3 + $0x2a] sm:$0x3] %vm504_vm10, %v5538_v41  ;;  %v2642_v3 = vpack.c.bf16 %v5538_v41, %v5538_v41  ;;  %v2540_v53 = vmul.f32 %v5447_v36, %v5538_v41 }
 0x82f   :  { %4207 = vmatmul.msk.bf16.vlgmr.msrb.gmra.mxu1 %vm124_vm1, %v2642_v3  ;;  %4208 = vmatmul.msk.bf16.vlgmr.msra.gmra.mxu2 %vm124_vm1, %v2642_v3  ;;  %v2541_v17 = vsel %vm504_vm10, %v2540_v53, 0.0 }
 0x830   :  { %4211 = vmatmul.msk.bf16.vlgmr.msra.gmra.mxu3 %vm124_vm1, %v2642_v3  ;;  %2542 = vadd.xlane.f32.xlu1 %v2541_v17 }
 0x831   :  { %2920 = vmatpush.bf16.msrb.mxu1 %v5550_v29  ;;  %2963 = vmatpush.bf16.msra.mxu2 %v5553_v7 }
 0x832   :  { %2976 = vmatpush.bf16.msra.mxu3 %v5556_v8 }
 0x835   :  { %2921 = vmatpush.bf16.msrb.mxu1 %v5559_v20  ;;  %2964 = vmatpush.bf16.msra.mxu2 %v5562_v24 }
 0x836   :  { %2977 = vmatpush.bf16.msra.mxu3 %v5565_v18 }
 0x884   :  { %v2537_v0 = vpop.xlane.xlu1 %2536 }
 0x885   :  { %2539 = vst.msk [vmem:[#allocation4 + $0x14] sm:$0x3] %vm515_vm4, %v2537_v0 }
 0x88e   :  { %v2628_v49 = vpop.f32.mrf.mxu0 }
 0x88f   :  { %v2629_v46 = vadd.f32 %v5573_v54, %v2628_v49 }
 0x893   :  { %v2562_v27 = vpop.f32.mrf.mxu2  ;;  %v2575_v1 = vpop.f32.mrf.mxu3 }
 0x894   :  { %v2579_v55 = vadd.f32 %v2562_v27, %v2546_v5  ;;  %v2599_v44 = vadd.f32 %v2575_v1, %v2547_v26 }
 0x896   :  { %v4204_v28 = vmul.f32 -1.442695, %v2579_v55  ;;  %v4205_v13 = vmul.f32 -1.442695, %v2599_v44  ;;  %v2630_v63 = vpop.f32.mrf.mxu0 }
 0x898   :  { %4529 = vpow2.f32 %v4204_v28 }
 0x899   :  { %4531 = vpow2.f32 %v4205_v13 }
 0x89b   :  { %v2564_v31 = vpop.f32.mrf.mxu2  ;;  %v2577_v22 = vpop.f32.mrf.mxu3 }
 0x89e   :  { %v4530_v2 = vpop.eup %4529 }
 0x89f   :  { %v4532_v37 = vpop.eup %4531  ;;  %v2583_v4 = vadd.f32 1.0, %v4530_v2 }
 0x8a0   :  { %v2603_v39 = vadd.f32 1.0, %v4532_v37 }
 0x8a1   :  { %4533 = vrcp.f32 %v2583_v4  ;;  %v2595_v35 = vand.u32 2147483648, %v2583_v4  ;;  %v2593_v12 = vand.u32 2147483647, %v2583_v4  ;;  %vm2589_vm11 = vweird.f32 %v2583_v4 }
 0x8a2   :  { %4535 = vrcp.f32 %v2603_v39  ;;  %v2615_v6 = vand.u32 2147483648, %v2603_v39  ;;  %vm2609_vm15 = vweird.f32 %v2603_v39  ;;  %v2613_v60 = vand.u32 2147483647, %v2603_v39 }
 0x8a3   :  { %v2543_v48 = vpop.xlane.xlu1 %2542  ;;  %v2596_v30 = vor.u32 1.1754944e-38, %v2595_v35  ;;  %vm2594_vm13 = vcmp.eq.f32.partialorder %v2593_v12, 8.507059e+37  ;;  %v5590_v35 = vld [vmem:[#allocation5 + $0x38] sm:$0xff] }
 0x8a4   :  { %2545 = vst.msk [vmem:[#allocation4 + $0x2a] sm:$0x3] %vm515_vm4, %v2543_v48  ;;  %v2616_v5 = vor.u32 1.1754944e-38, %v2615_v6  ;;  %vm2614_vm2 = vcmp.eq.f32.partialorder %v2613_v60, 8.507059e+37 }
 0x8a7   :  { %v4534_v16 = vpop.eup %4533 }
 0x8a8   :  { %v4536_v32 = vpop.eup %4535  ;;  %v2585_v33 = vmul.f32 %v4534_v16, %v2583_v4  ;;  %vm2590_vm9 = vweird.f32 %v4534_v16 }
 0x8a9   :  { %v2605_v34 = vmul.f32 %v4536_v32, %v2603_v39  ;;  %vm2591_vm12 = vmor %vm2589_vm11, %vm2590_vm9  ;;  %vm2610_vm14 = vweird.f32 %v4536_v32 }
 0x8aa   :  { %v2586_v10 = vsub.f32 1.0, %v2585_v33  ;;  %vm2611_vm0 = vmor %vm2609_vm15, %vm2610_vm14 }
 0x8ab   :  { %v2606_v45 = vsub.f32 1.0, %v2605_v34 }
 0x8ac   :  { %v2587_v43 = vmul.f32 %v4534_v16, %v2586_v10  ;;  %v2655_v47 = vpop.f32.mrf.mxu1 }
 0x8ad   :  { %v2607_v40 = vmul.f32 %v4536_v32, %v2606_v45  ;;  %v2672_v52 = vadd.f32 %v2655_v47, %v2639_v51 }
 0x8ae   :  { %v2588_v42 = vadd.f32 %v4534_v16, %v2587_v43 }
 0x8af   :  { %v4209_v59 = vmul.f32 -1.442695, %v2672_v52  ;;  %v2608_v15 = vadd.f32 %v4536_v32, %v2607_v40  ;;  %v5596_v52 = vld [vmem:[#allocation5 + $0x30] sm:$0xff] }
 0x8b0   :  { %v2592_v19 = vsel %vm2591_vm12, %v4534_v16, %v2588_v42 }
 0x8b1   :  { %v2597_v56 = vsel %vm2594_vm13, %v2596_v30, %v2592_v19  ;;  %4537 = vpow2.f32 %v4209_v59  ;;  %v2612_v0 = vsel %vm2611_vm0, %v4536_v32, %v2608_v15 }
 0x8b2   :  { %v2632_v61 = vmul.f32 %v2629_v46, %v2597_v56  ;;  %v2668_v21 = vpop.f32.mrf.mxu2  ;;  %v2617_v26 = vsel %vm2614_vm2, %v2616_v5, %v2612_v0  ;;  %v2641_v56 = vld [vmem:[#allocation2 + $0xa8] sm:$0x3]  ;;  %v2749_v5 = vld [vmem:[#allocation2 + $0x38] sm:$0x3] }
 0x8b3   :  { %v2692_v62 = vadd.f32 %v2668_v21, %v2640_v9  ;;  %v2721_v3 = vpop.f32.mrf.mxu3  ;;  %v2635_v44 = vsub.f32 1.0, %v2617_v26  ;;  %v2637_v22 = vmul.f32 %v2617_v26, %v5509_v25 }
 0x8b4   :  { %v2633_v53 = vadd.f32 %v2632_v61, %v2548_v57  ;;  %v2657_v17 = vpop.f32.mrf.mxu1  ;;  %v2722_v40 = vadd.f32 %v5433_v58, %v2721_v3 }
 0x8b5   :  { %v4210_v49 = vmul.f32 -1.442695, %v2692_v62 }
 0x8b6   :  { %4539 = vtanh.f32 %v2633_v53 }
 0x8b7   :  { %v4538_v27 = vpop.eup %4537  ;;  %4541 = vpow2.f32 %v4210_v49 }
 0x8b8   :  { %v2676_v1 = vadd.f32 1.0, %v4538_v27 }
 0x8ba   :  { %4543 = vrcp.f32 %v2676_v1  ;;  %v2670_v55 = vpop.f32.mrf.mxu2  ;;  %v2688_v33 = vand.u32 2147483648, %v2676_v1  ;;  %v2686_v10 = vand.u32 2147483647, %v2676_v1  ;;  %vm2682_vm5 = vweird.f32 %v2676_v1 }
 0x8bb   :  { %v2723_v28 = vpop.f32.mrf.mxu3 }
 0x8bc   :  { %v4540_v13 = vpop.eup %4539  ;;  %v2689_v12 = vor.u32 1.1754944e-38, %v2688_v33  ;;  %vm2687_vm7 = vcmp.eq.f32.partialorder %v2686_v10, 8.507059e+37 }
 0x8bd   :  { %v4542_v63 = vpop.eup %4541  ;;  %v2636_v31 = vmul.f32 %v4540_v13, %v2635_v44 }
 0x8be   :  { %v2696_v2 = vadd.f32 1.0, %v4542_v63 }
 0x8bf   :  { %v5577_v37 = vadd.f32 %v2637_v22, %v2636_v31 }
 0x8c0   :  { %v4544_v4 = vpop.eup %4543  ;;  %4545 = vrcp.f32 %v2696_v2  ;;  %v2708_v59 = vand.u32 2147483648, %v2696_v2  ;;  %v2706_v19 = vand.u32 2147483647, %v2696_v2  ;;  %vm2702_vm9 = vweird.f32 %v2696_v2 }
 0x8c1   :  { %2733 = vst.msk [vmem:[#allocation3 + $0x16] sm:$0x3] %vm504_vm10, %v5577_v37  ;;  %v2678_v39 = vmul.f32 %v4544_v4, %v2676_v1  ;;  %v2751_v48 = vpack.c.bf16 %v5577_v37, %v5577_v37  ;;  %v2736_v16 = vmul.f32 %v5416_v50, %v5577_v37  ;;  %vm2683_vm3 = vweird.f32 %v4544_v4 }
 0x8c2   :  { %vm2684_vm6 = vmor %vm2682_vm5, %vm2683_vm3  ;;  %v2709_v58 = vor.u32 1.1754944e-38, %v2708_v59  ;;  %vm2707_vm12 = vcmp.eq.f32.partialorder %v2706_v19, 8.507059e+37 }
 0x8c3   :  { %v2679_v32 = vsub.f32 1.0, %v2678_v39  ;;  %4212 = vmatmul.msk.bf16.vlgmr.msra.gmra.mxu0 %vm124_vm1, %v2751_v48  ;;  %4213 = vmatmul.msk.bf16.vlgmr.msra.gmra.mxu1 %vm124_vm1, %v2751_v48  ;;  %v2737_v25 = vsel %vm504_vm10, %v2736_v16, 0.0 }
 0x8c4   :  { %4216 = vmatmul.msk.bf16.vlgmr.msrb.gmra.mxu2 %vm124_vm1, %v2751_v48  ;;  %2738 = vadd.xlane.f32.xlu2 %v2737_v25 }
 0x8c5   :  { %v2680_v34 = vmul.f32 %v4544_v4, %v2679_v32  ;;  %3029 = vmatpush.bf16.msra.mxu0 %v5521_v23  ;;  %3056 = vmatpush.bf16.msra.mxu1 %v5590_v35 }
 0x8c6   :  { %v4546_v50 = vpop.eup %4545  ;;  %3069 = vmatpush.bf16.msrb.mxu2 %v5525_v38 }
 0x8c7   :  { %v2698_v45 = vmul.f32 %v4546_v50, %v2696_v2  ;;  %v2681_v43 = vadd.f32 %v4544_v4, %v2680_v34  ;;  %vm2703_vm8 = vweird.f32 %v4546_v50 }
 0x8c8   :  { %vm2704_vm11 = vmor %vm2702_vm9, %vm2703_vm8 }
 0x8c9   :  { %v2699_v51 = vsub.f32 1.0, %v2698_v45  ;;  %v2685_v47 = vsel %vm2684_vm6, %v4544_v4, %v2681_v43  ;;  %3030 = vmatpush.bf16.msra.mxu0 %v5528_v11  ;;  %3057 = vmatpush.bf16.msra.mxu1 %v5596_v52 }
 0x8ca   :  { %v2690_v42 = vsel %vm2687_vm7, %v2689_v12, %v2685_v47  ;;  %3070 = vmatpush.bf16.msrb.mxu2 %v5532_v14  ;;  %v2842_v12 = vld [vmem:[#allocation2 + $0x86] sm:$0x3] }
 0x8cb   :  { %v2700_v30 = vmul.f32 %v4546_v50, %v2699_v51  ;;  %v2725_v46 = vmul.f32 %v2722_v40, %v2690_v42 }
 0x8cd   :  { %v2701_v15 = vadd.f32 %v4546_v50, %v2700_v30  ;;  %v2726_v61 = vadd.f32 %v2725_v46, %v2641_v56 }
 0x8cf   :  { %v2705_v6 = vsel %vm2704_vm11, %v4546_v50, %v2701_v15  ;;  %4547 = vtanh.f32 %v2726_v61 }
 0x8d0   :  { %v2710_v9 = vsel %vm2707_vm12, %v2709_v58, %v2705_v6 }
 0x8d1   :  { %v2728_v21 = vsub.f32 1.0, %v2710_v9  ;;  %v2730_v62 = vmul.f32 %v2710_v9, %v5538_v41  ;;  %v2748_v41 = vld [vmem:[#allocation2 + $0x18] sm:$0x3]  ;;  %v2841_v9 = vld [vmem:[#allocation2 + $0x66] sm:$0x3] }
 0x8d5   :  { %v4548_v57 = vpop.eup %4547 }
 0x8d6   :  { %v2729_v60 = vmul.f32 %v4548_v57, %v2728_v21 }
 0x8d8   :  { %v5601_v3 = vadd.f32 %v2730_v62, %v2729_v60  ;;  %v2750_v60 = vld [vmem:[#allocation2 + $0x58] sm:$0x3] }
 0x8da   :  { %2735 = vst.msk [vmem:[#allocation3 + $0x28] sm:$0x3] %vm504_vm10, %v5601_v3  ;;  %v2844_v53 = vpack.c.bf16 %v5601_v3, %v5601_v3  ;;  %v2742_v17 = vmul.f32 %v5447_v36, %v5601_v3 }
 0x8dc   :  { %4217 = vmatmul.msk.bf16.vlgmr.msrb.gmra.mxu3 %vm124_vm1, %v2844_v53  ;;  %4218 = vmatmul.msk.bf16.vlgmr.msrb.gmra.mxu0 %vm124_vm1, %v2844_v53  ;;  %v2743_v0 = vsel %vm504_vm10, %v2742_v17, 0.0 }
 0x8dd   :  { %4221 = vmatmul.msk.bf16.vlgmr.msrb.gmra.mxu1 %vm124_vm1, %v2844_v53  ;;  %2744 = vadd.xlane.f32.xlu2 %v2743_v0 }
 0x8de   :  { %3122 = vmatpush.bf16.msrb.mxu3 %v5550_v29  ;;  %3165 = vmatpush.bf16.msrb.mxu0 %v5553_v7 }
 0x8df   :  { %3178 = vmatpush.bf16.msrb.mxu1 %v5556_v8 }
 0x8e2   :  { %3123 = vmatpush.bf16.msrb.mxu3 %v5559_v20  ;;  %3166 = vmatpush.bf16.msrb.mxu0 %v5562_v24 }
 0x8e3   :  { %3179 = vmatpush.bf16.msrb.mxu1 %v5565_v18 }
 0x937   :  { %v2739_v36 = vpop.xlane.xlu2 %2738 }
 0x938   :  { %2741 = vst.msk [vmem:[#allocation4 + $0x16] sm:$0x3] %vm515_vm4, %v2739_v36 }
 0x940   :  { %v2764_v49 = vpop.f32.mrf.mxu0  ;;  %v2777_v27 = vpop.f32.mrf.mxu1 }
 0x941   :  { %v2781_v26 = vadd.f32 %v2764_v49, %v2748_v41  ;;  %v2801_v1 = vadd.f32 %v2777_v27, %v2749_v5 }
 0x943   :  { %v4214_v55 = vmul.f32 -1.442695, %v2781_v26  ;;  %v4215_v44 = vmul.f32 -1.442695, %v2801_v1 }
 0x945   :  { %4549 = vpow2.f32 %v4214_v55 }
 0x946   :  { %4551 = vpow2.f32 %v4215_v44 }
 0x947   :  { %v2830_v28 = vpop.f32.mrf.mxu2 }
 0x948   :  { %v2766_v13 = vpop.f32.mrf.mxu0  ;;  %v2779_v63 = vpop.f32.mrf.mxu1  ;;  %v2831_v56 = vadd.f32 %v5573_v54, %v2830_v28 }
 0x94b   :  { %v4550_v31 = vpop.eup %4549 }
 0x94c   :  { %v4552_v22 = vpop.eup %4551  ;;  %v2785_v2 = vadd.f32 1.0, %v4550_v31 }
 0x94d   :  { %v2805_v4 = vadd.f32 1.0, %v4552_v22 }
 0x94e   :  { %4553 = vrcp.f32 %v2785_v2  ;;  %v2797_v50 = vand.u32 2147483648, %v2785_v2  ;;  %v2795_v43 = vand.u32 2147483647, %v2785_v2  ;;  %vm2791_vm14 = vweird.f32 %v2785_v2 }
 0x94f   :  { %4555 = vrcp.f32 %v2805_v4  ;;  %v2832_v39 = vpop.f32.mrf.mxu2  ;;  %v2817_v58 = vand.u32 2147483648, %v2805_v4  ;;  %vm2811_vm3 = vweird.f32 %v2805_v4  ;;  %v2815_v57 = vand.u32 2147483647, %v2805_v4 }
 0x950   :  { %v2745_v48 = vpop.xlane.xlu2 %2744  ;;  %v2798_v59 = vor.u32 1.1754944e-38, %v2797_v50  ;;  %vm2796_vm0 = vcmp.eq.f32.partialorder %v2795_v43, 8.507059e+37  ;;  %v5634_v39 = vld [vmem:[%s5961_s5] ss:$0 sm:$0xff] }
 0x951   :  { %2747 = vst.msk [vmem:[#allocation4 + $0x28] sm:$0x3] %vm515_vm4, %v2745_v48  ;;  %v2818_v49 = vor.u32 1.1754944e-38, %v2817_v58  ;;  %vm2816_vm6 = vcmp.eq.f32.partialorder %v2815_v57, 8.507059e+37 }
 0x954   :  { %v4554_v16 = vpop.eup %4553 }
 0x955   :  { %v4556_v32 = vpop.eup %4555  ;;  %v2787_v25 = vmul.f32 %v4554_v16, %v2785_v2  ;;  %vm2792_vm13 = vweird.f32 %v4554_v16 }
 0x956   :  { %v2807_v33 = vmul.f32 %v4556_v32, %v2805_v4  ;;  %vm2793_vm15 = vmor %vm2791_vm14, %vm2792_vm13  ;;  %vm2812_vm2 = vweird.f32 %v4556_v32 }
 0x957   :  { %v2788_v34 = vsub.f32 1.0, %v2787_v25  ;;  %vm2813_vm5 = vmor %vm2811_vm3, %vm2812_vm2 }
 0x958   :  { %v2808_v10 = vsub.f32 1.0, %v2807_v33 }
 0x959   :  { %v2789_v45 = vmul.f32 %v4554_v16, %v2788_v34  ;;  %v2870_v51 = vpop.f32.mrf.mxu0 }
 0x95a   :  { %v2809_v47 = vmul.f32 %v4556_v32, %v2808_v10  ;;  %v2894_v40 = vadd.f32 %v2870_v51, %v2842_v12  ;;  %v5621_v42 = vpop.f32.mrf.mxu1 }
 0x95b   :  { %v2790_v30 = vadd.f32 %v4554_v16, %v2789_v45 }
 0x95c   :  { %v4220_v46 = vmul.f32 -1.442695, %v2894_v40  ;;  %v2810_v15 = vadd.f32 %v4556_v32, %v2809_v47  ;;  %v5651_v47 = vld [vmem:[%s5960_s4 + $0x1] ss:$0 sm:$0xff] }
 0x95d   :  { %v2794_v19 = vsel %vm2793_vm15, %v4554_v16, %v2790_v30  ;;  %v2924_v40 = vadd.f32 %v5651_v47, %v5621_v42 }
 0x95e   :  { %v2799_v61 = vsel %vm2796_vm0, %v2798_v59, %v2794_v19  ;;  %4557 = vpow2.f32 %v4220_v46  ;;  %v2814_v0 = vsel %vm2813_vm5, %v4556_v32, %v2810_v15 }
 0x95f   :  { %v2834_v6 = vmul.f32 %v2831_v56, %v2799_v61  ;;  %v2857_v21 = vpop.f32.mrf.mxu3  ;;  %v2819_v27 = vsel %vm2816_vm6, %v2818_v49, %v2814_v0  ;;  %v2843_v61 = vld [vmem:[#allocation2 + $0xa6] sm:$0x3]  ;;  %v5665_v0 = vld [vmem:[%s5961_s5 + $0x1] ss:$0 sm:$0xff] }
 0x960   :  { %v2874_v62 = vadd.f32 %v2857_v21, %v2841_v9  ;;  %v2837_v55 = vsub.f32 1.0, %v2819_v27  ;;  %v2839_v63 = vmul.f32 %v2819_v27, %v5577_v37 }
 0x961   :  { %v2835_v53 = vadd.f32 %v2834_v6, %v2750_v60  ;;  %v2872_v17 = vpop.f32.mrf.mxu0 }
 0x962   :  { %v4219_v36 = vmul.f32 -1.442695, %v2874_v62  ;;  %v2925_v41 = vpop.f32.mrf.mxu1 }
 0x963   :  { %4559 = vtanh.f32 %v2835_v53 }
 0x964   :  { %v4558_v5 = vpop.eup %4557  ;;  %4561 = vpow2.f32 %v4219_v36 }
 0x965   :  { %v2898_v26 = vadd.f32 1.0, %v4558_v5  ;;  %v2950_v5 = vld [vmem:[#allocation2 + $0x1a] sm:$0x3] }
 0x967   :  { %v2859_v1 = vpop.f32.mrf.mxu3  ;;  %4563 = vrcp.f32 %v2898_v26  ;;  %v2910_v19 = vand.u32 2147483648, %v2898_v26  ;;  %vm2904_vm13 = vweird.f32 %v2898_v26  ;;  %v2908_v15 = vand.u32 2147483647, %v2898_v26 }
 0x969   :  { %v4560_v44 = vpop.eup %4559  ;;  %v2911_v9 = vor.u32 1.1754944e-38, %v2910_v19  ;;  %vm2909_vm15 = vcmp.eq.f32.partialorder %v2908_v15, 8.507059e+37 }
 0x96a   :  { %v4562_v28 = vpop.eup %4561  ;;  %v2838_v13 = vmul.f32 %v4560_v44, %v2837_v55 }
 0x96b   :  { %v2878_v31 = vadd.f32 1.0, %v4562_v28 }
 0x96c   :  { %v5625_v22 = vadd.f32 %v2839_v63, %v2838_v13 }
 0x96d   :  { %4565 = vrcp.f32 %v2878_v31  ;;  %v4564_v2 = vpop.eup %4563  ;;  %v2890_v10 = vand.u32 2147483648, %v2878_v31  ;;  %v2888_v45 = vand.u32 2147483647, %v2878_v31  ;;  %vm2884_vm8 = vweird.f32 %v2878_v31 }
 0x96e   :  { %2935 = vst.msk [vmem:[#allocation3 + $0x18] sm:$0x3] %vm504_vm10, %v5625_v22  ;;  %v2953_v4 = vpack.c.bf16 %v5625_v22, %v5625_v22  ;;  %v2938_v48 = vmul.f32 %v5634_v39, %v5625_v22  ;;  %v2900_v16 = vmul.f32 %v4564_v2, %v2898_v26  ;;  %vm2905_vm12 = vweird.f32 %v4564_v2  ;;  %v2951_v26 = vld [vmem:[#allocation2 + $0x3a] sm:$0x3] }
 0x96f   :  { %v2891_v51 = vor.u32 1.1754944e-38, %v2890_v10  ;;  %vm2889_vm11 = vcmp.eq.f32.partialorder %v2888_v45, 8.507059e+37  ;;  %vm2906_vm14 = vmor %vm2904_vm13, %vm2905_vm12  ;;  %v3043_v45 = vld [vmem:[#allocation2 + $0x64] sm:$0x3] }
 0x970   :  { %4222 = vmatmul.msk.bf16.vlgmr.msra.gmra.mxu2 %vm124_vm1, %v2953_v4  ;;  %4223 = vmatmul.msk.bf16.vlgmr.msra.gmra.mxu3 %vm124_vm1, %v2953_v4  ;;  %v2939_v37 = vsel %vm504_vm10, %v2938_v48, 0.0  ;;  %v2901_v33 = vsub.f32 1.0, %v2900_v16 }
 0x971   :  { %4226 = vmatmul.msk.bf16.vlgmr.msra.gmra.mxu0 %vm124_vm1, %v2953_v4  ;;  %2940 = vadd.xlane.f32.xlu1 %v2939_v37 }
 0x972   :  { %3231 = vmatpush.bf16.msra.mxu2 %v5521_v23  ;;  %3258 = vmatpush.bf16.msra.mxu3 %v5590_v35  ;;  %v2902_v43 = vmul.f32 %v4564_v2, %v2901_v33 }
 0x973   :  { %v4566_v32 = vpop.eup %4565  ;;  %3271 = vmatpush.bf16.msra.mxu0 %v5525_v38 }
 0x974   :  { %v2880_v25 = vmul.f32 %v4566_v32, %v2878_v31  ;;  %vm2885_vm7 = vweird.f32 %v4566_v32  ;;  %v2903_v59 = vadd.f32 %v4564_v2, %v2902_v43 }
 0x975   :  { %vm2886_vm9 = vmor %vm2884_vm8, %vm2885_vm7 }
 0x976   :  { %v2881_v34 = vsub.f32 1.0, %v2880_v25  ;;  %3232 = vmatpush.bf16.msra.mxu2 %v5528_v11  ;;  %3259 = vmatpush.bf16.msra.mxu3 %v5596_v52  ;;  %v2907_v6 = vsel %vm2906_vm14, %v4564_v2, %v2903_v59 }
 0x977   :  { %3272 = vmatpush.bf16.msra.mxu0 %v5532_v14  ;;  %v2912_v21 = vsel %vm2909_vm15, %v2911_v9, %v2907_v6  ;;  %v3044_v6 = vld [vmem:[#allocation2 + $0x84] sm:$0x3] }
 0x978   :  { %v2882_v50 = vmul.f32 %v4566_v32, %v2881_v34  ;;  %v2930_v57 = vsub.f32 1.0, %v2912_v21  ;;  %v2932_v42 = vmul.f32 %v2912_v21, %v5601_v3  ;;  %v2952_v21 = vld [vmem:[#allocation2 + $0x5a] sm:$0x3] }
 0x97a   :  { %v2883_v12 = vadd.f32 %v4566_v32, %v2882_v50 }
 0x97c   :  { %v2887_v30 = vsel %vm2886_vm9, %v4566_v32, %v2883_v12 }
 0x97d   :  { %v2892_v46 = vsel %vm2889_vm11, %v2891_v51, %v2887_v30 }
 0x97e   :  { %v2927_v56 = vmul.f32 %v2924_v40, %v2892_v46 }
 0x980   :  { %v2928_v58 = vadd.f32 %v2927_v56, %v2843_v61 }
 0x982   :  { %4567 = vtanh.f32 %v2928_v58 }
 0x988   :  { %v4568_v60 = vpop.eup %4567 }
 0x989   :  { %v2931_v62 = vmul.f32 %v4568_v60, %v2930_v57 }
 0x98b   :  { %v5656_v53 = vadd.f32 %v2932_v42, %v2931_v62 }
 0x98d   :  { %2937 = vst.msk [vmem:[#allocation3 + $0x26] sm:$0x3] %vm504_vm10, %v5656_v53  ;;  %v3046_v17 = vpack.c.bf16 %v5656_v53, %v5656_v53  ;;  %v2944_v36 = vmul.f32 %v5665_v0, %v5656_v53 }
 0x98f   :  { %4227 = vmatmul.msk.bf16.vlgmr.msra.gmra.mxu1 %vm124_vm1, %v3046_v17  ;;  %4228 = vmatmul.msk.bf16.vlgmr.msrb.gmra.mxu2 %vm124_vm1, %v3046_v17  ;;  %v2945_v3 = vsel %vm504_vm10, %v2944_v36, 0.0 }
 0x990   :  { %4231 = vmatmul.msk.bf16.vlgmr.msrb.gmra.mxu3 %vm124_vm1, %v3046_v17  ;;  %2946 = vadd.xlane.f32.xlu0 %v2945_v3 }
 0x991   :  { %3324 = vmatpush.bf16.msra.mxu1 %v5550_v29  ;;  %3367 = vmatpush.bf16.msrb.mxu2 %v5553_v7 }
 0x992   :  { %3380 = vmatpush.bf16.msrb.mxu3 %v5556_v8 }
 0x995   :  { %3325 = vmatpush.bf16.msra.mxu1 %v5559_v20  ;;  %3368 = vmatpush.bf16.msrb.mxu2 %v5562_v24 }
 0x996   :  { %3381 = vmatpush.bf16.msrb.mxu3 %v5565_v18 }
 0x9e4   :  { %v2941_v41 = vpop.xlane.xlu1 %2940 }
 0x9e5   :  { %2943 = vst.msk [vmem:[#allocation4 + $0x18] sm:$0x3] %vm515_vm4, %v2941_v41 }
 0x9ee   :  { %v3032_v49 = vpop.f32.mrf.mxu0 }
 0x9ef   :  { %v3033_v46 = vadd.f32 %v5573_v54, %v3032_v49 }
 0x9f3   :  { %v2966_v27 = vpop.f32.mrf.mxu2  ;;  %v2979_v1 = vpop.f32.mrf.mxu3 }
 0x9f4   :  { %v2983_v55 = vadd.f32 %v2966_v27, %v2950_v5  ;;  %v3003_v44 = vadd.f32 %v2979_v1, %v2951_v26 }
 0x9f6   :  { %v4224_v28 = vmul.f32 -1.442695, %v2983_v55  ;;  %v4225_v7 = vmul.f32 -1.442695, %v3003_v44  ;;  %v3034_v13 = vpop.f32.mrf.mxu0 }
 0x9f8   :  { %4569 = vpow2.f32 %v4224_v28 }
 0x9f9   :  { %4571 = vpow2.f32 %v4225_v7 }
 0x9fb   :  { %v2968_v8 = vpop.f32.mrf.mxu2  ;;  %v2981_v63 = vpop.f32.mrf.mxu3 }
 0x9fe   :  { %v4570_v24 = vpop.eup %4569 }
 0x9ff   :  { %v4572_v31 = vpop.eup %4571  ;;  %v2987_v18 = vadd.f32 1.0, %v4570_v24 }
 0xa00   :  { %v3007_v2 = vadd.f32 1.0, %v4572_v31 }
 0xa01   :  { %4573 = vrcp.f32 %v2987_v18  ;;  %v2999_v33 = vand.u32 2147483648, %v2987_v18  ;;  %v2997_v50 = vand.u32 2147483647, %v2987_v18  ;;  %vm2993_vm2 = vweird.f32 %v2987_v18 }
 0xa02   :  { %4575 = vrcp.f32 %v3007_v2  ;;  %v3019_v58 = vand.u32 2147483648, %v3007_v2  ;;  %vm3013_vm7 = vweird.f32 %v3007_v2  ;;  %v3017_v57 = vand.u32 2147483647, %v3007_v2 }
 0xa03   :  { %v2947_v4 = vpop.xlane.xlu0 %2946  ;;  %v3000_v30 = vor.u32 1.1754944e-38, %v2999_v33  ;;  %vm2998_vm5 = vcmp.eq.f32.partialorder %v2997_v50, 8.507059e+37 }
 0xa04   :  { %2949 = vst.msk [vmem:[#allocation4 + $0x26] sm:$0x3] %vm515_vm4, %v2947_v4  ;;  %v3020_v41 = vor.u32 1.1754944e-38, %v3019_v58  ;;  %vm3018_vm9 = vcmp.eq.f32.partialorder %v3017_v57, 8.507059e+37 }
 0xa07   :  { %v4574_v48 = vpop.eup %4573 }
 0xa08   :  { %v4576_v37 = vpop.eup %4575  ;;  %v2989_v16 = vmul.f32 %v4574_v48, %v2987_v18  ;;  %vm2994_vm0 = vweird.f32 %v4574_v48 }
 0xa09   :  { %v3009_v32 = vmul.f32 %v4576_v37, %v3007_v2  ;;  %vm2995_vm3 = vmor %vm2993_vm2, %vm2994_vm0  ;;  %vm3014_vm6 = vweird.f32 %v4576_v37 }
 0xa0a   :  { %v2990_v25 = vsub.f32 1.0, %v2989_v16  ;;  %vm3015_vm8 = vmor %vm3013_vm7, %vm3014_vm6 }
 0xa0b   :  { %v3010_v34 = vsub.f32 1.0, %v3009_v32 }
 0xa0c   :  { %v2991_v10 = vmul.f32 %v4574_v48, %v2990_v25  ;;  %v3059_v43 = vpop.f32.mrf.mxu1 }
 0xa0d   :  { %v3011_v12 = vmul.f32 %v4576_v37, %v3010_v34  ;;  %v3076_v51 = vadd.f32 %v3059_v43, %v3043_v45  ;;  %v3045_v43 = vld [vmem:[#allocation2 + $0xa4] sm:$0x3] }
 0xa0e   :  { %v2992_v40 = vadd.f32 %v4574_v48, %v2991_v10 }
 0xa0f   :  { %v4229_v59 = vmul.f32 -1.442695, %v3076_v51  ;;  %v3012_v15 = vadd.f32 %v4576_v37, %v3011_v12 }
 0xa10   :  { %v2996_v19 = vsel %vm2995_vm3, %v4574_v48, %v2992_v40 }
 0xa11   :  { %v3001_v56 = vsel %vm2998_vm5, %v3000_v30, %v2996_v19  ;;  %4577 = vpow2.f32 %v4229_v59  ;;  %v3016_v36 = vsel %vm3015_vm8, %v4576_v37, %v3012_v15 }
 0xa12   :  { %v3036_v61 = vmul.f32 %v3033_v46, %v3001_v56  ;;  %v3072_v9 = vpop.f32.mrf.mxu2  ;;  %v3021_v5 = vsel %vm3018_vm9, %v3020_v41, %v3016_v36 }
 0xa13   :  { %v3096_v60 = vadd.f32 %v3072_v9, %v3044_v6  ;;  %v3125_v42 = vpop.f32.mrf.mxu3  ;;  %v3039_v1 = vsub.f32 1.0, %v3021_v5  ;;  %v3041_v13 = vmul.f32 %v3021_v5, %v5625_v22  ;;  %v3153_v6 = vld [vmem:[#allocation2 + $0x3c] sm:$0x3] }
 0xa14   :  { %v3037_v62 = vadd.f32 %v3036_v61, %v2952_v21  ;;  %v3061_v17 = vpop.f32.mrf.mxu1 }
 0xa15   :  { %v4230_v3 = vmul.f32 -1.442695, %v3096_v60 }
 0xa16   :  { %4579 = vtanh.f32 %v3037_v62 }
 0xa17   :  { %v4578_v49 = vpop.eup %4577  ;;  %4581 = vpow2.f32 %v4230_v3 }
 0xa18   :  { %v3080_v27 = vadd.f32 1.0, %v4578_v49 }
 0xa1a   :  { %4583 = vrcp.f32 %v3080_v27  ;;  %v3074_v26 = vpop.f32.mrf.mxu2  ;;  %v3092_v4 = vand.u32 2147483648, %v3080_v27  ;;  %v3090_v48 = vand.u32 2147483647, %v3080_v27  ;;  %vm3086_vm12 = vweird.f32 %v3080_v27 }
 0xa1b   :  { %v3127_v55 = vpop.f32.mrf.mxu3 }
 0xa1c   :  { %v4580_v44 = vpop.eup %4579  ;;  %v3093_v25 = vor.u32 1.1754944e-38, %v3092_v4  ;;  %vm3091_vm14 = vcmp.eq.f32.partialorder %v3090_v48, 8.507059e+37 }
 0xa1d   :  { %v4582_v28 = vpop.eup %4581  ;;  %v3040_v7 = vmul.f32 %v4580_v44, %v3039_v1 }
 0xa1e   :  { %v3100_v8 = vadd.f32 1.0, %v4582_v28 }
 0xa1f   :  { %v5683_v63 = vadd.f32 %v3041_v13, %v3040_v7 }
 0xa20   :  { %v4584_v24 = vpop.eup %4583  ;;  %4585 = vrcp.f32 %v3100_v8  ;;  %v3110_v45 = vand.u32 2147483647, %v3100_v8  ;;  %vm3106_vm0 = vweird.f32 %v3100_v8 }
 0xa21   :  { %3137 = vst.msk [vmem:[#allocation3 + $0x1a] sm:$0x3] %vm504_vm10, %v5683_v63  ;;  %v3082_v31 = vmul.f32 %v4584_v24, %v3080_v27  ;;  %v3155_v18 = vpack.c.bf16 %v5683_v63, %v5683_v63  ;;  %vm3087_vm11 = vweird.f32 %v4584_v24 }
 0xa22   :  { %vm3088_vm13 = vmor %vm3086_vm12, %vm3087_vm11  ;;  %vm3111_vm3 = vcmp.eq.f32.partialorder %v3110_v45, 8.507059e+37 }
 0xa23   :  { %v3083_v2 = vsub.f32 1.0, %v3082_v31  ;;  %4232 = vmatmul.msk.bf16.vlgmr.msrb.gmra.mxu0 %vm124_vm1, %v3155_v18  ;;  %4233 = vmatmul.msk.bf16.vlgmr.msrb.gmra.mxu1 %vm124_vm1, %v3155_v18 }
 0xa24   :  { %4236 = vmatmul.msk.bf16.vlgmr.msra.gmra.mxu2 %vm124_vm1, %v3155_v18  ;;  %3433 = vmatpush.bf16.msrb.mxu0 %v5521_v23  ;;  %v3126_v23 = vadd.f32 %v5651_v47, %v3125_v42 }
 0xa25   :  { %v3084_v22 = vmul.f32 %v4584_v24, %v3083_v2  ;;  %3460 = vmatpush.bf16.msrb.mxu1 %v5590_v35  ;;  %3473 = vmatpush.bf16.msra.mxu2 %v5525_v38  ;;  %v3112_v38 = vand.u32 2147483648, %v3100_v8 }
 0xa26   :  { %v4586_v37 = vpop.eup %4585 }
 0xa27   :  { %v3102_v16 = vmul.f32 %v4586_v37, %v3100_v8  ;;  %v3085_v32 = vadd.f32 %v4584_v24, %v3084_v22  ;;  %vm3107_vm15 = vweird.f32 %v4586_v37 }
 0xa28   :  { %3434 = vmatpush.bf16.msrb.mxu0 %v5528_v11  ;;  %vm3108_vm2 = vmor %vm3106_vm0, %vm3107_vm15  ;;  %v3113_v11 = vor.u32 1.1754944e-38, %v3112_v38 }
 0xa29   :  { %v3103_v33 = vsub.f32 1.0, %v3102_v16  ;;  %v3089_v34 = vsel %vm3088_vm13, %v4584_v24, %v3085_v32  ;;  %3461 = vmatpush.bf16.msrb.mxu1 %v5596_v52  ;;  %3474 = vmatpush.bf16.msra.mxu2 %v5532_v14  ;;  %v3246_v24 = vld [vmem:[#allocation2 + $0x82] sm:$0x3] }
 0xa2a   :  { %v3094_v35 = vsel %vm3091_vm14, %v3093_v25, %v3089_v34 }
 0xa2b   :  { %v3104_v10 = vmul.f32 %v4586_v37, %v3103_v33  ;;  %v3129_v50 = vmul.f32 %v3126_v23, %v3094_v35  ;;  %v3245_v35 = vld [vmem:[#allocation2 + $0x62] sm:$0x3] }
 0xa2d   :  { %v3105_v12 = vadd.f32 %v4586_v37, %v3104_v10  ;;  %v3130_v51 = vadd.f32 %v3129_v50, %v3045_v43  ;;  %v3154_v50 = vld [vmem:[#allocation2 + $0x5c] sm:$0x3] }
 0xa2f   :  { %v3109_v40 = vsel %vm3108_vm2, %v4586_v37, %v3105_v12  ;;  %4587 = vtanh.f32 %v3130_v51 }
 0xa30   :  { %v3114_v30 = vsel %vm3111_vm3, %v3113_v11, %v3109_v40 }
 0xa31   :  { %v3132_v59 = vsub.f32 1.0, %v3114_v30  ;;  %v3134_v14 = vmul.f32 %v3114_v30, %v5656_v53  ;;  %v3152_v53 = vld [vmem:[#allocation2 + $0x1c] sm:$0x3] }
 0xa35   :  { %v4588_v52 = vpop.eup %4587 }
 0xa36   :  { %v3133_v46 = vmul.f32 %v4588_v52, %v3132_v59 }
 0xa38   :  { %v5700_v19 = vadd.f32 %v3134_v14, %v3133_v46 }
 0xa3a   :  { %3139 = vst.msk [vmem:[#allocation3 + $0x24] sm:$0x3] %vm504_vm10, %v5700_v19  ;;  %v3248_v56 = vpack.c.bf16 %v5700_v19, %v5700_v19  ;;  %v3146_v15 = vmul.f32 %v5665_v0, %v5700_v19 }
 0xa3c   :  { %4237 = vmatmul.msk.bf16.vlgmr.msra.gmra.mxu3 %vm124_vm1, %v3248_v56  ;;  %4238 = vmatmul.msk.bf16.vlgmr.msra.gmra.mxu0 %vm124_vm1, %v3248_v56  ;;  %v3147_v61 = vsel %vm504_vm10, %v3146_v15, 0.0 }
 0xa3d   :  { %4241 = vmatmul.msk.bf16.vlgmr.msra.gmra.mxu1 %vm124_vm1, %v3248_v56  ;;  %3148 = vadd.xlane.f32.xlu1 %v3147_v61 }
 0xa3e   :  { %3526 = vmatpush.bf16.msra.mxu3 %v5550_v29 }
 0xa42   :  { %3527 = vmatpush.bf16.msra.mxu3 %v5559_v20 }
 0xaa0   :  { %v3168_v58 = vpop.f32.mrf.mxu0  ;;  %v3181_v9 = vpop.f32.mrf.mxu1 }
 0xaa1   :  { %v3185_v21 = vadd.f32 %v3168_v58, %v3152_v53  ;;  %v3205_v57 = vadd.f32 %v3181_v9, %v3153_v6 }
 0xaa3   :  { %v4234_v60 = vmul.f32 -1.442695, %v3185_v21  ;;  %v4235_v42 = vmul.f32 -1.442695, %v3205_v57 }
 0xaa5   :  { %4589 = vpow2.f32 %v4234_v60 }
 0xaa6   :  { %4591 = vpow2.f32 %v4235_v42 }
 0xaa7   :  { %v3234_v62 = vpop.f32.mrf.mxu2 }
 0xaa8   :  { %v3170_v17 = vpop.f32.mrf.mxu0  ;;  %v3183_v36 = vpop.f32.mrf.mxu1  ;;  %v3235_v32 = vadd.f32 %v5573_v54, %v3234_v62 }
 0xaab   :  { %v4590_v3 = vpop.eup %4589 }
 0xaac   :  { %v4592_v41 = vpop.eup %4591  ;;  %v3189_v49 = vadd.f32 1.0, %v4590_v3 }
 0xaad   :  { %v3209_v5 = vadd.f32 1.0, %v4592_v41 }
 0xaae   :  { %4593 = vrcp.f32 %v3189_v49  ;;  %v3201_v7 = vand.u32 2147483648, %v3189_v49  ;;  %v3199_v8 = vand.u32 2147483647, %v3189_v49  ;;  %vm3195_vm6 = vweird.f32 %v3189_v49 }
 0xaaf   :  { %4595 = vrcp.f32 %v3209_v5  ;;  %v3236_v29 = vpop.f32.mrf.mxu2  ;;  %v3221_v34 = vand.u32 2147483648, %v3209_v5  ;;  %vm3215_vm11 = vweird.f32 %v3209_v5  ;;  %v3219_v38 = vand.u32 2147483647, %v3209_v5 }
 0xab0   :  { %v3149_v20 = vpop.xlane.xlu1 %3148  ;;  %v3202_v48 = vor.u32 1.1754944e-38, %v3201_v7  ;;  %vm3200_vm8 = vcmp.eq.f32.partialorder %v3199_v8, 8.507059e+37  ;;  %v3247_v7 = vld [vmem:[#allocation2 + $0xa2] sm:$0x3] }
 0xab1   :  { %3151 = vst.msk [vmem:[#allocation4 + $0x24] sm:$0x3] %vm515_vm4, %v3149_v20  ;;  %v3222_v30 = vor.u32 1.1754944e-38, %v3221_v34  ;;  %vm3220_vm13 = vcmp.eq.f32.partialorder %v3219_v38, 8.507059e+37  ;;  %v3354_v34 = vld [vmem:[#allocation2 + $0x1e] sm:$0x3] }
 0xab4   :  { %v4594_v27 = vpop.eup %4593 }
 0xab5   :  { %v4596_v26 = vpop.eup %4595  ;;  %v3191_v1 = vmul.f32 %v4594_v27, %v3189_v49  ;;  %vm3196_vm5 = vweird.f32 %v4594_v27 }
 0xab6   :  { %v3211_v55 = vmul.f32 %v4596_v26, %v3209_v5  ;;  %vm3197_vm7 = vmor %vm3195_vm6, %vm3196_vm5  ;;  %vm3216_vm9 = vweird.f32 %v4596_v26 }
 0xab7   :  { %v3192_v44 = vsub.f32 1.0, %v3191_v1  ;;  %vm3217_vm12 = vmor %vm3215_vm11, %vm3216_vm9 }
 0xab8   :  { %v3212_v28 = vsub.f32 1.0, %v3211_v55 }
 0xab9   :  { %v3193_v13 = vmul.f32 %v4594_v27, %v3192_v44  ;;  %v3274_v31 = vpop.f32.mrf.mxu0 }
 0xaba   :  { %v3213_v18 = vmul.f32 %v4596_v26, %v3212_v28  ;;  %v3298_v2 = vadd.f32 %v3274_v31, %v3246_v24  ;;  %v5715_v4 = vpop.f32.mrf.mxu1 }
 0xabb   :  { %v3194_v22 = vadd.f32 %v4594_v27, %v3193_v13  ;;  %v3328_v20 = vadd.f32 %v5651_v47, %v5715_v4 }
 0xabc   :  { %v4240_v37 = vmul.f32 -1.442695, %v3298_v2  ;;  %v3214_v25 = vadd.f32 %v4596_v26, %v3213_v18 }
 0xabd   :  { %v3198_v16 = vsel %vm3197_vm7, %v4594_v27, %v3194_v22 }
 0xabe   :  { %v3203_v33 = vsel %vm3200_vm8, %v3202_v48, %v3198_v16  ;;  %4597 = vpow2.f32 %v4240_v37  ;;  %v3218_v51 = vsel %vm3217_vm12, %v4596_v26, %v3214_v25 }
 0xabf   :  { %v3238_v23 = vmul.f32 %v3235_v32, %v3203_v33  ;;  %v3261_v10 = vpop.f32.mrf.mxu3  ;;  %v3223_v59 = vsel %vm3220_vm13, %v3222_v30, %v3218_v51 }
 0xac0   :  { %v3278_v45 = vadd.f32 %v3261_v10, %v3245_v35  ;;  %v3241_v14 = vsub.f32 1.0, %v3223_v59  ;;  %v3243_v53 = vmul.f32 %v3223_v59, %v5683_v63  ;;  %v3355_v35 = vld [vmem:[#allocation2 + $0x3e] sm:$0x3] }
 0xac1   :  { %v3239_v43 = vadd.f32 %v3238_v23, %v3154_v50  ;;  %v3276_v12 = vpop.f32.mrf.mxu0 }
 0xac2   :  { %v4239_v11 = vmul.f32 -1.442695, %v3278_v45  ;;  %v3329_v40 = vpop.f32.mrf.mxu1 }
 0xac3   :  { %4599 = vtanh.f32 %v3239_v43 }
 0xac4   :  { %v4598_v54 = vpop.eup %4597  ;;  %4601 = vpow2.f32 %v4239_v11 }
 0xac5   :  { %v3302_v52 = vadd.f32 1.0, %v4598_v54 }
 0xac7   :  { %v3263_v46 = vpop.f32.mrf.mxu3  ;;  %4603 = vrcp.f32 %v3302_v52  ;;  %v3314_v55 = vand.u32 2147483648, %v3302_v52  ;;  %vm3308_vm5 = vweird.f32 %v3302_v52  ;;  %v3312_v28 = vand.u32 2147483647, %v3302_v52 }
 0xac9   :  { %v4600_v56 = vpop.eup %4599  ;;  %v3315_v24 = vor.u32 1.1754944e-38, %v3314_v55  ;;  %vm3313_vm7 = vcmp.eq.f32.partialorder %v3312_v28, 8.507059e+37 }
 0xaca   :  { %v4602_v15 = vpop.eup %4601  ;;  %v3242_v61 = vmul.f32 %v4600_v56, %v3241_v14 }
 0xacb   :  { %v3282_v58 = vadd.f32 1.0, %v4602_v15 }
 0xacc   :  { %v5719_v6 = vadd.f32 %v3243_v53, %v3242_v61 }
 0xacd   :  { %4605 = vrcp.f32 %v3282_v58  ;;  %v4604_v9 = vpop.eup %4603  ;;  %v3294_v36 = vand.u32 2147483648, %v3282_v58  ;;  %v3292_v41 = vand.u32 2147483647, %v3282_v58  ;;  %vm3288_vm15 = vweird.f32 %v3282_v58 }
 0xace   :  { %3339 = vst.msk [vmem:[#allocation3 + $0x1c] sm:$0x3] %vm504_vm10, %v5719_v6  ;;  %v3357_v21 = vpack.c.bf16 %v5719_v6, %v5719_v6  ;;  %v3304_v57 = vmul.f32 %v4604_v9, %v3302_v52  ;;  %vm3309_vm3 = vweird.f32 %v4604_v9 }
 0xacf   :  { %v3295_v29 = vor.u32 1.1754944e-38, %v3294_v36  ;;  %vm3293_vm2 = vcmp.eq.f32.partialorder %v3292_v41, 8.507059e+37  ;;  %vm3310_vm6 = vmor %vm3308_vm5, %vm3309_vm3  ;;  %v4711_v41 = vld [vmem:[%s5960_s4] ss:$0 sm:$0xff] }
 0xad0   :  { %4242 = vmatmul.msk.bf16.vlgmr.msrb.gmra.mxu2 %vm124_vm1, %v3357_v21  ;;  %4243 = vmatmul.msk.bf16.vlgmr.msrb.gmra.mxu3 %vm124_vm1, %v3357_v21  ;;  %v3305_v62 = vsub.f32 1.0, %v3304_v57  ;;  %v3447_v57 = vld [vmem:[#allocation2 + $0x60] sm:$0x3] }
 0xad1   :  { %4246 = vmatmul.msk.bf16.vlgmr.msrb.gmra.mxu0 %vm124_vm1, %v3357_v21 }
 0xad2   :  { %v3306_v49 = vmul.f32 %v4604_v9, %v3305_v62 }
 0xad3   :  { %v4606_v60 = vpop.eup %4605 }
 0xad4   :  { %v3284_v42 = vmul.f32 %v4606_v60, %v3282_v58  ;;  %vm3289_vm14 = vweird.f32 %v4606_v60  ;;  %v3307_v26 = vadd.f32 %v4604_v9, %v3306_v49 }
 0xad5   :  { %vm3290_vm0 = vmor %vm3288_vm15, %vm3289_vm14 }
 0xad6   :  { %v3285_v17 = vsub.f32 1.0, %v3284_v42  ;;  %v3311_v8 = vsel %vm3310_vm6, %v4604_v9, %v3307_v26 }
 0xad7   :  { %v3316_v31 = vsel %vm3313_vm7, %v3315_v24, %v3311_v8 }
 0xad8   :  { %v3286_v3 = vmul.f32 %v4606_v60, %v3285_v17  ;;  %v3334_v18 = vsub.f32 1.0, %v3316_v31  ;;  %v3336_v4 = vmul.f32 %v3316_v31, %v5700_v19  ;;  %v3140_v19 = vmul.f32 %v5634_v39, %v5683_v63 }
 0xada   :  { %v3287_v5 = vadd.f32 %v4606_v60, %v3286_v3  ;;  %v3141_v25 = vsel %vm504_vm10, %v3140_v19, 0.0 }
 0xadc   :  { %v3291_v27 = vsel %vm3290_vm0, %v4606_v60, %v3287_v5 }
 0xadd   :  { %v3296_v1 = vsel %vm3293_vm2, %v3295_v29, %v3291_v27  ;;  %v3448_v27 = vld [vmem:[#allocation2 + $0x80] sm:$0x3] }
 0xade   :  { %v3331_v44 = vmul.f32 %v3328_v20, %v3296_v1 }
 0xae0   :  { %v3332_v13 = vadd.f32 %v3331_v44, %v3247_v7  ;;  %v3356_v7 = vld [vmem:[#allocation2 + $0x5e] sm:$0x3] }
 0xae2   :  { %4607 = vtanh.f32 %v3332_v13 }
 0xae8   :  { %v4608_v2 = vpop.eup %4607 }
 0xae9   :  { %v3335_v22 = vmul.f32 %v4608_v2, %v3334_v18 }
 0xaeb   :  { %v5731_v48 = vadd.f32 %v3336_v4, %v3335_v22 }
 0xaed   :  { %3341 = vst.msk [vmem:[#allocation3 + $0x22] sm:$0x3] %vm504_vm10, %v5731_v48  ;;  %v3450_v37 = vpack.c.bf16 %v5731_v48, %v5731_v48  ;;  %v3348_v16 = vmul.f32 %v5665_v0, %v5731_v48 }
 0xaef   :  { %4247 = vmatmul.msk.bf16.vlgmr.msrb.gmra.mxu1 %vm124_vm1, %v3450_v37  ;;  %4248 = vmatmul.msk.bf16.vlgmr.msra.gmra.mxu2 %vm124_vm1, %v3450_v37  ;;  %v3349_v32 = vsel %vm504_vm10, %v3348_v16, 0.0 }
 0xaf0   :  { %4251 = vmatmul.msk.bf16.vlgmr.msra.gmra.mxu3 %vm124_vm1, %v3450_v37  ;;  %3350 = vadd.xlane.f32.xlu2 %v3349_v32 }
 0xaf8   :  { %3142 = vadd.xlane.f32.xlu2 %v3141_v25 }
 0xb4e   :  { %v3436_v33 = vpop.f32.mrf.mxu0 }
 0xb4f   :  { %v3437_v49 = vadd.f32 %v4711_v41, %v3436_v33 }
 0xb53   :  { %v3370_v23 = vpop.f32.mrf.mxu2  ;;  %v3383_v10 = vpop.f32.mrf.mxu3 }
 0xb54   :  { %v3387_v38 = vadd.f32 %v3370_v23, %v3354_v34  ;;  %v3407_v50 = vadd.f32 %v3383_v10, %v3355_v35 }
 0xb56   :  { %v4244_v45 = vmul.f32 -1.442695, %v3387_v38  ;;  %v4245_v43 = vmul.f32 -1.442695, %v3407_v50  ;;  %v3438_v12 = vpop.f32.mrf.mxu0 }
 0xb58   :  { %4609 = vpow2.f32 %v4244_v45 }
 0xb59   :  { %4611 = vpow2.f32 %v4245_v43 }
 0xb5b   :  { %v3372_v51 = vpop.f32.mrf.mxu2  ;;  %v3385_v11 = vpop.f32.mrf.mxu3 }
 0xb5e   :  { %v4610_v40 = vpop.eup %4609 }
 0xb5f   :  { %v4612_v30 = vpop.eup %4611  ;;  %v3391_v63 = vadd.f32 1.0, %v4610_v40 }
 0xb60   :  { %v3411_v54 = vadd.f32 1.0, %v4612_v30 }
 0xb61   :  { %4613 = vrcp.f32 %v3391_v63  ;;  %v3403_v61 = vand.u32 2147483648, %v3391_v63  ;;  %v3401_v21 = vand.u32 2147483647, %v3391_v63  ;;  %vm3397_vm9 = vweird.f32 %v3391_v63 }
 0xb62   :  { %4615 = vrcp.f32 %v3411_v54  ;;  %v3423_v1 = vand.u32 2147483648, %v3411_v54  ;;  %vm3417_vm14 = vweird.f32 %v3411_v54  ;;  %v3421_v13 = vand.u32 2147483647, %v3411_v54 }
 0xb63   :  { %v3351_v59 = vpop.xlane.xlu2 %3350  ;;  %v3404_v36 = vor.u32 1.1754944e-38, %v3403_v61  ;;  %vm3402_vm12 = vcmp.eq.f32.partialorder %v3401_v21, 8.507059e+37 }
 0xb64   :  { %3353 = vst.msk [vmem:[#allocation4 + $0x22] sm:$0x3] %vm515_vm4, %v3351_v59  ;;  %v3424_v2 = vor.u32 1.1754944e-38, %v3423_v1  ;;  %vm3422_vm0 = vcmp.eq.f32.partialorder %v3421_v13, 8.507059e+37  ;;  %v3564_v1 = vld [vmem:[#allocation4 + $0x10] sm:$0x3] }
 0xb65   :  { %v3574_v13 = vld [vmem:[#allocation4 + $0x24] sm:$0x3] }
 0xb67   :  { %v4614_v52 = vpop.eup %4613 }
 0xb68   :  { %v4616_v46 = vpop.eup %4615  ;;  %v3393_v14 = vmul.f32 %v4614_v52, %v3391_v63  ;;  %vm3398_vm8 = vweird.f32 %v4614_v52 }
 0xb69   :  { %v3413_v56 = vmul.f32 %v4616_v46, %v3411_v54  ;;  %vm3399_vm11 = vmor %vm3397_vm9, %vm3398_vm8  ;;  %vm3418_vm13 = vweird.f32 %v4616_v46 }
 0xb6a   :  { %v3394_v15 = vsub.f32 1.0, %v3393_v14  ;;  %vm3419_vm15 = vmor %vm3417_vm14, %vm3418_vm13 }
 0xb6b   :  { %v3414_v53 = vsub.f32 1.0, %v3413_v56  ;;  %v3143_v58 = vpop.xlane.xlu2 %3142 }
 0xb6c   :  { %v3395_v9 = vmul.f32 %v4614_v52, %v3394_v15  ;;  %3145 = vst.msk [vmem:[#allocation4 + $0x1a] sm:$0x3] %vm515_vm4, %v3143_v58  ;;  %v3463_v60 = vpop.f32.mrf.mxu1  ;;  %v3449_v58 = vld [vmem:[#allocation2 + $0xa0] sm:$0x3] }
 0xb6d   :  { %v3480_v42 = vadd.f32 %v3463_v60, %v3447_v57  ;;  %v3415_v62 = vmul.f32 %v4616_v46, %v3414_v53 }
 0xb6e   :  { %v3396_v17 = vadd.f32 %v4614_v52, %v3395_v9 }
 0xb6f   :  { %v4249_v3 = vmul.f32 -1.442695, %v3480_v42  ;;  %v3416_v20 = vadd.f32 %v4616_v46, %v3415_v62 }
 0xb70   :  { %v3400_v5 = vsel %vm3399_vm11, %v4614_v52, %v3396_v17 }
 0xb71   :  { %4617 = vpow2.f32 %v4249_v3  ;;  %v3405_v29 = vsel %vm3402_vm12, %v3404_v36, %v3400_v5  ;;  %v3420_v18 = vsel %vm3419_vm15, %v4616_v46, %v3416_v20 }
 0xb72   :  { %v3476_v26 = vpop.f32.mrf.mxu2  ;;  %v3440_v55 = vmul.f32 %v3437_v49, %v3405_v29  ;;  %v3425_v37 = vsel %vm3422_vm0, %v3424_v2, %v3420_v18  ;;  %v3342_v29 = vmul.f32 %v5634_v39, %v5719_v6 }
 0xb73   :  { %v3500_v44 = vadd.f32 %v3476_v26, %v3448_v27  ;;  %v3529_v28 = vpop.f32.mrf.mxu3  ;;  %v3443_v19 = vsub.f32 1.0, %v3425_v37  ;;  %v3445_v23 = vmul.f32 %v3425_v37, %v5719_v6  ;;  %v3558_v6 = vld [vmem:[#allocation4 + $0x4] sm:$0x3]  ;;  %v3556_v37 = vld [vmem:[#allocation4] sm:$0x3] }
 0xb74   :  { %v3465_v8 = vpop.f32.mrf.mxu1  ;;  %v3441_v24 = vadd.f32 %v3440_v55, %v3356_v7  ;;  %v3530_v14 = vadd.f32 %v5651_v47, %v3529_v28  ;;  %v3343_v20 = vsel %vm504_vm10, %v3342_v29, 0.0  ;;  %v3579_v55 = vld [vmem:[#allocation4 + $0x2e] sm:$0x3]  ;;  %v3573_v7 = vld [vmem:[#allocation4 + $0x22] sm:$0x3] }
 0xb75   :  { %v4250_v31 = vmul.f32 -1.442695, %v3500_v44  ;;  %v3560_v44 = vld [vmem:[#allocation4 + $0x8] sm:$0x3]  ;;  %v3563_v28 = vld [vmem:[#allocation4 + $0xe] sm:$0x3] }
 0xb76   :  { %4619 = vtanh.f32 %v3441_v24  ;;  %v3575_v8 = vld [vmem:[#allocation4 + $0x26] sm:$0x3]  ;;  %v5769_v2 = vadd.f32 %v3579_v55, %v3563_v28  ;;  %v3586_v29 = vld [vmem:[#allocation4 + $0x3c] sm:$0x3] }
 0xb77   :  { %v4618_v4 = vpop.eup %4617  ;;  %4621 = vpow2.f32 %v4250_v31  ;;  %v3578_v31 = vld [vmem:[#allocation4 + $0x2c] sm:$0x3] }
 0xb78   :  { %v3484_v22 = vadd.f32 1.0, %v4618_v4  ;;  %v3561_v4 = vld [vmem:[#allocation4 + $0xa] sm:$0x3] }
 0xb7a   :  { %4623 = vrcp.f32 %v3484_v22  ;;  %v3478_v16 = vpop.f32.mrf.mxu2  ;;  %v3496_v51 = vand.u32 2147483648, %v3484_v22  ;;  %v3494_v40 = vand.u32 2147483647, %v3484_v22  ;;  %vm3490_vm3 = vweird.f32 %v3484_v22 }
 0xb7b   :  { %v3531_v32 = vpop.f32.mrf.mxu3  ;;  %v3559_v16 = vld [vmem:[#allocation4 + $0x6] sm:$0x3] }
 0xb7c   :  { %v4620_v25 = vpop.eup %4619  ;;  %v3497_v59 = vor.u32 1.1754944e-38, %v3496_v51  ;;  %vm3495_vm6 = vcmp.eq.f32.partialorder %v3494_v40, 8.507059e+37  ;;  %v3581_v32 = vld [vmem:[#allocation4 + $0x32] sm:$0x3]  ;;  %v3583_v51 = vld [vmem:[#allocation4 + $0x36] sm:$0x3] }
 0xb7d   :  { %v4622_v33 = vpop.eup %4621  ;;  %v3444_v34 = vmul.f32 %v4620_v25, %v3443_v19  ;;  %v3565_v19 = vld [vmem:[#allocation4 + $0x12] sm:$0x3]  ;;  %v3562_v25 = vld [vmem:[#allocation4 + $0xc] sm:$0x3] }
 0xb7e   :  { %v3504_v35 = vadd.f32 1.0, %v4622_v33 }
 0xb7f   :  { %v3446_v10 = vadd.f32 %v3445_v23, %v3444_v34  ;;  %v5773_v34 = vadd.f32 %v3574_v13, %v3558_v6  ;;  %v5775_v23 = vadd.f32 %v3575_v8, %v3559_v16 }
 0xb80   :  { %v4624_v38 = vpop.eup %4623  ;;  %4625 = vrcp.f32 %v3504_v35  ;;  %v3516_v53 = vand.u32 2147483648, %v3504_v35  ;;  %v3514_v9 = vand.u32 2147483647, %v3504_v35  ;;  %vm3510_vm8 = vweird.f32 %v3504_v35 }
 0xb81   :  { %v3486_v50 = vmul.f32 %v4624_v38, %v3484_v22  ;;  %3541 = vst.msk [vmem:[#allocation3 + $0x1e] sm:$0x3] %vm504_vm10, %v3446_v10  ;;  %v3544_v45 = vmul.f32 %v5634_v39, %v3446_v10  ;;  %vm3491_vm2 = vweird.f32 %v4624_v38  ;;  %v3557_v39 = vld [vmem:[#allocation4 + $0x2] sm:$0x3]  ;;  %v3577_v22 = vld [vmem:[#allocation4 + $0x2a] sm:$0x3] }
 0xb82   :  { %vm3492_vm5 = vmor %vm3490_vm3, %vm3491_vm2  ;;  %v3517_v42 = vor.u32 1.1754944e-38, %v3516_v53  ;;  %vm3515_vm11 = vcmp.eq.f32.partialorder %v3514_v9, 8.507059e+37  ;;  %v5771_v33 = vadd.f32 %v3573_v7, %v3557_v39  ;;  %v3566_v10 = vld [vmem:[#allocation4 + $0x14] sm:$0x3]  ;;  %v3607_v53 = vsel %vm515_vm4, %v5775_v23, -inf }
 0xb83   :  { %v3487_v43 = vsub.f32 1.0, %v3486_v50  ;;  %v3545_v12 = vsel %vm504_vm10, %v3544_v45, 0.0  ;;  %v5777_v50 = vadd.f32 %v3578_v31, %v3562_v25  ;;  %v3585_v9 = vld [vmem:[#allocation4 + $0x3a] sm:$0x3] }
 0xb84   :  { %3546 = vadd.xlane.f32.xlu1 %v3545_v12  ;;  %v3567_v12 = vld [vmem:[#allocation4 + $0x16] sm:$0x3] }
 0xb85   :  { %v3488_v11 = vmul.f32 %v4624_v38, %v3487_v43  ;;  %v5781_v43 = vadd.f32 %v3577_v22, %v3561_v4 }
 0xb86   :  { %v4626_v30 = vpop.eup %4625 }
 0xb87   :  { %v3506_v63 = vmul.f32 %v4626_v30, %v3504_v35  ;;  %v3489_v54 = vadd.f32 %v4624_v38, %v3488_v11  ;;  %vm3511_vm7 = vweird.f32 %v4626_v30 }
 0xb88   :  { %vm3512_vm9 = vmor %vm3510_vm8, %vm3511_vm7 }
 0xb89   :  { %v3507_v52 = vsub.f32 1.0, %v3506_v63  ;;  %v3493_v46 = vsel %vm3492_vm5, %v4624_v38, %v3489_v54  ;;  %v3568_v63 = vld [vmem:[#allocation4 + $0x18] sm:$0x3]  ;;  %v3569_v54 = vld [vmem:[#allocation4 + $0x1a] sm:$0x3] }
 0xb8a   :  { %v3498_v56 = vsel %vm3495_vm6, %v3497_v59, %v3493_v46  ;;  %v5788_v46 = vadd.f32 %v3581_v32, %v3565_v19 }
 0xb8b   :  { %v3533_v15 = vmul.f32 %v3530_v14, %v3498_v56  ;;  %v3508_v61 = vmul.f32 %v4626_v30, %v3507_v52  ;;  %v3587_v52 = vld [vmem:[#allocation4 + $0x3e] sm:$0x3]  ;;  %v3582_v14 = vld [vmem:[#allocation4 + $0x34] sm:$0x3] }
 0xb8d   :  { %v3534_v21 = vadd.f32 %v3533_v15, %v3449_v58  ;;  %v3509_v57 = vadd.f32 %v4626_v30, %v3508_v61  ;;  %v3605_v15 = vsel %vm515_vm4, %v5771_v33, -inf  ;;  %v3606_v61 = vsel %vm515_vm4, %v5773_v34, -inf  ;;  %v3584_v58 = vld [vmem:[#allocation4 + $0x38] sm:$0x3] }
 0xb8f   :  { %4627 = vtanh.f32 %v3534_v21  ;;  %v3513_v60 = vsel %vm3512_vm9, %v4626_v30, %v3509_v57  ;;  %v3614_v30 = vsel %vm515_vm4, %v5769_v2, -inf  ;;  %v5797_v21 = vadd.f32 %v3582_v14, %v3566_v10 }
 0xb90   :  { %v3518_v62 = vsel %vm3515_vm11, %v3517_v42, %v3513_v60  ;;  %v5799_v57 = vadd.f32 %v3583_v51, %v3567_v12  ;;  %v3612_v42 = vsel %vm515_vm4, %v5777_v50, -inf }
 0xb91   :  { %v3536_v17 = vsub.f32 1.0, %v3518_v62  ;;  %v3538_v47 = vmul.f32 %v3518_v62, %v5731_v48  ;;  %v3576_v48 = vld [vmem:[#allocation4 + $0x28] sm:$0x3]  ;;  %v5803_v62 = vadd.f32 %v3584_v58, %v3568_v63 }
 0xb92   :  { %v5767_v18 = vadd.f32 %v3576_v48, %v3560_v44 }
 0xb93   :  { %v3624_v55 = vsel %vm515_vm4, %v5803_v62, -inf }
 0xb94   :  { %v3608_v40 = vsel %vm515_vm4, %v5767_v18, -inf }
 0xb95   :  { %v4628_v36 = vpop.eup %4627 }
 0xb96   :  { %v3537_v3 = vmul.f32 %v4628_v36, %v3536_v17  ;;  %v5805_v17 = vadd.f32 %v3585_v9, %v3569_v54 }
 0xb98   :  { %v3539_v41 = vadd.f32 %v3538_v47, %v3537_v3  ;;  %v3610_v3 = vsel %vm515_vm4, %v5781_v43, -inf  ;;  %v3626_v44 = vsel %vm515_vm4, %v5805_v17, -inf }
 0xb99   :  { %v3611_v47 = vmax.f32 %v3605_v15, %v3610_v3 }
 0xb9a   :  { %3543 = vst.msk [vmem:[#allocation3 + $0x20] sm:$0x3] %vm504_vm10, %v3539_v41  ;;  %v3550_v49 = vmul.f32 %v5665_v0, %v3539_v41  ;;  %v3580_v0 = vld [vmem:[#allocation4 + $0x30] sm:$0x3]  ;;  %v3613_v41 = vmax.f32 %v3606_v61, %v3612_v42 }
 0xb9b   :  { %v5765_v24 = vadd.f32 %v3580_v0, %v3564_v1  ;;  %v3622_v1 = vsel %vm515_vm4, %v5799_v57, -inf }
 0xb9c   :  { %v3551_v5 = vsel %vm504_vm10, %v3550_v49, 0.0  ;;  %v3615_v49 = vmax.f32 %v3607_v53, %v3614_v30 }
 0xb9d   :  { %3552 = vadd.xlane.f32.xlu0 %v3551_v5  ;;  %v3616_v45 = vsel %vm515_vm4, %v5765_v24, -inf }
 0xb9e   :  { %v3623_v13 = vmax.f32 %v3615_v49, %v3622_v1 }
 0xba5   :  { %3344 = vadd.xlane.f32.xlu0 %v3343_v20 }
 0xbf7   :  { %v3547_v27 = vpop.xlane.xlu1 %3546 }
 0xbf8   :  { %3549 = vst.msk [vmem:[#allocation4 + $0x1e] sm:$0x3] %vm515_vm4, %v3547_v27  ;;  %v3618_v27 = vsel %vm515_vm4, %v5788_v46, -inf }
 0xbf9   :  { %v3619_v28 = vmax.f32 %v3611_v47, %v3618_v27 }
 0xbfb   :  { %v3627_v6 = vmax.f32 %v3619_v28, %v3626_v44 }
 0xbff   :  { %v3571_v59 = vld [vmem:[#allocation4 + $0x1e] sm:$0x3] }
 0xc00   :  { %v5807_v36 = vadd.f32 %v3587_v52, %v3571_v59 }
 0xc02   :  { %v3630_v0 = vsel %vm515_vm4, %v5807_v36, -inf }
 0xc03   :  { %v3631_v4 = vmax.f32 %v3623_v13, %v3630_v0 }
 0xc10   :  { %v3553_v26 = vpop.xlane.xlu0 %3552 }
 0xc11   :  { %3555 = vst.msk [vmem:[#allocation4 + $0x20] sm:$0x3] %vm515_vm4, %v3553_v26  ;;  %v3620_v26 = vsel %vm515_vm4, %v5797_v21, -inf }
 0xc12   :  { %v3621_v7 = vmax.f32 %v3613_v41, %v3620_v26 }
 0xc18   :  { %v3345_v35 = vpop.xlane.xlu0 %3344  ;;  %v3572_v38 = vld [vmem:[#allocation4 + $0x20] sm:$0x3] }
 0xc19   :  { %3347 = vst.msk [vmem:[#allocation4 + $0x1c] sm:$0x3] %vm515_vm4, %v3345_v35  ;;  %v3588_v11 = vadd.f32 %v3572_v38, %v3556_v37 }
 0xc1b   :  { %v3604_v56 = vsel %vm515_vm4, %v3588_v11, -inf }
 0xc1c   :  { %v3609_v60 = vmax.f32 %v3604_v56, %v3608_v40 }
 0xc1e   :  { %v3617_v5 = vmax.f32 %v3609_v60, %v3616_v45 }
 0xc20   :  { %v3570_v20 = vld [vmem:[#allocation4 + $0x1c] sm:$0x3]  ;;  %v3625_v8 = vmax.f32 %v3617_v5, %v3624_v55 }
 0xc21   :  { %v5817_v48 = vadd.f32 %v3586_v29, %v3570_v20 }
 0xc22   :  { %v3632_v22 = vmax.f32 %v3625_v8, %v3627_v6 }
 0xc23   :  { %v3628_v39 = vsel %vm515_vm4, %v5817_v48, -inf }
 0xc24   :  { %v3629_v31 = vmax.f32 %v3621_v7, %v3628_v39 }
 0xc26   :  { %v3633_v37 = vmax.f32 %v3629_v31, %v3631_v4 }
 0xc28   :  { %v5827_v16 = vmax.f32 %v3632_v22, %v3633_v37 }
 0xc2a   :  { %v3635_v32 = vsub.f32 %v3588_v11, %v5827_v16  ;;  %v3636_v19 = vsub.f32 %v5771_v33, %v5827_v16  ;;  %v3637_v25 = vsub.f32 %v5773_v34, %v5827_v16  ;;  %v3638_v35 = vsub.f32 %v5775_v23, %v5827_v16 }
 0xc2b   :  { %v3639_v10 = vsub.f32 %v5767_v18, %v5827_v16  ;;  %v3640_v51 = vsub.f32 %v5781_v43, %v5827_v16  ;;  %v3641_v33 = vsub.f32 %v5777_v50, %v5827_v16  ;;  %v3642_v34 = vsub.f32 %v5769_v2, %v5827_v16 }
 0xc2c   :  { %v3651_v38 = vmul.f32 1.442695, %v3635_v32  ;;  %v3653_v45 = vmul.f32 1.442695, %v3636_v19  ;;  %v3655_v12 = vmul.f32 1.442695, %v3637_v25  ;;  %v3643_v18 = vsub.f32 %v5765_v24, %v5827_v16 }
 0xc2d   :  { %v3657_v40 = vmul.f32 1.442695, %v3638_v35  ;;  %v3659_v11 = vmul.f32 1.442695, %v3639_v10  ;;  %v3661_v23 = vmul.f32 1.442695, %v3640_v51  ;;  %v3644_v50 = vsub.f32 %v5788_v46, %v5827_v16 }
 0xc2e   :  { %4629 = vpow2.f32 %v3651_v38  ;;  %v3663_v30 = vmul.f32 1.442695, %v3641_v33  ;;  %v3665_v54 = vmul.f32 1.442695, %v3642_v34  ;;  %v3645_v14 = vsub.f32 %v5797_v21, %v5827_v16 }
 0xc2f   :  { %4631 = vpow2.f32 %v3653_v45  ;;  %v3667_v56 = vmul.f32 1.442695, %v3643_v18  ;;  %v3646_v53 = vsub.f32 %v5799_v57, %v5827_v16  ;;  %v3669_v58 = vmul.f32 1.442695, %v3644_v50 }
 0xc30   :  { %4633 = vpow2.f32 %v3655_v12  ;;  %v3647_v21 = vsub.f32 %v5803_v62, %v5827_v16  ;;  %v3671_v3 = vmul.f32 1.442695, %v3645_v14  ;;  %v3648_v57 = vsub.f32 %v5805_v17, %v5827_v16 }
 0xc31   :  { %4635 = vpow2.f32 %v3657_v40  ;;  %v3673_v5 = vmul.f32 1.442695, %v3646_v53  ;;  %v3649_v62 = vsub.f32 %v5817_v48, %v5827_v16  ;;  %v3650_v17 = vsub.f32 %v5807_v36, %v5827_v16 }
 0xc32   :  { %4637 = vpow2.f32 %v3659_v11  ;;  %v3675_v26 = vmul.f32 1.442695, %v3647_v21  ;;  %v3677_v0 = vmul.f32 1.442695, %v3648_v57  ;;  %v3874_v21 = vld [vmem:[#allocation3 + $0x20] sm:$0x3] }
 0xc33   :  { %4639 = vpow2.f32 %v3661_v23  ;;  %v3679_v8 = vmul.f32 1.442695, %v3649_v62  ;;  %v3681_v31 = vmul.f32 1.442695, %v3650_v17  ;;  %v4291_v57 = vld [vmem:[%s5962_s6 + $0x8] sm:$0xff] }
 0xc34   :  { %v5846_v63 = vpop.eup %4629  ;;  %4641 = vpow2.f32 %v3663_v30  ;;  %3997 = vmatpush.bf16.msra.mxu1 %v4291_v57  ;;  %v3733_v17 = vld [vmem:[#allocation3 + $0x4] sm:$0x3]  ;;  %v3882_v57 = vld [vmem:[#allocation3 + $0x30] sm:$0x3] }
 0xc35   :  { %v5848_v43 = vpop.eup %4631  ;;  %v3683_v59 = vsel %vm515_vm4, %v5846_v63, 0.0  ;;  %4643 = vpow2.f32 %v3665_v54 }
 0xc36   :  { %v5854_v2 = vpop.eup %4633  ;;  %v3684_v52 = vsel %vm515_vm4, %v5848_v43, 0.0  ;;  %4645 = vpow2.f32 %v3667_v56 }
 0xc37   :  { %v5858_v24 = vpop.eup %4635  ;;  %v3685_v15 = vadd.f32 %v3684_v52, %v3683_v59  ;;  %v3686_v46 = vsel %vm515_vm4, %v5854_v2, 0.0  ;;  %4647 = vpow2.f32 %v3669_v58 }
 0xc38   :  { %v5864_v61 = vpop.eup %4637  ;;  %v3688_v60 = vsel %vm515_vm4, %v5858_v24, 0.0  ;;  %4649 = vpow2.f32 %v3671_v3  ;;  %v3731_v3 = vld [vmem:[#allocation3] sm:$0x3] }
 0xc39   :  { %v3687_v9 = vadd.f32 %v3686_v46, %v3685_v15  ;;  %v5870_v42 = vpop.eup %4639  ;;  %v3690_v41 = vsel %vm515_vm4, %v5864_v61, 0.0  ;;  %4651 = vpow2.f32 %v3673_v5 }
 0xc3a   :  { %v4642_v49 = vpop.eup %4641  ;;  %v3692_v20 = vsel %vm515_vm4, %v5870_v42, 0.0  ;;  %4653 = vpow2.f32 %v3675_v26 }
 0xc3b   :  { %v3689_v47 = vadd.f32 %v3688_v60, %v3687_v9  ;;  %v5880_v27 = vpop.eup %4643  ;;  %v3694_v55 = vsel %vm515_vm4, %v4642_v49, 0.0  ;;  %4655 = vpow2.f32 %v3677_v0  ;;  %v3876_v0 = vld [vmem:[#allocation3 + $0x24] sm:$0x3] }
 0xc3c   :  { %v4646_v44 = vpop.eup %4645  ;;  %v3696_v7 = vsel %vm515_vm4, %v5880_v27, 0.0  ;;  %4657 = vpow2.f32 %v3679_v8 }
 0xc3d   :  { %v3691_v29 = vadd.f32 %v3690_v41, %v3689_v47  ;;  %v4648_v13 = vpop.eup %4647  ;;  %v3698_v48 = vsel %vm515_vm4, %v4646_v44, 0.0  ;;  %4659 = vpow2.f32 %v3681_v31  ;;  %v3877_v31 = vld [vmem:[#allocation3 + $0x26] sm:$0x3] }
 0xc3e   :  { %v4650_v6 = vpop.eup %4649  ;;  %v3700_v22 = vsel %vm515_vm4, %v4648_v13, 0.0 }
 0xc3f   :  { %v3693_v1 = vadd.f32 %v3692_v20, %v3691_v29  ;;  %v4652_v37 = vpop.eup %4651  ;;  %v3702_v16 = vsel %vm515_vm4, %v4650_v6, 0.0  ;;  %v3732_v20 = vld [vmem:[#allocation3 + $0x2] sm:$0x3] }
 0xc40   :  { %v4654_v32 = vpop.eup %4653  ;;  %v3704_v25 = vsel %vm515_vm4, %v4652_v37, 0.0 }
 0xc41   :  { %v3695_v28 = vadd.f32 %v3694_v55, %v3693_v1  ;;  %v4656_v35 = vpop.eup %4655  ;;  %v3706_v38 = vsel %vm515_vm4, %v4654_v32, 0.0 }
 0xc42   :  { %v4658_v45 = vpop.eup %4657  ;;  %v3708_v51 = vsel %vm515_vm4, %v4656_v35, 0.0 }
 0xc43   :  { %v3697_v39 = vadd.f32 %v3696_v7, %v3695_v28  ;;  %v4660_v40 = vpop.eup %4659  ;;  %v3710_v11 = vsel %vm515_vm4, %v4658_v45, 0.0 }
 0xc44   :  { %v3712_v23 = vsel %vm515_vm4, %v4660_v40, 0.0 }
 0xc45   :  { %v3699_v4 = vadd.f32 %v3698_v48, %v3697_v39 }
 0xc47   :  { %v3701_v36 = vadd.f32 %v3700_v22, %v3699_v4  ;;  %v4292_v4 = vld [vmem:[%s5962_s6 + $0x10] sm:$0xff]  ;;  %v4290_v22 = vld [vmem:[%s5962_s6] sm:$0xff] }
 0xc48   :  { %3998 = vmatpush.bf16.msra.mxu1 %v4290_v22 }
 0xc49   :  { %v3703_v19 = vadd.f32 %v3702_v16, %v3701_v36 }
 0xc4b   :  { %v3705_v10 = vadd.f32 %v3704_v25, %v3703_v19 }
 0xc4d   :  { %v3707_v12 = vadd.f32 %v3706_v38, %v3705_v10  ;;  %v3878_v10 = vld [vmem:[#allocation3 + $0x28] sm:$0x3] }
 0xc4f   :  { %v3709_v33 = vadd.f32 %v3708_v51, %v3707_v12 }
 0xc51   :  { %v3711_v34 = vadd.f32 %v3710_v11, %v3709_v33 }
 0xc53   :  { %v3713_v18 = vadd.f32 %v3712_v23, %v3711_v34  ;;  %v3879_v34 = vld [vmem:[#allocation3 + $0x2a] sm:$0x3] }
 0xc55   :  { %4661 = vrcp.f32 %v3713_v18 }
 0xc5b   :  { %v4662_v30 = vpop.eup %4661 }
 0xc5c   :  { %v3717_v50 = vmul.f32 %v4662_v30, %v5854_v2  ;;  %v3716_v54 = vmul.f32 %v4662_v30, %v5848_v43  ;;  %v3715_v59 = vmul.f32 %v4662_v30, %v5846_v63  ;;  %v3719_v52 = vmul.f32 %v4662_v30, %v5864_v61 }
 0xc5d   :  { %v3723_v14 = vmul.f32 %v4662_v30, %v4646_v44  ;;  %v3718_v56 = vmul.f32 %v4662_v30, %v5858_v24  ;;  %v3721_v15 = vmul.f32 %v4662_v30, %v4642_v49  ;;  %v3726_v46 = vmul.f32 %v4662_v30, %v4652_v37  ;;  %v4293_v49 = vld [vmem:[%s5962_s6 + $0x18] sm:$0xff] }
 0xc5e   :  { %3759 = vperm.xlu1 %4303, %v3717_v50   ;;  %3754 = vperm.xlu0 %4302, %v3716_v54   ;;  %v3720_v53 = vmul.f32 %v4662_v30, %v5870_v42  ;;  %v3724_v43 = vmul.f32 %v4662_v30, %v4648_v13  ;;  %v3729_v63 = vmul.f32 %v4662_v30, %v4658_v45 }
 0xc5f   :  { %3749 = vperm.xlu2 %4301, %v3715_v59   ;;  %v3722_v2 = vmul.f32 %v4662_v30, %v5880_v27  ;;  %v3727_v61 = vmul.f32 %v4662_v30, %v4654_v32  ;;  %v3725_v58 = vmul.f32 %v4662_v30, %v4650_v6  ;;  %v3730_v24 = vmul.f32 %v4662_v30, %v4660_v40  ;;  %v3875_v27 = vld [vmem:[#allocation3 + $0x22] sm:$0x3]  ;;  %v3734_v6 = vld [vmem:[#allocation3 + $0x6] sm:$0x3]  ;;  %v3736_v40 = vld [vmem:[#allocation3 + $0xa] sm:$0x3] }
 0xc60   :  { %v3728_v9 = vmul.f32 %v4662_v30, %v4656_v35  ;;  %3969 = vmatpush.bf16.msra.mxu0 %v4293_v49  ;;  %v3735_v35 = vld [vmem:[#allocation3 + $0x8] sm:$0x3]  ;;  %v3739_v49 = vld [vmem:[#allocation3 + $0x10] sm:$0x3] }
 0xc64   :  { %3970 = vmatpush.bf16.msra.mxu0 %v4292_v4 }
 0xc66   :  { %3769 = vperm.xlu1 %4303, %v3719_v52   ;;  %3789 = vperm.xlu0 %4302, %v3723_v14  }
 0xc67   :  { %3764 = vperm.xlu2 %4301, %v3718_v56  }
 0xc6e   :  { %3779 = vperm.xlu1 %4303, %v3721_v15   ;;  %3804 = vperm.xlu0 %4302, %v3726_v46   ;;  %v3738_v15 = vld [vmem:[#allocation3 + $0xe] sm:$0x3]  ;;  %v3737_v46 = vld [vmem:[#allocation3 + $0xc] sm:$0x3] }
 0xc6f   :  { %3774 = vperm.xlu2 %4301, %v3720_v53  }
 0xc76   :  { %3794 = vperm.xlu1 %4303, %v3724_v43   ;;  %3819 = vperm.xlu0 %4302, %v3729_v63   ;;  %v3881_v63 = vld [vmem:[#allocation3 + $0x2e] sm:$0x3] }
 0xc77   :  { %3784 = vperm.xlu2 %4301, %v3722_v2   ;;  %v3880_v2 = vld [vmem:[#allocation3 + $0x2c] sm:$0x3] }
 0xc7e   :  { %3809 = vperm.xlu1 %4303, %v3727_v61  }
 0xc7f   :  { %3799 = vperm.xlu2 %4301, %v3725_v58  }
 0xc86   :  { %3824 = vperm.xlu1 %4303, %v3730_v24  }
 0xc87   :  { %3814 = vperm.xlu2 %4301, %v3728_v9  }
 0xcb9   :  { %v3750_v60 = vpop.permute.xlu2 %3749 }
 0xcba   :  { %v3827_v47 = vmul.f32 %v3750_v60, %v3731_v3  ;;  %v3890_v41 = vmul.f32 %v3874_v21, %v3750_v60 }
 0xcbc   :  { %v3843_v55 = vsel %vm504_vm10, %v3827_v47, 0.0  ;;  %v3906_v44 = vsel %vm504_vm10, %v3890_v41, 0.0 }
 0xcc1   :  { %v3765_v42 = vpop.permute.xlu2 %3764 }
 0xcc2   :  { %v3830_v37 = vmul.f32 %v3765_v42, %v3734_v6  ;;  %v3893_v36 = vmul.f32 %v3877_v31, %v3765_v42 }
 0xcc4   :  { %v3848_v33 = vsel %vm504_vm10, %v3830_v37, 0.0  ;;  %v3911_v11 = vsel %vm504_vm10, %v3893_v36, 0.0 }
 0xcc9   :  { %v3775_v5 = vpop.permute.xlu2 %3774 }
 0xcca   :  { %v3832_v30 = vmul.f32 %v3775_v5, %v3736_v40  ;;  %v3895_v50 = vmul.f32 %v3879_v34, %v3775_v5  ;;  %v3887_v34 = vld [vmem:[#allocation3 + $0x3a] sm:$0x3] }
 0xccc   :  { %v3852_v53 = vsel %vm504_vm10, %v3832_v30, 0.0  ;;  %v3915_v43 = vsel %vm504_vm10, %v3895_v50, 0.0  ;;  %v3743_v30 = vld [vmem:[#allocation3 + $0x18] sm:$0x3] }
 0xccd   :  { %v3886_v50 = vld [vmem:[#allocation3 + $0x38] sm:$0x3] }
 0xcd0   :  { %v3760_v29 = vpop.permute.xlu1 %3759  ;;  %v3755_v62 = vpop.permute.xlu0 %3754 }
 0xcd1   :  { %v3828_v26 = vmul.f32 %v3755_v62, %v3732_v20  ;;  %v3891_v1 = vmul.f32 %v3875_v27, %v3755_v62  ;;  %v3829_v28 = vmul.f32 %v3760_v29, %v3733_v17  ;;  %v3892_v7 = vmul.f32 %v3876_v0, %v3760_v29  ;;  %v3785_v45 = vpop.permute.xlu2 %3784  ;;  %v3884_v17 = vld [vmem:[#allocation3 + $0x34] sm:$0x3] }
 0xcd2   :  { %v3834_v58 = vmul.f32 %v3785_v45, %v3738_v15  ;;  %v3897_v24 = vmul.f32 %v3881_v63, %v3785_v45 }
 0xcd3   :  { %v3844_v13 = vsel %vm504_vm10, %v3828_v26, 0.0  ;;  %v3907_v8 = vsel %vm504_vm10, %v3891_v1, 0.0  ;;  %v3846_v16 = vsel %vm504_vm10, %v3829_v28, 0.0  ;;  %v3909_v32 = vsel %vm504_vm10, %v3892_v7, 0.0 }
 0xcd4   :  { %v3845_v39 = vadd.f32 %v3844_v13, %v3843_v55  ;;  %v3908_v48 = vadd.f32 %v3907_v8, %v3906_v44  ;;  %v3856_v20 = vsel %vm504_vm10, %v3834_v58, 0.0  ;;  %v3919_v27 = vsel %vm504_vm10, %v3897_v24, 0.0  ;;  %v3741_v44 = vld [vmem:[#allocation3 + $0x14] sm:$0x3]  ;;  %v3740_v13 = vld [vmem:[#allocation3 + $0x12] sm:$0x3] }
 0xcd5   :  { %v3883_v8 = vld [vmem:[#allocation3 + $0x32] sm:$0x3] }
 0xcd6   :  { %v3847_v19 = vadd.f32 %v3846_v16, %v3845_v39  ;;  %v3910_v25 = vadd.f32 %v3909_v32, %v3908_v48  ;;  %v3742_v32 = vld [vmem:[#allocation3 + $0x16] sm:$0x3] }
 0xcd8   :  { %v3770_v38 = vpop.permute.xlu1 %3769  ;;  %v3849_v54 = vadd.f32 %v3848_v33, %v3847_v19  ;;  %v3912_v59 = vadd.f32 %v3911_v11, %v3910_v25  ;;  %v3790_v56 = vpop.permute.xlu0 %3789  ;;  %v3885_v19 = vld [vmem:[#allocation3 + $0x36] sm:$0x3]  ;;  %v3744_v11 = vld [vmem:[#allocation3 + $0x1a] sm:$0x3] }
 0xcd9   :  { %v3831_v12 = vmul.f32 %v3770_v38, %v3735_v35  ;;  %v3894_v51 = vmul.f32 %v3878_v10, %v3770_v38  ;;  %v3800_v3 = vpop.permute.xlu2 %3799  ;;  %v3835_v62 = vmul.f32 %v3790_v56, %v3739_v49  ;;  %v3898_v26 = vmul.f32 %v3882_v57, %v3790_v56  ;;  %v3889_v49 = vld [vmem:[#allocation3 + $0x3e] sm:$0x3] }
 0xcda   :  { %v3837_v0 = vmul.f32 %v3800_v3, %v3741_v44  ;;  %v3900_v28 = vmul.f32 %v3884_v17, %v3800_v3 }
 0xcdb   :  { %v3850_v23 = vsel %vm504_vm10, %v3831_v12, 0.0  ;;  %v3913_v18 = vsel %vm504_vm10, %v3894_v51, 0.0  ;;  %v3858_v48 = vsel %vm504_vm10, %v3835_v62, 0.0  ;;  %v3921_v6 = vsel %vm504_vm10, %v3898_v26, 0.0 }
 0xcdc   :  { %v3851_v52 = vadd.f32 %v3850_v23, %v3849_v54  ;;  %v3914_v14 = vadd.f32 %v3913_v18, %v3912_v59  ;;  %v3862_v10 = vsel %vm504_vm10, %v3837_v0, 0.0  ;;  %v3925_v38 = vsel %vm504_vm10, %v3900_v28, 0.0 }
 0xcde   :  { %v3853_v42 = vadd.f32 %v3852_v53, %v3851_v52  ;;  %v3916_v21 = vadd.f32 %v3915_v43, %v3914_v14 }
 0xce0   :  { %v3780_v61 = vpop.permute.xlu1 %3779  ;;  %v3805_v7 = vpop.permute.xlu0 %3804 }
 0xce1   :  { %v3833_v9 = vmul.f32 %v3780_v61, %v3737_v46  ;;  %v3896_v60 = vmul.f32 %v3880_v2, %v3780_v61  ;;  %v3838_v45 = vmul.f32 %v3805_v7, %v3742_v32  ;;  %v3901_v12 = vmul.f32 %v3885_v19, %v3805_v7  ;;  %v3815_v51 = vpop.permute.xlu2 %3814  ;;  %v3745_v2 = vld [vmem:[#allocation3 + $0x1c] sm:$0x3]  ;;  %v4308_v7 = vld [vmem:[%s5963_s7] ss:$0 sm:$0xff] }
 0xce2   :  { %v3840_v23 = vmul.f32 %v3815_v51, %v3744_v11  ;;  %v3903_v18 = vmul.f32 %v3887_v34, %v3815_v51  ;;  %v3888_v61 = vld [vmem:[#allocation3 + $0x3c] sm:$0x3] }
 0xce3   :  { %v3854_v47 = vsel %vm504_vm10, %v3833_v9, 0.0  ;;  %v3917_v41 = vsel %vm504_vm10, %v3896_v60, 0.0  ;;  %v3864_v59 = vsel %vm504_vm10, %v3838_v45, 0.0  ;;  %v3927_v52 = vsel %vm504_vm10, %v3901_v12, 0.0 }
 0xce4   :  { %v3855_v5 = vadd.f32 %v3854_v47, %v3853_v42  ;;  %v3918_v29 = vadd.f32 %v3917_v41, %v3916_v21  ;;  %v3868_v9 = vsel %vm504_vm10, %v3840_v23, 0.0  ;;  %v3931_v60 = vsel %vm504_vm10, %v3903_v18, 0.0  ;;  %v3746_v41 = vld [vmem:[#allocation3 + $0x1e] sm:$0x3] }
 0xce6   :  { %v3857_v1 = vadd.f32 %v3856_v20, %v3855_v5  ;;  %v3920_v55 = vadd.f32 %v3919_v27, %v3918_v29 }
 0xce8   :  { %v3795_v39 = vpop.permute.xlu1 %3794  ;;  %v3859_v22 = vadd.f32 %v3858_v48, %v3857_v1  ;;  %v3922_v37 = vadd.f32 %v3921_v6, %v3920_v55  ;;  %v3820_v15 = vpop.permute.xlu0 %3819 }
 0xce9   :  { %v3836_v31 = vmul.f32 %v3795_v39, %v3740_v13  ;;  %v3899_v4 = vmul.f32 %v3883_v8, %v3795_v39  ;;  %v3841_v42 = vmul.f32 %v3820_v15, %v3745_v2  ;;  %v3904_v21 = vmul.f32 %v3888_v61, %v3820_v15 }
 0xceb   :  { %v3860_v36 = vsel %vm504_vm10, %v3836_v31, 0.0  ;;  %v3923_v16 = vsel %vm504_vm10, %v3899_v4, 0.0  ;;  %v3870_v5 = vsel %vm504_vm10, %v3841_v42, 0.0  ;;  %v3933_v29 = vsel %vm504_vm10, %v3904_v21, 0.0 }
 0xcec   :  { %v3861_v25 = vadd.f32 %v3860_v36, %v3859_v22  ;;  %v3924_v35 = vadd.f32 %v3923_v16, %v3922_v37 }
 0xcee   :  { %v3863_v40 = vadd.f32 %v3862_v10, %v3861_v25  ;;  %v3926_v33 = vadd.f32 %v3925_v38, %v3924_v35 }
 0xcf0   :  { %v3810_v54 = vpop.permute.xlu1 %3809  ;;  %v3865_v46 = vadd.f32 %v3864_v59, %v3863_v40  ;;  %v3928_v53 = vadd.f32 %v3927_v52, %v3926_v33 }
 0xcf1   :  { %v3839_v14 = vmul.f32 %v3810_v54, %v3743_v30  ;;  %v3902_v56 = vmul.f32 %v3886_v50, %v3810_v54 }
 0xcf3   :  { %v3866_v43 = vsel %vm504_vm10, %v3839_v14, 0.0  ;;  %v3929_v63 = vsel %vm504_vm10, %v3902_v56, 0.0 }
 0xcf4   :  { %v3867_v58 = vadd.f32 %v3866_v43, %v3865_v46  ;;  %v3930_v24 = vadd.f32 %v3929_v63, %v3928_v53 }
 0xcf6   :  { %v3869_v3 = vadd.f32 %v3868_v9, %v3867_v58  ;;  %v3932_v47 = vadd.f32 %v3931_v60, %v3930_v24 }
 0xcf8   :  { %v3825_v57 = vpop.permute.xlu1 %3824  ;;  %v3871_v62 = vadd.f32 %v3870_v5, %v3869_v3  ;;  %v3934_v26 = vadd.f32 %v3933_v29, %v3932_v47 }
 0xcf9   :  { %v3842_v20 = vmul.f32 %v3825_v57, %v3746_v41  ;;  %v3905_v27 = vmul.f32 %v3889_v49, %v3825_v57 }
 0xcfb   :  { %v3872_v1 = vsel %vm504_vm10, %v3842_v20, 0.0  ;;  %v3935_v55 = vsel %vm504_vm10, %v3905_v27, 0.0  ;;  %vm4009_vm10 = vcmask 58368  }
 0xcfc   :  { %v3873_v44 = vadd.f32 %v3872_v1, %v3871_v62  ;;  %v3936_v17 = vadd.f32 %v3935_v55, %v3934_v26 }
 0xcfe   :  { %v3937_v0 = vpack.c.bf16 %v3873_v44, %v3873_v44  ;;  %v3942_v28 = vpack.c.bf16 %v3936_v17, %v3936_v17 }
 0xd00   :  { %4264 = vmatmul.msk.bf16.vlgmr.msra.gmra.mxu0 %vm124_vm1, %v3942_v28  ;;  %4273 = vmatmul.msk.bf16.vlgmr.msra.gmra.mxu1 %vm124_vm1, %v3937_v0 }
 0xd7d   :  { %v3972_v13 = vpop.f32.mrf.mxu0  ;;  %v4000_v8 = vpop.f32.mrf.mxu1 }
 0xd7e   :  { %v4001_v39 = vadd.f32 %v4000_v8, %v3972_v13 }
 0xd80   :  { %v4008_v48 = vadd.f32 %v4308_v7, %v4001_v39 }
 0xd82   :  { %4010 = vst.msk [vmem:[#allocation8] sm:$0x3] %vm4009_vm10, %v4008_v48 }
 0xd83   :  { %4021 = dma.vmem_to_hbm [thread:$0]  %s4017_s17, 32, %s4019_s20, [#allocation7]  }
 0xd85   :  { %v3974_v6 = vpop.f32.mrf.mxu0  ;;  %v4002_v31 = vpop.f32.mrf.mxu1 }
 0xd86   :  { %4762 = dma.done.wait [#allocation7], 32  }
 0xd87   :  { %4763 = vsyncadd [#allocation7], 4294967264 }
 0xd88   :  { %4026 = vsyncpa [#allocation6], 1 }
 0xd89   :  { %4027 = vsyncpa [#allocation7], 1 }

</bundles_post_ra>
